<compile_context>
chip_gen: v7x
topology: tpu7x:2x2x1
jax: 0.10.0
libtpu: 0.0.40
codegen_flags: <defaults>
</compile_context>

<pallas_src>
import jax
import jax.numpy as jnp
from jax.experimental import pallas as pl
from jax.experimental.pallas import tpu as pltpu


def _round_up(x, m):
    return (x + m - 1) // m * m


def decoder_kernel(x_ref, w1, b1, w2, b2, w3, b3, w4, b4, out_ref):
    # Fused 4-layer MLP on one batch tile.  Matmul inputs are bf16, accumulation
    # is fp32 on the MXU; bias-add + ReLU run in fp32 on the VPU.
    h = jnp.dot(x_ref[...], w1[...], preferred_element_type=jnp.float32) + b1[...]
    h = jnp.maximum(h, 0.0).astype(jnp.bfloat16)
    h = jnp.dot(h, w2[...], preferred_element_type=jnp.float32) + b2[...]
    h = jnp.maximum(h, 0.0).astype(jnp.bfloat16)
    h = jnp.dot(h, w3[...], preferred_element_type=jnp.float32) + b3[...]
    h = jnp.maximum(h, 0.0).astype(jnp.bfloat16)
    y = jnp.dot(h, w4[...], preferred_element_type=jnp.float32) + b4[...]
    out_ref[...] = y.astype(out_ref.dtype)


def _vmem_limit_bytes():
    # Generation-aware scoped-VMEM budget: don't pin 128 MiB parts to the v7x number.
    try:
        cap = pltpu.get_tpu_info().vmem_capacity_bytes
    except Exception:
        cap = 64 * 1024 * 1024  # conservative (v7x physical VMEM per TC)
    if cap >= 128 * 1024 * 1024:
        return 64 * 1024 * 1024  # v5e / v6e
    return 48 * 1024 * 1024      # v7x: leave headroom under 64 MiB physical


def _choose_tile(batch, tile_b_max):
    # Pad batch only to the bf16 sublane pack (16 rows), then pick a tile so the
    # parallel grid axis has >=2 steps when the batch allows (v7x 2-TC sharding),
    # capped at tile_b_max to bound VMEM while amortizing per-step overhead.
    b16 = _round_up(max(batch, 1), 16)
    tile_b = min(tile_b_max, max(16, _round_up(pl.cdiv(b16, 2), 16)))
    b_pad = _round_up(b16, tile_b)
    return tile_b, b_pad


def decoder_forward(x, padded_params, out_dim, tile_b_max=512):
    """x: (batch, feature_dim) fp32.  padded_params: bf16 weights (in,out) + fp32 biases (1,out)."""
    (w1, b1), (w2, b2), (w3, b3), (w4, b4) = padded_params
    batch, feat = x.shape
    k_pad = w1.shape[0]          # padded feature_dim (multiple of 128)
    n_pad = w4.shape[1]          # padded output dim (multiple of 128)

    tile_b, b_pad = _choose_tile(batch, tile_b_max)

    # Single fused cast + zero-pad of the activation (no zeros+scatter HBM pass).
    x_p = jnp.pad(x.astype(jnp.bfloat16), ((0, b_pad - batch), (0, k_pad - feat)))

    grid = (b_pad // tile_b,)
    flat = (w1, b1, w2, b2, w3, b3, w4, b4)
    vmem_limit = _vmem_limit_bytes()

    def run(single_buffer_weights):
        def resident(shape):
            # Constant index_map -> block revisited every grid step, stays in VMEM.
            idx = lambda i: tuple(0 for _ in shape)
            if single_buffer_weights:
                # Never re-fetched, so a single buffer suffices (saves ~3.2 MiB VMEM).
                return pl.BlockSpec(shape, idx, pipeline_mode=pl.Buffered(1))
            return pl.BlockSpec(shape, idx)

        return pl.pallas_call(
            decoder_kernel,
            out_shape=jax.ShapeDtypeStruct((b_pad, n_pad), jnp.float32),
            grid=grid,
            in_specs=[pl.BlockSpec((tile_b, k_pad), lambda i: (i, 0))]  # x: tiled over batch
                     + [resident(a.shape) for a in flat],
            out_specs=pl.BlockSpec((tile_b, n_pad), lambda i: (i, 0)),
            compiler_params=pltpu.CompilerParams(
                dimension_semantics=("parallel",),   # megacore / 2-TC sharding
                vmem_limit_bytes=vmem_limit,
            ),
        )(x_p, *flat)

    try:
        out_p = run(True)
    except Exception:
        # Installed JAX may not accept pipeline_mode on BlockSpec; fall back to default
        # (double-buffered) resident weights — correctness is unchanged.
        out_p = run(False)

    return out_p[:batch, :out_dim]


def init_params(key, input_dim, feature_dim):
    # Deterministic init mimicking nn.Linear's default U(-1/sqrt(fan_in), +1/sqrt(fan_in)).
    # Weights stored already transposed: (in_dim, out_dim).
    layer_dims = [(feature_dim, 2000), (2000, 500), (500, 500), (500, input_dim)]
    params = []
    for din, dout in layer_dims:
        kw, kb, key = jax.random.split(key, 3)
        bound = 1.0 / float(din) ** 0.5
        w = jax.random.uniform(kw, (din, dout), jnp.float32, -bound, bound)
        b = jax.random.uniform(kb, (dout,), jnp.float32, -bound, bound)
        params.append((w, b))
    return params


def pad_params(params, feature_dim, input_dim):
    # Zero-pad each layer to (8,128)/MXU-friendly shapes and cast weights to bf16.
    k_pad = _round_up(feature_dim, 128)
    n_pad = _round_up(input_dim, 128)
    dims_pad = [(k_pad, 2048), (2048, 512), (512, 512), (512, n_pad)]
    padded = []
    for (w, b), (dpin, dpout) in zip(params, dims_pad):
        wp = jnp.zeros((dpin, dpout), jnp.float32).at[: w.shape[0], : w.shape[1]].set(w)
        bp = jnp.zeros((1, dpout), jnp.float32).at[0, : b.shape[0]].set(b)
        padded.append((wp.astype(jnp.bfloat16), bp))
    return padded


def reference_forward(x, padded_params, out_dim):
    # Pure-JAX reference matching the kernel numerics (bf16 matmul inputs, fp32 accum).
    k_pad = padded_params[0][0].shape[0]
    h = jnp.zeros((x.shape[0], k_pad), jnp.bfloat16).at[:, : x.shape[1]].set(
        x.astype(jnp.bfloat16))
    n = len(padded_params)
    for i, (w, b) in enumerate(padded_params):
        h = jnp.dot(h, w, preferred_element_type=jnp.float32) + b
        if i < n - 1:
            h = jnp.maximum(h, 0.0).astype(jnp.bfloat16)
    return h[:, :out_dim]


if __name__ == "__main__":
    key = jax.random.PRNGKey(0)
    batch, feature_dim, input_dim = 8, 32, 64

    kx, kp = jax.random.split(key)
    x = jax.random.normal(kx, (batch, feature_dim), dtype=jnp.float32)
    params = init_params(kp, input_dim, feature_dim)
    padded = pad_params(params, feature_dim, input_dim)

    out = decoder_forward(x, padded, input_dim)
    out = jax.block_until_ready(out)

    ref = reference_forward(x, padded, input_dim)
    assert out.shape == (batch, input_dim), out.shape
    assert jnp.allclose(out, ref, atol=2e-2, rtol=2e-2), "mismatch vs reference"

    print("KERNEL_OK")
</pallas_src>

<mosaic_0001>
module attributes {stable_mosaic.version = 11 : i64} {
  func.func @decoder_kernel(%arg0: i32, %arg1: memref<16x128xbf16, #tpu.memory_space<vmem>>, %arg2: memref<128x2048xbf16, #tpu.memory_space<vmem>>, %arg3: memref<1x2048xf32, #tpu.memory_space<vmem>>, %arg4: memref<2048x512xbf16, #tpu.memory_space<vmem>>, %arg5: memref<1x512xf32, #tpu.memory_space<vmem>>, %arg6: memref<512x512xbf16, #tpu.memory_space<vmem>>, %arg7: memref<1x512xf32, #tpu.memory_space<vmem>>, %arg8: memref<512x128xbf16, #tpu.memory_space<vmem>>, %arg9: memref<1x128xf32, #tpu.memory_space<vmem>>, %arg10: memref<16x128xf32, #tpu.memory_space<vmem>>) attributes {dimension_semantics = [#tpu.dimension_semantics<parallel>], iteration_bounds = array<i64: 1>, scalar_prefetch = 0 : i64, scratch_operands = 0 : i64, tpu.core_type = #tpu.core_type<tc>, window_params = [{transform_indices = @transform_0, window_bounds = array<i64: 16, 128>}, {pipeline_mode = #tpu.pipeline_mode<synchronous>, transform_indices = @transform_1, window_bounds = array<i64: 128, 2048>}, {pipeline_mode = #tpu.pipeline_mode<synchronous>, transform_indices = @transform_2, window_bounds = array<i64: 1, 2048>}, {pipeline_mode = #tpu.pipeline_mode<synchronous>, transform_indices = @transform_3, window_bounds = array<i64: 2048, 512>}, {pipeline_mode = #tpu.pipeline_mode<synchronous>, transform_indices = @transform_4, window_bounds = array<i64: 1, 512>}, {pipeline_mode = #tpu.pipeline_mode<synchronous>, transform_indices = @transform_5, window_bounds = array<i64: 512, 512>}, {pipeline_mode = #tpu.pipeline_mode<synchronous>, transform_indices = @transform_6, window_bounds = array<i64: 1, 512>}, {pipeline_mode = #tpu.pipeline_mode<synchronous>, transform_indices = @transform_7, window_bounds = array<i64: 512, 128>}, {pipeline_mode = #tpu.pipeline_mode<synchronous>, transform_indices = @transform_8, window_bounds = array<i64: 1, 128>}, {transform_indices = @transform_9, window_bounds = array<i64: 16, 128>}]} {
    %c0 = arith.constant 0 : index
    %c0_0 = arith.constant 0 : index
    %0 = vector.load %arg1[%c0, %c0_0] : memref<16x128xbf16, #tpu.memory_space<vmem>>, vector<16x128xbf16>
    %c0_1 = arith.constant 0 : index
    %c0_2 = arith.constant 0 : index
    %1 = vector.load %arg2[%c0_1, %c0_2] : memref<128x2048xbf16, #tpu.memory_space<vmem>>, vector<128x2048xbf16>
    %cst = arith.constant dense<0.000000e+00> : vector<16x2048xf32>
    %2 = tpu.matmul %0, %1, %cst {dimension_numbers = #tpu.dot_dimension_numbers<[1], [0], [0], [1], [0, 0, 1, 1], [], []>} : vector<16x128xbf16>, vector<128x2048xbf16>, vector<16x2048xf32> -> vector<16x2048xf32>
    %c0_3 = arith.constant 0 : index
    %c0_4 = arith.constant 0 : index
    %3 = vector.load %arg3[%c0_3, %c0_4] : memref<1x2048xf32, #tpu.memory_space<vmem>>, vector<1x2048xf32>
    %4 = vector.broadcast %3 : vector<1x2048xf32> to vector<16x2048xf32>
    %5 = arith.addf %2, %4 : vector<16x2048xf32>
    %cst_5 = arith.constant 0.000000e+00 : f32
    %6 = vector.broadcast %cst_5 : f32 to vector<16x2048xf32>
    %7 = arith.maximumf %5, %6 : vector<16x2048xf32>
    %8 = arith.truncf %7 : vector<16x2048xf32> to vector<16x2048xbf16>
    %c0_6 = arith.constant 0 : index
    %c0_7 = arith.constant 0 : index
    %9 = vector.load %arg4[%c0_6, %c0_7] : memref<2048x512xbf16, #tpu.memory_space<vmem>>, vector<2048x512xbf16>
    %cst_8 = arith.constant dense<0.000000e+00> : vector<16x512xf32>
    %10 = tpu.matmul %8, %9, %cst_8 {dimension_numbers = #tpu.dot_dimension_numbers<[1], [0], [0], [1], [0, 0, 1, 1], [], []>} : vector<16x2048xbf16>, vector<2048x512xbf16>, vector<16x512xf32> -> vector<16x512xf32>
    %c0_9 = arith.constant 0 : index
    %c0_10 = arith.constant 0 : index
    %11 = vector.load %arg5[%c0_9, %c0_10] : memref<1x512xf32, #tpu.memory_space<vmem>>, vector<1x512xf32>
    %12 = vector.broadcast %11 : vector<1x512xf32> to vector<16x512xf32>
    %13 = arith.addf %10, %12 : vector<16x512xf32>
    %cst_11 = arith.constant 0.000000e+00 : f32
    %14 = vector.broadcast %cst_11 : f32 to vector<16x512xf32>
    %15 = arith.maximumf %13, %14 : vector<16x512xf32>
    %16 = arith.truncf %15 : vector<16x512xf32> to vector<16x512xbf16>
    %c0_12 = arith.constant 0 : index
    %c0_13 = arith.constant 0 : index
    %17 = vector.load %arg6[%c0_12, %c0_13] : memref<512x512xbf16, #tpu.memory_space<vmem>>, vector<512x512xbf16>
    %cst_14 = arith.constant dense<0.000000e+00> : vector<16x512xf32>
    %18 = tpu.matmul %16, %17, %cst_14 {dimension_numbers = #tpu.dot_dimension_numbers<[1], [0], [0], [1], [0, 0, 1, 1], [], []>} : vector<16x512xbf16>, vector<512x512xbf16>, vector<16x512xf32> -> vector<16x512xf32>
    %c0_15 = arith.constant 0 : index
    %c0_16 = arith.constant 0 : index
    %19 = vector.load %arg7[%c0_15, %c0_16] : memref<1x512xf32, #tpu.memory_space<vmem>>, vector<1x512xf32>
    %20 = vector.broadcast %19 : vector<1x512xf32> to vector<16x512xf32>
    %21 = arith.addf %18, %20 : vector<16x512xf32>
    %cst_17 = arith.constant 0.000000e+00 : f32
    %22 = vector.broadcast %cst_17 : f32 to vector<16x512xf32>
    %23 = arith.maximumf %21, %22 : vector<16x512xf32>
    %24 = arith.truncf %23 : vector<16x512xf32> to vector<16x512xbf16>
    %c0_18 = arith.constant 0 : index
    %c0_19 = arith.constant 0 : index
    %25 = vector.load %arg8[%c0_18, %c0_19] : memref<512x128xbf16, #tpu.memory_space<vmem>>, vector<512x128xbf16>
    %cst_20 = arith.constant dense<0.000000e+00> : vector<16x128xf32>
    %26 = tpu.matmul %24, %25, %cst_20 {dimension_numbers = #tpu.dot_dimension_numbers<[1], [0], [0], [1], [0, 0, 1, 1], [], []>} : vector<16x512xbf16>, vector<512x128xbf16>, vector<16x128xf32> -> vector<16x128xf32>
    %c0_21 = arith.constant 0 : index
    %c0_22 = arith.constant 0 : index
    %27 = vector.load %arg9[%c0_21, %c0_22] : memref<1x128xf32, #tpu.memory_space<vmem>>, vector<1x128xf32>
    %28 = vector.broadcast %27 : vector<1x128xf32> to vector<16x128xf32>
    %29 = arith.addf %26, %28 : vector<16x128xf32>
    %c0_23 = arith.constant 0 : index
    %c0_24 = arith.constant 0 : index
    %30 = vector.load %arg10[%c0_23, %c0_24] : memref<16x128xf32, #tpu.memory_space<vmem>>, vector<16x128xf32>
    tpu.vector_store %arg10[%c0_23, %c0_24], %29 {strides = array<i32>} : memref<16x128xf32, #tpu.memory_space<vmem>>, vector<16x128xf32>,
    return
  }
  func.func @transform_0(%arg0: i32) -> (i32, i32) {
    %c0_i32 = arith.constant 0 : i32
    %c0_i32_0 = arith.constant 0 : i32
    return %arg0, %c0_i32 : i32, i32
  }
  func.func @transform_1(%arg0: i32) -> (i32, i32) {
    %c0_i32 = arith.constant 0 : i32
    %c0_i32_0 = arith.constant 0 : i32
    %c0_i32_1 = arith.constant 0 : i32
    return %c0_i32, %c0_i32_0 : i32, i32
  }
  func.func @transform_2(%arg0: i32) -> (i32, i32) {
    %c0_i32 = arith.constant 0 : i32
    %c0_i32_0 = arith.constant 0 : i32
    %c0_i32_1 = arith.constant 0 : i32
    return %c0_i32, %c0_i32_0 : i32, i32
  }
  func.func @transform_3(%arg0: i32) -> (i32, i32) {
    %c0_i32 = arith.constant 0 : i32
    %c0_i32_0 = arith.constant 0 : i32
    %c0_i32_1 = arith.constant 0 : i32
    return %c0_i32, %c0_i32_0 : i32, i32
  }
  func.func @transform_4(%arg0: i32) -> (i32, i32) {
    %c0_i32 = arith.constant 0 : i32
    %c0_i32_0 = arith.constant 0 : i32
    %c0_i32_1 = arith.constant 0 : i32
    return %c0_i32, %c0_i32_0 : i32, i32
  }
  func.func @transform_5(%arg0: i32) -> (i32, i32) {
    %c0_i32 = arith.constant 0 : i32
    %c0_i32_0 = arith.constant 0 : i32
    %c0_i32_1 = arith.constant 0 : i32
    return %c0_i32, %c0_i32_0 : i32, i32
  }
  func.func @transform_6(%arg0: i32) -> (i32, i32) {
    %c0_i32 = arith.constant 0 : i32
    %c0_i32_0 = arith.constant 0 : i32
    %c0_i32_1 = arith.constant 0 : i32
    return %c0_i32, %c0_i32_0 : i32, i32
  }
  func.func @transform_7(%arg0: i32) -> (i32, i32) {
    %c0_i32 = arith.constant 0 : i32
    %c0_i32_0 = arith.constant 0 : i32
    %c0_i32_1 = arith.constant 0 : i32
    return %c0_i32, %c0_i32_0 : i32, i32
  }
  func.func @transform_8(%arg0: i32) -> (i32, i32) {
    %c0_i32 = arith.constant 0 : i32
    %c0_i32_0 = arith.constant 0 : i32
    %c0_i32_1 = arith.constant 0 : i32
    return %c0_i32, %c0_i32_0 : i32, i32
  }
  func.func @transform_9(%arg0: i32) -> (i32, i32) {
    %c0_i32 = arith.constant 0 : i32
    %c0_i32_0 = arith.constant 0 : i32
    return %arg0, %c0_i32 : i32, i32
  }
}

module attributes {stable_mosaic.version = 11 : i64} {
  func.func @decoder_kernel(%arg0: i32, %arg1: memref<16x128xbf16, #tpu.memory_space<vmem>>, %arg2: memref<128x2048xbf16, #tpu.memory_space<vmem>>, %arg3: memref<1x2048xf32, #tpu.memory_space<vmem>>, %arg4: memref<2048x512xbf16, #tpu.memory_space<vmem>>, %arg5: memref<1x512xf32, #tpu.memory_space<vmem>>, %arg6: memref<512x512xbf16, #tpu.memory_space<vmem>>, %arg7: memref<1x512xf32, #tpu.memory_space<vmem>>, %arg8: memref<512x128xbf16, #tpu.memory_space<vmem>>, %arg9: memref<1x128xf32, #tpu.memory_space<vmem>>, %arg10: memref<16x128xf32, #tpu.memory_space<vmem>>) attributes {dimension_semantics = [#tpu.dimension_semantics<parallel>], iteration_bounds = array<i64: 1>, scalar_prefetch = 0 : i64, scratch_operands = 0 : i64, tpu.core_type = #tpu.core_type<tc>, window_params = [{transform_indices = @transform_0, window_bounds = array<i64: 16, 128>}, {pipeline_mode = #tpu.pipeline_mode<synchronous>, transform_indices = @transform_1, window_bounds = array<i64: 128, 2048>}, {pipeline_mode = #tpu.pipeline_mode<synchronous>, transform_indices = @transform_2, window_bounds = array<i64: 1, 2048>}, {pipeline_mode = #tpu.pipeline_mode<synchronous>, transform_indices = @transform_3, window_bounds = array<i64: 2048, 512>}, {pipeline_mode = #tpu.pipeline_mode<synchronous>, transform_indices = @transform_4, window_bounds = array<i64: 1, 512>}, {pipeline_mode = #tpu.pipeline_mode<synchronous>, transform_indices = @transform_5, window_bounds = array<i64: 512, 512>}, {pipeline_mode = #tpu.pipeline_mode<synchronous>, transform_indices = @transform_6, window_bounds = array<i64: 1, 512>}, {pipeline_mode = #tpu.pipeline_mode<synchronous>, transform_indices = @transform_7, window_bounds = array<i64: 512, 128>}, {pipeline_mode = #tpu.pipeline_mode<synchronous>, transform_indices = @transform_8, window_bounds = array<i64: 1, 128>}, {transform_indices = @transform_9, window_bounds = array<i64: 16, 128>}]} {
    %c0 = arith.constant 0 : index
    %c0_0 = arith.constant 0 : index
    %0 = vector.load %arg1[%c0, %c0_0] : memref<16x128xbf16, #tpu.memory_space<vmem>>, vector<16x128xbf16>
    %c0_1 = arith.constant 0 : index
    %c0_2 = arith.constant 0 : index
    %1 = vector.load %arg2[%c0_1, %c0_2] : memref<128x2048xbf16, #tpu.memory_space<vmem>>, vector<128x2048xbf16>
    %cst = arith.constant dense<0.000000e+00> : vector<16x2048xf32>
    %2 = tpu.matmul %0, %1, %cst {dimension_numbers = #tpu.dot_dimension_numbers<[1], [0], [0], [1], [0, 0, 1, 1], [], []>} : vector<16x128xbf16>, vector<128x2048xbf16>, vector<16x2048xf32> -> vector<16x2048xf32>
    %c0_3 = arith.constant 0 : index
    %c0_4 = arith.constant 0 : index
    %3 = vector.load %arg3[%c0_3, %c0_4] : memref<1x2048xf32, #tpu.memory_space<vmem>>, vector<1x2048xf32>
    %4 = vector.broadcast %3 : vector<1x2048xf32> to vector<16x2048xf32>
    %5 = arith.addf %2, %4 : vector<16x2048xf32>
    %cst_5 = arith.constant 0.000000e+00 : f32
    %6 = vector.broadcast %cst_5 : f32 to vector<16x2048xf32>
    %7 = arith.maximumf %5, %6 : vector<16x2048xf32>
    %8 = arith.truncf %7 : vector<16x2048xf32> to vector<16x2048xbf16>
    %c0_6 = arith.constant 0 : index
    %c0_7 = arith.constant 0 : index
    %9 = vector.load %arg4[%c0_6, %c0_7] : memref<2048x512xbf16, #tpu.memory_space<vmem>>, vector<2048x512xbf16>
    %cst_8 = arith.constant dense<0.000000e+00> : vector<16x512xf32>
    %10 = tpu.matmul %8, %9, %cst_8 {dimension_numbers = #tpu.dot_dimension_numbers<[1], [0], [0], [1], [0, 0, 1, 1], [], []>} : vector<16x2048xbf16>, vector<2048x512xbf16>, vector<16x512xf32> -> vector<16x512xf32>
    %c0_9 = arith.constant 0 : index
    %c0_10 = arith.constant 0 : index
    %11 = vector.load %arg5[%c0_9, %c0_10] : memref<1x512xf32, #tpu.memory_space<vmem>>, vector<1x512xf32>
    %12 = vector.broadcast %11 : vector<1x512xf32> to vector<16x512xf32>
    %13 = arith.addf %10, %12 : vector<16x512xf32>
    %cst_11 = arith.constant 0.000000e+00 : f32
    %14 = vector.broadcast %cst_11 : f32 to vector<16x512xf32>
    %15 = arith.maximumf %13, %14 : vector<16x512xf32>
    %16 = arith.truncf %15 : vector<16x512xf32> to vector<16x512xbf16>
    %c0_12 = arith.constant 0 : index
    %c0_13 = arith.constant 0 : index
    %17 = vector.load %arg6[%c0_12, %c0_13] : memref<512x512xbf16, #tpu.memory_space<vmem>>, vector<512x512xbf16>
    %cst_14 = arith.constant dense<0.000000e+00> : vector<16x512xf32>
    %18 = tpu.matmul %16, %17, %cst_14 {dimension_numbers = #tpu.dot_dimension_numbers<[1], [0], [0], [1], [0, 0, 1, 1], [], []>} : vector<16x512xbf16>, vector<512x512xbf16>, vector<16x512xf32> -> vector<16x512xf32>
    %c0_15 = arith.constant 0 : index
    %c0_16 = arith.constant 0 : index
    %19 = vector.load %arg7[%c0_15, %c0_16] : memref<1x512xf32, #tpu.memory_space<vmem>>, vector<1x512xf32>
    %20 = vector.broadcast %19 : vector<1x512xf32> to vector<16x512xf32>
    %21 = arith.addf %18, %20 : vector<16x512xf32>
    %cst_17 = arith.constant 0.000000e+00 : f32
    %22 = vector.broadcast %cst_17 : f32 to vector<16x512xf32>
    %23 = arith.maximumf %21, %22 : vector<16x512xf32>
    %24 = arith.truncf %23 : vector<16x512xf32> to vector<16x512xbf16>
    %c0_18 = arith.constant 0 : index
    %c0_19 = arith.constant 0 : index
    %25 = vector.load %arg8[%c0_18, %c0_19] : memref<512x128xbf16, #tpu.memory_space<vmem>>, vector<512x128xbf16>
    %cst_20 = arith.constant dense<0.000000e+00> : vector<16x128xf32>
    %26 = tpu.matmul %24, %25, %cst_20 {dimension_numbers = #tpu.dot_dimension_numbers<[1], [0], [0], [1], [0, 0, 1, 1], [], []>} : vector<16x512xbf16>, vector<512x128xbf16>, vector<16x128xf32> -> vector<16x128xf32>
    %c0_21 = arith.constant 0 : index
    %c0_22 = arith.constant 0 : index
    %27 = vector.load %arg9[%c0_21, %c0_22] : memref<1x128xf32, #tpu.memory_space<vmem>>, vector<1x128xf32>
    %28 = vector.broadcast %27 : vector<1x128xf32> to vector<16x128xf32>
    %29 = arith.addf %26, %28 : vector<16x128xf32>
    %c0_23 = arith.constant 0 : index
    %c0_24 = arith.constant 0 : index
    %30 = vector.load %arg10[%c0_23, %c0_24] : memref<16x128xf32, #tpu.memory_space<vmem>>, vector<16x128xf32>
    tpu.vector_store %arg10[%c0_23, %c0_24], %29 {strides = array<i32>} : memref<16x128xf32, #tpu.memory_space<vmem>>, vector<16x128xf32>,
    return
  }
  func.func @transform_0(%arg0: i32) -> (i32, i32) {
    %c0_i32 = arith.constant 0 : i32
    %c0_i32_0 = arith.constant 0 : i32
    return %arg0, %c0_i32 : i32, i32
  }
  func.func @transform_1(%arg0: i32) -> (i32, i32) {
    %c0_i32 = arith.constant 0 : i32
    %c0_i32_0 = arith.constant 0 : i32
    %c0_i32_1 = arith.constant 0 : i32
    return %c0_i32, %c0_i32_0 : i32, i32
  }
  func.func @transform_2(%arg0: i32) -> (i32, i32) {
    %c0_i32 = arith.constant 0 : i32
    %c0_i32_0 = arith.constant 0 : i32
    %c0_i32_1 = arith.constant 0 : i32
    return %c0_i32, %c0_i32_0 : i32, i32
  }
  func.func @transform_3(%arg0: i32) -> (i32, i32) {
    %c0_i32 = arith.constant 0 : i32
    %c0_i32_0 = arith.constant 0 : i32
    %c0_i32_1 = arith.constant 0 : i32
    return %c0_i32, %c0_i32_0 : i32, i32
  }
  func.func @transform_4(%arg0: i32) -> (i32, i32) {
    %c0_i32 = arith.constant 0 : i32
    %c0_i32_0 = arith.constant 0 : i32
    %c0_i32_1 = arith.constant 0 : i32
    return %c0_i32, %c0_i32_0 : i32, i32
  }
  func.func @transform_5(%arg0: i32) -> (i32, i32) {
    %c0_i32 = arith.constant 0 : i32
    %c0_i32_0 = arith.constant 0 : i32
    %c0_i32_1 = arith.constant 0 : i32
    return %c0_i32, %c0_i32_0 : i32, i32
  }
  func.func @transform_6(%arg0: i32) -> (i32, i32) {
    %c0_i32 = arith.constant 0 : i32
    %c0_i32_0 = arith.constant 0 : i32
    %c0_i32_1 = arith.constant 0 : i32
    return %c0_i32, %c0_i32_0 : i32, i32
  }
  func.func @transform_7(%arg0: i32) -> (i32, i32) {
    %c0_i32 = arith.constant 0 : i32
    %c0_i32_0 = arith.constant 0 : i32
    %c0_i32_1 = arith.constant 0 : i32
    return %c0_i32, %c0_i32_0 : i32, i32
  }
  func.func @transform_8(%arg0: i32) -> (i32, i32) {
    %c0_i32 = arith.constant 0 : i32
    %c0_i32_0 = arith.constant 0 : i32
    %c0_i32_1 = arith.constant 0 : i32
    return %c0_i32, %c0_i32_0 : i32, i32
  }
  func.func @transform_9(%arg0: i32) -> (i32, i32) {
    %c0_i32 = arith.constant 0 : i32
    %c0_i32_0 = arith.constant 0 : i32
    return %arg0, %c0_i32 : i32, i32
  }
}

</mosaic_0001>

<bundles_post_ra>
// kernel: tpu_custom_call.1
= control target key start
LH: loop header
LB: loop body
LE: loop exit
PB: predicated region body
PF: predicated region fallthrough
CT: control target
= control target key end

     0   :  { %14 = vsyncpa [#allocation3], 0  ;;  %s9042_s0 = inlined_call_operand.hbm [shape: bf16[16,128], index: 0, kind: input, shape index: {}]   ;;  %s9043_s1 = inlined_call_operand.hbm [shape: bf16[128,2048], index: 1, kind: input, shape index: {}]   ;;  %s9044_s2 = inlined_call_operand.hbm [shape: f32[1,2048], index: 2, kind: input, shape index: {}]   ;;  %s9045_s3 = inlined_call_operand.hbm [shape: bf16[2048,512], index: 3, kind: input, shape index: {}]   ;;  %s9046_s4 = inlined_call_operand.hbm [shape: f32[1,512], index: 4, kind: input, shape index: {}]   ;;  %s9047_s5 = inlined_call_operand.hbm [shape: bf16[512,512], index: 5, kind: input, shape index: {}]   ;;  %s9048_s6 = inlined_call_operand.hbm [shape: f32[1,512], index: 6, kind: input, shape index: {}]   ;;  %s9049_s7 = inlined_call_operand.hbm [shape: bf16[512,128], index: 7, kind: input, shape index: {}]   ;;  %s9050_s8 = inlined_call_operand.hbm [shape: f32[1,128], index: 8, kind: input, shape index: {}]   ;;  %s9051_s9 = inlined_call_operand.hbm [shape: f32[16,128], index: 9, kind: output, shape index: {}]  }
   0x1   :  { %15 = vsyncpa [#allocation6], 0 }
   0x2   :  { %16 = vsyncpa [#allocation9], 0 }
   0x3   :  { %17 = vsyncpa [#allocation12], 0 }
   0x4   :  { %18 = vsyncpa [#allocation15], 0 }
   0x5   :  { %19 = vsyncpa [#allocation4], 0  ;;  %s8706_s30 = smov [#allocation5]   ;;  %s8474_s13 = scalar_lea.hbm %s9043_s1, 16384 }
   0x6   :  { %s37_s10 = sshll.u32 %s8706_s30, 4  ;;  %p8475_p0 = scmp.ne.s32.totalorder %s9043_s1, %s8474_s13  ;;  %s38_s10 = int_to_ptr.vmem [resolvable:$true] %s37_s10 }
   0x7   :  { %p8478_p1 = scmp.lt.u32.totalorder %s8474_s13, %s9043_s1 }
   0x9   :  { %p8480_p2 = pnand %p8478_p1, %p8475_p0 }
   0xb   :  { %8483 = shalt.err (!%p8480_p2)
}
   0xc   :  { %s8484_s18 = scalar_lea.vmem %s38_s10, 16384  ;;  %p8489_p4 = scmp.lt.s32.totalorder %s38_s10, %s38_s10 }
   0xd   :  { %p8485_p3 = scmp.ne.s32.totalorder %s38_s10, %s8484_s18  ;;  %p8490_p5 = scmp.lt.s32.totalorder %s8484_s18, %s8484_s18 }
   0xf   :  { %p8491_p6 = por %p8490_p5, %p8489_p4 }
  0x11   :  { %p8492_p7 = pnand %p8491_p6, %p8485_p3 }
  0x13   :  { %8495 = shalt.err (!%p8492_p7)
}
  0x14   :  { %s8707_s19 = smov 1024   ;;  %s8708_s20 = smov 64  }
  0x15   :  { %43 = dma.hbm_to_vmem [thread:$0]  %s9043_s1, 16384, %s38_s10, [#allocation6], %s8707_s19, %s8707_s19, %s8708_s20  }
  0x16   :  { %s8709_s23 = smov [#allocation8]   ;;  %s8496_s27 = scalar_lea.hbm %s9045_s3, 65536 }
  0x17   :  { %s59_s24 = sshll.u32 %s8709_s23, 4  ;;  %p8497_p8 = scmp.ne.s32.totalorder %s9045_s3, %s8496_s27  ;;  %s60_s24 = int_to_ptr.vmem [resolvable:$true] %s59_s24 }
  0x18   :  { %p8500_p9 = scmp.lt.u32.totalorder %s8496_s27, %s9045_s3 }
  0x1a   :  { %p8502_p10 = pnand %p8500_p9, %p8497_p8 }
  0x1c   :  { %8505 = shalt.err (!%p8502_p10)
}
  0x1d   :  { %s8506_s12 = scalar_lea.vmem %s60_s24, 65536  ;;  %p8511_p12 = scmp.lt.s32.totalorder %s60_s24, %s60_s24 }
  0x1e   :  { %p8507_p11 = scmp.ne.s32.totalorder %s60_s24, %s8506_s12  ;;  %p8512_p13 = scmp.lt.s32.totalorder %s8506_s12, %s8506_s12 }
  0x20   :  { %p8513_p0 = por %p8512_p13, %p8511_p12 }
  0x22   :  { %p8514_p1 = pnand %p8513_p0, %p8507_p11 }
  0x24   :  { %8517 = shalt.err (!%p8514_p1)
}
  0x25   :  { %s8710_s1 = smov 256   ;;  %s8711_s10 = smov 16  }
  0x26   :  { %65 = dma.hbm_to_vmem [thread:$0]  %s9045_s3, 65536, %s60_s24, [#allocation9], %s8710_s1, %s8710_s1, %s8711_s10  }
  0x27   :  { %s8712_s15 = smov [#allocation11]   ;;  %s8713_s17 = smov [#allocation14]  }
  0x28   :  { %s81_s16 = sshll.u32 %s8712_s15, 4  ;;  %s103_s18 = sshll.u32 %s8713_s17, 4  ;;  %s82_s16 = int_to_ptr.vmem [resolvable:$true] %s81_s16  ;;  %s104_s18 = int_to_ptr.vmem [resolvable:$true] %s103_s18 }
  0x29   :  { %s8518_s22 = scalar_lea.hbm %s9047_s5, 16384 }
  0x2a   :  { %p8519_p2 = scmp.ne.s32.totalorder %s9047_s5, %s8518_s22  ;;  %p8522_p3 = scmp.lt.u32.totalorder %s8518_s22, %s9047_s5 }
  0x2c   :  { %p8524_p4 = pnand %p8522_p3, %p8519_p2 }
  0x2e   :  { %8527 = shalt.err (!%p8524_p4)
}
  0x2f   :  { %s8528_s3 = scalar_lea.vmem %s82_s16, 16384  ;;  %p8533_p6 = scmp.lt.s32.totalorder %s82_s16, %s82_s16 }
  0x30   :  { %p8529_p5 = scmp.ne.s32.totalorder %s82_s16, %s8528_s3  ;;  %p8534_p7 = scmp.lt.s32.totalorder %s8528_s3, %s8528_s3 }
  0x32   :  { %p8535_p8 = por %p8534_p7, %p8533_p6 }
  0x34   :  { %p8536_p9 = pnand %p8535_p8, %p8529_p5 }
  0x36   :  { %8539 = shalt.err (!%p8536_p9)
}
  0x37   :  { %87 = dma.hbm_to_vmem [thread:$0]  %s9047_s5, 16384, %s82_s16, [#allocation12], %s8710_s1, %s8710_s1, %s8711_s10  }
  0x38   :  { %s8540_s11 = scalar_lea.hbm %s9049_s7, 4096 }
  0x39   :  { %p8541_p10 = scmp.ne.s32.totalorder %s9049_s7, %s8540_s11  ;;  %p8544_p11 = scmp.lt.u32.totalorder %s8540_s11, %s9049_s7 }
  0x3b   :  { %p8546_p12 = pnand %p8544_p11, %p8541_p10 }
  0x3d   :  { %8549 = shalt.err (!%p8546_p12)
}
  0x3e   :  { %s8550_s17 = scalar_lea.vmem %s104_s18, 4096  ;;  %p8555_p0 = scmp.lt.s32.totalorder %s104_s18, %s104_s18 }
  0x3f   :  { %p8551_p13 = scmp.ne.s32.totalorder %s104_s18, %s8550_s17  ;;  %p8556_p1 = scmp.lt.s32.totalorder %s8550_s17, %s8550_s17 }
  0x41   :  { %p8557_p2 = por %p8556_p1, %p8555_p0 }
  0x43   :  { %p8558_p3 = pnand %p8557_p2, %p8551_p13 }
  0x45   :  { %8561 = shalt.err (!%p8558_p3)
}
  0x46   :  { %s8714_s5 = smov 4   ;;  %s8715_s16 = smov [#allocation2]  }
  0x47   :  { %109 = dma.hbm_to_vmem [thread:$0]  %s9049_s7, 4096, %s104_s18, [#allocation15], %s8708_s20, %s8708_s20, %s8714_s5  }
  0x48   :  { %s25_s19 = sshll.u32 %s8715_s16, 4  ;;  %s8716_s21 = smov [#allocation7]   ;;  %s26_s19 = int_to_ptr.vmem [resolvable:$true] %s25_s19 }
  0x49   :  { %s50_s22 = sshll.u32 %s8716_s21, 4  ;;  %s8562_s26 = scalar_lea.hbm %s9042_s0, 128  ;;  %s51_s22 = int_to_ptr.vmem [resolvable:$true] %s50_s22 }
  0x4a   :  { %p8563_p4 = scmp.ne.s32.totalorder %s9042_s0, %s8562_s26  ;;  %p8566_p5 = scmp.lt.u32.totalorder %s8562_s26, %s9042_s0 }
  0x4c   :  { %p8568_p6 = pnand %p8566_p5, %p8563_p4 }
  0x4e   :  { %8571 = shalt.err (!%p8568_p6)
}
  0x4f   :  { %s8572_s7 = scalar_lea.vmem %s26_s19, 128  ;;  %p8577_p8 = scmp.lt.s32.totalorder %s26_s19, %s26_s19 }
  0x50   :  { %p8573_p7 = scmp.ne.s32.totalorder %s26_s19, %s8572_s7  ;;  %p8578_p9 = scmp.lt.s32.totalorder %s8572_s7, %s8572_s7 }
  0x52   :  { %p8579_p10 = por %p8578_p9, %p8577_p8 }
  0x54   :  { %p8580_p11 = pnand %p8579_p10, %p8573_p7 }
  0x56   :  { %8583 = shalt.err (!%p8580_p11)
}
  0x57   :  { %31 = dma.hbm_to_vmem [thread:$0]  %s9042_s0, 128, %s26_s19, [#allocation3], %s8708_s20, %s8708_s20, %s8714_s5  }
  0x58   :  { %s8584_s12 = scalar_lea.hbm %s9044_s2, 256 }
  0x59   :  { %p8585_p12 = scmp.ne.s32.totalorder %s9044_s2, %s8584_s12  ;;  %p8588_p13 = scmp.lt.u32.totalorder %s8584_s12, %s9044_s2 }
  0x5b   :  { %p8590_p0 = pnand %p8588_p13, %p8585_p12 }
  0x5d   :  { %8593 = shalt.err (!%p8590_p0)
}
  0x5e   :  { %s8594_s1 = scalar_lea.vmem %s51_s22, 256  ;;  %p8599_p2 = scmp.lt.s32.totalorder %s51_s22, %s51_s22 }
  0x5f   :  { %p8595_p1 = scmp.ne.s32.totalorder %s51_s22, %s8594_s1  ;;  %p8600_p3 = scmp.lt.s32.totalorder %s8594_s1, %s8594_s1 }
  0x61   :  { %p8601_p4 = por %p8600_p3, %p8599_p2 }
  0x63   :  { %p8602_p5 = pnand %p8601_p4, %p8595_p1 }
  0x65   :  { %8605 = shalt.err (!%p8602_p5)
}
  0x66   :  { %53 = dma.hbm_to_vmem [thread:$0]  %s9044_s2, 256, %s51_s22, [#allocation6]  }
  0x67   :  { %s8717_s5 = smov [#allocation10]   ;;  %s8718_s16 = smov [#allocation13]  }
  0x68   :  { %s72_s10 = sshll.u32 %s8717_s5, 4  ;;  %s94_s19 = sshll.u32 %s8718_s16, 4  ;;  %s73_s10 = int_to_ptr.vmem [resolvable:$true] %s72_s10  ;;  %s95_s19 = int_to_ptr.vmem [resolvable:$true] %s94_s19 }
  0x69   :  { %s8606_s25 = scalar_lea.hbm %s9046_s4, 64 }
  0x6a   :  { %p8607_p6 = scmp.ne.s32.totalorder %s9046_s4, %s8606_s25  ;;  %p8610_p7 = scmp.lt.u32.totalorder %s8606_s25, %s9046_s4 }
  0x6c   :  { %p8612_p8 = pnand %p8610_p7, %p8607_p6 }
  0x6e   :  { %8615 = shalt.err (!%p8612_p8)
}
  0x6f   :  { %s8616_s2 = scalar_lea.vmem %s73_s10, 64  ;;  %p8621_p10 = scmp.lt.s32.totalorder %s73_s10, %s73_s10 }
  0x70   :  { %p8617_p9 = scmp.ne.s32.totalorder %s73_s10, %s8616_s2  ;;  %p8622_p11 = scmp.lt.s32.totalorder %s8616_s2, %s8616_s2 }
  0x72   :  { %p8623_p12 = por %p8622_p11, %p8621_p10 }
  0x74   :  { %p8624_p13 = pnand %p8623_p12, %p8617_p9 }
  0x76   :  { %8627 = shalt.err (!%p8624_p13)
}
  0x77   :  { %75 = dma.hbm_to_vmem [thread:$0]  %s9046_s4, 64, %s73_s10, [#allocation9]  }
  0x78   :  { %s8628_s29 = scalar_lea.hbm %s9048_s6, 64 }
  0x79   :  { %p8629_p0 = scmp.ne.s32.totalorder %s9048_s6, %s8628_s29  ;;  %p8632_p1 = scmp.lt.u32.totalorder %s8628_s29, %s9048_s6 }
  0x7b   :  { %p8634_p2 = pnand %p8632_p1, %p8629_p0 }
  0x7d   :  { %8637 = shalt.err (!%p8634_p2)
}
  0x7e   :  { %s8638_s14 = scalar_lea.vmem %s95_s19, 64  ;;  %p8643_p4 = scmp.lt.s32.totalorder %s95_s19, %s95_s19 }
  0x7f   :  { %p8639_p3 = scmp.ne.s32.totalorder %s95_s19, %s8638_s14  ;;  %p8644_p5 = scmp.lt.s32.totalorder %s8638_s14, %s8638_s14 }
  0x81   :  { %p8645_p6 = por %p8644_p5, %p8643_p4 }
  0x83   :  { %p8646_p7 = pnand %p8645_p6, %p8639_p3 }
  0x85   :  { %8649 = shalt.err (!%p8646_p7)
}
  0x86   :  { %97 = dma.hbm_to_vmem [thread:$0]  %s9048_s6, 64, %s95_s19, [#allocation12]  }
  0x87   :  { %s8719_s17 = smov [#allocation16]   ;;  %s8650_s5 = scalar_lea.hbm %s9050_s8, 16 }
  0x88   :  { %s116_s1 = sshll.u32 %s8719_s17, 4  ;;  %p8651_p8 = scmp.ne.s32.totalorder %s9050_s8, %s8650_s5  ;;  %s117_s1 = int_to_ptr.vmem [resolvable:$true] %s116_s1 }
  0x89   :  { %p8654_p9 = scmp.lt.u32.totalorder %s8650_s5, %s9050_s8 }
  0x8b   :  { %p8656_p10 = pnand %p8654_p9, %p8651_p8 }
  0x8d   :  { %8659 = shalt.err (!%p8656_p10)
}
  0x8e   :  { %s8660_s25 = scalar_lea.vmem %s117_s1, 16  ;;  %s8664_s6 = scalar_lea.vmem %s117_s1, 32 }
  0x8f   :  { %p8661_p11 = scmp.ne.s32.totalorder %s117_s1, %s8660_s25  ;;  %p8665_p12 = scmp.lt.s32.totalorder %s117_s1, %s117_s1 }
  0x90   :  { %p8666_p13 = scmp.lt.s32.totalorder %s8664_s6, %s8660_s25 }
  0x92   :  { %p8667_p0 = por %p8666_p13, %p8665_p12 }
  0x94   :  { %p8668_p1 = pnand %p8667_p0, %p8661_p11 }
  0x96   :  { %8671 = shalt.err (!%p8668_p1)
}
  0x97   :  { %119 = dma.hbm_to_vmem [thread:$0]  %s9050_s8, 16, %s117_s1, [#allocation15]  }
  0x98   :  { %8694 = dma.done.wait [#allocation3], 128  }
  0x99   :  { %8695 = vsyncadd [#allocation3], 4294967168 }
  0x9a   :  { %8696 = dma.done.wait [#allocation6], 16640  }
  0x9b   :  { %8697 = vsyncadd [#allocation6], 4294950656 }
  0x9c   :  { %8698 = dma.done.wait [#allocation9], 65600  }
  0x9d   :  { %8699 = vsyncadd [#allocation9], 4294901696 }
  0x9e   :  { %8700 = dma.done.wait [#allocation12], 16448  }
  0x9f   :  { %8701 = vsyncadd [#allocation12], 4294950848 }
  0xa0   :  { %8702 = dma.done.wait [#allocation15], 4112  }
  0xa1   :  { %8703 = vsyncadd [#allocation15], 4294963184  ;;  %v8720_v0 = vmov 0   ;;  %v150_v1 = vld [vmem:[#allocation5] sm:$0xff]  ;;  %v151_v14 = vld [vmem:[#allocation5 + $0x8] sm:$0xff]  ;;  %s8721_s8 = smov [#allocation17]  }
  0xa2   :  { %1040 = vmatprep.mubr.bf16.mxu0 %v8720_v0  ;;  %1083 = vmatprep.mubr.bf16.mxu1 %v8720_v0  ;;  %v158_v2 = vld [vmem:[#allocation5 + $0x40] sm:$0xff]  ;;  %v159_v15 = vld [vmem:[#allocation5 + $0x48] sm:$0xff]  ;;  %v152_v58 = vld [vmem:[#allocation5 + $0x10] sm:$0xff]  ;;  %s6520_s27 = sshll.u32 %s8721_s8, 4  ;;  %s6521_s27 = int_to_ptr.vmem [resolvable:$true] %s6520_s27 }
  0xa3   :  { %v166_v3 = vld [vmem:[#allocation5 + $0x80] sm:$0xff]  ;;  %v6538_v4 = vcombine.high %v150_v1, %v158_v2  ;;  %v6537_v5 = vcombine.low %v150_v1, %v158_v2  ;;  %v6540_v16 = vcombine.high %v151_v14, %v159_v15  ;;  %v6539_v17 = vcombine.low %v151_v14, %v159_v15  ;;  %v167_v18 = vld [vmem:[#allocation5 + $0x88] sm:$0xff]  ;;  %v160_v59 = vld [vmem:[#allocation5 + $0x50] sm:$0xff]  ;;  %s8672_s3 = scalar_lea.vmem %s6521_s27, 256  ;;  %p8677_p3 = scmp.lt.s32.totalorder %s6521_s27, %s6521_s27 }
  0xa4   :  { %v174_v6 = vld [vmem:[#allocation5 + $0xc0] sm:$0xff]  ;;  %v175_v19 = vld [vmem:[#allocation5 + $0xc8] sm:$0xff]  ;;  %v6542_v1 = vcombine.high %v152_v58, %v160_v59  ;;  %p8673_p2 = scmp.ne.s32.totalorder %s6521_s27, %s8672_s3  ;;  %p8678_p4 = scmp.lt.s32.totalorder %s8672_s3, %s8672_s3 }
  0xa5   :  { %v6554_v7 = vcombine.high %v166_v3, %v174_v6  ;;  %v182_v8 = vld [vmem:[#allocation5 + $0x100] sm:$0xff]  ;;  %1008 = vmatprep.subr.bf16.mxu0 %v6538_v4  ;;  %v6553_v10 = vcombine.low %v166_v3, %v174_v6  ;;  %v6556_v21 = vcombine.high %v167_v18, %v175_v19  ;;  %v183_v22 = vld [vmem:[#allocation5 + $0x108] sm:$0xff]  ;;  %1051 = vmatprep.subr.bf16.mxu1 %v6540_v16  ;;  %v168_v3 = vld [vmem:[#allocation5 + $0x90] sm:$0xff] }
  0xa6   :  { %v190_v9 = vld [vmem:[#allocation5 + $0x140] sm:$0xff]  ;;  %1009 = vmatpush1.bf16.msra.mxu0 %v6537_v5  ;;  %v191_v23 = vld [vmem:[#allocation5 + $0x148] sm:$0xff]  ;;  %1052 = vmatpush1.bf16.msra.mxu1 %v6539_v17  ;;  %v6555_v27 = vcombine.low %v167_v18, %v175_v19  ;;  %v176_v4 = vld [vmem:[#allocation5 + $0xd0] sm:$0xff]  ;;  %p8679_p5 = por %p8678_p4, %p8677_p3 }
  0xa7   :  { %1010 = vmatprep.subr.bf16.mxu0 %v6554_v7  ;;  %v6570_v11 = vcombine.high %v182_v8, %v190_v9  ;;  %v198_v12 = vld [vmem:[#allocation5 + $0x180] sm:$0xff]  ;;  %v6569_v20 = vcombine.low %v182_v8, %v190_v9  ;;  %1053 = vmatprep.subr.bf16.mxu1 %v6556_v21  ;;  %v6572_v28 = vcombine.high %v183_v22, %v191_v23  ;;  %v199_v30 = vld [vmem:[#allocation5 + $0x188] sm:$0xff]  ;;  %v8889_v5 = vld [vmem:[#allocation2] sm:$0xff]  }
  0xa8   :  { %v206_v13 = vld [vmem:[#allocation5 + $0x1c0] sm:$0xff]  ;;  %v207_v31 = vld [vmem:[#allocation5 + $0x1c8] sm:$0xff]  ;;  %v6571_v35 = vcombine.low %v183_v22, %v191_v23  ;;  %v6541_v7 = vcombine.low %v152_v58, %v160_v59  ;;  %v153_v8 = vld [vmem:[#allocation5 + $0x18] sm:$0xff]  ;;  %v6557_v15 = vcombine.low %v168_v3, %v176_v4  ;;  %p8680_p6 = pnand %p8679_p5, %p8673_p2 }
  0xa9   :  { %v6586_v24 = vcombine.high %v198_v12, %v206_v13  ;;  %v214_v25 = vld [vmem:[#allocation5 + $0x200] sm:$0xff]  ;;  %v6585_v29 = vcombine.low %v198_v12, %v206_v13  ;;  %v6588_v36 = vcombine.high %v199_v30, %v207_v31  ;;  %v215_v38 = vld [vmem:[#allocation5 + $0x208] sm:$0xff]  ;;  %v6587_v43 = vcombine.low %v199_v30, %v207_v31  ;;  %v161_v9 = vld [vmem:[#allocation5 + $0x58] sm:$0xff] }
  0xaa   :  { %1011 = vmatpush1.bf16.msra.mxu0 %v6553_v10  ;;  %v222_v26 = vld [vmem:[#allocation5 + $0x240] sm:$0xff]  ;;  %1054 = vmatpush1.bf16.msra.mxu1 %v6555_v27  ;;  %v223_v39 = vld [vmem:[#allocation5 + $0x248] sm:$0xff]  ;;  %v6558_v10 = vcombine.high %v168_v3, %v176_v4  ;;  %v184_v12 = vld [vmem:[#allocation5 + $0x110] sm:$0xff]  ;;  %v6544_v14 = vcombine.high %v153_v8, %v161_v9  ;;  %v6543_v19 = vcombine.low %v153_v8, %v161_v9 }
  0xab   :  { %1012 = vmatprep.subr.bf16.mxu0 %v6570_v11  ;;  %v6602_v32 = vcombine.high %v214_v25, %v222_v26  ;;  %v230_v33 = vld [vmem:[#allocation5 + $0x280] sm:$0xff]  ;;  %1055 = vmatprep.subr.bf16.mxu1 %v6572_v28  ;;  %v6601_v37 = vcombine.low %v214_v25, %v222_v26  ;;  %v6604_v44 = vcombine.high %v215_v38, %v223_v39  ;;  %v231_v46 = vld [vmem:[#allocation5 + $0x288] sm:$0xff]  ;;  %v192_v13 = vld [vmem:[#allocation5 + $0x150] sm:$0xff] }
  0xac   :  { %v238_v34 = vld [vmem:[#allocation5 + $0x2c0] sm:$0xff]  ;;  %v239_v47 = vld [vmem:[#allocation5 + $0x2c8] sm:$0xff]  ;;  %v6603_v51 = vcombine.low %v215_v38, %v223_v39  ;;  %v169_v16 = vld [vmem:[#allocation5 + $0x98] sm:$0xff]  ;;  %v6574_v18 = vcombine.high %v184_v12, %v192_v13  ;;  %v6573_v23 = vcombine.low %v184_v12, %v192_v13 }
  0xad   :  { %v6618_v40 = vcombine.high %v230_v33, %v238_v34  ;;  %v246_v41 = vld [vmem:[#allocation5 + $0x300] sm:$0xff]  ;;  %v6617_v45 = vcombine.low %v230_v33, %v238_v34  ;;  %v6620_v52 = vcombine.high %v231_v46, %v239_v47  ;;  %v247_v54 = vld [vmem:[#allocation5 + $0x308] sm:$0xff]  ;;  %v6619_v57 = vcombine.low %v231_v46, %v239_v47  ;;  %v177_v17 = vld [vmem:[#allocation5 + $0xd8] sm:$0xff] }
  0xae   :  { %1013 = vmatpush1.bf16.msra.mxu0 %v6569_v20  ;;  %v254_v42 = vld [vmem:[#allocation5 + $0x340] sm:$0xff]  ;;  %1056 = vmatpush1.bf16.msra.mxu1 %v6571_v35  ;;  %v255_v55 = vld [vmem:[#allocation5 + $0x348] sm:$0xff]  ;;  %v200_v20 = vld [vmem:[#allocation5 + $0x190] sm:$0xff]  ;;  %v6560_v22 = vcombine.high %v169_v16, %v177_v17  ;;  %v6559_v27 = vcombine.low %v169_v16, %v177_v17 }
  0xaf   :  { %1014 = vmatprep.subr.bf16.mxu0 %v6586_v24  ;;  %1057 = vmatprep.subr.bf16.mxu1 %v6588_v36  ;;  %v6634_v48 = vcombine.high %v246_v41, %v254_v42  ;;  %v262_v49 = vld [vmem:[#allocation5 + $0x380] sm:$0xff]  ;;  %v6633_v53 = vcombine.low %v246_v41, %v254_v42  ;;  %v6636_v60 = vcombine.high %v247_v54, %v255_v55  ;;  %v263_v62 = vld [vmem:[#allocation5 + $0x388] sm:$0xff]  ;;  %v208_v21 = vld [vmem:[#allocation5 + $0x1d0] sm:$0xff] }
  0xb0   :  { %v270_v50 = vld [vmem:[#allocation5 + $0x3c0] sm:$0xff]  ;;  %v271_v63 = vld [vmem:[#allocation5 + $0x3c8] sm:$0xff]  ;;  %v6635_v2 = vcombine.low %v247_v54, %v255_v55  ;;  %v185_v24 = vld [vmem:[#allocation5 + $0x118] sm:$0xff]  ;;  %v6590_v26 = vcombine.high %v200_v20, %v208_v21  ;;  %v6589_v31 = vcombine.low %v200_v20, %v208_v21 }
  0xb1   :  { %v6650_v56 = vcombine.high %v262_v49, %v270_v50  ;;  %v6649_v61 = vcombine.low %v262_v49, %v270_v50  ;;  %v6652_v6 = vcombine.high %v263_v62, %v271_v63  ;;  %v6651_v11 = vcombine.low %v263_v62, %v271_v63  ;;  %v193_v25 = vld [vmem:[#allocation5 + $0x158] sm:$0xff]  ;;  %v216_v28 = vld [vmem:[#allocation5 + $0x210] sm:$0xff]  ;;  %v154_v59 = vld [vmem:[#allocation5 + $0x20] sm:$0xff] }
  0xb2   :  { %1015 = vmatpush1.bf16.msra.mxu0 %v6585_v29  ;;  %1058 = vmatpush1.bf16.msra.mxu1 %v6587_v43  ;;  %v224_v29 = vld [vmem:[#allocation5 + $0x250] sm:$0xff]  ;;  %v6576_v30 = vcombine.high %v185_v24, %v193_v25  ;;  %v209_v33 = vld [vmem:[#allocation5 + $0x1d8] sm:$0xff]  ;;  %v6575_v36 = vcombine.low %v185_v24, %v193_v25  ;;  %v170_v4 = vld [vmem:[#allocation5 + $0xa0] sm:$0xff] }
  0xb3   :  { %1016 = vmatprep.subr.bf16.mxu0 %v6602_v32  ;;  %1059 = vmatprep.subr.bf16.mxu1 %v6604_v44  ;;  %v201_v32 = vld [vmem:[#allocation5 + $0x198] sm:$0xff]  ;;  %v6606_v34 = vcombine.high %v216_v28, %v224_v29  ;;  %v232_v35 = vld [vmem:[#allocation5 + $0x290] sm:$0xff]  ;;  %v6605_v39 = vcombine.low %v216_v28, %v224_v29  ;;  %v186_v13 = vld [vmem:[#allocation5 + $0x120] sm:$0xff] }
  0xb4   :  { %v6592_v38 = vcombine.high %v201_v32, %v209_v33  ;;  %v225_v41 = vld [vmem:[#allocation5 + $0x258] sm:$0xff]  ;;  %v248_v43 = vld [vmem:[#allocation5 + $0x310] sm:$0xff]  ;;  %v6591_v44 = vcombine.low %v201_v32, %v209_v33  ;;  %v202_v21 = vld [vmem:[#allocation5 + $0x1a0] sm:$0xff] }
  0xb5   :  { %v241_v49 = vld [vmem:[#allocation5 + $0x2d8] sm:$0xff]  ;;  %v218_v29 = vld [vmem:[#allocation5 + $0x220] sm:$0xff] }
  0xb6   :  { %1017 = vmatpush1.bf16.msra.mxu0 %v6601_v37  ;;  %1060 = vmatpush1.bf16.msra.mxu1 %v6603_v51  ;;  %v240_v37 = vld [vmem:[#allocation5 + $0x2d0] sm:$0xff] }
  0xb7   :  { %1018 = vmatprep.subr.bf16.mxu0 %v6618_v40  ;;  %1061 = vmatprep.subr.bf16.mxu1 %v6620_v52  ;;  %v217_v40 = vld [vmem:[#allocation5 + $0x218] sm:$0xff]  ;;  %v6622_v42 = vcombine.high %v232_v35, %v240_v37  ;;  %v6621_v47 = vcombine.low %v232_v35, %v240_v37  ;;  %v264_v51 = vld [vmem:[#allocation5 + $0x390] sm:$0xff]  ;;  %v211_v35 = vld [vmem:[#allocation5 + $0x1e8] sm:$0xff] }
  0xb8   :  { %v6608_v46 = vcombine.high %v217_v40, %v225_v41  ;;  %v6607_v52 = vcombine.low %v217_v40, %v225_v41  ;;  %v234_v37 = vld [vmem:[#allocation5 + $0x2a0] sm:$0xff]  ;;  %v219_v41 = vld [vmem:[#allocation5 + $0x228] sm:$0xff] }
  0xba   :  { %1019 = vmatpush1.bf16.msra.mxu0 %v6617_v45  ;;  %1062 = vmatpush1.bf16.msra.mxu1 %v6619_v57  ;;  %v256_v45 = vld [vmem:[#allocation5 + $0x350] sm:$0xff]  ;;  %v257_v57 = vld [vmem:[#allocation5 + $0x358] sm:$0xff] }
  0xbb   :  { %1020 = vmatprep.subr.bf16.mxu0 %v6634_v48  ;;  %1063 = vmatprep.subr.bf16.mxu1 %v6636_v60  ;;  %v233_v48 = vld [vmem:[#allocation5 + $0x298] sm:$0xff]  ;;  %v6638_v50 = vcombine.high %v248_v43, %v256_v45  ;;  %v6637_v55 = vcombine.low %v248_v43, %v256_v45  ;;  %v227_v43 = vld [vmem:[#allocation5 + $0x268] sm:$0xff] }
  0xbc   :  { %v6624_v54 = vcombine.high %v233_v48, %v241_v49  ;;  %v6623_v60 = vcombine.low %v233_v48, %v241_v49  ;;  %v235_v48 = vld [vmem:[#allocation5 + $0x2a8] sm:$0xff] }
  0xbd   :  { %v243_v49 = vld [vmem:[#allocation5 + $0x2e8] sm:$0xff] }
  0xbe   :  { %1021 = vmatpush1.bf16.msra.mxu0 %v6633_v53  ;;  %1064 = vmatpush1.bf16.msra.mxu1 %v6635_v2  ;;  %v272_v53 = vld [vmem:[#allocation5 + $0x3d0] sm:$0xff]  ;;  %v273_v2 = vld [vmem:[#allocation5 + $0x3d8] sm:$0xff] }
  0xbf   :  { %1022 = vmatprep.subr.bf16.mxu0 %v6650_v56  ;;  %1065 = vmatprep.subr.bf16.mxu1 %v6652_v6  ;;  %v249_v56 = vld [vmem:[#allocation5 + $0x318] sm:$0xff]  ;;  %v6654_v58 = vcombine.high %v264_v51, %v272_v53  ;;  %v6653_v63 = vcombine.low %v264_v51, %v272_v53  ;;  %v274_v53 = vld [vmem:[#allocation5 + $0x3e0] sm:$0xff] }
  0xc0   :  { %v6640_v62 = vcombine.high %v249_v56, %v257_v57  ;;  %v6639_v6 = vcombine.low %v249_v56, %v257_v57  ;;  %v251_v56 = vld [vmem:[#allocation5 + $0x328] sm:$0xff] }
  0xc1   :  { %v259_v57 = vld [vmem:[#allocation5 + $0x368] sm:$0xff] }
  0xc2   :  { %1023 = vmatpush1.bf16.msra.mxu0 %v6649_v61  ;;  %1066 = vmatpush1.bf16.msra.mxu1 %v6651_v11  ;;  %v162_v61 = vld [vmem:[#allocation5 + $0x60] sm:$0xff]  ;;  %v163_v11 = vld [vmem:[#allocation5 + $0x68] sm:$0xff] }
  0xc3   :  { %1094 = vmatprep.subr.bf16.mxu0 %v6542_v1  ;;  %1137 = vmatprep.subr.bf16.mxu1 %v6544_v14  ;;  %v265_v1 = vld [vmem:[#allocation5 + $0x398] sm:$0xff]  ;;  %v6546_v3 = vcombine.high %v154_v59, %v162_v61  ;;  %v6545_v9 = vcombine.low %v154_v59, %v162_v61  ;;  %v164_v61 = vld [vmem:[#allocation5 + $0x70] sm:$0xff] }
  0xc4   :  { %v6656_v8 = vcombine.high %v265_v1, %v273_v2  ;;  %v6655_v14 = vcombine.low %v265_v1, %v273_v2  ;;  %v267_v1 = vld [vmem:[#allocation5 + $0x3a8] sm:$0xff] }
  0xc5   :  { %1041 = vmatmul.mubr.bf16.vlgmr.msra.gmra.mrb[0].mxu0 %v8889_v5  ;;  %1084 = vmatmul.mubr.bf16.vlgmr.msra.gmra.mrb[0].mxu1 %v8889_v5  ;;  %v275_v2 = vld [vmem:[#allocation5 + $0x3e8] sm:$0xff] }
  0xc6   :  { %1095 = vmatpush1.bf16.msra.mxu0 %v6541_v7  ;;  %1126 = vmatprep.mubr.bf16.mxu0 %v8720_v0  ;;  %v178_v7 = vld [vmem:[#allocation5 + $0xe0] sm:$0xff] }
  0xc7   :  { %1096 = vmatprep.subr.bf16.mxu0 %v6558_v10  ;;  %1138 = vmatpush1.bf16.msra.mxu1 %v6543_v19  ;;  %v155_v10 = vld [vmem:[#allocation5 + $0x28] sm:$0xff]  ;;  %v6562_v12 = vcombine.high %v170_v4, %v178_v7  ;;  %v6561_v17 = vcombine.low %v170_v4, %v178_v7  ;;  %v180_v7 = vld [vmem:[#allocation5 + $0xf0] sm:$0xff] }
  0xc8   :  { %1169 = vmatprep.mubr.bf16.mxu1 %v8720_v0  ;;  %1139 = vmatprep.subr.bf16.mxu1 %v6560_v22  ;;  %v6548_v16 = vcombine.high %v155_v10, %v163_v11  ;;  %v179_v19 = vld [vmem:[#allocation5 + $0xe8] sm:$0xff]  ;;  %v6547_v22 = vcombine.low %v155_v10, %v163_v11  ;;  %v157_v10 = vld [vmem:[#allocation5 + $0x38] sm:$0xff] }
  0xc9   :  { %v165_v11 = vld [vmem:[#allocation5 + $0x78] sm:$0xff] }
  0xca   :  { %1097 = vmatpush1.bf16.msra.mxu0 %v6557_v15  ;;  %v194_v15 = vld [vmem:[#allocation5 + $0x160] sm:$0xff] }
  0xcb   :  { %1098 = vmatprep.subr.bf16.mxu0 %v6574_v18  ;;  %1140 = vmatpush1.bf16.msra.mxu1 %v6559_v27  ;;  %v171_v18 = vld [vmem:[#allocation5 + $0xa8] sm:$0xff]  ;;  %v6578_v20 = vcombine.high %v186_v13, %v194_v15  ;;  %v6577_v25 = vcombine.low %v186_v13, %v194_v15  ;;  %v196_v15 = vld [vmem:[#allocation5 + $0x170] sm:$0xff] }
  0xcc   :  { %1141 = vmatprep.subr.bf16.mxu1 %v6576_v30  ;;  %v6564_v24 = vcombine.high %v171_v18, %v179_v19  ;;  %v195_v27 = vld [vmem:[#allocation5 + $0x168] sm:$0xff]  ;;  %v6563_v30 = vcombine.low %v171_v18, %v179_v19  ;;  %v173_v18 = vld [vmem:[#allocation5 + $0xb8] sm:$0xff] }
  0xcd   :  { %v181_v19 = vld [vmem:[#allocation5 + $0xf8] sm:$0xff] }
  0xce   :  { %1099 = vmatpush1.bf16.msra.mxu0 %v6573_v23  ;;  %v210_v23 = vld [vmem:[#allocation5 + $0x1e0] sm:$0xff] }
  0xcf   :  { %1100 = vmatprep.subr.bf16.mxu0 %v6590_v26  ;;  %1142 = vmatpush1.bf16.msra.mxu1 %v6575_v36  ;;  %v187_v26 = vld [vmem:[#allocation5 + $0x128] sm:$0xff]  ;;  %v6594_v28 = vcombine.high %v202_v21, %v210_v23  ;;  %v6593_v33 = vcombine.low %v202_v21, %v210_v23  ;;  %v212_v23 = vld [vmem:[#allocation5 + $0x1f0] sm:$0xff] }
  0xd0   :  { %1143 = vmatprep.subr.bf16.mxu1 %v6592_v38  ;;  %v6580_v32 = vcombine.high %v187_v26, %v195_v27  ;;  %v6579_v38 = vcombine.low %v187_v26, %v195_v27  ;;  %v189_v26 = vld [vmem:[#allocation5 + $0x138] sm:$0xff] }
  0xd1   :  { %v197_v27 = vld [vmem:[#allocation5 + $0x178] sm:$0xff] }
  0xd2   :  { %1101 = vmatpush1.bf16.msra.mxu0 %v6589_v31  ;;  %v226_v31 = vld [vmem:[#allocation5 + $0x260] sm:$0xff] }
  0xd3   :  { %1102 = vmatprep.subr.bf16.mxu0 %v6606_v34  ;;  %1144 = vmatpush1.bf16.msra.mxu1 %v6591_v44  ;;  %v203_v34 = vld [vmem:[#allocation5 + $0x1a8] sm:$0xff]  ;;  %v6610_v36 = vcombine.high %v218_v29, %v226_v31  ;;  %v250_v44 = vld [vmem:[#allocation5 + $0x320] sm:$0xff] }
  0xd4   :  { %1145 = vmatprep.subr.bf16.mxu1 %v6608_v46  ;;  %v6596_v40 = vcombine.high %v203_v34, %v211_v35  ;;  %v258_v46 = vld [vmem:[#allocation5 + $0x360] sm:$0xff] }
  0xd5   :  { %v6641_v59 = vcombine.low %v250_v44, %v258_v46 }
  0xd6   :  { %1103 = vmatpush1.bf16.msra.mxu0 %v6605_v39  ;;  %v242_v39 = vld [vmem:[#allocation5 + $0x2e0] sm:$0xff] }
  0xd7   :  { %1104 = vmatprep.subr.bf16.mxu0 %v6622_v42  ;;  %1146 = vmatpush1.bf16.msra.mxu1 %v6607_v52  ;;  %v6609_v42 = vcombine.low %v218_v29, %v226_v31  ;;  %v6626_v45 = vcombine.high %v234_v37, %v242_v39  ;;  %v6625_v51 = vcombine.low %v234_v37, %v242_v39  ;;  %v266_v52 = vld [vmem:[#allocation5 + $0x3a0] sm:$0xff]  ;;  %v228_v31 = vld [vmem:[#allocation5 + $0x270] sm:$0xff] }
  0xd8   :  { %1147 = vmatprep.subr.bf16.mxu1 %v6624_v54  ;;  %v6642_v54 = vcombine.high %v250_v44, %v258_v46  ;;  %v6657_v4 = vcombine.low %v266_v52, %v274_v53  ;;  %v244_v39 = vld [vmem:[#allocation5 + $0x2f0] sm:$0xff] }
  0xd9   :  { %v252_v46 = vld [vmem:[#allocation5 + $0x330] sm:$0xff] }
  0xda   :  { %1105 = vmatpush1.bf16.msra.mxu0 %v6621_v47  ;;  %v6595_v47 = vcombine.low %v203_v34, %v211_v35  ;;  %v205_v34 = vld [vmem:[#allocation5 + $0x1b8] sm:$0xff] }
  0xdb   :  { %1106 = vmatprep.subr.bf16.mxu0 %v6638_v50  ;;  %1148 = vmatpush1.bf16.msra.mxu1 %v6623_v60  ;;  %v6612_v50 = vcombine.high %v219_v41, %v227_v43  ;;  %v156_v60 = vld [vmem:[#allocation5 + $0x30] sm:$0xff]  ;;  %v213_v35 = vld [vmem:[#allocation5 + $0x1f8] sm:$0xff] }
  0xdc   :  { %1149 = vmatprep.subr.bf16.mxu1 %v6640_v62  ;;  %v6658_v62 = vcombine.high %v266_v52, %v274_v53  ;;  %v6549_v13 = vcombine.low %v156_v60, %v164_v61  ;;  %v6600_v44 = vcombine.high %v205_v34, %v213_v35 }
  0xde   :  { %1107 = vmatpush1.bf16.msra.mxu0 %v6637_v55  ;;  %v6611_v55 = vcombine.low %v219_v41, %v227_v43  ;;  %v6583_v41 = vcombine.low %v189_v26, %v197_v27  ;;  %v229_v43 = vld [vmem:[#allocation5 + $0x278] sm:$0xff] }
  0xdf   :  { %1108 = vmatprep.subr.bf16.mxu0 %v6654_v58  ;;  %1150 = vmatpush1.bf16.msra.mxu1 %v6639_v6  ;;  %v6628_v58 = vcombine.high %v235_v48, %v243_v49  ;;  %v172_v6 = vld [vmem:[#allocation5 + $0xb0] sm:$0xff] }
  0xe0   :  { %1151 = vmatprep.subr.bf16.mxu1 %v6656_v8  ;;  %v6550_v8 = vcombine.high %v156_v60, %v164_v61  ;;  %v6565_v21 = vcombine.low %v172_v6, %v180_v7 }
  0xe2   :  { %1109 = vmatpush1.bf16.msra.mxu0 %v6653_v63  ;;  %v6627_v63 = vcombine.low %v235_v48, %v243_v49  ;;  %v6599_v48 = vcombine.low %v205_v34, %v213_v35  ;;  %v237_v49 = vld [vmem:[#allocation5 + $0x2b8] sm:$0xff] }
  0xe3   :  { %1180 = vmatprep.subr.bf16.mxu0 %v6546_v3  ;;  %1152 = vmatpush1.bf16.msra.mxu1 %v6655_v14  ;;  %v6644_v3 = vcombine.high %v251_v56, %v259_v57  ;;  %v188_v14 = vld [vmem:[#allocation5 + $0x130] sm:$0xff]  ;;  %v7514_v34 = vld [vmem:[#allocation8 + $0xa8] ss:$16 sps:$4 sm:$0xff]   ;;  %v7522_v35 = vld [vmem:[#allocation8 + $0xcc] ss:$16 sps:$4 sm:$0xff]  }
  0xe4   :  { %1223 = vmatprep.subr.bf16.mxu1 %v6548_v16  ;;  %v6566_v16 = vcombine.high %v172_v6, %v180_v7  ;;  %v6581_v29 = vcombine.low %v188_v14, %v196_v15 }
  0xe5   :  { %1127 = vmatmul.mubr.bf16.vlgmr.msra.gmra.mrb[4].mxu0 %v8889_v5 }
  0xe6   :  { %1181 = vmatpush1.bf16.msra.mxu0 %v6545_v9  ;;  %1212 = vmatprep.mubr.bf16.mxu0 %v8720_v0  ;;  %v6643_v9 = vcombine.low %v251_v56, %v259_v57  ;;  %v276_v56 = vld [vmem:[#allocation5 + $0x3f0] sm:$0xff] }
  0xe7   :  { %1182 = vmatprep.subr.bf16.mxu0 %v6562_v12  ;;  %1170 = vmatmul.mubr.bf16.vlgmr.msra.gmra.mrb[4].mxu1 %v8889_v5  ;;  %v6660_v12 = vcombine.high %v267_v1, %v275_v2 }
  0xe8   :  { %1224 = vmatpush1.bf16.msra.mxu1 %v6547_v22  ;;  %1255 = vmatprep.mubr.bf16.mxu1 %v8720_v0  ;;  %v204_v22 = vld [vmem:[#allocation5 + $0x1b0] sm:$0xff] }
  0xe9   :  { %1225 = vmatprep.subr.bf16.mxu1 %v6564_v24  ;;  %v6582_v24 = vcombine.high %v188_v14, %v196_v15  ;;  %v6597_v37 = vcombine.low %v204_v22, %v212_v23  ;;  %v7484_v14 = vld [vmem:[#allocation8 + $0x8] ss:$16 sps:$4 sm:$0xff]   ;;  %v7492_v15 = vld [vmem:[#allocation8 + $0x2c] ss:$16 sps:$4 sm:$0xff]  }
  0xea   :  { %1183 = vmatpush1.bf16.msra.mxu0 %v6561_v17  ;;  %v6659_v17 = vcombine.low %v267_v1, %v275_v2  ;;  %v277_v2 = vld [vmem:[#allocation5 + $0x3f8] sm:$0xff] }
  0xeb   :  { %1184 = vmatprep.subr.bf16.mxu0 %v6578_v20  ;;  %v6552_v20 = vcombine.high %v157_v10, %v165_v11 }
  0xec   :  { %1226 = vmatpush1.bf16.msra.mxu1 %v6563_v30  ;;  %v220_v30 = vld [vmem:[#allocation5 + $0x230] sm:$0xff] }
  0xed   :  { %1227 = vmatprep.subr.bf16.mxu1 %v6580_v32  ;;  %v6598_v32 = vcombine.high %v204_v22, %v212_v23  ;;  %v7496_v22 = vld [vmem:[#allocation8 + $0x48] ss:$16 sps:$4 sm:$0xff]   ;;  %v7504_v23 = vld [vmem:[#allocation8 + $0x6c] ss:$16 sps:$4 sm:$0xff]  }
  0xee   :  { %1185 = vmatpush1.bf16.msra.mxu0 %v6577_v25  ;;  %v6551_v25 = vcombine.low %v157_v10, %v165_v11  ;;  %v7486_v11 = vld [vmem:[#allocation8 + $0xc] ss:$16 sps:$4 sm:$0xff]  }
  0xef   :  { %1186 = vmatprep.subr.bf16.mxu0 %v6594_v28  ;;  %v6568_v28 = vcombine.high %v173_v18, %v181_v19 }
  0xf0   :  { %1228 = vmatpush1.bf16.msra.mxu1 %v6579_v38  ;;  %v236_v38 = vld [vmem:[#allocation5 + $0x2b0] sm:$0xff] }
  0xf1   :  { %1229 = vmatprep.subr.bf16.mxu1 %v6596_v40  ;;  %v6614_v40 = vcombine.high %v220_v30, %v228_v31  ;;  %v6629_v52 = vcombine.low %v236_v38, %v244_v39 }
  0xf2   :  { %1187 = vmatpush1.bf16.msra.mxu0 %v6593_v33  ;;  %v6567_v33 = vcombine.low %v173_v18, %v181_v19  ;;  %v8473_v18 = vld [vmem:[#allocation2] sm:$0xff]  }
  0xf3   :  { %1188 = vmatprep.subr.bf16.mxu0 %v6610_v36  ;;  %v6584_v36 = vcombine.high %v189_v26, %v197_v27  ;;  %v7490_v19 = vld [vmem:[#allocation8 + $0x28] ss:$16 sps:$4 sm:$0xff]   ;;  %v7510_v27 = vld [vmem:[#allocation8 + $0x8c] ss:$16 sps:$4 sm:$0xff]  }
  0xf4   :  { %1230 = vmatpush1.bf16.msra.mxu1 %v6595_v47  ;;  %v260_v47 = vld [vmem:[#allocation5 + $0x370] sm:$0xff]  ;;  %v7502_v26 = vld [vmem:[#allocation8 + $0x68] ss:$16 sps:$4 sm:$0xff]  }
  0xf5   :  { %1231 = vmatprep.subr.bf16.mxu1 %v6612_v50  ;;  %v245_v50 = vld [vmem:[#allocation5 + $0x2f8] sm:$0xff]  ;;  %v6646_v53 = vcombine.high %v252_v46, %v260_v47  ;;  %v6645_v60 = vcombine.low %v252_v46, %v260_v47 }
  0xf6   :  { %1189 = vmatpush1.bf16.msra.mxu0 %v6609_v42  ;;  %v221_v42 = vld [vmem:[#allocation5 + $0x238] sm:$0xff]  ;;  %v6632_v57 = vcombine.high %v237_v49, %v245_v50 }
  0xf7   :  { %1190 = vmatprep.subr.bf16.mxu0 %v6626_v45  ;;  %v6613_v45 = vcombine.low %v220_v30, %v228_v31  ;;  %v7508_v30 = vld [vmem:[#allocation8 + $0x88] ss:$16 sps:$4 sm:$0xff]   ;;  %v7516_v31 = vld [vmem:[#allocation8 + $0xac] ss:$16 sps:$4 sm:$0xff]  }
  0xf8   :  { %1232 = vmatpush1.bf16.msra.mxu1 %v6611_v55  ;;  %v268_v55 = vld [vmem:[#allocation5 + $0x3b0] sm:$0xff]  ;;  %v7532_v46 = vld [vmem:[#allocation8 + $0x108] ss:$16 sps:$4 sm:$0xff]   ;;  %v7540_v47 = vld [vmem:[#allocation8 + $0x12c] ss:$16 sps:$4 sm:$0xff]  }
  0xf9   :  { %1233 = vmatprep.subr.bf16.mxu1 %v6628_v58  ;;  %v253_v58 = vld [vmem:[#allocation5 + $0x338] sm:$0xff]  ;;  %v6662_v61 = vcombine.high %v268_v55, %v276_v56 }
  0xfa   :  { %1191 = vmatpush1.bf16.msra.mxu0 %v6625_v51  ;;  %v6616_v51 = vcombine.high %v221_v42, %v229_v43 }
  0xfb   :  { %1192 = vmatprep.subr.bf16.mxu0 %v6642_v54  ;;  %v6615_v54 = vcombine.low %v221_v42, %v229_v43  ;;  %v7526_v42 = vld [vmem:[#allocation8 + $0xe8] ss:$16 sps:$4 sm:$0xff]   ;;  %v7534_v43 = vld [vmem:[#allocation8 + $0x10c] ss:$16 sps:$4 sm:$0xff]  }
  0xfc   :  { %1234 = vmatpush1.bf16.msra.mxu1 %v6627_v63  ;;  %v269_v63 = vld [vmem:[#allocation5 + $0x3b8] sm:$0xff] }
  0xfd   :  { %1235 = vmatprep.subr.bf16.mxu1 %v6644_v3  ;;  %v7483_v3 = vld [vmem:[#allocation8 + $0x4] ss:$16 sps:$4 sm:$0xff]   ;;  %v6664_v7 = vcombine.high %v269_v63, %v277_v2  ;;  %v6663_v10 = vcombine.low %v269_v63, %v277_v2  ;;  %v7565_v63 = vld [vmem:[#allocation8 + $0x1c0] ss:$16 sps:$4 sm:$0xff]   ;;  %v7562_v2 = vld [vmem:[#allocation8 + $0x1a8] ss:$16 sps:$4 sm:$0xff]  }
  0xfe   :  { %1193 = vmatpush1.bf16.msra.mxu0 %v6641_v59  ;;  %v261_v59 = vld [vmem:[#allocation5 + $0x378] sm:$0xff] }
  0xff   :  { %1194 = vmatprep.subr.bf16.mxu0 %v6658_v62  ;;  %v6631_v62 = vcombine.low %v237_v49, %v245_v50  ;;  %v6648_v1 = vcombine.high %v253_v58, %v261_v59  ;;  %v6647_v6 = vcombine.low %v253_v58, %v261_v59  ;;  %v7538_v49 = vld [vmem:[#allocation8 + $0x128] ss:$16 sps:$4 sm:$0xff]   ;;  %v7546_v50 = vld [vmem:[#allocation8 + $0x14c] ss:$16 sps:$4 sm:$0xff]   ;;  %v7559_v59 = vld [vmem:[#allocation8 + $0x1a0] ss:$16 sps:$4 sm:$0xff]  }
 0x100   :  { %1236 = vmatpush1.bf16.msra.mxu1 %v6643_v9  ;;  %v7489_v9 = vld [vmem:[#allocation8 + $0x24] ss:$16 sps:$4 sm:$0xff]   ;;  %v7558_v58 = vld [vmem:[#allocation8 + $0x18c] ss:$16 sps:$4 sm:$0xff]  }
 0x101   :  { %1237 = vmatprep.subr.bf16.mxu1 %v6660_v12  ;;  %v7487_v12 = vld [vmem:[#allocation8 + $0x20] ss:$16 sps:$4 sm:$0xff]  }
 0x102   :  { %1195 = vmatpush1.bf16.msra.mxu0 %v6657_v4  ;;  %v6661_v4 = vcombine.low %v268_v55, %v276_v56  ;;  %v7553_v55 = vld [vmem:[#allocation8 + $0x180] ss:$16 sps:$4 sm:$0xff]   ;;  %v7561_v56 = vld [vmem:[#allocation8 + $0x1a4] ss:$16 sps:$4 sm:$0xff]  }
 0x103   :  { %1266 = vmatprep.subr.bf16.mxu0 %v6550_v8  ;;  %v7481_v8 = vld [vmem:[#allocation8] ss:$16 sps:$4 sm:$0xff]  }
 0x104   :  { %1238 = vmatpush1.bf16.msra.mxu1 %v6659_v17  ;;  %v7501_v17 = vld [vmem:[#allocation8 + $0x64] ss:$16 sps:$4 sm:$0xff]  }
 0x105   :  { %1213 = vmatmul.mubr.bf16.vlgmr.msra.gmra.mrb[8].mxu0 %v8889_v5  ;;  %1309 = vmatprep.subr.bf16.mxu1 %v6552_v20  ;;  %v7498_v20 = vld [vmem:[#allocation8 + $0x4c] ss:$16 sps:$4 sm:$0xff]  }
 0x106   :  { %1267 = vmatpush1.bf16.msra.mxu0 %v6549_v13  ;;  %1298 = vmatprep.mubr.bf16.mxu0 %v8720_v0  ;;  %v7495_v13 = vld [vmem:[#allocation8 + $0x44] ss:$16 sps:$4 sm:$0xff]  }
 0x107   :  { %1268 = vmatprep.subr.bf16.mxu0 %v6566_v16  ;;  %1256 = vmatmul.mubr.bf16.vlgmr.msra.gmra.mrb[8].mxu1 %v8889_v5  ;;  %v7493_v16 = vld [vmem:[#allocation8 + $0x40] ss:$16 sps:$4 sm:$0xff]  }
 0x108   :  { %1310 = vmatpush1.bf16.msra.mxu1 %v6551_v25  ;;  %1341 = vmatprep.mubr.bf16.mxu1 %v8720_v0  ;;  %v6630_v0 = vcombine.high %v236_v38, %v244_v39  ;;  %v7513_v25 = vld [vmem:[#allocation8 + $0xa4] ss:$16 sps:$4 sm:$0xff]   ;;  %v7520_v38 = vld [vmem:[#allocation8 + $0xc8] ss:$16 sps:$4 sm:$0xff]   ;;  %v7528_v39 = vld [vmem:[#allocation8 + $0xec] ss:$16 sps:$4 sm:$0xff]  }
 0x109   :  { %1311 = vmatprep.subr.bf16.mxu1 %v6568_v28  ;;  %v7511_v28 = vld [vmem:[#allocation8 + $0xa0] ss:$16 sps:$4 sm:$0xff]  }
 0x10a   :  { %1269 = vmatpush1.bf16.msra.mxu0 %v6565_v21  ;;  %v7499_v21 = vld [vmem:[#allocation8 + $0x60] ss:$16 sps:$4 sm:$0xff]  }
 0x10b   :  { %1270 = vmatprep.subr.bf16.mxu0 %v6582_v24  ;;  %v7505_v24 = vld [vmem:[#allocation8 + $0x80] ss:$16 sps:$4 sm:$0xff]  }
 0x10c   :  { %1312 = vmatpush1.bf16.msra.mxu1 %v6567_v33  ;;  %v7525_v33 = vld [vmem:[#allocation8 + $0xe4] ss:$16 sps:$4 sm:$0xff]  }
 0x10d   :  { %1313 = vmatprep.subr.bf16.mxu1 %v6584_v36  ;;  %v7523_v36 = vld [vmem:[#allocation8 + $0xe0] ss:$16 sps:$4 sm:$0xff]  }
 0x10e   :  { %1271 = vmatpush1.bf16.msra.mxu0 %v6581_v29  ;;  %v7519_v29 = vld [vmem:[#allocation8 + $0xc4] ss:$16 sps:$4 sm:$0xff]  }
 0x10f   :  { %1272 = vmatprep.subr.bf16.mxu0 %v6598_v32  ;;  %v7517_v32 = vld [vmem:[#allocation8 + $0xc0] ss:$16 sps:$4 sm:$0xff]  }
 0x110   :  { %1314 = vmatpush1.bf16.msra.mxu1 %v6583_v41  ;;  %v7537_v41 = vld [vmem:[#allocation8 + $0x124] ss:$16 sps:$4 sm:$0xff]  }
 0x111   :  { %1315 = vmatprep.subr.bf16.mxu1 %v6600_v44  ;;  %v7535_v44 = vld [vmem:[#allocation8 + $0x120] ss:$16 sps:$4 sm:$0xff]  }
 0x112   :  { %1273 = vmatpush1.bf16.msra.mxu0 %v6597_v37  ;;  %v7531_v37 = vld [vmem:[#allocation8 + $0x104] ss:$16 sps:$4 sm:$0xff]  }
 0x113   :  { %1274 = vmatprep.subr.bf16.mxu0 %v6614_v40  ;;  %v7529_v40 = vld [vmem:[#allocation8 + $0x100] ss:$16 sps:$4 sm:$0xff]  }
 0x114   :  { %1316 = vmatpush1.bf16.msra.mxu1 %v6599_v48  ;;  %v7549_v48 = vld [vmem:[#allocation8 + $0x164] ss:$16 sps:$4 sm:$0xff]  }
 0x115   :  { %1317 = vmatprep.subr.bf16.mxu1 %v6616_v51  ;;  %v7547_v51 = vld [vmem:[#allocation8 + $0x160] ss:$16 sps:$4 sm:$0xff]  }
 0x116   :  { %1275 = vmatpush1.bf16.msra.mxu0 %v6613_v45  ;;  %v7543_v45 = vld [vmem:[#allocation8 + $0x144] ss:$16 sps:$4 sm:$0xff]  }
 0x117   :  { %1276 = vmatprep.subr.bf16.mxu0 %v6630_v0  ;;  %v7541_v0 = vld [vmem:[#allocation8 + $0x140] ss:$16 sps:$4 sm:$0xff]  }
 0x118   :  { %1318 = vmatpush1.bf16.msra.mxu1 %v6615_v54  ;;  %v7552_v54 = vld [vmem:[#allocation8 + $0x16c] ss:$16 sps:$4 sm:$0xff]  }
 0x119   :  { %1319 = vmatprep.subr.bf16.mxu1 %v6632_v57  ;;  %v7550_v57 = vld [vmem:[#allocation8 + $0x168] ss:$16 sps:$4 sm:$0xff]  }
 0x11a   :  { %1277 = vmatpush1.bf16.msra.mxu0 %v6629_v52  ;;  %v7555_v52 = vld [vmem:[#allocation8 + $0x184] ss:$16 sps:$4 sm:$0xff]  }
 0x11b   :  { %1278 = vmatprep.subr.bf16.mxu0 %v6646_v53  ;;  %v7544_v53 = vld [vmem:[#allocation8 + $0x148] ss:$16 sps:$4 sm:$0xff]  }
 0x11c   :  { %1320 = vmatpush1.bf16.msra.mxu1 %v6631_v62  ;;  %v7564_v62 = vld [vmem:[#allocation8 + $0x1ac] ss:$16 sps:$4 sm:$0xff]  }
 0x11d   :  { %1321 = vmatprep.subr.bf16.mxu1 %v6648_v1  ;;  %v7573_v1 = vld [vmem:[#allocation8 + $0x1e4] ss:$16 sps:$4 sm:$0xff]  }
 0x11e   :  { %1279 = vmatpush1.bf16.msra.mxu0 %v6645_v60  ;;  %v7567_v60 = vld [vmem:[#allocation8 + $0x1c4] ss:$16 sps:$4 sm:$0xff]  }
 0x11f   :  { %1280 = vmatprep.subr.bf16.mxu0 %v6662_v61  ;;  %v7556_v61 = vld [vmem:[#allocation8 + $0x188] ss:$16 sps:$4 sm:$0xff]  }
 0x120   :  { %1322 = vmatpush1.bf16.msra.mxu1 %v6647_v6  ;;  %v7579_v6 = vld [vmem:[#allocation8 + $0x204] ss:$16 sps:$4 sm:$0xff]  }
 0x121   :  { %1323 = vmatprep.subr.bf16.mxu1 %v6664_v7  ;;  %v7568_v7 = vld [vmem:[#allocation8 + $0x1c8] ss:$16 sps:$4 sm:$0xff]  }
 0x122   :  { %1281 = vmatpush1.bf16.msra.mxu0 %v6661_v4  ;;  %v7571_v4 = vld [vmem:[#allocation8 + $0x1e0] ss:$16 sps:$4 sm:$0xff]  }
 0x123   :  { %4494 = vmatprep.subr.bf16.mxu0 %v7483_v3  ;;  %v7570_v3 = vld [vmem:[#allocation8 + $0x1cc] ss:$16 sps:$4 sm:$0xff]  }
 0x124   :  { %1324 = vmatpush1.bf16.msra.mxu1 %v6663_v10  ;;  %v7582_v10 = vld [vmem:[#allocation8 + $0x20c] ss:$16 sps:$4 sm:$0xff]  }
 0x125   :  { %1299 = vmatmul.mubr.bf16.vlgmr.msra.gmra.mrb[12].mxu0 %v8889_v5  ;;  %4838 = vmatprep.subr.bf16.mxu1 %v7486_v11  ;;  %v7507_v5 = vld [vmem:[#allocation8 + $0x84] ss:$16 sps:$4 sm:$0xff]   ;;  %v282_v11 = vlaneseq }
 0x126   :  { %4495 = vmatpush1.bf16.msra.mxu0 %v7481_v8  ;;  %v7576_v8 = vld [vmem:[#allocation8 + $0x1ec] ss:$16 sps:$4 sm:$0xff]  }
 0x127   :  { %4496 = vmatprep.subr.bf16.mxu0 %v7489_v9  ;;  %1342 = vmatmul.mubr.bf16.vlgmr.msra.gmra.mrb[12].mxu1 %v8473_v18  ;;  %v7574_v9 = vld [vmem:[#allocation8 + $0x1e8] ss:$16 sps:$4 sm:$0xff]  }
 0x128   :  { %4839 = vmatpush1.bf16.msra.mxu1 %v7484_v14 }
 0x129   :  { %4840 = vmatprep.subr.bf16.mxu1 %v7492_v15 }
 0x12a   :  { %4497 = vmatpush1.bf16.msra.mxu0 %v7487_v12  ;;  %v8904_v12 = vshrl.u32 %v282_v11, 7  ;;  %v7618_v11 = vld [vmem:[#allocation8 + $0x2cc] ss:$16 sps:$4 sm:$0xff]  }
 0x12b   :  { %4498 = vmatprep.subr.bf16.mxu0 %v7495_v13  ;;  %v8906_v13 = vld [vmem:[#allocation7] sm:$0xff] }
 0x12c   :  { %4841 = vmatpush1.bf16.msra.mxu1 %v7490_v19  ;;  %v8909_v14 = vsub.s32 0, %v8904_v12  ;;  %v8912_v15 = vsub.s32 1, %v8904_v12  ;;  %v8919_v18 = vsub.s32 2, %v8904_v12 }
 0x12d   :  { %4842 = vmatprep.subr.bf16.mxu1 %v7498_v20  ;;  %v8922_v20 = vsub.s32 3, %v8904_v12 }
 0x12e   :  { %4499 = vmatpush1.bf16.msra.mxu0 %v7493_v16  ;;  %v285_v16 = vrot.slane %v8906_v13, %v8909_v14 }
 0x12f   :  { %4500 = vmatprep.subr.bf16.mxu0 %v7501_v17  ;;  %v289_v17 = vrot.slane %v8906_v13, %v8912_v15 }
 0x130   :  { %4843 = vmatpush1.bf16.msra.mxu1 %v7496_v22 }
 0x131   :  { %4844 = vmatprep.subr.bf16.mxu1 %v7504_v23 }
 0x132   :  { %4501 = vmatpush1.bf16.msra.mxu0 %v7499_v21 }
 0x133   :  { %4502 = vmatprep.subr.bf16.mxu0 %v7507_v5 }
 0x134   :  { %4845 = vmatpush1.bf16.msra.mxu1 %v7502_v26  ;;  %v293_v26 = vrot.slane %v8906_v13, %v8919_v18 }
 0x135   :  { %4846 = vmatprep.subr.bf16.mxu1 %v7510_v27 }
 0x136   :  { %4503 = vmatpush1.bf16.msra.mxu0 %v7505_v24 }
 0x137   :  { %4504 = vmatprep.subr.bf16.mxu0 %v7513_v25 }
 0x138   :  { %4847 = vmatpush1.bf16.msra.mxu1 %v7508_v30 }
 0x139   :  { %4848 = vmatprep.subr.bf16.mxu1 %v7516_v31 }
 0x13a   :  { %4505 = vmatpush1.bf16.msra.mxu0 %v7511_v28  ;;  %v297_v28 = vrot.slane %v8906_v13, %v8922_v20 }
 0x13b   :  { %4506 = vmatprep.subr.bf16.mxu0 %v7519_v29 }
 0x13c   :  { %4849 = vmatpush1.bf16.msra.mxu1 %v7514_v34  ;;  %v7580_v34 = vld [vmem:[#allocation8 + $0x208] ss:$16 sps:$4 sm:$0xff]  }
 0x13d   :  { %4850 = vmatprep.subr.bf16.mxu1 %v7522_v35 }
 0x13e   :  { %4507 = vmatpush1.bf16.msra.mxu0 %v7517_v32 }
 0x13f   :  { %4508 = vmatprep.subr.bf16.mxu0 %v7525_v33  ;;  %v7577_v33 = vld [vmem:[#allocation8 + $0x200] ss:$16 sps:$4 sm:$0xff]  }
 0x140   :  { %4851 = vmatpush1.bf16.msra.mxu1 %v7520_v38 }
 0x141   :  { %4852 = vmatprep.subr.bf16.mxu1 %v7528_v39 }
 0x142   :  { %4509 = vmatpush1.bf16.msra.mxu0 %v7523_v36 }
 0x143   :  { %4510 = vmatprep.subr.bf16.mxu0 %v7531_v37 }
 0x144   :  { %4853 = vmatpush1.bf16.msra.mxu1 %v7526_v42  ;;  %v7585_v42 = vld [vmem:[#allocation8 + $0x224] ss:$16 sps:$4 sm:$0xff]  }
 0x145   :  { %4854 = vmatprep.subr.bf16.mxu1 %v7534_v43  ;;  %v7588_v43 = vld [vmem:[#allocation8 + $0x22c] ss:$16 sps:$4 sm:$0xff]  }
 0x146   :  { %4511 = vmatpush1.bf16.msra.mxu0 %v7529_v40 }
 0x147   :  { %4512 = vmatprep.subr.bf16.mxu0 %v7537_v41 }
 0x148   :  { %4855 = vmatpush1.bf16.msra.mxu1 %v7532_v46 }
 0x149   :  { %4856 = vmatprep.subr.bf16.mxu1 %v7540_v47 }
 0x14a   :  { %4513 = vmatpush1.bf16.msra.mxu0 %v7535_v44 }
 0x14b   :  { %4514 = vmatprep.subr.bf16.mxu0 %v7543_v45 }
 0x14c   :  { %4857 = vmatpush1.bf16.msra.mxu1 %v7538_v49  ;;  %v7583_v49 = vld [vmem:[#allocation8 + $0x220] ss:$16 sps:$4 sm:$0xff]  }
 0x14d   :  { %4858 = vmatprep.subr.bf16.mxu1 %v7546_v50  ;;  %v7586_v50 = vld [vmem:[#allocation8 + $0x228] ss:$16 sps:$4 sm:$0xff]  }
 0x14e   :  { %4515 = vmatpush1.bf16.msra.mxu0 %v7541_v0 }
 0x14f   :  { %4516 = vmatprep.subr.bf16.mxu0 %v7549_v48 }
 0x150   :  { %4859 = vmatpush1.bf16.msra.mxu1 %v7544_v53  ;;  %v7594_v53 = vld [vmem:[#allocation8 + $0x24c] ss:$16 sps:$4 sm:$0xff]  }
 0x151   :  { %4860 = vmatprep.subr.bf16.mxu1 %v7552_v54 }
 0x152   :  { %4517 = vmatpush1.bf16.msra.mxu0 %v7547_v51 }
 0x153   :  { %4518 = vmatprep.subr.bf16.mxu0 %v7555_v52  ;;  %v7591_v52 = vld [vmem:[#allocation8 + $0x244] ss:$16 sps:$4 sm:$0xff]  }
 0x154   :  { %4861 = vmatpush1.bf16.msra.mxu1 %v7550_v57  ;;  %v7592_v57 = vld [vmem:[#allocation8 + $0x248] ss:$16 sps:$4 sm:$0xff]  }
 0x155   :  { %4862 = vmatprep.subr.bf16.mxu1 %v7558_v58  ;;  %v7597_v58 = vld [vmem:[#allocation8 + $0x264] ss:$16 sps:$4 sm:$0xff]  }
 0x156   :  { %4519 = vmatpush1.bf16.msra.mxu0 %v7553_v55 }
 0x157   :  { %4520 = vmatprep.subr.bf16.mxu0 %v7561_v56  ;;  %v7589_v56 = vld [vmem:[#allocation8 + $0x240] ss:$16 sps:$4 sm:$0xff]  }
 0x158   :  { %4863 = vmatpush1.bf16.msra.mxu1 %v7556_v61  ;;  %v7598_v61 = vld [vmem:[#allocation8 + $0x268] ss:$16 sps:$4 sm:$0xff]  }
 0x159   :  { %4864 = vmatprep.subr.bf16.mxu1 %v7564_v62  ;;  %v7603_v62 = vld [vmem:[#allocation8 + $0x284] ss:$16 sps:$4 sm:$0xff]  }
 0x15a   :  { %4521 = vmatpush1.bf16.msra.mxu0 %v7559_v59  ;;  %v7600_v59 = vld [vmem:[#allocation8 + $0x26c] ss:$16 sps:$4 sm:$0xff]  }
 0x15b   :  { %4522 = vmatprep.subr.bf16.mxu0 %v7567_v60  ;;  %v7595_v60 = vld [vmem:[#allocation8 + $0x260] ss:$16 sps:$4 sm:$0xff]  }
 0x15c   :  { %4865 = vmatpush1.bf16.msra.mxu1 %v7562_v2  ;;  %v7604_v2 = vld [vmem:[#allocation8 + $0x288] ss:$16 sps:$4 sm:$0xff]  }
 0x15d   :  { %4866 = vmatprep.subr.bf16.mxu1 %v7570_v3  ;;  %v7609_v3 = vld [vmem:[#allocation8 + $0x2a4] ss:$16 sps:$4 sm:$0xff]  }
 0x15e   :  { %4523 = vmatpush1.bf16.msra.mxu0 %v7565_v63  ;;  %v7606_v63 = vld [vmem:[#allocation8 + $0x28c] ss:$16 sps:$4 sm:$0xff]  }
 0x15f   :  { %4524 = vmatprep.subr.bf16.mxu0 %v7573_v1  ;;  %v7601_v1 = vld [vmem:[#allocation8 + $0x280] ss:$16 sps:$4 sm:$0xff]  }
 0x160   :  { %4867 = vmatpush1.bf16.msra.mxu1 %v7568_v7  ;;  %v304_v7 = vsub.s32 5, %v8904_v12 }
 0x161   :  { %4868 = vmatprep.subr.bf16.mxu1 %v7576_v8  ;;  %v7607_v8 = vld [vmem:[#allocation8 + $0x2a0] ss:$16 sps:$4 sm:$0xff]  }
 0x162   :  { %4525 = vmatpush1.bf16.msra.mxu0 %v7571_v4  ;;  %v7612_v4 = vld [vmem:[#allocation8 + $0x2ac] ss:$16 sps:$4 sm:$0xff]  }
 0x163   :  { %4537 = vmatprep.subr.bf16.mxu0 %v7579_v6  ;;  %v300_v6 = vsub.s32 4, %v8904_v12 }
 0x164   :  { %4869 = vmatpush1.bf16.msra.mxu1 %v7574_v9  ;;  %v7610_v9 = vld [vmem:[#allocation8 + $0x2a8] ss:$16 sps:$4 sm:$0xff]  }
 0x165   :  { %4881 = vmatprep.subr.bf16.mxu1 %v7582_v10  ;;  %v7615_v10 = vld [vmem:[#allocation8 + $0x2c4] ss:$16 sps:$4 sm:$0xff]  }
 0x198   :  { %v1042_v19 = vpop.f32.mrb[0].mxu0  ;;  %v1085_v35 = vpop.f32.mrb[0].mxu1 }
 0x199   :  { %v1043_v21 = vadd.f32 %v1042_v19, %v285_v16  ;;  %v1044_v5 = vpop.f32.mrb[1].mxu0  ;;  %v1086_v37 = vadd.f32 %v1085_v35, %v293_v26  ;;  %v1087_v38 = vpop.f32.mrb[1].mxu1  ;;  %v305_v19 = vrot.slane %v8906_v13, %v304_v7  ;;  %v7622_v35 = vld [vmem:[#allocation8 + $0x2e8] ss:$16 sps:$4 sm:$0xff]  }
 0x19a   :  { %v1045_v22 = vadd.f32 %v1044_v5, %v289_v17  ;;  %v1046_v23 = vpop.f32.mrb[2].mxu0  ;;  %v1088_v40 = vadd.f32 %v1087_v38, %v297_v28  ;;  %v1089_v41 = vpop.f32.mrb[2].mxu1  ;;  %v7616_v5 = vld [vmem:[#allocation8 + $0x2c8] ss:$16 sps:$4 sm:$0xff]  }
 0x19b   :  { %v1047_v24 = vadd.f32 %v1046_v23, %v285_v16  ;;  %v1048_v25 = vpop.f32.mrb[3].mxu0  ;;  %v1352_v29 = vmax.f32 %v1043_v21, 0.0  ;;  %v1354_v44 = vmax.f32 %v1086_v37, 0.0  ;;  %v1090_v45 = vadd.f32 %v1089_v41, %v293_v26  ;;  %v1091_v46 = vpop.f32.mrb[3].mxu1 }
 0x19c   :  { %v1049_v27 = vadd.f32 %v1048_v25, %v289_v17  ;;  %v1353_v31 = vmax.f32 %v1045_v22, 0.0  ;;  %v1355_v47 = vmax.f32 %v1088_v40, 0.0  ;;  %v1092_v0 = vadd.f32 %v1091_v46, %v297_v28  ;;  %v7613_v17 = vld [vmem:[#allocation8 + $0x2c0] ss:$16 sps:$4 sm:$0xff]   ;;  %v7624_v25 = vld [vmem:[#allocation8 + $0x2ec] ss:$16 sps:$4 sm:$0xff]  }
 0x19d   :  { %v1368_v30 = vmax.f32 %v1047_v24, 0.0  ;;  %v1370_v48 = vmax.f32 %v1090_v45, 0.0  ;;  %v301_v16 = vrot.slane %v8906_v13, %v300_v6  ;;  %v308_v21 = vsub.s32 6, %v8904_v12  ;;  %v7621_v24 = vld [vmem:[#allocation8 + $0x2e4] ss:$16 sps:$4 sm:$0xff]  }
 0x19e   :  { %v1369_v32 = vmax.f32 %v1049_v27, 0.0  ;;  %v1371_v51 = vmax.f32 %v1092_v0, 0.0  ;;  %v312_v23 = vsub.s32 7, %v8904_v12  ;;  %v7630_v40 = vld [vmem:[#allocation8 + $0x30c] ss:$16 sps:$4 sm:$0xff]  }
 0x19f   :  { %v1384_v36 = vpack.c.bf16 %v1368_v30, %v1352_v29  ;;  %v8928_v54 = vpack.c.bf16 %v1370_v48, %v1354_v44  ;;  %v7628_v0 = vld [vmem:[#allocation8 + $0x308] ss:$16 sps:$4 sm:$0xff]  }
 0x1a0   :  { %v1385_v39 = vpack.c.bf16 %v1369_v32, %v1353_v31  ;;  %v1387_v55 = vpack.c.bf16 %v1371_v51, %v1355_v47  ;;  %v313_v38 = vrot.slane %v8906_v13, %v312_v23  ;;  %v7625_v47 = vld [vmem:[#allocation8 + $0x300] ss:$16 sps:$4 sm:$0xff]   ;;  %v7636_v51 = vld [vmem:[#allocation8 + $0x32c] ss:$16 sps:$4 sm:$0xff]  }
 0x1a2   :  { %4526 = vmatprep.mubr.bf16.mxu0 %v1385_v39  ;;  %4870 = vmatprep.mubr.bf16.mxu1 %v1385_v39  ;;  %v7627_v39 = vld [vmem:[#allocation8 + $0x304] ss:$16 sps:$4 sm:$0xff]  }
 0x1a3   :  { %4527 = vmatmul.mubr.bf16.vlgmr.msra.gmra.mrb[16].mxu0 %v1384_v36  ;;  %4871 = vmatmul.mubr.bf16.vlgmr.msra.gmra.mrb[16].mxu1 %v1384_v36 }
 0x1a4   :  { %4538 = vmatpush1.bf16.msra.mxu0 %v7577_v33  ;;  %4882 = vmatpush1.bf16.msra.mxu1 %v7580_v34  ;;  %v309_v33 = vrot.slane %v8906_v13, %v308_v21  ;;  %v7619_v34 = vld [vmem:[#allocation8 + $0x2e0] ss:$16 sps:$4 sm:$0xff]   ;;  %v7633_v13 = vld [vmem:[#allocation8 + $0x324] ss:$16 sps:$4 sm:$0xff]  }
 0x1a5   :  { %4539 = vmatprep.subr.bf16.mxu0 %v7585_v42  ;;  %4883 = vmatprep.subr.bf16.mxu1 %v7588_v43 }
 0x1a6   :  { %4569 = vmatprep.mubr.bf16.mxu0 %v1387_v55  ;;  %4913 = vmatprep.mubr.bf16.mxu1 %v1387_v55 }
 0x1a8   :  { %4540 = vmatpush1.bf16.msra.mxu0 %v7583_v49  ;;  %4884 = vmatpush1.bf16.msra.mxu1 %v7586_v50 }
 0x1a9   :  { %4541 = vmatprep.subr.bf16.mxu0 %v7591_v52  ;;  %4885 = vmatprep.subr.bf16.mxu1 %v7594_v53 }
 0x1ac   :  { %4542 = vmatpush1.bf16.msra.mxu0 %v7589_v56  ;;  %4886 = vmatpush1.bf16.msra.mxu1 %v7592_v57 }
 0x1ad   :  { %4543 = vmatprep.subr.bf16.mxu0 %v7597_v58  ;;  %4887 = vmatprep.subr.bf16.mxu1 %v7600_v59  ;;  %v7631_v59 = vld [vmem:[#allocation8 + $0x320] ss:$16 sps:$4 sm:$0xff]  }
 0x1b0   :  { %4544 = vmatpush1.bf16.msra.mxu0 %v7595_v60  ;;  %4888 = vmatpush1.bf16.msra.mxu1 %v7598_v61  ;;  %v7634_v60 = vld [vmem:[#allocation8 + $0x328] ss:$16 sps:$4 sm:$0xff]  }
 0x1b1   :  { %4545 = vmatprep.subr.bf16.mxu0 %v7603_v62  ;;  %4889 = vmatprep.subr.bf16.mxu1 %v7606_v63  ;;  %v7639_v62 = vld [vmem:[#allocation8 + $0x344] ss:$16 sps:$4 sm:$0xff]   ;;  %v7642_v63 = vld [vmem:[#allocation8 + $0x34c] ss:$16 sps:$4 sm:$0xff]  }
 0x1b4   :  { %4546 = vmatpush1.bf16.msra.mxu0 %v7601_v1  ;;  %4890 = vmatpush1.bf16.msra.mxu1 %v7604_v2 }
 0x1b5   :  { %4547 = vmatprep.subr.bf16.mxu0 %v7609_v3  ;;  %4891 = vmatprep.subr.bf16.mxu1 %v7612_v4  ;;  %v7637_v3 = vld [vmem:[#allocation8 + $0x340] ss:$16 sps:$4 sm:$0xff]   ;;  %v7640_v4 = vld [vmem:[#allocation8 + $0x348] ss:$16 sps:$4 sm:$0xff]  }
 0x1b8   :  { %4548 = vmatpush1.bf16.msra.mxu0 %v7607_v8  ;;  %4892 = vmatpush1.bf16.msra.mxu1 %v7610_v9  ;;  %v1128_v22 = vpop.f32.mrb[4].mxu0  ;;  %v7645_v8 = vld [vmem:[#allocation8 + $0x364] ss:$16 sps:$4 sm:$0xff]   ;;  %v7648_v9 = vld [vmem:[#allocation8 + $0x36c] ss:$16 sps:$4 sm:$0xff]  }
 0x1b9   :  { %4549 = vmatprep.subr.bf16.mxu0 %v7615_v10  ;;  %4893 = vmatprep.subr.bf16.mxu1 %v7618_v11  ;;  %v1129_v26 = vadd.f32 %v1128_v22, %v301_v16  ;;  %v1130_v27 = vpop.f32.mrb[5].mxu0  ;;  %v7643_v10 = vld [vmem:[#allocation8 + $0x360] ss:$16 sps:$4 sm:$0xff]   ;;  %v7646_v11 = vld [vmem:[#allocation8 + $0x368] ss:$16 sps:$4 sm:$0xff]  }
 0x1ba   :  { %v1131_v28 = vadd.f32 %v1130_v27, %v305_v19  ;;  %v1132_v29 = vpop.f32.mrb[6].mxu0  ;;  %v1171_v43 = vpop.f32.mrb[4].mxu1  ;;  %v7657_v22 = vld [vmem:[#allocation8 + $0x3a4] ss:$16 sps:$4 sm:$0xff]   ;;  %v7658_v27 = vld [vmem:[#allocation8 + $0x3a8] ss:$16 sps:$4 sm:$0xff]  }
 0x1bb   :  { %v1356_v30 = vmax.f32 %v1129_v26, 0.0  ;;  %v1133_v31 = vadd.f32 %v1132_v29, %v301_v16  ;;  %v1134_v32 = vpop.f32.mrb[7].mxu0  ;;  %v1172_v45 = vadd.f32 %v1171_v43, %v309_v33  ;;  %v1173_v46 = vpop.f32.mrb[5].mxu1  ;;  %v7651_v16 = vld [vmem:[#allocation8 + $0x384] ss:$16 sps:$4 sm:$0xff]  }
 0x1bc   :  { %4550 = vmatpush1.bf16.msra.mxu0 %v7613_v17  ;;  %4894 = vmatpush1.bf16.msra.mxu1 %v7616_v5  ;;  %v1357_v36 = vmax.f32 %v1131_v28, 0.0  ;;  %v1135_v37 = vadd.f32 %v1134_v32, %v305_v19  ;;  %v1174_v49 = vadd.f32 %v1173_v46, %v313_v38  ;;  %v1175_v50 = vpop.f32.mrb[6].mxu1  ;;  %v7654_v17 = vld [vmem:[#allocation8 + $0x38c] ss:$16 sps:$4 sm:$0xff]   ;;  %v7649_v19 = vld [vmem:[#allocation8 + $0x380] ss:$16 sps:$4 sm:$0xff]  }
 0x1bd   :  { %4551 = vmatprep.subr.bf16.mxu0 %v7621_v24  ;;  %4895 = vmatprep.subr.bf16.mxu1 %v7624_v25  ;;  %v1372_v41 = vmax.f32 %v1133_v31, 0.0  ;;  %v1358_v52 = vmax.f32 %v1172_v45, 0.0  ;;  %v1176_v53 = vadd.f32 %v1175_v50, %v309_v33  ;;  %v1177_v55 = vpop.f32.mrb[7].mxu1  ;;  %v7652_v5 = vld [vmem:[#allocation8 + $0x388] ss:$16 sps:$4 sm:$0xff]  }
 0x1be   :  { %v1373_v42 = vmax.f32 %v1135_v37, 0.0  ;;  %v1359_v56 = vmax.f32 %v1174_v49, 0.0  ;;  %v1178_v57 = vadd.f32 %v1177_v55, %v313_v38  ;;  %v7660_v24 = vld [vmem:[#allocation8 + $0x3ac] ss:$16 sps:$4 sm:$0xff]   ;;  %v7655_v26 = vld [vmem:[#allocation8 + $0x3a0] ss:$16 sps:$4 sm:$0xff]  }
 0x1bf   :  { %v8946_v44 = vpack.c.bf16 %v1372_v41, %v1356_v30  ;;  %v1374_v58 = vmax.f32 %v1176_v53, 0.0  ;;  %v8954_v25 = vld [vmem:[#allocation7 + $0x8] sm:$0xff]  ;;  %v7663_v28 = vld [vmem:[#allocation8 + $0x3c4] ss:$16 sps:$4 sm:$0xff]   ;;  %v7661_v32 = vld [vmem:[#allocation8 + $0x3c0] ss:$16 sps:$4 sm:$0xff]  }
 0x1c0   :  { %4552 = vmatpush1.bf16.msra.mxu0 %v7619_v34  ;;  %4896 = vmatpush1.bf16.msra.mxu1 %v7622_v35  ;;  %v8948_v48 = vpack.c.bf16 %v1373_v42, %v1357_v36  ;;  %v1375_v61 = vmax.f32 %v1178_v57, 0.0  ;;  %v7666_v29 = vld [vmem:[#allocation8 + $0x3cc] ss:$16 sps:$4 sm:$0xff]   ;;  %v317_v30 = vrot.slane %v8954_v25, %v8909_v14  ;;  %v321_v31 = vrot.slane %v8954_v25, %v8912_v15  ;;  %v7664_v33 = vld [vmem:[#allocation8 + $0x3c8] ss:$16 sps:$4 sm:$0xff]  }
 0x1c1   :  { %4553 = vmatprep.subr.bf16.mxu0 %v7627_v39  ;;  %4897 = vmatprep.subr.bf16.mxu1 %v7630_v40  ;;  %v8950_v1 = vpack.c.bf16 %v1374_v58, %v1358_v52  ;;  %v7669_v35 = vld [vmem:[#allocation8 + $0x3e4] ss:$16 sps:$4 sm:$0xff]   ;;  %v7672_v36 = vld [vmem:[#allocation8 + $0x3ec] ss:$16 sps:$4 sm:$0xff]   ;;  %v325_v45 = vrot.slane %v8954_v25, %v8919_v18  ;;  %v7667_v46 = vld [vmem:[#allocation8 + $0x3e0] ss:$16 sps:$4 sm:$0xff]   ;;  %v329_v50 = vrot.slane %v8954_v25, %v8922_v20 }
 0x1c2   :  { %v8952_v2 = vpack.c.bf16 %v1375_v61, %v1359_v56  ;;  %v7673_v53 = vld [vmem:[#allocation8 + $0x400] ss:$16 sps:$4 sm:$0xff]   ;;  %v7676_v55 = vld [vmem:[#allocation8 + $0x408] ss:$16 sps:$4 sm:$0xff]  }
 0x1c4   :  { %4554 = vmatpush1.bf16.msra.mxu0 %v7625_v47  ;;  %4898 = vmatpush1.bf16.msra.mxu1 %v7628_v0  ;;  %v7670_v47 = vld [vmem:[#allocation8 + $0x3e8] ss:$16 sps:$4 sm:$0xff]  }
 0x1c5   :  { %4555 = vmatprep.subr.bf16.mxu0 %v7633_v13  ;;  %4899 = vmatprep.subr.bf16.mxu1 %v7636_v51  ;;  %v7675_v13 = vld [vmem:[#allocation8 + $0x404] ss:$16 sps:$4 sm:$0xff]   ;;  %v7678_v51 = vld [vmem:[#allocation8 + $0x40c] ss:$16 sps:$4 sm:$0xff]  }
 0x1c8   :  { %4556 = vmatpush1.bf16.msra.mxu0 %v7631_v59  ;;  %4900 = vmatpush1.bf16.msra.mxu1 %v7634_v60 }
 0x1c9   :  { %4557 = vmatprep.subr.bf16.mxu0 %v7639_v62  ;;  %4901 = vmatprep.subr.bf16.mxu1 %v7642_v63 }
 0x1cc   :  { %4558 = vmatpush1.bf16.msra.mxu0 %v7637_v3  ;;  %4902 = vmatpush1.bf16.msra.mxu1 %v7640_v4  ;;  %v7681_v3 = vld [vmem:[#allocation8 + $0x424] ss:$16 sps:$4 sm:$0xff]   ;;  %v7684_v4 = vld [vmem:[#allocation8 + $0x42c] ss:$16 sps:$4 sm:$0xff]  }
 0x1cd   :  { %4559 = vmatprep.subr.bf16.mxu0 %v7645_v8  ;;  %4903 = vmatprep.subr.bf16.mxu1 %v7648_v9 }
 0x1d0   :  { %4560 = vmatpush1.bf16.msra.mxu0 %v7643_v10  ;;  %4904 = vmatpush1.bf16.msra.mxu1 %v7646_v11  ;;  %v7679_v11 = vld [vmem:[#allocation8 + $0x420] ss:$16 sps:$4 sm:$0xff]  }
 0x1d1   :  { %4561 = vmatprep.subr.bf16.mxu0 %v7651_v16  ;;  %4905 = vmatprep.subr.bf16.mxu1 %v7654_v17  ;;  %v7682_v16 = vld [vmem:[#allocation8 + $0x428] ss:$16 sps:$4 sm:$0xff]  }
 0x1d4   :  { %4562 = vmatpush1.bf16.msra.mxu0 %v7649_v19  ;;  %4906 = vmatpush1.bf16.msra.mxu1 %v7652_v5 }
 0x1d5   :  { %4563 = vmatprep.subr.bf16.mxu0 %v7657_v22  ;;  %4907 = vmatprep.subr.bf16.mxu1 %v7660_v24  ;;  %v7687_v24 = vld [vmem:[#allocation8 + $0x444] ss:$16 sps:$4 sm:$0xff]  }
 0x1d8   :  { %4564 = vmatpush1.bf16.msra.mxu0 %v7655_v26  ;;  %4908 = vmatpush1.bf16.msra.mxu1 %v7658_v27  ;;  %v1214_v34 = vpop.f32.mrb[8].mxu0  ;;  %v7690_v26 = vld [vmem:[#allocation8 + $0x44c] ss:$16 sps:$4 sm:$0xff]  }
 0x1d9   :  { %4565 = vmatprep.subr.bf16.mxu0 %v7663_v28  ;;  %4909 = vmatprep.subr.bf16.mxu1 %v7666_v29  ;;  %v1215_v37 = vadd.f32 %v1214_v34, %v317_v30  ;;  %v1216_v38 = vpop.f32.mrb[9].mxu0  ;;  %v7685_v28 = vld [vmem:[#allocation8 + $0x440] ss:$16 sps:$4 sm:$0xff]   ;;  %v7688_v29 = vld [vmem:[#allocation8 + $0x448] ss:$16 sps:$4 sm:$0xff]  }
 0x1da   :  { %v1217_v39 = vadd.f32 %v1216_v38, %v321_v31  ;;  %v1218_v40 = vpop.f32.mrb[10].mxu0  ;;  %v1257_v57 = vpop.f32.mrb[8].mxu1  ;;  %v7699_v34 = vld [vmem:[#allocation8 + $0x484] ss:$16 sps:$4 sm:$0xff]   ;;  %v7708_v38 = vld [vmem:[#allocation8 + $0x4ac] ss:$16 sps:$4 sm:$0xff]  }
 0x1db   :  { %v1360_v41 = vmax.f32 %v1215_v37, 0.0  ;;  %v1219_v42 = vadd.f32 %v1218_v40, %v317_v30  ;;  %v1220_v43 = vpop.f32.mrb[11].mxu0  ;;  %v1258_v59 = vadd.f32 %v1257_v57, %v325_v45  ;;  %v1259_v60 = vpop.f32.mrb[9].mxu1  ;;  %v7700_v37 = vld [vmem:[#allocation8 + $0x488] ss:$16 sps:$4 sm:$0xff]  }
 0x1dc   :  { %4566 = vmatpush1.bf16.msra.mxu0 %v7661_v32  ;;  %4910 = vmatpush1.bf16.msra.mxu1 %v7664_v33  ;;  %v1361_v0 = vmax.f32 %v1217_v39, 0.0  ;;  %v1221_v49 = vadd.f32 %v1220_v43, %v321_v31  ;;  %v1260_v62 = vadd.f32 %v1259_v60, %v329_v50  ;;  %v1261_v63 = vpop.f32.mrb[10].mxu1  ;;  %v7696_v31 = vld [vmem:[#allocation8 + $0x46c] ss:$16 sps:$4 sm:$0xff]   ;;  %v7691_v32 = vld [vmem:[#allocation8 + $0x460] ss:$16 sps:$4 sm:$0xff]   ;;  %v333_v43 = vrot.slane %v8954_v25, %v300_v6 }
 0x1dd   :  { %4567 = vmatprep.subr.bf16.mxu0 %v7669_v35  ;;  %4911 = vmatprep.subr.bf16.mxu1 %v7672_v36  ;;  %v1376_v52 = vmax.f32 %v1219_v42, 0.0  ;;  %v1362_v8 = vmax.f32 %v1258_v59, 0.0  ;;  %v1262_v9 = vadd.f32 %v1261_v63, %v325_v45  ;;  %v1263_v10 = vpop.f32.mrb[11].mxu1  ;;  %v7694_v33 = vld [vmem:[#allocation8 + $0x468] ss:$16 sps:$4 sm:$0xff]   ;;  %v345_v63 = vrot.slane %v8954_v25, %v312_v23 }
 0x1de   :  { %v1377_v56 = vmax.f32 %v1221_v49, 0.0  ;;  %v1363_v17 = vmax.f32 %v1260_v62, 0.0  ;;  %v1264_v19 = vadd.f32 %v1263_v10, %v329_v50  ;;  %v7702_v35 = vld [vmem:[#allocation8 + $0x48c] ss:$16 sps:$4 sm:$0xff]   ;;  %v7697_v36 = vld [vmem:[#allocation8 + $0x480] ss:$16 sps:$4 sm:$0xff]  }
 0x1df   :  { %v8964_v58 = vpack.c.bf16 %v1376_v52, %v1360_v41  ;;  %v1378_v5 = vmax.f32 %v1262_v9, 0.0  ;;  %v7703_v39 = vld [vmem:[#allocation8 + $0x4a0] ss:$16 sps:$4 sm:$0xff]   ;;  %v7706_v40 = vld [vmem:[#allocation8 + $0x4a8] ss:$16 sps:$4 sm:$0xff]  }
 0x1e0   :  { %4568 = vmatpush1.bf16.msra.mxu0 %v7667_v46  ;;  %4912 = vmatpush1.bf16.msra.mxu1 %v7670_v47  ;;  %v8966_v61 = vpack.c.bf16 %v1377_v56, %v1361_v0  ;;  %v1379_v22 = vmax.f32 %v1264_v19, 0.0  ;;  %v7711_v41 = vld [vmem:[#allocation8 + $0x4c4] ss:$16 sps:$4 sm:$0xff]   ;;  %v7714_v42 = vld [vmem:[#allocation8 + $0x4cc] ss:$16 sps:$4 sm:$0xff]   ;;  %v337_v47 = vrot.slane %v8954_v25, %v304_v7  ;;  %v341_v7 = vrot.slane %v8954_v25, %v308_v21 }
 0x1e1   :  { %4580 = vmatprep.subr.bf16.mxu0 %v7675_v13  ;;  %4924 = vmatprep.subr.bf16.mxu1 %v7678_v51  ;;  %v8970_v27 = vpack.c.bf16 %v1378_v5, %v1362_v8  ;;  %v7709_v45 = vld [vmem:[#allocation8 + $0x4c0] ss:$16 sps:$4 sm:$0xff]   ;;  %v7712_v46 = vld [vmem:[#allocation8 + $0x4c8] ss:$16 sps:$4 sm:$0xff]   ;;  %v7717_v49 = vld [vmem:[#allocation8 + $0x4e4] ss:$16 sps:$4 sm:$0xff]  }
 0x1e2   :  { %v8974_v30 = vpack.c.bf16 %v1379_v22, %v1363_v17  ;;  %v7720_v50 = vld [vmem:[#allocation8 + $0x4ec] ss:$16 sps:$4 sm:$0xff]   ;;  %v7715_v52 = vld [vmem:[#allocation8 + $0x4e0] ss:$16 sps:$4 sm:$0xff]   ;;  %v7724_v10 = vld [vmem:[#allocation8 + $0x508] ss:$16 sps:$4 sm:$0xff]  }
 0x1e3   :  { %4570 = vmatmul.mubr.bf16.vlgmr.msra.gmra.mrb[16].mxu0 %v8928_v54  ;;  %4914 = vmatmul.mubr.bf16.vlgmr.msra.gmra.mrb[16].mxu1 %v8928_v54  ;;  %v7693_v54 = vld [vmem:[#allocation8 + $0x464] ss:$16 sps:$4 sm:$0xff]   ;;  %v7721_v9 = vld [vmem:[#allocation8 + $0x500] ss:$16 sps:$4 sm:$0xff]   ;;  %v7732_v25 = vld [vmem:[#allocation8 + $0x52c] ss:$16 sps:$4 sm:$0xff]  }
 0x1e4   :  { %4581 = vmatpush1.bf16.msra.mxu0 %v7673_v53  ;;  %4925 = vmatpush1.bf16.msra.mxu1 %v7676_v55  ;;  %v7718_v53 = vld [vmem:[#allocation8 + $0x4e8] ss:$16 sps:$4 sm:$0xff]   ;;  %v7729_v23 = vld [vmem:[#allocation8 + $0x524] ss:$16 sps:$4 sm:$0xff]  }
 0x1e5   :  { %4582 = vmatprep.subr.bf16.mxu0 %v7681_v3  ;;  %4926 = vmatprep.subr.bf16.mxu1 %v7684_v4  ;;  %v7723_v3 = vld [vmem:[#allocation8 + $0x504] ss:$16 sps:$4 sm:$0xff]   ;;  %v7726_v4 = vld [vmem:[#allocation8 + $0x50c] ss:$16 sps:$4 sm:$0xff]  }
 0x1e6   :  { %4612 = vmatprep.mubr.bf16.mxu0 %v8948_v48  ;;  %4956 = vmatprep.mubr.bf16.mxu1 %v8948_v48  ;;  %v7705_v48 = vld [vmem:[#allocation8 + $0x4a4] ss:$16 sps:$4 sm:$0xff]  }
 0x1e8   :  { %4583 = vmatpush1.bf16.msra.mxu0 %v7679_v11  ;;  %4927 = vmatpush1.bf16.msra.mxu1 %v7682_v16 }
 0x1e9   :  { %4584 = vmatprep.subr.bf16.mxu0 %v7687_v24  ;;  %4928 = vmatprep.subr.bf16.mxu1 %v7690_v26 }
 0x1ec   :  { %4585 = vmatpush1.bf16.msra.mxu0 %v7685_v28  ;;  %4929 = vmatpush1.bf16.msra.mxu1 %v7688_v29  ;;  %v7727_v29 = vld [vmem:[#allocation8 + $0x520] ss:$16 sps:$4 sm:$0xff]  }
 0x1ed   :  { %4586 = vmatprep.subr.bf16.mxu0 %v7693_v54  ;;  %4930 = vmatprep.subr.bf16.mxu1 %v7696_v31  ;;  %v7730_v54 = vld [vmem:[#allocation8 + $0x528] ss:$16 sps:$4 sm:$0xff]  }
 0x1f0   :  { %4587 = vmatpush1.bf16.msra.mxu0 %v7691_v32  ;;  %4931 = vmatpush1.bf16.msra.mxu1 %v7694_v33 }
 0x1f1   :  { %4588 = vmatprep.subr.bf16.mxu0 %v7699_v34  ;;  %4932 = vmatprep.subr.bf16.mxu1 %v7702_v35  ;;  %v7735_v35 = vld [vmem:[#allocation8 + $0x544] ss:$16 sps:$4 sm:$0xff]  }
 0x1f4   :  { %4589 = vmatpush1.bf16.msra.mxu0 %v7697_v36  ;;  %4933 = vmatpush1.bf16.msra.mxu1 %v7700_v37  ;;  %v7738_v36 = vld [vmem:[#allocation8 + $0x54c] ss:$16 sps:$4 sm:$0xff]  }
 0x1f5   :  { %4590 = vmatprep.subr.bf16.mxu0 %v7705_v48  ;;  %4934 = vmatprep.subr.bf16.mxu1 %v7708_v38  ;;  %v7733_v48 = vld [vmem:[#allocation8 + $0x540] ss:$16 sps:$4 sm:$0xff]   ;;  %v7736_v38 = vld [vmem:[#allocation8 + $0x548] ss:$16 sps:$4 sm:$0xff]  }
 0x1f8   :  { %4591 = vmatpush1.bf16.msra.mxu0 %v7703_v39  ;;  %4935 = vmatpush1.bf16.msra.mxu1 %v7706_v40  ;;  %v1300_v0 = vpop.f32.mrb[12].mxu0  ;;  %v7741_v40 = vld [vmem:[#allocation8 + $0x564] ss:$16 sps:$4 sm:$0xff]  }
 0x1f9   :  { %4592 = vmatprep.subr.bf16.mxu0 %v7711_v41  ;;  %4936 = vmatprep.subr.bf16.mxu1 %v7714_v42  ;;  %v1301_v13 = vadd.f32 %v1300_v0, %v333_v43  ;;  %v1302_v51 = vpop.f32.mrb[13].mxu0  ;;  %v7744_v41 = vld [vmem:[#allocation8 + $0x56c] ss:$16 sps:$4 sm:$0xff]   ;;  %v7739_v42 = vld [vmem:[#allocation8 + $0x560] ss:$16 sps:$4 sm:$0xff]  }
 0x1fa   :  { %v1303_v55 = vadd.f32 %v1302_v51, %v337_v47  ;;  %v1304_v56 = vpop.f32.mrb[14].mxu0  ;;  %v1343_v16 = vpop.f32.mrb[12].mxu1  ;;  %v7748_v0 = vld [vmem:[#allocation8 + $0x588] ss:$16 sps:$4 sm:$0xff]  }
 0x1fb   :  { %v1364_v6 = vmax.f32 %v1301_v13, 0.0  ;;  %v1305_v57 = vadd.f32 %v1304_v56, %v333_v43  ;;  %v1306_v59 = vpop.f32.mrb[15].mxu0  ;;  %v1344_v21 = vadd.f32 %v1343_v16, %v341_v7  ;;  %v1345_v19 = vpop.f32.mrb[13].mxu1  ;;  %v7742_v43 = vld [vmem:[#allocation8 + $0x568] ss:$16 sps:$4 sm:$0xff]  }
 0x1fc   :  { %4593 = vmatpush1.bf16.msra.mxu0 %v7709_v45  ;;  %4937 = vmatpush1.bf16.msra.mxu1 %v7712_v46  ;;  %v1365_v60 = vmax.f32 %v1303_v55, 0.0  ;;  %v1307_v62 = vadd.f32 %v1306_v59, %v337_v47  ;;  %v1346_v12 = vadd.f32 %v1345_v19, %v345_v63  ;;  %v1347_v22 = vpop.f32.mrb[14].mxu1  ;;  %v7747_v45 = vld [vmem:[#allocation8 + $0x584] ss:$16 sps:$4 sm:$0xff]   ;;  %v7750_v46 = vld [vmem:[#allocation8 + $0x58c] ss:$16 sps:$4 sm:$0xff]  }
 0x1fd   :  { %4594 = vmatprep.subr.bf16.mxu0 %v7717_v49  ;;  %4938 = vmatprep.subr.bf16.mxu1 %v7720_v50  ;;  %v1380_v8 = vmax.f32 %v1305_v57, 0.0  ;;  %v1366_v24 = vmax.f32 %v1344_v21, 0.0  ;;  %v1348_v26 = vadd.f32 %v1347_v22, %v341_v7  ;;  %v1349_v28 = vpop.f32.mrb[15].mxu1  ;;  %v7745_v47 = vld [vmem:[#allocation8 + $0x580] ss:$16 sps:$4 sm:$0xff]  }
 0x1fe   :  { %v1381_v11 = vmax.f32 %v1307_v62, 0.0  ;;  %v1367_v31 = vmax.f32 %v1346_v12, 0.0  ;;  %v1350_v32 = vadd.f32 %v1349_v28, %v345_v63  ;;  %v7753_v49 = vld [vmem:[#allocation8 + $0x5a4] ss:$16 sps:$4 sm:$0xff]   ;;  %v7756_v50 = vld [vmem:[#allocation8 + $0x5ac] ss:$16 sps:$4 sm:$0xff]  }
 0x1ff   :  { %v8988_v17 = vpack.c.bf16 %v1380_v8, %v1364_v6  ;;  %v1382_v33 = vmax.f32 %v1348_v26, 0.0  ;;  %v7751_v13 = vld [vmem:[#allocation8 + $0x5a0] ss:$16 sps:$4 sm:$0xff]   ;;  %v7754_v51 = vld [vmem:[#allocation8 + $0x5a8] ss:$16 sps:$4 sm:$0xff]  }
 0x200   :  { %4595 = vmatpush1.bf16.msra.mxu0 %v7715_v52  ;;  %4939 = vmatpush1.bf16.msra.mxu1 %v7718_v53  ;;  %v8990_v5 = vpack.c.bf16 %v1381_v11, %v1365_v60  ;;  %v1383_v34 = vmax.f32 %v1350_v32, 0.0  ;;  %v7759_v52 = vld [vmem:[#allocation8 + $0x5c4] ss:$16 sps:$4 sm:$0xff]   ;;  %v7762_v53 = vld [vmem:[#allocation8 + $0x5cc] ss:$16 sps:$4 sm:$0xff]  }
 0x201   :  { %4596 = vmatprep.subr.bf16.mxu0 %v7723_v3  ;;  %4940 = vmatprep.subr.bf16.mxu1 %v7726_v4  ;;  %v8992_v37 = vpack.c.bf16 %v1382_v33, %v1366_v24  ;;  %v7757_v55 = vld [vmem:[#allocation8 + $0x5c0] ss:$16 sps:$4 sm:$0xff]   ;;  %v7760_v56 = vld [vmem:[#allocation8 + $0x5c8] ss:$16 sps:$4 sm:$0xff]   ;;  %v7765_v6 = vld [vmem:[#allocation8 + $0x5e4] ss:$16 sps:$4 sm:$0xff]  }
 0x202   :  { %v8994_v39 = vpack.c.bf16 %v1383_v34, %v1367_v31  ;;  %v7768_v57 = vld [vmem:[#allocation8 + $0x5ec] ss:$16 sps:$4 sm:$0xff]   ;;  %v7763_v59 = vld [vmem:[#allocation8 + $0x5e0] ss:$16 sps:$4 sm:$0xff]   ;;  %v7766_v7 = vld [vmem:[#allocation8 + $0x5e8] ss:$16 sps:$4 sm:$0xff]  }
 0x203   :  { %v7771_v60 = vld [vmem:[#allocation8 + $0x604] ss:$16 sps:$4 sm:$0xff]   ;;  %v7774_v62 = vld [vmem:[#allocation8 + $0x60c] ss:$16 sps:$4 sm:$0xff]   ;;  %v7769_v63 = vld [vmem:[#allocation8 + $0x600] ss:$16 sps:$4 sm:$0xff]  }
 0x204   :  { %4597 = vmatpush1.bf16.msra.mxu0 %v7721_v9  ;;  %4941 = vmatpush1.bf16.msra.mxu1 %v7724_v10  ;;  %v7772_v3 = vld [vmem:[#allocation8 + $0x608] ss:$16 sps:$4 sm:$0xff]   ;;  %v7777_v4 = vld [vmem:[#allocation8 + $0x624] ss:$16 sps:$4 sm:$0xff]   ;;  %v7780_v8 = vld [vmem:[#allocation8 + $0x62c] ss:$16 sps:$4 sm:$0xff]  }
 0x205   :  { %4598 = vmatprep.subr.bf16.mxu0 %v7729_v23  ;;  %4942 = vmatprep.subr.bf16.mxu1 %v7732_v25  ;;  %v7775_v9 = vld [vmem:[#allocation8 + $0x620] ss:$16 sps:$4 sm:$0xff]   ;;  %v7778_v10 = vld [vmem:[#allocation8 + $0x628] ss:$16 sps:$4 sm:$0xff]   ;;  %v7783_v11 = vld [vmem:[#allocation8 + $0x644] ss:$16 sps:$4 sm:$0xff]  }
 0x206   :  { %v7786_v16 = vld [vmem:[#allocation8 + $0x64c] ss:$16 sps:$4 sm:$0xff]   ;;  %v7781_v21 = vld [vmem:[#allocation8 + $0x640] ss:$16 sps:$4 sm:$0xff]   ;;  %v7784_v19 = vld [vmem:[#allocation8 + $0x648] ss:$16 sps:$4 sm:$0xff]  }
 0x207   :  { %v7789_v12 = vld [vmem:[#allocation8 + $0x664] ss:$16 sps:$4 sm:$0xff]   ;;  %v7792_v22 = vld [vmem:[#allocation8 + $0x66c] ss:$16 sps:$4 sm:$0xff]   ;;  %v7790_v23 = vld [vmem:[#allocation8 + $0x668] ss:$16 sps:$4 sm:$0xff]  }
 0x208   :  { %4599 = vmatpush1.bf16.msra.mxu0 %v7727_v29  ;;  %4943 = vmatpush1.bf16.msra.mxu1 %v7730_v54  ;;  %v7795_v25 = vld [vmem:[#allocation8 + $0x684] ss:$16 sps:$4 sm:$0xff]   ;;  %v7798_v24 = vld [vmem:[#allocation8 + $0x68c] ss:$16 sps:$4 sm:$0xff]   ;;  %v7793_v26 = vld [vmem:[#allocation8 + $0x680] ss:$16 sps:$4 sm:$0xff]  }
 0x209   :  { %4600 = vmatprep.subr.bf16.mxu0 %v7735_v35  ;;  %4944 = vmatprep.subr.bf16.mxu1 %v7738_v36  ;;  %v7801_v28 = vld [vmem:[#allocation8 + $0x6a4] ss:$16 sps:$4 sm:$0xff]   ;;  %v7804_v29 = vld [vmem:[#allocation8 + $0x6ac] ss:$16 sps:$4 sm:$0xff]   ;;  %v7799_v54 = vld [vmem:[#allocation8 + $0x6a0] ss:$16 sps:$4 sm:$0xff]  }
 0x20a   :  { %v7802_v31 = vld [vmem:[#allocation8 + $0x6a8] ss:$16 sps:$4 sm:$0xff]   ;;  %v7807_v32 = vld [vmem:[#allocation8 + $0x6c4] ss:$16 sps:$4 sm:$0xff]   ;;  %v7810_v33 = vld [vmem:[#allocation8 + $0x6cc] ss:$16 sps:$4 sm:$0xff]  }
 0x20b   :  { %v7805_v34 = vld [vmem:[#allocation8 + $0x6c0] ss:$16 sps:$4 sm:$0xff]   ;;  %v7808_v35 = vld [vmem:[#allocation8 + $0x6c8] ss:$16 sps:$4 sm:$0xff]   ;;  %v7813_v36 = vld [vmem:[#allocation8 + $0x6e4] ss:$16 sps:$4 sm:$0xff]  }
 0x20c   :  { %4601 = vmatpush1.bf16.msra.mxu0 %v7733_v48  ;;  %4945 = vmatpush1.bf16.msra.mxu1 %v7736_v38  ;;  %v7816_v48 = vld [vmem:[#allocation8 + $0x6ec] ss:$16 sps:$4 sm:$0xff]   ;;  %v7811_v38 = vld [vmem:[#allocation8 + $0x6e0] ss:$16 sps:$4 sm:$0xff]  }
 0x20d   :  { %4602 = vmatprep.subr.bf16.mxu0 %v7741_v40  ;;  %4946 = vmatprep.subr.bf16.mxu1 %v7744_v41  ;;  %v7814_v40 = vld [vmem:[#allocation8 + $0x6e8] ss:$16 sps:$4 sm:$0xff]   ;;  %v7819_v41 = vld [vmem:[#allocation8 + $0x704] ss:$16 sps:$4 sm:$0xff]  }
 0x210   :  { %4603 = vmatpush1.bf16.msra.mxu0 %v7739_v42  ;;  %4947 = vmatpush1.bf16.msra.mxu1 %v7742_v43  ;;  %v7822_v42 = vld [vmem:[#allocation8 + $0x70c] ss:$16 sps:$4 sm:$0xff]   ;;  %v7817_v43 = vld [vmem:[#allocation8 + $0x700] ss:$16 sps:$4 sm:$0xff]  }
 0x211   :  { %4604 = vmatprep.subr.bf16.mxu0 %v7747_v45  ;;  %4948 = vmatprep.subr.bf16.mxu1 %v7750_v46  ;;  %v7820_v45 = vld [vmem:[#allocation8 + $0x708] ss:$16 sps:$4 sm:$0xff]   ;;  %v7825_v46 = vld [vmem:[#allocation8 + $0x724] ss:$16 sps:$4 sm:$0xff]  }
 0x214   :  { %4605 = vmatpush1.bf16.msra.mxu0 %v7745_v47  ;;  %4949 = vmatpush1.bf16.msra.mxu1 %v7748_v0  ;;  %v7828_v47 = vld [vmem:[#allocation8 + $0x72c] ss:$16 sps:$4 sm:$0xff]   ;;  %v7823_v0 = vld [vmem:[#allocation8 + $0x720] ss:$16 sps:$4 sm:$0xff]  }
 0x215   :  { %4606 = vmatprep.subr.bf16.mxu0 %v7753_v49  ;;  %4950 = vmatprep.subr.bf16.mxu1 %v7756_v50  ;;  %v7826_v49 = vld [vmem:[#allocation8 + $0x728] ss:$16 sps:$4 sm:$0xff]   ;;  %v7831_v50 = vld [vmem:[#allocation8 + $0x744] ss:$16 sps:$4 sm:$0xff]  }
 0x218   :  { %4607 = vmatpush1.bf16.msra.mxu0 %v7751_v13  ;;  %4951 = vmatpush1.bf16.msra.mxu1 %v7754_v51  ;;  %v7834_v13 = vld [vmem:[#allocation8 + $0x74c] ss:$16 sps:$4 sm:$0xff]   ;;  %v7829_v51 = vld [vmem:[#allocation8 + $0x740] ss:$16 sps:$4 sm:$0xff]  }
 0x219   :  { %4608 = vmatprep.subr.bf16.mxu0 %v7759_v52  ;;  %4952 = vmatprep.subr.bf16.mxu1 %v7762_v53  ;;  %v7832_v52 = vld [vmem:[#allocation8 + $0x748] ss:$16 sps:$4 sm:$0xff]   ;;  %v7837_v53 = vld [vmem:[#allocation8 + $0x764] ss:$16 sps:$4 sm:$0xff]  }
 0x21c   :  { %4609 = vmatpush1.bf16.msra.mxu0 %v7757_v55  ;;  %4953 = vmatpush1.bf16.msra.mxu1 %v7760_v56  ;;  %v7840_v55 = vld [vmem:[#allocation8 + $0x76c] ss:$16 sps:$4 sm:$0xff]   ;;  %v7835_v56 = vld [vmem:[#allocation8 + $0x760] ss:$16 sps:$4 sm:$0xff]  }
 0x21d   :  { %4610 = vmatprep.subr.bf16.mxu0 %v7765_v6  ;;  %4954 = vmatprep.subr.bf16.mxu1 %v7768_v57  ;;  %v7838_v6 = vld [vmem:[#allocation8 + $0x768] ss:$16 sps:$4 sm:$0xff]   ;;  %v7843_v57 = vld [vmem:[#allocation8 + $0x784] ss:$16 sps:$4 sm:$0xff]  }
 0x220   :  { %4611 = vmatpush1.bf16.msra.mxu0 %v7763_v59  ;;  %4955 = vmatpush1.bf16.msra.mxu1 %v7766_v7  ;;  %v7846_v59 = vld [vmem:[#allocation8 + $0x78c] ss:$16 sps:$4 sm:$0xff]   ;;  %v7841_v7 = vld [vmem:[#allocation8 + $0x780] ss:$16 sps:$4 sm:$0xff]  }
 0x221   :  { %4623 = vmatprep.subr.bf16.mxu0 %v7771_v60  ;;  %4967 = vmatprep.subr.bf16.mxu1 %v7774_v62  ;;  %v7844_v60 = vld [vmem:[#allocation8 + $0x788] ss:$16 sps:$4 sm:$0xff]   ;;  %v7849_v62 = vld [vmem:[#allocation8 + $0x7a4] ss:$16 sps:$4 sm:$0xff]  }
 0x223   :  { %4613 = vmatmul.mubr.bf16.vlgmr.msra.gmra.mrb[16].mxu0 %v8946_v44  ;;  %4957 = vmatmul.mubr.bf16.vlgmr.msra.gmra.mrb[16].mxu1 %v8946_v44  ;;  %v7787_v44 = vld [vmem:[#allocation8 + $0x660] ss:$16 sps:$4 sm:$0xff]  }
 0x224   :  { %4624 = vmatpush1.bf16.msra.mxu0 %v7769_v63  ;;  %4968 = vmatpush1.bf16.msra.mxu1 %v7772_v3  ;;  %v7852_v63 = vld [vmem:[#allocation8 + $0x7ac] ss:$16 sps:$4 sm:$0xff]   ;;  %v7847_v3 = vld [vmem:[#allocation8 + $0x7a0] ss:$16 sps:$4 sm:$0xff]  }
 0x225   :  { %4625 = vmatprep.subr.bf16.mxu0 %v7777_v4  ;;  %4969 = vmatprep.subr.bf16.mxu1 %v7780_v8  ;;  %v7850_v4 = vld [vmem:[#allocation8 + $0x7a8] ss:$16 sps:$4 sm:$0xff]   ;;  %v7855_v8 = vld [vmem:[#allocation8 + $0x7c4] ss:$16 sps:$4 sm:$0xff]  }
 0x226   :  { %4655 = vmatprep.mubr.bf16.mxu0 %v8952_v2  ;;  %4999 = vmatprep.mubr.bf16.mxu1 %v8952_v2  ;;  %v7796_v2 = vld [vmem:[#allocation8 + $0x688] ss:$16 sps:$4 sm:$0xff]  }
 0x228   :  { %4626 = vmatpush1.bf16.msra.mxu0 %v7775_v9  ;;  %4970 = vmatpush1.bf16.msra.mxu1 %v7778_v10  ;;  %v7858_v9 = vld [vmem:[#allocation8 + $0x7cc] ss:$16 sps:$4 sm:$0xff]   ;;  %v7853_v10 = vld [vmem:[#allocation8 + $0x7c0] ss:$16 sps:$4 sm:$0xff]  }
 0x229   :  { %4627 = vmatprep.subr.bf16.mxu0 %v7783_v11  ;;  %4971 = vmatprep.subr.bf16.mxu1 %v7786_v16  ;;  %v7856_v11 = vld [vmem:[#allocation8 + $0x7c8] ss:$16 sps:$4 sm:$0xff]   ;;  %v7861_v16 = vld [vmem:[#allocation8 + $0x7e4] ss:$16 sps:$4 sm:$0xff]  }
 0x22c   :  { %4628 = vmatpush1.bf16.msra.mxu0 %v7781_v21  ;;  %4972 = vmatpush1.bf16.msra.mxu1 %v7784_v19  ;;  %v7864_v21 = vld [vmem:[#allocation8 + $0x7ec] ss:$16 sps:$4 sm:$0xff]   ;;  %v7859_v19 = vld [vmem:[#allocation8 + $0x7e0] ss:$16 sps:$4 sm:$0xff]  }
 0x22d   :  { %4629 = vmatprep.subr.bf16.mxu0 %v7789_v12  ;;  %4973 = vmatprep.subr.bf16.mxu1 %v7792_v22  ;;  %v7862_v12 = vld [vmem:[#allocation8 + $0x7e8] ss:$16 sps:$4 sm:$0xff]   ;;  %v7867_v22 = vld [vmem:[#allocation8 + $0x804] ss:$16 sps:$4 sm:$0xff]  }
 0x230   :  { %4630 = vmatpush1.bf16.msra.mxu0 %v7787_v44  ;;  %4974 = vmatpush1.bf16.msra.mxu1 %v7790_v23  ;;  %v7870_v44 = vld [vmem:[#allocation8 + $0x80c] ss:$16 sps:$4 sm:$0xff]   ;;  %v7865_v23 = vld [vmem:[#allocation8 + $0x800] ss:$16 sps:$4 sm:$0xff]  }
 0x231   :  { %4631 = vmatprep.subr.bf16.mxu0 %v7795_v25  ;;  %4975 = vmatprep.subr.bf16.mxu1 %v7798_v24  ;;  %v7868_v25 = vld [vmem:[#allocation8 + $0x808] ss:$16 sps:$4 sm:$0xff]   ;;  %v7873_v24 = vld [vmem:[#allocation8 + $0x824] ss:$16 sps:$4 sm:$0xff]  }
 0x234   :  { %4632 = vmatpush1.bf16.msra.mxu0 %v7793_v26  ;;  %4976 = vmatpush1.bf16.msra.mxu1 %v7796_v2  ;;  %v7876_v26 = vld [vmem:[#allocation8 + $0x82c] ss:$16 sps:$4 sm:$0xff]   ;;  %v7871_v2 = vld [vmem:[#allocation8 + $0x820] ss:$16 sps:$4 sm:$0xff]  }
 0x235   :  { %4633 = vmatprep.subr.bf16.mxu0 %v7801_v28  ;;  %4977 = vmatprep.subr.bf16.mxu1 %v7804_v29  ;;  %v7874_v28 = vld [vmem:[#allocation8 + $0x828] ss:$16 sps:$4 sm:$0xff]   ;;  %v7879_v29 = vld [vmem:[#allocation8 + $0x844] ss:$16 sps:$4 sm:$0xff]  }
 0x238   :  { %4634 = vmatpush1.bf16.msra.mxu0 %v7799_v54  ;;  %4978 = vmatpush1.bf16.msra.mxu1 %v7802_v31  ;;  %v7882_v54 = vld [vmem:[#allocation8 + $0x84c] ss:$16 sps:$4 sm:$0xff]   ;;  %v7877_v31 = vld [vmem:[#allocation8 + $0x840] ss:$16 sps:$4 sm:$0xff]  }
 0x239   :  { %4635 = vmatprep.subr.bf16.mxu0 %v7807_v32  ;;  %4979 = vmatprep.subr.bf16.mxu1 %v7810_v33  ;;  %v7880_v32 = vld [vmem:[#allocation8 + $0x848] ss:$16 sps:$4 sm:$0xff]   ;;  %v7885_v33 = vld [vmem:[#allocation8 + $0x864] ss:$16 sps:$4 sm:$0xff]  }
 0x23c   :  { %4636 = vmatpush1.bf16.msra.mxu0 %v7805_v34  ;;  %4980 = vmatpush1.bf16.msra.mxu1 %v7808_v35  ;;  %v7883_v34 = vld [vmem:[#allocation8 + $0x860] ss:$16 sps:$4 sm:$0xff]   ;;  %v7886_v35 = vld [vmem:[#allocation8 + $0x868] ss:$16 sps:$4 sm:$0xff]  }
 0x23d   :  { %4637 = vmatprep.subr.bf16.mxu0 %v7813_v36  ;;  %4981 = vmatprep.subr.bf16.mxu1 %v7816_v48  ;;  %v7891_v36 = vld [vmem:[#allocation8 + $0x884] ss:$16 sps:$4 sm:$0xff]   ;;  %v7889_v48 = vld [vmem:[#allocation8 + $0x880] ss:$16 sps:$4 sm:$0xff]  }
 0x240   :  { %4638 = vmatpush1.bf16.msra.mxu0 %v7811_v38  ;;  %4982 = vmatpush1.bf16.msra.mxu1 %v7814_v40  ;;  %v7892_v38 = vld [vmem:[#allocation8 + $0x888] ss:$16 sps:$4 sm:$0xff]   ;;  %v7897_v40 = vld [vmem:[#allocation8 + $0x8a4] ss:$16 sps:$4 sm:$0xff]  }
 0x241   :  { %4639 = vmatprep.subr.bf16.mxu0 %v7819_v41  ;;  %4983 = vmatprep.subr.bf16.mxu1 %v7822_v42  ;;  %v7900_v41 = vld [vmem:[#allocation8 + $0x8ac] ss:$16 sps:$4 sm:$0xff]   ;;  %v7895_v42 = vld [vmem:[#allocation8 + $0x8a0] ss:$16 sps:$4 sm:$0xff]  }
 0x244   :  { %4640 = vmatpush1.bf16.msra.mxu0 %v7817_v43  ;;  %4984 = vmatpush1.bf16.msra.mxu1 %v7820_v45  ;;  %v7898_v43 = vld [vmem:[#allocation8 + $0x8a8] ss:$16 sps:$4 sm:$0xff]   ;;  %v7903_v45 = vld [vmem:[#allocation8 + $0x8c4] ss:$16 sps:$4 sm:$0xff]  }
 0x245   :  { %4641 = vmatprep.subr.bf16.mxu0 %v7825_v46  ;;  %4985 = vmatprep.subr.bf16.mxu1 %v7828_v47  ;;  %v7906_v46 = vld [vmem:[#allocation8 + $0x8cc] ss:$16 sps:$4 sm:$0xff]   ;;  %v7901_v47 = vld [vmem:[#allocation8 + $0x8c0] ss:$16 sps:$4 sm:$0xff]  }
 0x248   :  { %4642 = vmatpush1.bf16.msra.mxu0 %v7823_v0  ;;  %4986 = vmatpush1.bf16.msra.mxu1 %v7826_v49  ;;  %v7904_v0 = vld [vmem:[#allocation8 + $0x8c8] ss:$16 sps:$4 sm:$0xff]   ;;  %v7909_v49 = vld [vmem:[#allocation8 + $0x8e4] ss:$16 sps:$4 sm:$0xff]  }
 0x249   :  { %4643 = vmatprep.subr.bf16.mxu0 %v7831_v50  ;;  %4987 = vmatprep.subr.bf16.mxu1 %v7834_v13  ;;  %v7912_v50 = vld [vmem:[#allocation8 + $0x8ec] ss:$16 sps:$4 sm:$0xff]   ;;  %v7907_v13 = vld [vmem:[#allocation8 + $0x8e0] ss:$16 sps:$4 sm:$0xff]  }
 0x24c   :  { %4644 = vmatpush1.bf16.msra.mxu0 %v7829_v51  ;;  %4988 = vmatpush1.bf16.msra.mxu1 %v7832_v52  ;;  %v7910_v51 = vld [vmem:[#allocation8 + $0x8e8] ss:$16 sps:$4 sm:$0xff]   ;;  %v7915_v52 = vld [vmem:[#allocation8 + $0x904] ss:$16 sps:$4 sm:$0xff]  }
 0x24d   :  { %4645 = vmatprep.subr.bf16.mxu0 %v7837_v53  ;;  %4989 = vmatprep.subr.bf16.mxu1 %v7840_v55  ;;  %v7918_v53 = vld [vmem:[#allocation8 + $0x90c] ss:$16 sps:$4 sm:$0xff]   ;;  %v7913_v55 = vld [vmem:[#allocation8 + $0x900] ss:$16 sps:$4 sm:$0xff]  }
 0x250   :  { %4646 = vmatpush1.bf16.msra.mxu0 %v7835_v56  ;;  %4990 = vmatpush1.bf16.msra.mxu1 %v7838_v6  ;;  %v7916_v56 = vld [vmem:[#allocation8 + $0x908] ss:$16 sps:$4 sm:$0xff]   ;;  %v7921_v6 = vld [vmem:[#allocation8 + $0x924] ss:$16 sps:$4 sm:$0xff]  }
 0x251   :  { %4647 = vmatprep.subr.bf16.mxu0 %v7843_v57  ;;  %4991 = vmatprep.subr.bf16.mxu1 %v7846_v59  ;;  %v7924_v57 = vld [vmem:[#allocation8 + $0x92c] ss:$16 sps:$4 sm:$0xff]   ;;  %v7919_v59 = vld [vmem:[#allocation8 + $0x920] ss:$16 sps:$4 sm:$0xff]  }
 0x254   :  { %4648 = vmatpush1.bf16.msra.mxu0 %v7841_v7  ;;  %4992 = vmatpush1.bf16.msra.mxu1 %v7844_v60  ;;  %v7922_v7 = vld [vmem:[#allocation8 + $0x928] ss:$16 sps:$4 sm:$0xff]   ;;  %v7927_v60 = vld [vmem:[#allocation8 + $0x944] ss:$16 sps:$4 sm:$0xff]  }
 0x255   :  { %4649 = vmatprep.subr.bf16.mxu0 %v7849_v62  ;;  %4993 = vmatprep.subr.bf16.mxu1 %v7852_v63  ;;  %v7930_v62 = vld [vmem:[#allocation8 + $0x94c] ss:$16 sps:$4 sm:$0xff]   ;;  %v7925_v63 = vld [vmem:[#allocation8 + $0x940] ss:$16 sps:$4 sm:$0xff]  }
 0x258   :  { %4650 = vmatpush1.bf16.msra.mxu0 %v7847_v3  ;;  %4994 = vmatpush1.bf16.msra.mxu1 %v7850_v4  ;;  %v7928_v3 = vld [vmem:[#allocation8 + $0x948] ss:$16 sps:$4 sm:$0xff]   ;;  %v7933_v4 = vld [vmem:[#allocation8 + $0x964] ss:$16 sps:$4 sm:$0xff]  }
 0x259   :  { %4651 = vmatprep.subr.bf16.mxu0 %v7855_v8  ;;  %4995 = vmatprep.subr.bf16.mxu1 %v7858_v9  ;;  %v7936_v8 = vld [vmem:[#allocation8 + $0x96c] ss:$16 sps:$4 sm:$0xff]   ;;  %v7931_v9 = vld [vmem:[#allocation8 + $0x960] ss:$16 sps:$4 sm:$0xff]  }
 0x25c   :  { %4652 = vmatpush1.bf16.msra.mxu0 %v7853_v10  ;;  %4996 = vmatpush1.bf16.msra.mxu1 %v7856_v11  ;;  %v7934_v10 = vld [vmem:[#allocation8 + $0x968] ss:$16 sps:$4 sm:$0xff]   ;;  %v7939_v11 = vld [vmem:[#allocation8 + $0x984] ss:$16 sps:$4 sm:$0xff]  }
 0x25d   :  { %4653 = vmatprep.subr.bf16.mxu0 %v7861_v16  ;;  %4997 = vmatprep.subr.bf16.mxu1 %v7864_v21  ;;  %v7942_v16 = vld [vmem:[#allocation8 + $0x98c] ss:$16 sps:$4 sm:$0xff]   ;;  %v7937_v21 = vld [vmem:[#allocation8 + $0x980] ss:$16 sps:$4 sm:$0xff]  }
 0x260   :  { %4654 = vmatpush1.bf16.msra.mxu0 %v7859_v19  ;;  %4998 = vmatpush1.bf16.msra.mxu1 %v7862_v12  ;;  %v7940_v19 = vld [vmem:[#allocation8 + $0x988] ss:$16 sps:$4 sm:$0xff]   ;;  %v7945_v12 = vld [vmem:[#allocation8 + $0x9a4] ss:$16 sps:$4 sm:$0xff]  }
 0x261   :  { %4666 = vmatprep.subr.bf16.mxu0 %v7867_v22  ;;  %5010 = vmatprep.subr.bf16.mxu1 %v7870_v44  ;;  %v7948_v22 = vld [vmem:[#allocation8 + $0x9ac] ss:$16 sps:$4 sm:$0xff]   ;;  %v7943_v44 = vld [vmem:[#allocation8 + $0x9a0] ss:$16 sps:$4 sm:$0xff]  }
 0x263   :  { %4656 = vmatmul.mubr.bf16.vlgmr.msra.gmra.mrb[16].mxu0 %v8950_v1  ;;  %5000 = vmatmul.mubr.bf16.vlgmr.msra.gmra.mrb[16].mxu1 %v8950_v1  ;;  %v7888_v1 = vld [vmem:[#allocation8 + $0x86c] ss:$16 sps:$4 sm:$0xff]  }
 0x264   :  { %4667 = vmatpush1.bf16.msra.mxu0 %v7865_v23  ;;  %4698 = vmatprep.mubr.bf16.mxu0 %v8966_v61  ;;  %v7946_v23 = vld [vmem:[#allocation8 + $0x9a8] ss:$16 sps:$4 sm:$0xff]  }
 0x265   :  { %5011 = vmatpush1.bf16.msra.mxu1 %v7868_v25  ;;  %5042 = vmatprep.mubr.bf16.mxu1 %v8966_v61  ;;  %v7894_v61 = vld [vmem:[#allocation8 + $0x88c] ss:$16 sps:$4 sm:$0xff]   ;;  %v7951_v25 = vld [vmem:[#allocation8 + $0x9c4] ss:$16 sps:$4 sm:$0xff]  }
 0x266   :  { %4668 = vmatprep.subr.bf16.mxu0 %v7873_v24  ;;  %5012 = vmatprep.subr.bf16.mxu1 %v7876_v26  ;;  %v7954_v24 = vld [vmem:[#allocation8 + $0x9cc] ss:$16 sps:$4 sm:$0xff]   ;;  %v7949_v26 = vld [vmem:[#allocation8 + $0x9c0] ss:$16 sps:$4 sm:$0xff]  }
 0x268   :  { %4669 = vmatpush1.bf16.msra.mxu0 %v7871_v2  ;;  %v7952_v2 = vld [vmem:[#allocation8 + $0x9c8] ss:$16 sps:$4 sm:$0xff]  }
 0x269   :  { %5013 = vmatpush1.bf16.msra.mxu1 %v7874_v28  ;;  %4670 = vmatprep.subr.bf16.mxu0 %v7879_v29  ;;  %v7957_v28 = vld [vmem:[#allocation8 + $0x9e4] ss:$16 sps:$4 sm:$0xff]   ;;  %v7960_v29 = vld [vmem:[#allocation8 + $0x9ec] ss:$16 sps:$4 sm:$0xff]  }
 0x26a   :  { %5014 = vmatprep.subr.bf16.mxu1 %v7882_v54  ;;  %v7955_v54 = vld [vmem:[#allocation8 + $0x9e0] ss:$16 sps:$4 sm:$0xff]  }
 0x26c   :  { %4671 = vmatpush1.bf16.msra.mxu0 %v7877_v31  ;;  %v7958_v31 = vld [vmem:[#allocation8 + $0x9e8] ss:$16 sps:$4 sm:$0xff]  }
 0x26d   :  { %5015 = vmatpush1.bf16.msra.mxu1 %v7880_v32  ;;  %4672 = vmatprep.subr.bf16.mxu0 %v7885_v33  ;;  %v7963_v32 = vld [vmem:[#allocation8 + $0xa04] ss:$16 sps:$4 sm:$0xff]   ;;  %v7966_v33 = vld [vmem:[#allocation8 + $0xa0c] ss:$16 sps:$4 sm:$0xff]  }
 0x26e   :  { %5016 = vmatprep.subr.bf16.mxu1 %v7888_v1  ;;  %v7961_v1 = vld [vmem:[#allocation8 + $0xa00] ss:$16 sps:$4 sm:$0xff]  }
 0x270   :  { %4673 = vmatpush1.bf16.msra.mxu0 %v7883_v34  ;;  %v7964_v34 = vld [vmem:[#allocation8 + $0xa08] ss:$16 sps:$4 sm:$0xff]  }
 0x271   :  { %5017 = vmatpush1.bf16.msra.mxu1 %v7886_v35  ;;  %4674 = vmatprep.subr.bf16.mxu0 %v7891_v36  ;;  %v7969_v35 = vld [vmem:[#allocation8 + $0xa24] ss:$16 sps:$4 sm:$0xff]   ;;  %v7972_v36 = vld [vmem:[#allocation8 + $0xa2c] ss:$16 sps:$4 sm:$0xff]  }
 0x272   :  { %5018 = vmatprep.subr.bf16.mxu1 %v7894_v61  ;;  %v7967_v61 = vld [vmem:[#allocation8 + $0xa20] ss:$16 sps:$4 sm:$0xff]  }
 0x274   :  { %4675 = vmatpush1.bf16.msra.mxu0 %v7889_v48  ;;  %v7970_v48 = vld [vmem:[#allocation8 + $0xa28] ss:$16 sps:$4 sm:$0xff]  }
 0x275   :  { %5019 = vmatpush1.bf16.msra.mxu1 %v7892_v38  ;;  %4676 = vmatprep.subr.bf16.mxu0 %v7897_v40  ;;  %v7975_v38 = vld [vmem:[#allocation8 + $0xa44] ss:$16 sps:$4 sm:$0xff]   ;;  %v7978_v40 = vld [vmem:[#allocation8 + $0xa4c] ss:$16 sps:$4 sm:$0xff]  }
 0x276   :  { %5020 = vmatprep.subr.bf16.mxu1 %v7900_v41  ;;  %v7973_v41 = vld [vmem:[#allocation8 + $0xa40] ss:$16 sps:$4 sm:$0xff]  }
 0x278   :  { %4677 = vmatpush1.bf16.msra.mxu0 %v7895_v42  ;;  %v7976_v42 = vld [vmem:[#allocation8 + $0xa48] ss:$16 sps:$4 sm:$0xff]  }
 0x279   :  { %5021 = vmatpush1.bf16.msra.mxu1 %v7898_v43  ;;  %4678 = vmatprep.subr.bf16.mxu0 %v7903_v45  ;;  %v7981_v43 = vld [vmem:[#allocation8 + $0xa64] ss:$16 sps:$4 sm:$0xff]   ;;  %v7979_v45 = vld [vmem:[#allocation8 + $0xa60] ss:$16 sps:$4 sm:$0xff]  }
 0x27a   :  { %5022 = vmatprep.subr.bf16.mxu1 %v7906_v46  ;;  %v7982_v46 = vld [vmem:[#allocation8 + $0xa68] ss:$16 sps:$4 sm:$0xff]  }
 0x27c   :  { %4679 = vmatpush1.bf16.msra.mxu0 %v7901_v47  ;;  %v7987_v47 = vld [vmem:[#allocation8 + $0xa84] ss:$16 sps:$4 sm:$0xff]  }
 0x27d   :  { %5023 = vmatpush1.bf16.msra.mxu1 %v7904_v0  ;;  %4680 = vmatprep.subr.bf16.mxu0 %v7909_v49  ;;  %v7990_v0 = vld [vmem:[#allocation8 + $0xa8c] ss:$16 sps:$4 sm:$0xff]   ;;  %v7988_v49 = vld [vmem:[#allocation8 + $0xa88] ss:$16 sps:$4 sm:$0xff]  }
 0x27e   :  { %5024 = vmatprep.subr.bf16.mxu1 %v7912_v50  ;;  %v7993_v50 = vld [vmem:[#allocation8 + $0xaa4] ss:$16 sps:$4 sm:$0xff]  }
 0x280   :  { %4681 = vmatpush1.bf16.msra.mxu0 %v7907_v13  ;;  %v7996_v13 = vld [vmem:[#allocation8 + $0xaac] ss:$16 sps:$4 sm:$0xff]  }
 0x281   :  { %5025 = vmatpush1.bf16.msra.mxu1 %v7910_v51  ;;  %4682 = vmatprep.subr.bf16.mxu0 %v7915_v52  ;;  %v7991_v51 = vld [vmem:[#allocation8 + $0xaa0] ss:$16 sps:$4 sm:$0xff]   ;;  %v7994_v52 = vld [vmem:[#allocation8 + $0xaa8] ss:$16 sps:$4 sm:$0xff]  }
 0x282   :  { %5026 = vmatprep.subr.bf16.mxu1 %v7918_v53  ;;  %v7999_v53 = vld [vmem:[#allocation8 + $0xac4] ss:$16 sps:$4 sm:$0xff]  }
 0x284   :  { %4683 = vmatpush1.bf16.msra.mxu0 %v7913_v55  ;;  %v8002_v55 = vld [vmem:[#allocation8 + $0xacc] ss:$16 sps:$4 sm:$0xff]  }
 0x285   :  { %5027 = vmatpush1.bf16.msra.mxu1 %v7916_v56  ;;  %4684 = vmatprep.subr.bf16.mxu0 %v7921_v6  ;;  %v7997_v56 = vld [vmem:[#allocation8 + $0xac0] ss:$16 sps:$4 sm:$0xff]   ;;  %v8000_v6 = vld [vmem:[#allocation8 + $0xac8] ss:$16 sps:$4 sm:$0xff]  }
 0x286   :  { %5028 = vmatprep.subr.bf16.mxu1 %v7924_v57  ;;  %v8005_v57 = vld [vmem:[#allocation8 + $0xae4] ss:$16 sps:$4 sm:$0xff]  }
 0x288   :  { %4685 = vmatpush1.bf16.msra.mxu0 %v7919_v59  ;;  %v8008_v59 = vld [vmem:[#allocation8 + $0xaec] ss:$16 sps:$4 sm:$0xff]  }
 0x289   :  { %5029 = vmatpush1.bf16.msra.mxu1 %v7922_v7  ;;  %4686 = vmatprep.subr.bf16.mxu0 %v7927_v60  ;;  %v8003_v7 = vld [vmem:[#allocation8 + $0xae0] ss:$16 sps:$4 sm:$0xff]   ;;  %v8006_v60 = vld [vmem:[#allocation8 + $0xae8] ss:$16 sps:$4 sm:$0xff]  }
 0x28a   :  { %5030 = vmatprep.subr.bf16.mxu1 %v7930_v62  ;;  %v8011_v62 = vld [vmem:[#allocation8 + $0xb04] ss:$16 sps:$4 sm:$0xff]  }
 0x28c   :  { %4687 = vmatpush1.bf16.msra.mxu0 %v7925_v63  ;;  %v8014_v63 = vld [vmem:[#allocation8 + $0xb0c] ss:$16 sps:$4 sm:$0xff]  }
 0x28d   :  { %5031 = vmatpush1.bf16.msra.mxu1 %v7928_v3  ;;  %4688 = vmatprep.subr.bf16.mxu0 %v7933_v4  ;;  %v8009_v3 = vld [vmem:[#allocation8 + $0xb00] ss:$16 sps:$4 sm:$0xff]   ;;  %v8012_v4 = vld [vmem:[#allocation8 + $0xb08] ss:$16 sps:$4 sm:$0xff]  }
 0x28e   :  { %5032 = vmatprep.subr.bf16.mxu1 %v7936_v8  ;;  %v8017_v8 = vld [vmem:[#allocation8 + $0xb24] ss:$16 sps:$4 sm:$0xff]  }
 0x290   :  { %4689 = vmatpush1.bf16.msra.mxu0 %v7931_v9  ;;  %v8020_v9 = vld [vmem:[#allocation8 + $0xb2c] ss:$16 sps:$4 sm:$0xff]  }
 0x291   :  { %5033 = vmatpush1.bf16.msra.mxu1 %v7934_v10  ;;  %4690 = vmatprep.subr.bf16.mxu0 %v7939_v11  ;;  %v8015_v10 = vld [vmem:[#allocation8 + $0xb20] ss:$16 sps:$4 sm:$0xff]   ;;  %v8018_v11 = vld [vmem:[#allocation8 + $0xb28] ss:$16 sps:$4 sm:$0xff]  }
 0x292   :  { %5034 = vmatprep.subr.bf16.mxu1 %v7942_v16  ;;  %v8023_v16 = vld [vmem:[#allocation8 + $0xb44] ss:$16 sps:$4 sm:$0xff]  }
 0x294   :  { %4691 = vmatpush1.bf16.msra.mxu0 %v7937_v21  ;;  %v8026_v21 = vld [vmem:[#allocation8 + $0xb4c] ss:$16 sps:$4 sm:$0xff]  }
 0x295   :  { %5035 = vmatpush1.bf16.msra.mxu1 %v7940_v19  ;;  %4692 = vmatprep.subr.bf16.mxu0 %v7945_v12  ;;  %v8021_v19 = vld [vmem:[#allocation8 + $0xb40] ss:$16 sps:$4 sm:$0xff]   ;;  %v8024_v12 = vld [vmem:[#allocation8 + $0xb48] ss:$16 sps:$4 sm:$0xff]  }
 0x296   :  { %5036 = vmatprep.subr.bf16.mxu1 %v7948_v22  ;;  %v8029_v22 = vld [vmem:[#allocation8 + $0xb64] ss:$16 sps:$4 sm:$0xff]  }
 0x298   :  { %4693 = vmatpush1.bf16.msra.mxu0 %v7943_v44  ;;  %v8032_v44 = vld [vmem:[#allocation8 + $0xb6c] ss:$16 sps:$4 sm:$0xff]  }
 0x299   :  { %5037 = vmatpush1.bf16.msra.mxu1 %v7946_v23  ;;  %4694 = vmatprep.subr.bf16.mxu0 %v7951_v25  ;;  %v8027_v23 = vld [vmem:[#allocation8 + $0xb60] ss:$16 sps:$4 sm:$0xff]   ;;  %v8030_v25 = vld [vmem:[#allocation8 + $0xb68] ss:$16 sps:$4 sm:$0xff]  }
 0x29a   :  { %5038 = vmatprep.subr.bf16.mxu1 %v7954_v24  ;;  %v8035_v24 = vld [vmem:[#allocation8 + $0xb84] ss:$16 sps:$4 sm:$0xff]  }
 0x29c   :  { %4695 = vmatpush1.bf16.msra.mxu0 %v7949_v26  ;;  %v8038_v26 = vld [vmem:[#allocation8 + $0xb8c] ss:$16 sps:$4 sm:$0xff]  }
 0x29d   :  { %5039 = vmatpush1.bf16.msra.mxu1 %v7952_v2  ;;  %4696 = vmatprep.subr.bf16.mxu0 %v7957_v28  ;;  %v8033_v2 = vld [vmem:[#allocation8 + $0xb80] ss:$16 sps:$4 sm:$0xff]   ;;  %v8036_v28 = vld [vmem:[#allocation8 + $0xb88] ss:$16 sps:$4 sm:$0xff]  }
 0x29e   :  { %5040 = vmatprep.subr.bf16.mxu1 %v7960_v29  ;;  %v8041_v29 = vld [vmem:[#allocation8 + $0xba4] ss:$16 sps:$4 sm:$0xff]  }
 0x2a0   :  { %4697 = vmatpush1.bf16.msra.mxu0 %v7955_v54  ;;  %v8044_v54 = vld [vmem:[#allocation8 + $0xbac] ss:$16 sps:$4 sm:$0xff]  }
 0x2a1   :  { %5041 = vmatpush1.bf16.msra.mxu1 %v7958_v31  ;;  %4709 = vmatprep.subr.bf16.mxu0 %v7963_v32  ;;  %v8039_v31 = vld [vmem:[#allocation8 + $0xba0] ss:$16 sps:$4 sm:$0xff]   ;;  %v8042_v32 = vld [vmem:[#allocation8 + $0xba8] ss:$16 sps:$4 sm:$0xff]  }
 0x2a2   :  { %5053 = vmatprep.subr.bf16.mxu1 %v7966_v33  ;;  %v8047_v33 = vld [vmem:[#allocation8 + $0xbc4] ss:$16 sps:$4 sm:$0xff]  }
 0x2a3   :  { %4699 = vmatmul.mubr.bf16.vlgmr.msra.gmra.mrb[16].mxu0 %v8964_v58 }
 0x2a4   :  { %5043 = vmatmul.mubr.bf16.vlgmr.msra.gmra.mrb[16].mxu1 %v8964_v58  ;;  %4710 = vmatpush1.bf16.msra.mxu0 %v7961_v1  ;;  %v7984_v58 = vld [vmem:[#allocation8 + $0xa6c] ss:$16 sps:$4 sm:$0xff]  }
 0x2a5   :  { %4741 = vmatprep.mubr.bf16.mxu0 %v8974_v30  ;;  %5054 = vmatpush1.bf16.msra.mxu1 %v7964_v34  ;;  %v8050_v1 = vld [vmem:[#allocation8 + $0xbcc] ss:$16 sps:$4 sm:$0xff]   ;;  %v8045_v34 = vld [vmem:[#allocation8 + $0xbc0] ss:$16 sps:$4 sm:$0xff]  }
 0x2a6   :  { %5085 = vmatprep.mubr.bf16.mxu1 %v8974_v30  ;;  %4711 = vmatprep.subr.bf16.mxu0 %v7969_v35  ;;  %v7985_v30 = vld [vmem:[#allocation8 + $0xa80] ss:$16 sps:$4 sm:$0xff]   ;;  %v8048_v35 = vld [vmem:[#allocation8 + $0xbc8] ss:$16 sps:$4 sm:$0xff]  }
 0x2a7   :  { %5055 = vmatprep.subr.bf16.mxu1 %v7972_v36  ;;  %v8053_v36 = vld [vmem:[#allocation8 + $0xbe4] ss:$16 sps:$4 sm:$0xff]  }
 0x2a8   :  { %4712 = vmatpush1.bf16.msra.mxu0 %v7967_v61  ;;  %v8056_v61 = vld [vmem:[#allocation8 + $0xbec] ss:$16 sps:$4 sm:$0xff]  }
 0x2a9   :  { %5056 = vmatpush1.bf16.msra.mxu1 %v7970_v48  ;;  %4713 = vmatprep.subr.bf16.mxu0 %v7975_v38  ;;  %v8051_v48 = vld [vmem:[#allocation8 + $0xbe0] ss:$16 sps:$4 sm:$0xff]   ;;  %v8054_v38 = vld [vmem:[#allocation8 + $0xbe8] ss:$16 sps:$4 sm:$0xff]  }
 0x2aa   :  { %5057 = vmatprep.subr.bf16.mxu1 %v7978_v40  ;;  %v8059_v40 = vld [vmem:[#allocation8 + $0xc04] ss:$16 sps:$4 sm:$0xff]  }
 0x2ac   :  { %4714 = vmatpush1.bf16.msra.mxu0 %v7973_v41  ;;  %v8062_v41 = vld [vmem:[#allocation8 + $0xc0c] ss:$16 sps:$4 sm:$0xff]  }
 0x2ad   :  { %5058 = vmatpush1.bf16.msra.mxu1 %v7976_v42  ;;  %4715 = vmatprep.subr.bf16.mxu0 %v7981_v43  ;;  %v8057_v42 = vld [vmem:[#allocation8 + $0xc00] ss:$16 sps:$4 sm:$0xff]   ;;  %v8060_v43 = vld [vmem:[#allocation8 + $0xc08] ss:$16 sps:$4 sm:$0xff]  }
 0x2ae   :  { %5059 = vmatprep.subr.bf16.mxu1 %v7984_v58  ;;  %v8065_v58 = vld [vmem:[#allocation8 + $0xc24] ss:$16 sps:$4 sm:$0xff]  }
 0x2b0   :  { %4716 = vmatpush1.bf16.msra.mxu0 %v7979_v45  ;;  %v8068_v45 = vld [vmem:[#allocation8 + $0xc2c] ss:$16 sps:$4 sm:$0xff]  }
 0x2b1   :  { %5060 = vmatpush1.bf16.msra.mxu1 %v7982_v46  ;;  %4717 = vmatprep.subr.bf16.mxu0 %v7987_v47  ;;  %v8063_v46 = vld [vmem:[#allocation8 + $0xc20] ss:$16 sps:$4 sm:$0xff]   ;;  %v8066_v47 = vld [vmem:[#allocation8 + $0xc28] ss:$16 sps:$4 sm:$0xff]  }
 0x2b2   :  { %5061 = vmatprep.subr.bf16.mxu1 %v7990_v0  ;;  %v8071_v0 = vld [vmem:[#allocation8 + $0xc44] ss:$16 sps:$4 sm:$0xff]  }
 0x2b4   :  { %4718 = vmatpush1.bf16.msra.mxu0 %v7985_v30  ;;  %v8074_v30 = vld [vmem:[#allocation8 + $0xc4c] ss:$16 sps:$4 sm:$0xff]  }
 0x2b5   :  { %5062 = vmatpush1.bf16.msra.mxu1 %v7988_v49  ;;  %4719 = vmatprep.subr.bf16.mxu0 %v7993_v50  ;;  %v8069_v49 = vld [vmem:[#allocation8 + $0xc40] ss:$16 sps:$4 sm:$0xff]   ;;  %v8072_v50 = vld [vmem:[#allocation8 + $0xc48] ss:$16 sps:$4 sm:$0xff]  }
 0x2b6   :  { %5063 = vmatprep.subr.bf16.mxu1 %v7996_v13  ;;  %v8077_v13 = vld [vmem:[#allocation8 + $0xc64] ss:$16 sps:$4 sm:$0xff]  }
 0x2b8   :  { %4720 = vmatpush1.bf16.msra.mxu0 %v7991_v51  ;;  %v8075_v51 = vld [vmem:[#allocation8 + $0xc60] ss:$16 sps:$4 sm:$0xff]  }
 0x2b9   :  { %5064 = vmatpush1.bf16.msra.mxu1 %v7994_v52  ;;  %4721 = vmatprep.subr.bf16.mxu0 %v7999_v53  ;;  %v8078_v52 = vld [vmem:[#allocation8 + $0xc68] ss:$16 sps:$4 sm:$0xff]   ;;  %v8083_v53 = vld [vmem:[#allocation8 + $0xc84] ss:$16 sps:$4 sm:$0xff]  }
 0x2ba   :  { %5065 = vmatprep.subr.bf16.mxu1 %v8002_v55  ;;  %v8086_v55 = vld [vmem:[#allocation8 + $0xc8c] ss:$16 sps:$4 sm:$0xff]  }
 0x2bc   :  { %4722 = vmatpush1.bf16.msra.mxu0 %v7997_v56  ;;  %v8084_v56 = vld [vmem:[#allocation8 + $0xc88] ss:$16 sps:$4 sm:$0xff]  }
 0x2bd   :  { %5066 = vmatpush1.bf16.msra.mxu1 %v8000_v6  ;;  %4723 = vmatprep.subr.bf16.mxu0 %v8005_v57  ;;  %v8089_v6 = vld [vmem:[#allocation8 + $0xca4] ss:$16 sps:$4 sm:$0xff]   ;;  %v8092_v57 = vld [vmem:[#allocation8 + $0xcac] ss:$16 sps:$4 sm:$0xff]  }
 0x2be   :  { %5067 = vmatprep.subr.bf16.mxu1 %v8008_v59  ;;  %v8087_v59 = vld [vmem:[#allocation8 + $0xca0] ss:$16 sps:$4 sm:$0xff]  }
 0x2c0   :  { %4724 = vmatpush1.bf16.msra.mxu0 %v8003_v7  ;;  %v8090_v7 = vld [vmem:[#allocation8 + $0xca8] ss:$16 sps:$4 sm:$0xff]  }
 0x2c1   :  { %5068 = vmatpush1.bf16.msra.mxu1 %v8006_v60  ;;  %4725 = vmatprep.subr.bf16.mxu0 %v8011_v62  ;;  %v8095_v60 = vld [vmem:[#allocation8 + $0xcc4] ss:$16 sps:$4 sm:$0xff]   ;;  %v8098_v62 = vld [vmem:[#allocation8 + $0xccc] ss:$16 sps:$4 sm:$0xff]  }
 0x2c2   :  { %5069 = vmatprep.subr.bf16.mxu1 %v8014_v63  ;;  %v8093_v63 = vld [vmem:[#allocation8 + $0xcc0] ss:$16 sps:$4 sm:$0xff]  }
 0x2c4   :  { %4726 = vmatpush1.bf16.msra.mxu0 %v8009_v3  ;;  %v8096_v3 = vld [vmem:[#allocation8 + $0xcc8] ss:$16 sps:$4 sm:$0xff]  }
 0x2c5   :  { %5070 = vmatpush1.bf16.msra.mxu1 %v8012_v4  ;;  %4727 = vmatprep.subr.bf16.mxu0 %v8017_v8  ;;  %v8101_v4 = vld [vmem:[#allocation8 + $0xce4] ss:$16 sps:$4 sm:$0xff]   ;;  %v8104_v8 = vld [vmem:[#allocation8 + $0xcec] ss:$16 sps:$4 sm:$0xff]  }
 0x2c6   :  { %5071 = vmatprep.subr.bf16.mxu1 %v8020_v9  ;;  %v8099_v9 = vld [vmem:[#allocation8 + $0xce0] ss:$16 sps:$4 sm:$0xff]  }
 0x2c8   :  { %4728 = vmatpush1.bf16.msra.mxu0 %v8015_v10  ;;  %v8102_v10 = vld [vmem:[#allocation8 + $0xce8] ss:$16 sps:$4 sm:$0xff]  }
 0x2c9   :  { %5072 = vmatpush1.bf16.msra.mxu1 %v8018_v11  ;;  %4729 = vmatprep.subr.bf16.mxu0 %v8023_v16  ;;  %v8107_v11 = vld [vmem:[#allocation8 + $0xd04] ss:$16 sps:$4 sm:$0xff]   ;;  %v8110_v16 = vld [vmem:[#allocation8 + $0xd0c] ss:$16 sps:$4 sm:$0xff]  }
 0x2ca   :  { %5073 = vmatprep.subr.bf16.mxu1 %v8026_v21  ;;  %v8105_v21 = vld [vmem:[#allocation8 + $0xd00] ss:$16 sps:$4 sm:$0xff]  }
 0x2cc   :  { %4730 = vmatpush1.bf16.msra.mxu0 %v8021_v19  ;;  %v8108_v19 = vld [vmem:[#allocation8 + $0xd08] ss:$16 sps:$4 sm:$0xff]  }
 0x2cd   :  { %5074 = vmatpush1.bf16.msra.mxu1 %v8024_v12  ;;  %4731 = vmatprep.subr.bf16.mxu0 %v8029_v22  ;;  %v8113_v12 = vld [vmem:[#allocation8 + $0xd24] ss:$16 sps:$4 sm:$0xff]   ;;  %v8116_v22 = vld [vmem:[#allocation8 + $0xd2c] ss:$16 sps:$4 sm:$0xff]  }
 0x2ce   :  { %5075 = vmatprep.subr.bf16.mxu1 %v8032_v44  ;;  %v8111_v44 = vld [vmem:[#allocation8 + $0xd20] ss:$16 sps:$4 sm:$0xff]  }
 0x2d0   :  { %4732 = vmatpush1.bf16.msra.mxu0 %v8027_v23  ;;  %v8114_v23 = vld [vmem:[#allocation8 + $0xd28] ss:$16 sps:$4 sm:$0xff]  }
 0x2d1   :  { %5076 = vmatpush1.bf16.msra.mxu1 %v8030_v25  ;;  %4733 = vmatprep.subr.bf16.mxu0 %v8035_v24  ;;  %v8119_v25 = vld [vmem:[#allocation8 + $0xd44] ss:$16 sps:$4 sm:$0xff]   ;;  %v8122_v24 = vld [vmem:[#allocation8 + $0xd4c] ss:$16 sps:$4 sm:$0xff]  }
 0x2d2   :  { %5077 = vmatprep.subr.bf16.mxu1 %v8038_v26  ;;  %v8117_v26 = vld [vmem:[#allocation8 + $0xd40] ss:$16 sps:$4 sm:$0xff]  }
 0x2d4   :  { %4734 = vmatpush1.bf16.msra.mxu0 %v8033_v2  ;;  %v8120_v2 = vld [vmem:[#allocation8 + $0xd48] ss:$16 sps:$4 sm:$0xff]  }
 0x2d5   :  { %5078 = vmatpush1.bf16.msra.mxu1 %v8036_v28  ;;  %4735 = vmatprep.subr.bf16.mxu0 %v8041_v29  ;;  %v8125_v28 = vld [vmem:[#allocation8 + $0xd64] ss:$16 sps:$4 sm:$0xff]   ;;  %v8128_v29 = vld [vmem:[#allocation8 + $0xd6c] ss:$16 sps:$4 sm:$0xff]  }
 0x2d6   :  { %5079 = vmatprep.subr.bf16.mxu1 %v8044_v54  ;;  %v8123_v54 = vld [vmem:[#allocation8 + $0xd60] ss:$16 sps:$4 sm:$0xff]  }
 0x2d8   :  { %4736 = vmatpush1.bf16.msra.mxu0 %v8039_v31  ;;  %v8126_v31 = vld [vmem:[#allocation8 + $0xd68] ss:$16 sps:$4 sm:$0xff]  }
 0x2d9   :  { %5080 = vmatpush1.bf16.msra.mxu1 %v8042_v32  ;;  %4737 = vmatprep.subr.bf16.mxu0 %v8047_v33  ;;  %v8131_v32 = vld [vmem:[#allocation8 + $0xd84] ss:$16 sps:$4 sm:$0xff]   ;;  %v8134_v33 = vld [vmem:[#allocation8 + $0xd8c] ss:$16 sps:$4 sm:$0xff]  }
 0x2da   :  { %5081 = vmatprep.subr.bf16.mxu1 %v8050_v1  ;;  %v8129_v1 = vld [vmem:[#allocation8 + $0xd80] ss:$16 sps:$4 sm:$0xff]  }
 0x2dc   :  { %4738 = vmatpush1.bf16.msra.mxu0 %v8045_v34  ;;  %v8132_v34 = vld [vmem:[#allocation8 + $0xd88] ss:$16 sps:$4 sm:$0xff]  }
 0x2dd   :  { %5082 = vmatpush1.bf16.msra.mxu1 %v8048_v35  ;;  %4739 = vmatprep.subr.bf16.mxu0 %v8053_v36  ;;  %v8137_v35 = vld [vmem:[#allocation8 + $0xda4] ss:$16 sps:$4 sm:$0xff]   ;;  %v8140_v36 = vld [vmem:[#allocation8 + $0xdac] ss:$16 sps:$4 sm:$0xff]  }
 0x2de   :  { %5083 = vmatprep.subr.bf16.mxu1 %v8056_v61  ;;  %v8135_v61 = vld [vmem:[#allocation8 + $0xda0] ss:$16 sps:$4 sm:$0xff]  }
 0x2e0   :  { %4740 = vmatpush1.bf16.msra.mxu0 %v8051_v48  ;;  %v8138_v48 = vld [vmem:[#allocation8 + $0xda8] ss:$16 sps:$4 sm:$0xff]  }
 0x2e1   :  { %5084 = vmatpush1.bf16.msra.mxu1 %v8054_v38  ;;  %4752 = vmatprep.subr.bf16.mxu0 %v8059_v40  ;;  %v8143_v38 = vld [vmem:[#allocation8 + $0xdc4] ss:$16 sps:$4 sm:$0xff]   ;;  %v8146_v40 = vld [vmem:[#allocation8 + $0xdcc] ss:$16 sps:$4 sm:$0xff]  }
 0x2e2   :  { %5096 = vmatprep.subr.bf16.mxu1 %v8062_v41  ;;  %v8141_v41 = vld [vmem:[#allocation8 + $0xdc0] ss:$16 sps:$4 sm:$0xff]  }
 0x2e3   :  { %4742 = vmatmul.mubr.bf16.vlgmr.msra.gmra.mrb[16].mxu0 %v8970_v27 }
 0x2e4   :  { %5086 = vmatmul.mubr.bf16.vlgmr.msra.gmra.mrb[16].mxu1 %v8970_v27  ;;  %4753 = vmatpush1.bf16.msra.mxu0 %v8057_v42  ;;  %v8080_v27 = vld [vmem:[#allocation8 + $0xc6c] ss:$16 sps:$4 sm:$0xff]   ;;  %v8144_v42 = vld [vmem:[#allocation8 + $0xdc8] ss:$16 sps:$4 sm:$0xff]  }
 0x2e5   :  { %4784 = vmatprep.mubr.bf16.mxu0 %v8990_v5  ;;  %5097 = vmatpush1.bf16.msra.mxu1 %v8060_v43  ;;  %v8149_v43 = vld [vmem:[#allocation8 + $0xde4] ss:$16 sps:$4 sm:$0xff]  }
 0x2e6   :  { %5128 = vmatprep.mubr.bf16.mxu1 %v8990_v5  ;;  %4754 = vmatprep.subr.bf16.mxu0 %v8065_v58  ;;  %v8081_v5 = vld [vmem:[#allocation8 + $0xc80] ss:$16 sps:$4 sm:$0xff]   ;;  %v8152_v58 = vld [vmem:[#allocation8 + $0xdec] ss:$16 sps:$4 sm:$0xff]  }
 0x2e7   :  { %5098 = vmatprep.subr.bf16.mxu1 %v8068_v45  ;;  %v8147_v45 = vld [vmem:[#allocation8 + $0xde0] ss:$16 sps:$4 sm:$0xff]  }
 0x2e8   :  { %4755 = vmatpush1.bf16.msra.mxu0 %v8063_v46  ;;  %v8150_v46 = vld [vmem:[#allocation8 + $0xde8] ss:$16 sps:$4 sm:$0xff]  }
 0x2e9   :  { %5099 = vmatpush1.bf16.msra.mxu1 %v8066_v47  ;;  %4756 = vmatprep.subr.bf16.mxu0 %v8071_v0  ;;  %v8155_v47 = vld [vmem:[#allocation8 + $0xe04] ss:$16 sps:$4 sm:$0xff]   ;;  %v8158_v0 = vld [vmem:[#allocation8 + $0xe0c] ss:$16 sps:$4 sm:$0xff]  }
 0x2ea   :  { %5100 = vmatprep.subr.bf16.mxu1 %v8074_v30  ;;  %v8153_v30 = vld [vmem:[#allocation8 + $0xe00] ss:$16 sps:$4 sm:$0xff]  }
 0x2ec   :  { %4757 = vmatpush1.bf16.msra.mxu0 %v8069_v49  ;;  %v8156_v49 = vld [vmem:[#allocation8 + $0xe08] ss:$16 sps:$4 sm:$0xff]  }
 0x2ed   :  { %5101 = vmatpush1.bf16.msra.mxu1 %v8072_v50  ;;  %4758 = vmatprep.subr.bf16.mxu0 %v8077_v13  ;;  %v8161_v50 = vld [vmem:[#allocation8 + $0xe24] ss:$16 sps:$4 sm:$0xff]   ;;  %v8164_v13 = vld [vmem:[#allocation8 + $0xe2c] ss:$16 sps:$4 sm:$0xff]  }
 0x2ee   :  { %5102 = vmatprep.subr.bf16.mxu1 %v8080_v27  ;;  %v8159_v27 = vld [vmem:[#allocation8 + $0xe20] ss:$16 sps:$4 sm:$0xff]  }
 0x2f0   :  { %4759 = vmatpush1.bf16.msra.mxu0 %v8075_v51  ;;  %v8162_v51 = vld [vmem:[#allocation8 + $0xe28] ss:$16 sps:$4 sm:$0xff]  }
 0x2f1   :  { %5103 = vmatpush1.bf16.msra.mxu1 %v8078_v52  ;;  %4760 = vmatprep.subr.bf16.mxu0 %v8083_v53  ;;  %v8167_v52 = vld [vmem:[#allocation8 + $0xe44] ss:$16 sps:$4 sm:$0xff]   ;;  %v8170_v53 = vld [vmem:[#allocation8 + $0xe4c] ss:$16 sps:$4 sm:$0xff]  }
 0x2f2   :  { %5104 = vmatprep.subr.bf16.mxu1 %v8086_v55  ;;  %v8165_v55 = vld [vmem:[#allocation8 + $0xe40] ss:$16 sps:$4 sm:$0xff]  }
 0x2f4   :  { %4761 = vmatpush1.bf16.msra.mxu0 %v8081_v5  ;;  %v8168_v5 = vld [vmem:[#allocation8 + $0xe48] ss:$16 sps:$4 sm:$0xff]  }
 0x2f5   :  { %5105 = vmatpush1.bf16.msra.mxu1 %v8084_v56  ;;  %4762 = vmatprep.subr.bf16.mxu0 %v8089_v6  ;;  %v8173_v56 = vld [vmem:[#allocation8 + $0xe64] ss:$16 sps:$4 sm:$0xff]   ;;  %v8171_v6 = vld [vmem:[#allocation8 + $0xe60] ss:$16 sps:$4 sm:$0xff]  }
 0x2f6   :  { %5106 = vmatprep.subr.bf16.mxu1 %v8092_v57  ;;  %v8174_v57 = vld [vmem:[#allocation8 + $0xe68] ss:$16 sps:$4 sm:$0xff]  }
 0x2f8   :  { %4763 = vmatpush1.bf16.msra.mxu0 %v8087_v59  ;;  %v8179_v59 = vld [vmem:[#allocation8 + $0xe84] ss:$16 sps:$4 sm:$0xff]  }
 0x2f9   :  { %5107 = vmatpush1.bf16.msra.mxu1 %v8090_v7  ;;  %4764 = vmatprep.subr.bf16.mxu0 %v8095_v60  ;;  %v8182_v7 = vld [vmem:[#allocation8 + $0xe8c] ss:$16 sps:$4 sm:$0xff]   ;;  %v8180_v60 = vld [vmem:[#allocation8 + $0xe88] ss:$16 sps:$4 sm:$0xff]  }
 0x2fa   :  { %5108 = vmatprep.subr.bf16.mxu1 %v8098_v62  ;;  %v8185_v62 = vld [vmem:[#allocation8 + $0xea4] ss:$16 sps:$4 sm:$0xff]  }
 0x2fc   :  { %4765 = vmatpush1.bf16.msra.mxu0 %v8093_v63  ;;  %v8188_v63 = vld [vmem:[#allocation8 + $0xeac] ss:$16 sps:$4 sm:$0xff]  }
 0x2fd   :  { %5109 = vmatpush1.bf16.msra.mxu1 %v8096_v3  ;;  %4766 = vmatprep.subr.bf16.mxu0 %v8101_v4  ;;  %v8183_v3 = vld [vmem:[#allocation8 + $0xea0] ss:$16 sps:$4 sm:$0xff]   ;;  %v8186_v4 = vld [vmem:[#allocation8 + $0xea8] ss:$16 sps:$4 sm:$0xff]  }
 0x2fe   :  { %5110 = vmatprep.subr.bf16.mxu1 %v8104_v8  ;;  %v8191_v8 = vld [vmem:[#allocation8 + $0xec4] ss:$16 sps:$4 sm:$0xff]  }
 0x300   :  { %4767 = vmatpush1.bf16.msra.mxu0 %v8099_v9  ;;  %v8194_v9 = vld [vmem:[#allocation8 + $0xecc] ss:$16 sps:$4 sm:$0xff]  }
 0x301   :  { %5111 = vmatpush1.bf16.msra.mxu1 %v8102_v10  ;;  %4768 = vmatprep.subr.bf16.mxu0 %v8107_v11  ;;  %v8189_v10 = vld [vmem:[#allocation8 + $0xec0] ss:$16 sps:$4 sm:$0xff]   ;;  %v8192_v11 = vld [vmem:[#allocation8 + $0xec8] ss:$16 sps:$4 sm:$0xff]  }
 0x302   :  { %5112 = vmatprep.subr.bf16.mxu1 %v8110_v16  ;;  %v8197_v16 = vld [vmem:[#allocation8 + $0xee4] ss:$16 sps:$4 sm:$0xff]  }
 0x304   :  { %4769 = vmatpush1.bf16.msra.mxu0 %v8105_v21  ;;  %v8200_v21 = vld [vmem:[#allocation8 + $0xeec] ss:$16 sps:$4 sm:$0xff]  }
 0x305   :  { %5113 = vmatpush1.bf16.msra.mxu1 %v8108_v19  ;;  %4770 = vmatprep.subr.bf16.mxu0 %v8113_v12  ;;  %v8195_v19 = vld [vmem:[#allocation8 + $0xee0] ss:$16 sps:$4 sm:$0xff]   ;;  %v8198_v12 = vld [vmem:[#allocation8 + $0xee8] ss:$16 sps:$4 sm:$0xff]  }
 0x306   :  { %5114 = vmatprep.subr.bf16.mxu1 %v8116_v22  ;;  %v8203_v22 = vld [vmem:[#allocation8 + $0xf04] ss:$16 sps:$4 sm:$0xff]  }
 0x308   :  { %4771 = vmatpush1.bf16.msra.mxu0 %v8111_v44  ;;  %v8206_v44 = vld [vmem:[#allocation8 + $0xf0c] ss:$16 sps:$4 sm:$0xff]  }
 0x309   :  { %5115 = vmatpush1.bf16.msra.mxu1 %v8114_v23  ;;  %4772 = vmatprep.subr.bf16.mxu0 %v8119_v25  ;;  %v8201_v23 = vld [vmem:[#allocation8 + $0xf00] ss:$16 sps:$4 sm:$0xff]   ;;  %v8204_v25 = vld [vmem:[#allocation8 + $0xf08] ss:$16 sps:$4 sm:$0xff]  }
 0x30a   :  { %5116 = vmatprep.subr.bf16.mxu1 %v8122_v24  ;;  %v8209_v24 = vld [vmem:[#allocation8 + $0xf24] ss:$16 sps:$4 sm:$0xff]  }
 0x30c   :  { %4773 = vmatpush1.bf16.msra.mxu0 %v8117_v26  ;;  %v8212_v26 = vld [vmem:[#allocation8 + $0xf2c] ss:$16 sps:$4 sm:$0xff]  }
 0x30d   :  { %5117 = vmatpush1.bf16.msra.mxu1 %v8120_v2  ;;  %4774 = vmatprep.subr.bf16.mxu0 %v8125_v28  ;;  %v8207_v2 = vld [vmem:[#allocation8 + $0xf20] ss:$16 sps:$4 sm:$0xff]   ;;  %v8210_v28 = vld [vmem:[#allocation8 + $0xf28] ss:$16 sps:$4 sm:$0xff]  }
 0x30e   :  { %5118 = vmatprep.subr.bf16.mxu1 %v8128_v29  ;;  %v8215_v29 = vld [vmem:[#allocation8 + $0xf44] ss:$16 sps:$4 sm:$0xff]  }
 0x310   :  { %4775 = vmatpush1.bf16.msra.mxu0 %v8123_v54  ;;  %v8218_v54 = vld [vmem:[#allocation8 + $0xf4c] ss:$16 sps:$4 sm:$0xff]  }
 0x311   :  { %5119 = vmatpush1.bf16.msra.mxu1 %v8126_v31  ;;  %4776 = vmatprep.subr.bf16.mxu0 %v8131_v32  ;;  %v8213_v31 = vld [vmem:[#allocation8 + $0xf40] ss:$16 sps:$4 sm:$0xff]   ;;  %v8216_v32 = vld [vmem:[#allocation8 + $0xf48] ss:$16 sps:$4 sm:$0xff]  }
 0x312   :  { %5120 = vmatprep.subr.bf16.mxu1 %v8134_v33  ;;  %v8221_v33 = vld [vmem:[#allocation8 + $0xf64] ss:$16 sps:$4 sm:$0xff]  }
 0x314   :  { %4777 = vmatpush1.bf16.msra.mxu0 %v8129_v1  ;;  %v8224_v1 = vld [vmem:[#allocation8 + $0xf6c] ss:$16 sps:$4 sm:$0xff]  }
 0x315   :  { %5121 = vmatpush1.bf16.msra.mxu1 %v8132_v34  ;;  %4778 = vmatprep.subr.bf16.mxu0 %v8137_v35  ;;  %v8219_v34 = vld [vmem:[#allocation8 + $0xf60] ss:$16 sps:$4 sm:$0xff]   ;;  %v8222_v35 = vld [vmem:[#allocation8 + $0xf68] ss:$16 sps:$4 sm:$0xff]  }
 0x316   :  { %5122 = vmatprep.subr.bf16.mxu1 %v8140_v36  ;;  %v8227_v36 = vld [vmem:[#allocation8 + $0xf84] ss:$16 sps:$4 sm:$0xff]  }
 0x318   :  { %4779 = vmatpush1.bf16.msra.mxu0 %v8135_v61  ;;  %v8230_v61 = vld [vmem:[#allocation8 + $0xf8c] ss:$16 sps:$4 sm:$0xff]  }
 0x319   :  { %5123 = vmatpush1.bf16.msra.mxu1 %v8138_v48  ;;  %4780 = vmatprep.subr.bf16.mxu0 %v8143_v38  ;;  %v8225_v48 = vld [vmem:[#allocation8 + $0xf80] ss:$16 sps:$4 sm:$0xff]   ;;  %v8228_v38 = vld [vmem:[#allocation8 + $0xf88] ss:$16 sps:$4 sm:$0xff]  }
 0x31a   :  { %5124 = vmatprep.subr.bf16.mxu1 %v8146_v40  ;;  %v8233_v40 = vld [vmem:[#allocation8 + $0xfa4] ss:$16 sps:$4 sm:$0xff]  }
 0x31c   :  { %4781 = vmatpush1.bf16.msra.mxu0 %v8141_v41  ;;  %v8236_v41 = vld [vmem:[#allocation8 + $0xfac] ss:$16 sps:$4 sm:$0xff]  }
 0x31d   :  { %5125 = vmatpush1.bf16.msra.mxu1 %v8144_v42  ;;  %4782 = vmatprep.subr.bf16.mxu0 %v8149_v43  ;;  %v8231_v42 = vld [vmem:[#allocation8 + $0xfa0] ss:$16 sps:$4 sm:$0xff]   ;;  %v8234_v43 = vld [vmem:[#allocation8 + $0xfa8] ss:$16 sps:$4 sm:$0xff]  }
 0x31e   :  { %5126 = vmatprep.subr.bf16.mxu1 %v8152_v58  ;;  %v8239_v58 = vld [vmem:[#allocation8 + $0xfc4] ss:$16 sps:$4 sm:$0xff]  }
 0x320   :  { %4783 = vmatpush1.bf16.msra.mxu0 %v8147_v45  ;;  %v8242_v45 = vld [vmem:[#allocation8 + $0xfcc] ss:$16 sps:$4 sm:$0xff]  }
 0x321   :  { %5127 = vmatpush1.bf16.msra.mxu1 %v8150_v46  ;;  %4795 = vmatprep.subr.bf16.mxu0 %v8155_v47  ;;  %v8237_v46 = vld [vmem:[#allocation8 + $0xfc0] ss:$16 sps:$4 sm:$0xff]   ;;  %v8240_v47 = vld [vmem:[#allocation8 + $0xfc8] ss:$16 sps:$4 sm:$0xff]  }
 0x322   :  { %5139 = vmatprep.subr.bf16.mxu1 %v8158_v0  ;;  %v8245_v0 = vld [vmem:[#allocation8 + $0xfe4] ss:$16 sps:$4 sm:$0xff]  }
 0x323   :  { %4785 = vmatmul.mubr.bf16.vlgmr.msra.gmra.mrb[16].mxu0 %v8988_v17 }
 0x324   :  { %5129 = vmatmul.mubr.bf16.vlgmr.msra.gmra.mrb[16].mxu1 %v8988_v17  ;;  %4796 = vmatpush1.bf16.msra.mxu0 %v8153_v30  ;;  %v8176_v17 = vld [vmem:[#allocation8 + $0xe6c] ss:$16 sps:$4 sm:$0xff]  }
 0x325   :  { %4827 = vmatprep.mubr.bf16.mxu0 %v8994_v39  ;;  %5140 = vmatpush1.bf16.msra.mxu1 %v8156_v49  ;;  %v8248_v30 = vld [vmem:[#allocation8 + $0xfec] ss:$16 sps:$4 sm:$0xff]   ;;  %v8243_v49 = vld [vmem:[#allocation8 + $0xfe0] ss:$16 sps:$4 sm:$0xff]  }
 0x326   :  { %5171 = vmatprep.mubr.bf16.mxu1 %v8994_v39  ;;  %4797 = vmatprep.subr.bf16.mxu0 %v8161_v50  ;;  %v8177_v39 = vld [vmem:[#allocation8 + $0xe80] ss:$16 sps:$4 sm:$0xff]   ;;  %v8246_v50 = vld [vmem:[#allocation8 + $0xfe8] ss:$16 sps:$4 sm:$0xff]  }
 0x327   :  { %5141 = vmatprep.subr.bf16.mxu1 %v8164_v13  ;;  %v8251_v13 = vld [vmem:[#allocation11 + $0x4] ss:$16 sps:$4 sm:$0xff]  }
 0x328   :  { %4798 = vmatpush1.bf16.msra.mxu0 %v8159_v27  ;;  %v8254_v27 = vld [vmem:[#allocation11 + $0xc] ss:$16 sps:$4 sm:$0xff]  }
 0x329   :  { %5142 = vmatpush1.bf16.msra.mxu1 %v8162_v51  ;;  %4799 = vmatprep.subr.bf16.mxu0 %v8167_v52  ;;  %v8249_v51 = vld [vmem:[#allocation11] ss:$16 sps:$4 sm:$0xff]   ;;  %v8252_v52 = vld [vmem:[#allocation11 + $0x8] ss:$16 sps:$4 sm:$0xff]  }
 0x32a   :  { %5143 = vmatprep.subr.bf16.mxu1 %v8170_v53  ;;  %v8257_v53 = vld [vmem:[#allocation11 + $0x24] ss:$16 sps:$4 sm:$0xff]  }
 0x32c   :  { %4800 = vmatpush1.bf16.msra.mxu0 %v8165_v55  ;;  %v8260_v55 = vld [vmem:[#allocation11 + $0x2c] ss:$16 sps:$4 sm:$0xff]  }
 0x32d   :  { %5144 = vmatpush1.bf16.msra.mxu1 %v8168_v5  ;;  %4801 = vmatprep.subr.bf16.mxu0 %v8173_v56  ;;  %v8255_v5 = vld [vmem:[#allocation11 + $0x20] ss:$16 sps:$4 sm:$0xff]   ;;  %v8258_v56 = vld [vmem:[#allocation11 + $0x28] ss:$16 sps:$4 sm:$0xff]  }
 0x32e   :  { %5145 = vmatprep.subr.bf16.mxu1 %v8176_v17  ;;  %v8263_v17 = vld [vmem:[#allocation11 + $0x44] ss:$16 sps:$4 sm:$0xff]  }
 0x330   :  { %4802 = vmatpush1.bf16.msra.mxu0 %v8171_v6  ;;  %v8266_v6 = vld [vmem:[#allocation11 + $0x4c] ss:$16 sps:$4 sm:$0xff]  }
 0x331   :  { %5146 = vmatpush1.bf16.msra.mxu1 %v8174_v57  ;;  %4803 = vmatprep.subr.bf16.mxu0 %v8179_v59  ;;  %v8261_v57 = vld [vmem:[#allocation11 + $0x40] ss:$16 sps:$4 sm:$0xff]   ;;  %v8264_v59 = vld [vmem:[#allocation11 + $0x48] ss:$16 sps:$4 sm:$0xff]  }
 0x332   :  { %5147 = vmatprep.subr.bf16.mxu1 %v8182_v7  ;;  %v8269_v7 = vld [vmem:[#allocation11 + $0x64] ss:$16 sps:$4 sm:$0xff]  }
 0x334   :  { %4804 = vmatpush1.bf16.msra.mxu0 %v8177_v39  ;;  %v8272_v39 = vld [vmem:[#allocation11 + $0x6c] ss:$16 sps:$4 sm:$0xff]  }
 0x335   :  { %5148 = vmatpush1.bf16.msra.mxu1 %v8180_v60  ;;  %4805 = vmatprep.subr.bf16.mxu0 %v8185_v62  ;;  %v8267_v60 = vld [vmem:[#allocation11 + $0x60] ss:$16 sps:$4 sm:$0xff]   ;;  %v8275_v62 = vld [vmem:[#allocation11 + $0x84] ss:$16 sps:$4 sm:$0xff]  }
 0x336   :  { %5149 = vmatprep.subr.bf16.mxu1 %v8188_v63  ;;  %v8278_v63 = vld [vmem:[#allocation11 + $0x8c] ss:$16 sps:$4 sm:$0xff]  }
 0x338   :  { %4806 = vmatpush1.bf16.msra.mxu0 %v8183_v3  ;;  %v8273_v3 = vld [vmem:[#allocation11 + $0x80] ss:$16 sps:$4 sm:$0xff]  }
 0x339   :  { %5150 = vmatpush1.bf16.msra.mxu1 %v8186_v4  ;;  %4807 = vmatprep.subr.bf16.mxu0 %v8191_v8  ;;  %v8276_v4 = vld [vmem:[#allocation11 + $0x88] ss:$16 sps:$4 sm:$0xff]   ;;  %v8281_v8 = vld [vmem:[#allocation11 + $0xa4] ss:$16 sps:$4 sm:$0xff]  }
 0x33a   :  { %5151 = vmatprep.subr.bf16.mxu1 %v8194_v9  ;;  %v8284_v9 = vld [vmem:[#allocation11 + $0xac] ss:$16 sps:$4 sm:$0xff]  }
 0x33c   :  { %4808 = vmatpush1.bf16.msra.mxu0 %v8189_v10  ;;  %v8279_v10 = vld [vmem:[#allocation11 + $0xa0] ss:$16 sps:$4 sm:$0xff]  }
 0x33d   :  { %5152 = vmatpush1.bf16.msra.mxu1 %v8192_v11  ;;  %4809 = vmatprep.subr.bf16.mxu0 %v8197_v16  ;;  %v8282_v11 = vld [vmem:[#allocation11 + $0xa8] ss:$16 sps:$4 sm:$0xff]   ;;  %v8287_v16 = vld [vmem:[#allocation11 + $0xc4] ss:$16 sps:$4 sm:$0xff]  }
 0x33e   :  { %5153 = vmatprep.subr.bf16.mxu1 %v8200_v21  ;;  %v8290_v21 = vld [vmem:[#allocation11 + $0xcc] ss:$16 sps:$4 sm:$0xff]  }
 0x340   :  { %4810 = vmatpush1.bf16.msra.mxu0 %v8195_v19  ;;  %v8285_v19 = vld [vmem:[#allocation11 + $0xc0] ss:$16 sps:$4 sm:$0xff]  }
 0x341   :  { %5154 = vmatpush1.bf16.msra.mxu1 %v8198_v12  ;;  %4811 = vmatprep.subr.bf16.mxu0 %v8203_v22  ;;  %v8288_v12 = vld [vmem:[#allocation11 + $0xc8] ss:$16 sps:$4 sm:$0xff]   ;;  %v8293_v22 = vld [vmem:[#allocation11 + $0xe4] ss:$16 sps:$4 sm:$0xff]  }
 0x342   :  { %5155 = vmatprep.subr.bf16.mxu1 %v8206_v44  ;;  %v8296_v44 = vld [vmem:[#allocation11 + $0xec] ss:$16 sps:$4 sm:$0xff]  }
 0x344   :  { %4812 = vmatpush1.bf16.msra.mxu0 %v8201_v23  ;;  %v8291_v23 = vld [vmem:[#allocation11 + $0xe0] ss:$16 sps:$4 sm:$0xff]  }
 0x345   :  { %5156 = vmatpush1.bf16.msra.mxu1 %v8204_v25  ;;  %4813 = vmatprep.subr.bf16.mxu0 %v8209_v24  ;;  %v8294_v25 = vld [vmem:[#allocation11 + $0xe8] ss:$16 sps:$4 sm:$0xff]   ;;  %v8299_v24 = vld [vmem:[#allocation11 + $0x104] ss:$16 sps:$4 sm:$0xff]  }
 0x346   :  { %5157 = vmatprep.subr.bf16.mxu1 %v8212_v26  ;;  %v8302_v26 = vld [vmem:[#allocation11 + $0x10c] ss:$16 sps:$4 sm:$0xff]  }
 0x348   :  { %4814 = vmatpush1.bf16.msra.mxu0 %v8207_v2  ;;  %v8297_v2 = vld [vmem:[#allocation11 + $0x100] ss:$16 sps:$4 sm:$0xff]  }
 0x349   :  { %5158 = vmatpush1.bf16.msra.mxu1 %v8210_v28  ;;  %4815 = vmatprep.subr.bf16.mxu0 %v8215_v29  ;;  %v8300_v28 = vld [vmem:[#allocation11 + $0x108] ss:$16 sps:$4 sm:$0xff]   ;;  %v8305_v29 = vld [vmem:[#allocation11 + $0x124] ss:$16 sps:$4 sm:$0xff]  }
 0x34a   :  { %5159 = vmatprep.subr.bf16.mxu1 %v8218_v54  ;;  %v8308_v54 = vld [vmem:[#allocation11 + $0x12c] ss:$16 sps:$4 sm:$0xff]  }
 0x34c   :  { %4816 = vmatpush1.bf16.msra.mxu0 %v8213_v31  ;;  %v8303_v31 = vld [vmem:[#allocation11 + $0x120] ss:$16 sps:$4 sm:$0xff]  }
 0x34d   :  { %5160 = vmatpush1.bf16.msra.mxu1 %v8216_v32  ;;  %4817 = vmatprep.subr.bf16.mxu0 %v8221_v33  ;;  %v8306_v32 = vld [vmem:[#allocation11 + $0x128] ss:$16 sps:$4 sm:$0xff]   ;;  %v8311_v33 = vld [vmem:[#allocation11 + $0x144] ss:$16 sps:$4 sm:$0xff]  }
 0x34e   :  { %5161 = vmatprep.subr.bf16.mxu1 %v8224_v1  ;;  %v8314_v1 = vld [vmem:[#allocation11 + $0x14c] ss:$16 sps:$4 sm:$0xff]  }
 0x350   :  { %4818 = vmatpush1.bf16.msra.mxu0 %v8219_v34  ;;  %v8309_v34 = vld [vmem:[#allocation11 + $0x140] ss:$16 sps:$4 sm:$0xff]  }
 0x351   :  { %5162 = vmatpush1.bf16.msra.mxu1 %v8222_v35  ;;  %4819 = vmatprep.subr.bf16.mxu0 %v8227_v36  ;;  %v8312_v35 = vld [vmem:[#allocation11 + $0x148] ss:$16 sps:$4 sm:$0xff]   ;;  %v8317_v36 = vld [vmem:[#allocation11 + $0x164] ss:$16 sps:$4 sm:$0xff]  }
 0x352   :  { %5163 = vmatprep.subr.bf16.mxu1 %v8230_v61  ;;  %v8320_v61 = vld [vmem:[#allocation11 + $0x16c] ss:$16 sps:$4 sm:$0xff]  }
 0x354   :  { %4820 = vmatpush1.bf16.msra.mxu0 %v8225_v48  ;;  %v8315_v48 = vld [vmem:[#allocation11 + $0x160] ss:$16 sps:$4 sm:$0xff]  }
 0x355   :  { %5164 = vmatpush1.bf16.msra.mxu1 %v8228_v38  ;;  %4821 = vmatprep.subr.bf16.mxu0 %v8233_v40  ;;  %v8318_v38 = vld [vmem:[#allocation11 + $0x168] ss:$16 sps:$4 sm:$0xff]   ;;  %v8323_v40 = vld [vmem:[#allocation11 + $0x184] ss:$16 sps:$4 sm:$0xff]  }
 0x356   :  { %5165 = vmatprep.subr.bf16.mxu1 %v8236_v41  ;;  %v8326_v41 = vld [vmem:[#allocation11 + $0x18c] ss:$16 sps:$4 sm:$0xff]  }
 0x358   :  { %4822 = vmatpush1.bf16.msra.mxu0 %v8231_v42  ;;  %v8321_v42 = vld [vmem:[#allocation11 + $0x180] ss:$16 sps:$4 sm:$0xff]  }
 0x359   :  { %5166 = vmatpush1.bf16.msra.mxu1 %v8234_v43  ;;  %4823 = vmatprep.subr.bf16.mxu0 %v8239_v58  ;;  %v8324_v43 = vld [vmem:[#allocation11 + $0x188] ss:$16 sps:$4 sm:$0xff]   ;;  %v8329_v58 = vld [vmem:[#allocation11 + $0x1a4] ss:$16 sps:$4 sm:$0xff]  }
 0x35a   :  { %5167 = vmatprep.subr.bf16.mxu1 %v8242_v45  ;;  %v8332_v45 = vld [vmem:[#allocation11 + $0x1ac] ss:$16 sps:$4 sm:$0xff]  }
 0x35c   :  { %4824 = vmatpush1.bf16.msra.mxu0 %v8237_v46  ;;  %v8327_v46 = vld [vmem:[#allocation11 + $0x1a0] ss:$16 sps:$4 sm:$0xff]  }
 0x35d   :  { %5168 = vmatpush1.bf16.msra.mxu1 %v8240_v47  ;;  %4825 = vmatprep.subr.bf16.mxu0 %v8245_v0  ;;  %v8330_v47 = vld [vmem:[#allocation11 + $0x1a8] ss:$16 sps:$4 sm:$0xff]   ;;  %v8335_v0 = vld [vmem:[#allocation11 + $0x1c4] ss:$16 sps:$4 sm:$0xff]  }
 0x35e   :  { %5169 = vmatprep.subr.bf16.mxu1 %v8248_v30  ;;  %v8338_v30 = vld [vmem:[#allocation11 + $0x1cc] ss:$16 sps:$4 sm:$0xff]  }
 0x360   :  { %4826 = vmatpush1.bf16.msra.mxu0 %v8243_v49  ;;  %v8333_v49 = vld [vmem:[#allocation11 + $0x1c0] ss:$16 sps:$4 sm:$0xff]  }
 0x361   :  { %5170 = vmatpush1.bf16.msra.mxu1 %v8246_v50  ;;  %5984 = vmatprep.subr.bf16.mxu0 %v8251_v13  ;;  %v8336_v50 = vld [vmem:[#allocation11 + $0x1c8] ss:$16 sps:$4 sm:$0xff]   ;;  %v8341_v13 = vld [vmem:[#allocation11 + $0x1e4] ss:$16 sps:$4 sm:$0xff]  }
 0x362   :  { %6070 = vmatprep.subr.bf16.mxu1 %v8254_v27  ;;  %v8344_v27 = vld [vmem:[#allocation11 + $0x1ec] ss:$16 sps:$4 sm:$0xff]  }
 0x363   :  { %4828 = vmatmul.mubr.bf16.vlgmr.msra.gmra.mrb[16].mxu0 %v8992_v37 }
 0x364   :  { %5172 = vmatmul.mubr.bf16.vlgmr.msra.gmra.mrb[16].mxu1 %v8992_v37  ;;  %5985 = vmatpush1.bf16.msra.mxu0 %v8249_v51  ;;  %v8270_v37 = vld [vmem:[#allocation11 + $0x68] ss:$16 sps:$4 sm:$0xff]   ;;  %v8339_v51 = vld [vmem:[#allocation11 + $0x1e0] ss:$16 sps:$4 sm:$0xff]  }
 0x365   :  { %6071 = vmatpush1.bf16.msra.mxu1 %v8252_v52  ;;  %5986 = vmatprep.subr.bf16.mxu0 %v8257_v53  ;;  %v8342_v52 = vld [vmem:[#allocation11 + $0x1e8] ss:$16 sps:$4 sm:$0xff]   ;;  %v8347_v53 = vld [vmem:[#allocation11 + $0x204] ss:$16 sps:$4 sm:$0xff]  }
 0x366   :  { %6072 = vmatprep.subr.bf16.mxu1 %v8260_v55  ;;  %v8350_v55 = vld [vmem:[#allocation11 + $0x20c] ss:$16 sps:$4 sm:$0xff]  }
 0x368   :  { %5987 = vmatpush1.bf16.msra.mxu0 %v8255_v5  ;;  %v1912_v5 = vld [vmem:[#allocation10] sm:$0xf] }
 0x369   :  { %6073 = vmatpush1.bf16.msra.mxu1 %v8258_v56  ;;  %5988 = vmatprep.subr.bf16.mxu0 %v8263_v17  ;;  %v1917_v56 = vrot.slane %v1912_v5, %v8909_v14  ;;  %v1925_v17 = vrot.slane %v1912_v5, %v8919_v18 }
 0x36a   :  { %6074 = vmatprep.subr.bf16.mxu1 %v8266_v6  ;;  %v1921_v6 = vrot.slane %v1912_v5, %v8912_v15 }
 0x36c   :  { %5989 = vmatpush1.bf16.msra.mxu0 %v8261_v57  ;;  %v1929_v57 = vrot.slane %v1912_v5, %v8922_v20  ;;  %v8392_v5 = vld [vmem:[#allocation11 + $0x2ec] ss:$16 sps:$4 sm:$0xff]  }
 0x36d   :  { %6075 = vmatpush1.bf16.msra.mxu1 %v8264_v59  ;;  %5990 = vmatprep.subr.bf16.mxu0 %v8269_v7 }
 0x36e   :  { %6076 = vmatprep.subr.bf16.mxu1 %v8272_v39 }
 0x370   :  { %5991 = vmatpush1.bf16.msra.mxu0 %v8267_v60 }
 0x371   :  { %6077 = vmatpush1.bf16.msra.mxu1 %v8270_v37  ;;  %5992 = vmatprep.subr.bf16.mxu0 %v8275_v62 }
 0x372   :  { %6078 = vmatprep.subr.bf16.mxu1 %v8278_v63 }
 0x374   :  { %5993 = vmatpush1.bf16.msra.mxu0 %v8273_v3 }
 0x375   :  { %6079 = vmatpush1.bf16.msra.mxu1 %v8276_v4  ;;  %5994 = vmatprep.subr.bf16.mxu0 %v8281_v8 }
 0x376   :  { %6080 = vmatprep.subr.bf16.mxu1 %v8284_v9 }
 0x378   :  { %5995 = vmatpush1.bf16.msra.mxu0 %v8279_v10 }
 0x379   :  { %6081 = vmatpush1.bf16.msra.mxu1 %v8282_v11  ;;  %5996 = vmatprep.subr.bf16.mxu0 %v8287_v16 }
 0x37a   :  { %6082 = vmatprep.subr.bf16.mxu1 %v8290_v21 }
 0x37c   :  { %5997 = vmatpush1.bf16.msra.mxu0 %v8285_v19 }
 0x37d   :  { %6083 = vmatpush1.bf16.msra.mxu1 %v8288_v12  ;;  %5998 = vmatprep.subr.bf16.mxu0 %v8293_v22 }
 0x37e   :  { %6084 = vmatprep.subr.bf16.mxu1 %v8296_v44 }
 0x380   :  { %5999 = vmatpush1.bf16.msra.mxu0 %v8291_v23 }
 0x381   :  { %6085 = vmatpush1.bf16.msra.mxu1 %v8294_v25  ;;  %6000 = vmatprep.subr.bf16.mxu0 %v8299_v24 }
 0x382   :  { %6086 = vmatprep.subr.bf16.mxu1 %v8302_v26 }
 0x384   :  { %6001 = vmatpush1.bf16.msra.mxu0 %v8297_v2 }
 0x385   :  { %6087 = vmatpush1.bf16.msra.mxu1 %v8300_v28  ;;  %6002 = vmatprep.subr.bf16.mxu0 %v8305_v29 }
 0x386   :  { %6088 = vmatprep.subr.bf16.mxu1 %v8308_v54 }
 0x388   :  { %6003 = vmatpush1.bf16.msra.mxu0 %v8303_v31  ;;  %v8345_v31 = vld [vmem:[#allocation11 + $0x200] ss:$16 sps:$4 sm:$0xff]  }
 0x389   :  { %6089 = vmatpush1.bf16.msra.mxu1 %v8306_v32  ;;  %6004 = vmatprep.subr.bf16.mxu0 %v8311_v33  ;;  %v8348_v32 = vld [vmem:[#allocation11 + $0x208] ss:$16 sps:$4 sm:$0xff]  }
 0x38a   :  { %6090 = vmatprep.subr.bf16.mxu1 %v8314_v1  ;;  %v8353_v1 = vld [vmem:[#allocation11 + $0x224] ss:$16 sps:$4 sm:$0xff]  }
 0x38c   :  { %6005 = vmatpush1.bf16.msra.mxu0 %v8309_v34  ;;  %v8356_v34 = vld [vmem:[#allocation11 + $0x22c] ss:$16 sps:$4 sm:$0xff]  }
 0x38d   :  { %6091 = vmatpush1.bf16.msra.mxu1 %v8312_v35  ;;  %6006 = vmatprep.subr.bf16.mxu0 %v8317_v36  ;;  %v8351_v35 = vld [vmem:[#allocation11 + $0x220] ss:$16 sps:$4 sm:$0xff]   ;;  %v8354_v36 = vld [vmem:[#allocation11 + $0x228] ss:$16 sps:$4 sm:$0xff]  }
 0x38e   :  { %6092 = vmatprep.subr.bf16.mxu1 %v8320_v61  ;;  %v8359_v61 = vld [vmem:[#allocation11 + $0x244] ss:$16 sps:$4 sm:$0xff]  }
 0x390   :  { %6007 = vmatpush1.bf16.msra.mxu0 %v8315_v48  ;;  %v8362_v48 = vld [vmem:[#allocation11 + $0x24c] ss:$16 sps:$4 sm:$0xff]  }
 0x391   :  { %6093 = vmatpush1.bf16.msra.mxu1 %v8318_v38  ;;  %6008 = vmatprep.subr.bf16.mxu0 %v8323_v40  ;;  %v8357_v38 = vld [vmem:[#allocation11 + $0x240] ss:$16 sps:$4 sm:$0xff]   ;;  %v8360_v40 = vld [vmem:[#allocation11 + $0x248] ss:$16 sps:$4 sm:$0xff]  }
 0x392   :  { %6094 = vmatprep.subr.bf16.mxu1 %v8326_v41  ;;  %v8365_v41 = vld [vmem:[#allocation11 + $0x264] ss:$16 sps:$4 sm:$0xff]  }
 0x394   :  { %6009 = vmatpush1.bf16.msra.mxu0 %v8321_v42  ;;  %v8368_v42 = vld [vmem:[#allocation11 + $0x26c] ss:$16 sps:$4 sm:$0xff]  }
 0x395   :  { %6095 = vmatpush1.bf16.msra.mxu1 %v8324_v43  ;;  %6010 = vmatprep.subr.bf16.mxu0 %v8329_v58  ;;  %v8363_v43 = vld [vmem:[#allocation11 + $0x260] ss:$16 sps:$4 sm:$0xff]   ;;  %v8366_v58 = vld [vmem:[#allocation11 + $0x268] ss:$16 sps:$4 sm:$0xff]  }
 0x396   :  { %6096 = vmatprep.subr.bf16.mxu1 %v8332_v45  ;;  %v8371_v45 = vld [vmem:[#allocation11 + $0x284] ss:$16 sps:$4 sm:$0xff]  }
 0x398   :  { %6011 = vmatpush1.bf16.msra.mxu0 %v8327_v46  ;;  %v8374_v46 = vld [vmem:[#allocation11 + $0x28c] ss:$16 sps:$4 sm:$0xff]  }
 0x399   :  { %6097 = vmatpush1.bf16.msra.mxu1 %v8330_v47  ;;  %6012 = vmatprep.subr.bf16.mxu0 %v8335_v0  ;;  %v8369_v47 = vld [vmem:[#allocation11 + $0x280] ss:$16 sps:$4 sm:$0xff]   ;;  %v8372_v0 = vld [vmem:[#allocation11 + $0x288] ss:$16 sps:$4 sm:$0xff]  }
 0x39a   :  { %6098 = vmatprep.subr.bf16.mxu1 %v8338_v30  ;;  %v8377_v30 = vld [vmem:[#allocation11 + $0x2a4] ss:$16 sps:$4 sm:$0xff]  }
 0x39c   :  { %6013 = vmatpush1.bf16.msra.mxu0 %v8333_v49  ;;  %v8380_v49 = vld [vmem:[#allocation11 + $0x2ac] ss:$16 sps:$4 sm:$0xff]  }
 0x39d   :  { %6099 = vmatpush1.bf16.msra.mxu1 %v8336_v50  ;;  %6014 = vmatprep.subr.bf16.mxu0 %v8341_v13  ;;  %v8375_v50 = vld [vmem:[#allocation11 + $0x2a0] ss:$16 sps:$4 sm:$0xff]   ;;  %v8378_v13 = vld [vmem:[#allocation11 + $0x2a8] ss:$16 sps:$4 sm:$0xff]  }
 0x39e   :  { %6100 = vmatprep.subr.bf16.mxu1 %v8344_v27  ;;  %v8383_v27 = vld [vmem:[#allocation11 + $0x2c4] ss:$16 sps:$4 sm:$0xff]  }
 0x3a0   :  { %6015 = vmatpush1.bf16.msra.mxu0 %v8339_v51  ;;  %v8386_v51 = vld [vmem:[#allocation11 + $0x2cc] ss:$16 sps:$4 sm:$0xff]  }
 0x3a1   :  { %6101 = vmatpush1.bf16.msra.mxu1 %v8342_v52  ;;  %6027 = vmatprep.subr.bf16.mxu0 %v8347_v53  ;;  %v8381_v52 = vld [vmem:[#allocation11 + $0x2c0] ss:$16 sps:$4 sm:$0xff]   ;;  %v8384_v53 = vld [vmem:[#allocation11 + $0x2c8] ss:$16 sps:$4 sm:$0xff]  }
 0x3a2   :  { %6113 = vmatprep.subr.bf16.mxu1 %v8350_v55  ;;  %v8389_v55 = vld [vmem:[#allocation11 + $0x2e4] ss:$16 sps:$4 sm:$0xff]  }
 0x436   :  { %v4829_v59 = vpop.f32.mrb[16].mxu0 }
 0x437   :  { %v7382_v7 = vadd.f32 %v4829_v59, %v1917_v56  ;;  %v5173_v39 = vpop.f32.mrb[16].mxu1  ;;  %v4831_v60 = vpop.f32.mrb[17].mxu0  ;;  %v8393_v59 = vld [vmem:[#allocation11 + $0x300] ss:$16 sps:$4 sm:$0xff]  }
 0x438   :  { %v7386_v37 = vadd.f32 %v5173_v39, %v1925_v17  ;;  %v7383_v62 = vadd.f32 %v4831_v60, %v1921_v6  ;;  %v5175_v63 = vpop.f32.mrb[17].mxu1  ;;  %v4833_v3 = vpop.f32.mrb[18].mxu0  ;;  %v8401_v39 = vld [vmem:[#allocation11 + $0x324] ss:$16 sps:$4 sm:$0xff]   ;;  %v8404_v60 = vld [vmem:[#allocation11 + $0x32c] ss:$16 sps:$4 sm:$0xff]  }
 0x439   :  { %v7387_v4 = vadd.f32 %v5175_v63, %v1929_v57  ;;  %v7384_v8 = vadd.f32 %v4833_v3, %v1917_v56  ;;  %v5177_v9 = vpop.f32.mrb[18].mxu1  ;;  %v4835_v10 = vpop.f32.mrb[19].mxu0  ;;  %v5182_v19 = vmax.f32 %v7382_v7, 0.0  ;;  %v8387_v56 = vld [vmem:[#allocation11 + $0x2e0] ss:$16 sps:$4 sm:$0xff]  }
 0x43a   :  { %v7388_v11 = vadd.f32 %v5177_v9, %v1925_v17  ;;  %v7385_v16 = vadd.f32 %v4835_v10, %v1921_v6  ;;  %v5179_v21 = vpop.f32.mrb[19].mxu1  ;;  %v5184_v44 = vmax.f32 %v7386_v37, 0.0  ;;  %v5183_v23 = vmax.f32 %v7383_v62, 0.0  ;;  %v8390_v17 = vld [vmem:[#allocation11 + $0x2e8] ss:$16 sps:$4 sm:$0xff]  }
 0x43b   :  { %v5186_v12 = vmax.f32 %v7384_v8, 0.0  ;;  %v7389_v22 = vadd.f32 %v5179_v21, %v1929_v57  ;;  %v5185_v26 = vmax.f32 %v7387_v4, 0.0  ;;  %v8395_v6 = vld [vmem:[#allocation11 + $0x304] ss:$16 sps:$4 sm:$0xff]   ;;  %v8398_v57 = vld [vmem:[#allocation11 + $0x30c] ss:$16 sps:$4 sm:$0xff]  }
 0x43c   :  { %v5188_v25 = vmax.f32 %v7388_v11, 0.0  ;;  %v5187_v24 = vmax.f32 %v7385_v16, 0.0  ;;  %v8396_v7 = vld [vmem:[#allocation11 + $0x308] ss:$16 sps:$4 sm:$0xff]   ;;  %v8399_v37 = vld [vmem:[#allocation11 + $0x320] ss:$16 sps:$4 sm:$0xff]  }
 0x43d   :  { %v5190_v2 = vpack.c.bf16 %v5186_v12, %v5182_v19  ;;  %v5189_v28 = vmax.f32 %v7389_v22, 0.0  ;;  %v8402_v62 = vld [vmem:[#allocation11 + $0x328] ss:$16 sps:$4 sm:$0xff]   ;;  %v8407_v63 = vld [vmem:[#allocation11 + $0x344] ss:$16 sps:$4 sm:$0xff]  }
 0x43e   :  { %v9022_v29 = vpack.c.bf16 %v5188_v25, %v5184_v44  ;;  %v5191_v54 = vpack.c.bf16 %v5187_v24, %v5183_v23  ;;  %v8410_v3 = vld [vmem:[#allocation11 + $0x34c] ss:$16 sps:$4 sm:$0xff]   ;;  %v8405_v4 = vld [vmem:[#allocation11 + $0x340] ss:$16 sps:$4 sm:$0xff]   ;;  %v8408_v8 = vld [vmem:[#allocation11 + $0x348] ss:$16 sps:$4 sm:$0xff]  }
 0x43f   :  { %v5193_v33 = vpack.c.bf16 %v5189_v28, %v5185_v26  ;;  %v8413_v9 = vld [vmem:[#allocation11 + $0x364] ss:$16 sps:$4 sm:$0xff]   ;;  %v8416_v10 = vld [vmem:[#allocation11 + $0x36c] ss:$16 sps:$4 sm:$0xff]   ;;  %v8411_v11 = vld [vmem:[#allocation11 + $0x360] ss:$16 sps:$4 sm:$0xff]  }
 0x440   :  { %6016 = vmatprep.mubr.bf16.mxu0 %v5191_v54  ;;  %6102 = vmatprep.mubr.bf16.mxu1 %v5191_v54  ;;  %v8414_v16 = vld [vmem:[#allocation11 + $0x368] ss:$16 sps:$4 sm:$0xff]   ;;  %v8419_v21 = vld [vmem:[#allocation11 + $0x384] ss:$16 sps:$4 sm:$0xff]   ;;  %v8422_v19 = vld [vmem:[#allocation11 + $0x38c] ss:$16 sps:$4 sm:$0xff]  }
 0x441   :  { %6017 = vmatmul.mubr.bf16.vlgmr.msra.gmra.mrb[20].mxu0 %v5190_v2  ;;  %6103 = vmatmul.mubr.bf16.vlgmr.msra.gmra.mrb[20].mxu1 %v5190_v2  ;;  %v8417_v12 = vld [vmem:[#allocation11 + $0x380] ss:$16 sps:$4 sm:$0xff]   ;;  %v8420_v22 = vld [vmem:[#allocation11 + $0x388] ss:$16 sps:$4 sm:$0xff]   ;;  %v8425_v44 = vld [vmem:[#allocation11 + $0x3a4] ss:$16 sps:$4 sm:$0xff]  }
 0x442   :  { %6028 = vmatpush1.bf16.msra.mxu0 %v8345_v31  ;;  %6114 = vmatpush1.bf16.msra.mxu1 %v8348_v32  ;;  %v8428_v23 = vld [vmem:[#allocation11 + $0x3ac] ss:$16 sps:$4 sm:$0xff]   ;;  %v8423_v25 = vld [vmem:[#allocation11 + $0x3a0] ss:$16 sps:$4 sm:$0xff]   ;;  %v8426_v24 = vld [vmem:[#allocation11 + $0x3a8] ss:$16 sps:$4 sm:$0xff]  }
 0x443   :  { %6059 = vmatprep.mubr.bf16.mxu0 %v5193_v33  ;;  %6145 = vmatprep.mubr.bf16.mxu1 %v5193_v33  ;;  %v8431_v26 = vld [vmem:[#allocation11 + $0x3c4] ss:$16 sps:$4 sm:$0xff]   ;;  %v8434_v2 = vld [vmem:[#allocation11 + $0x3cc] ss:$16 sps:$4 sm:$0xff]   ;;  %v8429_v28 = vld [vmem:[#allocation11 + $0x3c0] ss:$16 sps:$4 sm:$0xff]  }
 0x444   :  { %6029 = vmatprep.subr.bf16.mxu0 %v8353_v1  ;;  %6115 = vmatprep.subr.bf16.mxu1 %v8356_v34  ;;  %v8432_v54 = vld [vmem:[#allocation11 + $0x3c8] ss:$16 sps:$4 sm:$0xff]   ;;  %v8437_v31 = vld [vmem:[#allocation11 + $0x3e4] ss:$16 sps:$4 sm:$0xff]   ;;  %v8440_v32 = vld [vmem:[#allocation11 + $0x3ec] ss:$16 sps:$4 sm:$0xff]  }
 0x445   :  { %v8435_v33 = vld [vmem:[#allocation11 + $0x3e0] ss:$16 sps:$4 sm:$0xff]   ;;  %v8438_v1 = vld [vmem:[#allocation11 + $0x3e8] ss:$16 sps:$4 sm:$0xff]  }
 0x446   :  { %6030 = vmatpush1.bf16.msra.mxu0 %v8351_v35  ;;  %6116 = vmatpush1.bf16.msra.mxu1 %v8354_v36  ;;  %v8441_v34 = vld [vmem:[#allocation14 + $0x40] sm:$0xff]  }
 0x447   :  { %6031 = vmatprep.subr.bf16.mxu0 %v8359_v61  ;;  %6117 = vmatprep.subr.bf16.mxu1 %v8362_v48  ;;  %v8442_v35 = vld [vmem:[#allocation14 + $0xc0] sm:$0xff]   ;;  %v8445_v48 = vld [vmem:[#allocation14 + $0x48] sm:$0xff]  }
 0x448   :  { %v8443_v36 = vld [vmem:[#allocation14] sm:$0xff]  }
 0x449   :  { %v8444_v61 = vld [vmem:[#allocation14 + $0x80] sm:$0xff]  }
 0x44a   :  { %6032 = vmatpush1.bf16.msra.mxu0 %v8357_v38  ;;  %6118 = vmatpush1.bf16.msra.mxu1 %v8360_v40  ;;  %v8446_v38 = vld [vmem:[#allocation14 + $0xc8] sm:$0xff]  }
 0x44b   :  { %6033 = vmatprep.subr.bf16.mxu0 %v8365_v41  ;;  %6119 = vmatprep.subr.bf16.mxu1 %v8368_v42  ;;  %v8447_v40 = vld [vmem:[#allocation14 + $0x8] sm:$0xff]   ;;  %v8449_v42 = vld [vmem:[#allocation14 + $0x50] sm:$0xff]  }
 0x44c   :  { %v8448_v41 = vld [vmem:[#allocation14 + $0x88] sm:$0xff]  }
 0x44e   :  { %6034 = vmatpush1.bf16.msra.mxu0 %v8363_v43  ;;  %6120 = vmatpush1.bf16.msra.mxu1 %v8366_v58  ;;  %v8450_v43 = vld [vmem:[#allocation14 + $0xd0] sm:$0xff]  }
 0x44f   :  { %6035 = vmatprep.subr.bf16.mxu0 %v8371_v45  ;;  %6121 = vmatprep.subr.bf16.mxu1 %v8374_v46  ;;  %v8451_v58 = vld [vmem:[#allocation14 + $0x10] sm:$0xff]   ;;  %v8453_v46 = vld [vmem:[#allocation14 + $0x58] sm:$0xff]  }
 0x450   :  { %v8452_v45 = vld [vmem:[#allocation14 + $0x90] sm:$0xff]  }
 0x452   :  { %6036 = vmatpush1.bf16.msra.mxu0 %v8369_v47  ;;  %6122 = vmatpush1.bf16.msra.mxu1 %v8372_v0  ;;  %v8454_v47 = vld [vmem:[#allocation14 + $0xd8] sm:$0xff]  }
 0x453   :  { %6037 = vmatprep.subr.bf16.mxu0 %v8377_v30  ;;  %6123 = vmatprep.subr.bf16.mxu1 %v8380_v49  ;;  %v8455_v0 = vld [vmem:[#allocation14 + $0x18] sm:$0xff]   ;;  %v8457_v30 = vld [vmem:[#allocation14 + $0x60] sm:$0xff]  }
 0x454   :  { %v8458_v49 = vld [vmem:[#allocation14 + $0xe0] sm:$0xff]  }
 0x456   :  { %6038 = vmatpush1.bf16.msra.mxu0 %v8375_v50  ;;  %6124 = vmatpush1.bf16.msra.mxu1 %v8378_v13  ;;  %v8459_v50 = vld [vmem:[#allocation14 + $0x20] sm:$0xff]  }
 0x457   :  { %6039 = vmatprep.subr.bf16.mxu0 %v8383_v27  ;;  %6125 = vmatprep.subr.bf16.mxu1 %v8386_v51  ;;  %v8460_v13 = vld [vmem:[#allocation14 + $0xa0] sm:$0xff]   ;;  %v8461_v27 = vld [vmem:[#allocation14 + $0x68] sm:$0xff]  }
 0x458   :  { %v8462_v51 = vld [vmem:[#allocation14 + $0xe8] sm:$0xff]  }
 0x45a   :  { %6040 = vmatpush1.bf16.msra.mxu0 %v8381_v52  ;;  %6126 = vmatpush1.bf16.msra.mxu1 %v8384_v53  ;;  %v8463_v52 = vld [vmem:[#allocation14 + $0x28] sm:$0xff]  }
 0x45b   :  { %6041 = vmatprep.subr.bf16.mxu0 %v8389_v55  ;;  %6127 = vmatprep.subr.bf16.mxu1 %v8392_v5  ;;  %v8464_v53 = vld [vmem:[#allocation14 + $0xa8] sm:$0xff]   ;;  %v8465_v55 = vld [vmem:[#allocation14 + $0x70] sm:$0xff]  }
 0x45c   :  { %v8466_v5 = vld [vmem:[#allocation14 + $0xf0] sm:$0xff]  }
 0x45e   :  { %6042 = vmatpush1.bf16.msra.mxu0 %v8387_v56  ;;  %6128 = vmatpush1.bf16.msra.mxu1 %v8390_v17  ;;  %v8467_v56 = vld [vmem:[#allocation14 + $0x30] sm:$0xff]  }
 0x45f   :  { %6043 = vmatprep.subr.bf16.mxu0 %v8395_v6  ;;  %6129 = vmatprep.subr.bf16.mxu1 %v8398_v57  ;;  %v8468_v17 = vld [vmem:[#allocation14 + $0xb0] sm:$0xff]   ;;  %v8469_v6 = vld [vmem:[#allocation14 + $0x78] sm:$0xff]  }
 0x460   :  { %v8470_v57 = vld [vmem:[#allocation14 + $0xf8] sm:$0xff]  }
 0x462   :  { %6044 = vmatpush1.bf16.msra.mxu0 %v8393_v59  ;;  %6130 = vmatpush1.bf16.msra.mxu1 %v8396_v7  ;;  %v8471_v59 = vld [vmem:[#allocation14 + $0x38] sm:$0xff]  }
 0x463   :  { %6045 = vmatprep.subr.bf16.mxu0 %v8401_v39  ;;  %6131 = vmatprep.subr.bf16.mxu1 %v8404_v60  ;;  %v8472_v7 = vld [vmem:[#allocation14 + $0xb8] sm:$0xff]  }
 0x464   :  { %v5322_v39 = vld [vmem:[#allocation13] sm:$0xf] }
 0x465   :  { %v5327_v60 = vrot.slane %v5322_v39, %v8909_v14 }
 0x466   :  { %6046 = vmatpush1.bf16.msra.mxu0 %v8399_v37  ;;  %6132 = vmatpush1.bf16.msra.mxu1 %v8402_v62  ;;  %v5335_v37 = vrot.slane %v5322_v39, %v8919_v18  ;;  %v5331_v62 = vrot.slane %v5322_v39, %v8912_v15 }
 0x467   :  { %6047 = vmatprep.subr.bf16.mxu0 %v8407_v63  ;;  %6133 = vmatprep.subr.bf16.mxu1 %v8410_v3  ;;  %v5339_v63 = vrot.slane %v5322_v39, %v8922_v20 }
 0x46a   :  { %6048 = vmatpush1.bf16.msra.mxu0 %v8405_v4  ;;  %6134 = vmatpush1.bf16.msra.mxu1 %v8408_v8 }
 0x46b   :  { %6049 = vmatprep.subr.bf16.mxu0 %v8413_v9  ;;  %6135 = vmatprep.subr.bf16.mxu1 %v8416_v10 }
 0x46e   :  { %6050 = vmatpush1.bf16.msra.mxu0 %v8411_v11  ;;  %6136 = vmatpush1.bf16.msra.mxu1 %v8414_v16 }
 0x46f   :  { %6051 = vmatprep.subr.bf16.mxu0 %v8419_v21  ;;  %6137 = vmatprep.subr.bf16.mxu1 %v8422_v19 }
 0x472   :  { %6052 = vmatpush1.bf16.msra.mxu0 %v8417_v12  ;;  %6138 = vmatpush1.bf16.msra.mxu1 %v8420_v22 }
 0x473   :  { %6053 = vmatprep.subr.bf16.mxu0 %v8425_v44  ;;  %6139 = vmatprep.subr.bf16.mxu1 %v8428_v23 }
 0x476   :  { %6054 = vmatpush1.bf16.msra.mxu0 %v8423_v25  ;;  %6140 = vmatpush1.bf16.msra.mxu1 %v8426_v24 }
 0x477   :  { %6055 = vmatprep.subr.bf16.mxu0 %v8431_v26  ;;  %6141 = vmatprep.subr.bf16.mxu1 %v8434_v2 }
 0x47a   :  { %6056 = vmatpush1.bf16.msra.mxu0 %v8429_v28  ;;  %6142 = vmatpush1.bf16.msra.mxu1 %v8432_v54 }
 0x47b   :  { %6057 = vmatprep.subr.bf16.mxu0 %v8437_v31  ;;  %6143 = vmatprep.subr.bf16.mxu1 %v8440_v32 }
 0x47e   :  { %6058 = vmatpush1.bf16.msra.mxu0 %v8435_v33  ;;  %6144 = vmatpush1.bf16.msra.mxu1 %v8438_v1 }
 0x47f   :  { %7338 = vmatprep.subr.bf16.mxu0 %v8441_v34  ;;  %7360 = vmatprep.subr.bf16.mxu1 %v8442_v35 }
 0x481   :  { %6060 = vmatmul.mubr.bf16.vlgmr.msra.gmra.mrb[20].mxu0 %v9022_v29  ;;  %6146 = vmatmul.mubr.bf16.vlgmr.msra.gmra.mrb[20].mxu1 %v9022_v29  ;;  %v8456_v29 = vld [vmem:[#allocation14 + $0x98] sm:$0xff]  }
 0x482   :  { %7339 = vmatpush3.bf16.msra.mxu0 %v8443_v36  ;;  %7361 = vmatpush3.bf16.msra.mxu1 %v8444_v61  ;;  %v7305_v61 = vld [vmem:[#allocation16] ss:$0 sm:$0xff] }
 0x483   :  { %7340 = vmatprep.subr.bf16.mxu0 %v8445_v48  ;;  %7362 = vmatprep.subr.bf16.mxu1 %v8446_v38 }
 0x486   :  { %7341 = vmatpush3.bf16.msra.mxu0 %v8447_v40  ;;  %7363 = vmatpush3.bf16.msra.mxu1 %v8448_v41 }
 0x487   :  { %7342 = vmatprep.subr.bf16.mxu0 %v8449_v42  ;;  %7364 = vmatprep.subr.bf16.mxu1 %v8450_v43 }
 0x48a   :  { %7343 = vmatpush3.bf16.msra.mxu0 %v8451_v58  ;;  %7365 = vmatpush3.bf16.msra.mxu1 %v8452_v45 }
 0x48b   :  { %7344 = vmatprep.subr.bf16.mxu0 %v8453_v46  ;;  %7366 = vmatprep.subr.bf16.mxu1 %v8454_v47 }
 0x48e   :  { %7345 = vmatpush3.bf16.msra.mxu0 %v8455_v0  ;;  %7367 = vmatpush3.bf16.msra.mxu1 %v8456_v29 }
 0x48f   :  { %7346 = vmatprep.subr.bf16.mxu0 %v8457_v30  ;;  %7368 = vmatprep.subr.bf16.mxu1 %v8458_v49 }
 0x492   :  { %7347 = vmatpush3.bf16.msra.mxu0 %v8459_v50  ;;  %7369 = vmatpush3.bf16.msra.mxu1 %v8460_v13 }
 0x493   :  { %7348 = vmatprep.subr.bf16.mxu0 %v8461_v27  ;;  %7370 = vmatprep.subr.bf16.mxu1 %v8462_v51 }
 0x496   :  { %7349 = vmatpush3.bf16.msra.mxu0 %v8463_v52  ;;  %7371 = vmatpush3.bf16.msra.mxu1 %v8464_v53 }
 0x497   :  { %7350 = vmatprep.subr.bf16.mxu0 %v8465_v55  ;;  %7372 = vmatprep.subr.bf16.mxu1 %v8466_v5 }
 0x49a   :  { %7351 = vmatpush3.bf16.msra.mxu0 %v8467_v56  ;;  %7373 = vmatpush3.bf16.msra.mxu1 %v8468_v17 }
 0x49b   :  { %7352 = vmatprep.subr.bf16.mxu0 %v8469_v6  ;;  %7374 = vmatprep.subr.bf16.mxu1 %v8470_v57 }
 0x49e   :  { %7353 = vmatpush3.bf16.msra.mxu0 %v8471_v59  ;;  %7375 = vmatpush3.bf16.msra.mxu1 %v8472_v7 }
 0x554   :  { %v6061_v3 = vpop.f32.mrb[20].mxu0  ;;  %v6147_v4 = vpop.f32.mrb[20].mxu1 }
 0x555   :  { %v7390_v8 = vadd.f32 %v6061_v3, %v5327_v60  ;;  %v7394_v9 = vadd.f32 %v6147_v4, %v5335_v37  ;;  %v6063_v10 = vpop.f32.mrb[21].mxu0  ;;  %v6149_v11 = vpop.f32.mrb[21].mxu1 }
 0x556   :  { %v7391_v16 = vadd.f32 %v6063_v10, %v5331_v62  ;;  %v7395_v21 = vadd.f32 %v6149_v11, %v5339_v63  ;;  %v6065_v19 = vpop.f32.mrb[22].mxu0  ;;  %v6151_v12 = vpop.f32.mrb[22].mxu1 }
 0x557   :  { %v7392_v22 = vadd.f32 %v6065_v19, %v5327_v60  ;;  %v7396_v44 = vadd.f32 %v6151_v12, %v5335_v37  ;;  %v6067_v23 = vpop.f32.mrb[23].mxu0  ;;  %v6153_v14 = vpop.f32.mrb[23].mxu1  ;;  %v6156_v24 = vmax.f32 %v7390_v8, 0.0  ;;  %v6158_v15 = vmax.f32 %v7394_v9, 0.0 }
 0x558   :  { %v7393_v25 = vadd.f32 %v6067_v23, %v5331_v62  ;;  %v7397_v18 = vadd.f32 %v6153_v14, %v5339_v63  ;;  %v6157_v2 = vmax.f32 %v7391_v16, 0.0  ;;  %v6159_v28 = vmax.f32 %v7395_v21, 0.0 }
 0x559   :  { %v6160_v26 = vmax.f32 %v7392_v22, 0.0  ;;  %v6162_v20 = vmax.f32 %v7396_v44, 0.0 }
 0x55a   :  { %v6161_v54 = vmax.f32 %v7393_v25, 0.0  ;;  %v6163_v31 = vmax.f32 %v7397_v18, 0.0 }
 0x55b   :  { %v6164_v32 = vpack.c.bf16 %v6160_v26, %v6156_v24  ;;  %v6166_v33 = vpack.c.bf16 %v6162_v20, %v6158_v15 }
 0x55c   :  { %v6165_v1 = vpack.c.bf16 %v6161_v54, %v6157_v2  ;;  %v6167_v34 = vpack.c.bf16 %v6163_v31, %v6159_v28 }
 0x55e   :  { %6463 = vmatprep.mubr.bf16.mxu0 %v6165_v1  ;;  %6504 = vmatprep.mubr.bf16.mxu1 %v6167_v34 }
 0x55f   :  { %6464 = vmatmul.mubr.bf16.vlgmr.msra.gmra.mrb[24].mxu0 %v6164_v32  ;;  %6505 = vmatmul.mubr.bf16.vlgmr.msra.gmra.mrb[24].mxu1 %v6166_v33 }
 0x632   :  { %v7354_v35 = vpop.f32.mrb[24].mxu0  ;;  %v7376_v36 = vpop.f32.mrb[24].mxu1 }
 0x633   :  { %v7355_v48 = vpop.f32.mrb[25].mxu0  ;;  %v7377_v38 = vpop.f32.mrb[25].mxu1 }
 0x634   :  { %v7356_v40 = vadd.f32 %v7355_v48, %v7354_v35  ;;  %v7378_v41 = vadd.f32 %v7377_v38, %v7376_v36  ;;  %v7357_v42 = vpop.f32.mrb[26].mxu0  ;;  %v7379_v43 = vpop.f32.mrb[26].mxu1 }
 0x635   :  { %v7358_v58 = vpop.f32.mrb[27].mxu0  ;;  %v7380_v45 = vpop.f32.mrb[27].mxu1 }
 0x636   :  { %v6466_v46 = vadd.f32 %v7356_v40, %v7305_v61  ;;  %v7359_v47 = vadd.f32 %v7358_v58, %v7357_v42  ;;  %v7381_v0 = vadd.f32 %v7380_v45, %v7379_v43 }
 0x638   :  { %v6507_v29 = vadd.f32 %v7378_v41, %v6466_v46  ;;  %v6469_v30 = vadd.f32 %v7359_v47, %v7305_v61 }
 0x63a   :  { %6513 = vst [vmem:[#allocation17] sm:$0xff] %v6507_v29  ;;  %v6510_v49 = vadd.f32 %v7381_v0, %v6469_v30 }
 0x63c   :  { %6514 = vst [vmem:[#allocation17 + $0x8] sm:$0xff] %v6510_v49 }
 0x63d   :  { %8683 = shalt.err (!%p8680_p6)
}
 0x63e   :  { %s8684_s22 = scalar_lea.hbm %s9051_s9, 256 }
 0x63f   :  { %p8685_p7 = scmp.ne.s32.totalorder %s9051_s9, %s8684_s22  ;;  %p8688_p8 = scmp.lt.u32.totalorder %s8684_s22, %s9051_s9 }
 0x641   :  { %p8690_p9 = pnand %p8688_p8, %p8685_p7 }
 0x643   :  { %8693 = shalt.err (!%p8690_p9)
}
 0x644   :  { %s8722_s30 = smov 128   ;;  %s8723_s11 = smov 8  }
 0x645   :  { %6526 = dma.vmem_to_hbm [thread:$0]  %s6521_s27, 256, %s9051_s9, [#allocation4], %s8722_s30, %s8722_s30, %s8723_s11  }
 0x646   :  { %8704 = dma.done.wait [#allocation4], 256  }
 0x647   :  { %8705 = vsyncadd [#allocation4], 4294967040 }
 0x648   :  { %6530 = vsyncpa [#allocation3], 1 }
 0x649   :  { %6531 = vsyncpa [#allocation6], 1 }
 0x64a   :  { %6532 = vsyncpa [#allocation9], 1 }
 0x64b   :  { %6533 = vsyncpa [#allocation12], 1 }
 0x64c   :  { %6534 = vsyncpa [#allocation15], 1 }
 0x64d   :  { %6535 = vsyncpa [#allocation4], 1 }

// kernel: tpu_custom_call.1
= control target key start
LH: loop header
LB: loop body
LE: loop exit
PB: predicated region body
PF: predicated region fallthrough
CT: control target
= control target key end

     0   :  { %14 = vsyncpa [#allocation3], 0  ;;  %s9042_s0 = inlined_call_operand.hbm [shape: bf16[16,128], index: 0, kind: input, shape index: {}]   ;;  %s9043_s1 = inlined_call_operand.hbm [shape: bf16[128,2048], index: 1, kind: input, shape index: {}]   ;;  %s9044_s2 = inlined_call_operand.hbm [shape: f32[1,2048], index: 2, kind: input, shape index: {}]   ;;  %s9045_s3 = inlined_call_operand.hbm [shape: bf16[2048,512], index: 3, kind: input, shape index: {}]   ;;  %s9046_s4 = inlined_call_operand.hbm [shape: f32[1,512], index: 4, kind: input, shape index: {}]   ;;  %s9047_s5 = inlined_call_operand.hbm [shape: bf16[512,512], index: 5, kind: input, shape index: {}]   ;;  %s9048_s6 = inlined_call_operand.hbm [shape: f32[1,512], index: 6, kind: input, shape index: {}]   ;;  %s9049_s7 = inlined_call_operand.hbm [shape: bf16[512,128], index: 7, kind: input, shape index: {}]   ;;  %s9050_s8 = inlined_call_operand.hbm [shape: f32[1,128], index: 8, kind: input, shape index: {}]   ;;  %s9051_s9 = inlined_call_operand.hbm [shape: f32[16,128], index: 9, kind: output, shape index: {}]  }
   0x1   :  { %15 = vsyncpa [#allocation6], 0 }
   0x2   :  { %16 = vsyncpa [#allocation9], 0 }
   0x3   :  { %17 = vsyncpa [#allocation12], 0 }
   0x4   :  { %18 = vsyncpa [#allocation15], 0 }
   0x5   :  { %19 = vsyncpa [#allocation4], 0  ;;  %s8706_s30 = smov [#allocation5]   ;;  %s8474_s13 = scalar_lea.hbm %s9043_s1, 16384 }
   0x6   :  { %s37_s10 = sshll.u32 %s8706_s30, 4  ;;  %p8475_p0 = scmp.ne.s32.totalorder %s9043_s1, %s8474_s13  ;;  %s38_s10 = int_to_ptr.vmem [resolvable:$true] %s37_s10 }
   0x7   :  { %p8478_p1 = scmp.lt.u32.totalorder %s8474_s13, %s9043_s1 }
   0x9   :  { %p8480_p2 = pnand %p8478_p1, %p8475_p0 }
   0xb   :  { %8483 = shalt.err (!%p8480_p2)
}
   0xc   :  { %s8484_s18 = scalar_lea.vmem %s38_s10, 16384  ;;  %p8489_p4 = scmp.lt.s32.totalorder %s38_s10, %s38_s10 }
   0xd   :  { %p8485_p3 = scmp.ne.s32.totalorder %s38_s10, %s8484_s18  ;;  %p8490_p5 = scmp.lt.s32.totalorder %s8484_s18, %s8484_s18 }
   0xf   :  { %p8491_p6 = por %p8490_p5, %p8489_p4 }
  0x11   :  { %p8492_p7 = pnand %p8491_p6, %p8485_p3 }
  0x13   :  { %8495 = shalt.err (!%p8492_p7)
}
  0x14   :  { %s8707_s19 = smov 1024   ;;  %s8708_s20 = smov 64  }
  0x15   :  { %43 = dma.hbm_to_vmem [thread:$0]  %s9043_s1, 16384, %s38_s10, [#allocation6], %s8707_s19, %s8707_s19, %s8708_s20  }
  0x16   :  { %s8709_s23 = smov [#allocation8]   ;;  %s8496_s27 = scalar_lea.hbm %s9045_s3, 65536 }
  0x17   :  { %s59_s24 = sshll.u32 %s8709_s23, 4  ;;  %p8497_p8 = scmp.ne.s32.totalorder %s9045_s3, %s8496_s27  ;;  %s60_s24 = int_to_ptr.vmem [resolvable:$true] %s59_s24 }
  0x18   :  { %p8500_p9 = scmp.lt.u32.totalorder %s8496_s27, %s9045_s3 }
  0x1a   :  { %p8502_p10 = pnand %p8500_p9, %p8497_p8 }
  0x1c   :  { %8505 = shalt.err (!%p8502_p10)
}
  0x1d   :  { %s8506_s12 = scalar_lea.vmem %s60_s24, 65536  ;;  %p8511_p12 = scmp.lt.s32.totalorder %s60_s24, %s60_s24 }
  0x1e   :  { %p8507_p11 = scmp.ne.s32.totalorder %s60_s24, %s8506_s12  ;;  %p8512_p13 = scmp.lt.s32.totalorder %s8506_s12, %s8506_s12 }
  0x20   :  { %p8513_p0 = por %p8512_p13, %p8511_p12 }
  0x22   :  { %p8514_p1 = pnand %p8513_p0, %p8507_p11 }
  0x24   :  { %8517 = shalt.err (!%p8514_p1)
}
  0x25   :  { %s8710_s1 = smov 256   ;;  %s8711_s10 = smov 16  }
  0x26   :  { %65 = dma.hbm_to_vmem [thread:$0]  %s9045_s3, 65536, %s60_s24, [#allocation9], %s8710_s1, %s8710_s1, %s8711_s10  }
  0x27   :  { %s8712_s15 = smov [#allocation11]   ;;  %s8713_s17 = smov [#allocation14]  }
  0x28   :  { %s81_s16 = sshll.u32 %s8712_s15, 4  ;;  %s103_s18 = sshll.u32 %s8713_s17, 4  ;;  %s82_s16 = int_to_ptr.vmem [resolvable:$true] %s81_s16  ;;  %s104_s18 = int_to_ptr.vmem [resolvable:$true] %s103_s18 }
  0x29   :  { %s8518_s22 = scalar_lea.hbm %s9047_s5, 16384 }
  0x2a   :  { %p8519_p2 = scmp.ne.s32.totalorder %s9047_s5, %s8518_s22  ;;  %p8522_p3 = scmp.lt.u32.totalorder %s8518_s22, %s9047_s5 }
  0x2c   :  { %p8524_p4 = pnand %p8522_p3, %p8519_p2 }
  0x2e   :  { %8527 = shalt.err (!%p8524_p4)
}
  0x2f   :  { %s8528_s3 = scalar_lea.vmem %s82_s16, 16384  ;;  %p8533_p6 = scmp.lt.s32.totalorder %s82_s16, %s82_s16 }
  0x30   :  { %p8529_p5 = scmp.ne.s32.totalorder %s82_s16, %s8528_s3  ;;  %p8534_p7 = scmp.lt.s32.totalorder %s8528_s3, %s8528_s3 }
  0x32   :  { %p8535_p8 = por %p8534_p7, %p8533_p6 }
  0x34   :  { %p8536_p9 = pnand %p8535_p8, %p8529_p5 }
  0x36   :  { %8539 = shalt.err (!%p8536_p9)
}
  0x37   :  { %87 = dma.hbm_to_vmem [thread:$0]  %s9047_s5, 16384, %s82_s16, [#allocation12], %s8710_s1, %s8710_s1, %s8711_s10  }
  0x38   :  { %s8540_s11 = scalar_lea.hbm %s9049_s7, 4096 }
  0x39   :  { %p8541_p10 = scmp.ne.s32.totalorder %s9049_s7, %s8540_s11  ;;  %p8544_p11 = scmp.lt.u32.totalorder %s8540_s11, %s9049_s7 }
  0x3b   :  { %p8546_p12 = pnand %p8544_p11, %p8541_p10 }
  0x3d   :  { %8549 = shalt.err (!%p8546_p12)
}
  0x3e   :  { %s8550_s17 = scalar_lea.vmem %s104_s18, 4096  ;;  %p8555_p0 = scmp.lt.s32.totalorder %s104_s18, %s104_s18 }
  0x3f   :  { %p8551_p13 = scmp.ne.s32.totalorder %s104_s18, %s8550_s17  ;;  %p8556_p1 = scmp.lt.s32.totalorder %s8550_s17, %s8550_s17 }
  0x41   :  { %p8557_p2 = por %p8556_p1, %p8555_p0 }
  0x43   :  { %p8558_p3 = pnand %p8557_p2, %p8551_p13 }
  0x45   :  { %8561 = shalt.err (!%p8558_p3)
}
  0x46   :  { %s8714_s5 = smov 4   ;;  %s8715_s16 = smov [#allocation2]  }
  0x47   :  { %109 = dma.hbm_to_vmem [thread:$0]  %s9049_s7, 4096, %s104_s18, [#allocation15], %s8708_s20, %s8708_s20, %s8714_s5  }
  0x48   :  { %s25_s19 = sshll.u32 %s8715_s16, 4  ;;  %s8716_s21 = smov [#allocation7]   ;;  %s26_s19 = int_to_ptr.vmem [resolvable:$true] %s25_s19 }
  0x49   :  { %s50_s22 = sshll.u32 %s8716_s21, 4  ;;  %s8562_s26 = scalar_lea.hbm %s9042_s0, 128  ;;  %s51_s22 = int_to_ptr.vmem [resolvable:$true] %s50_s22 }
  0x4a   :  { %p8563_p4 = scmp.ne.s32.totalorder %s9042_s0, %s8562_s26  ;;  %p8566_p5 = scmp.lt.u32.totalorder %s8562_s26, %s9042_s0 }
  0x4c   :  { %p8568_p6 = pnand %p8566_p5, %p8563_p4 }
  0x4e   :  { %8571 = shalt.err (!%p8568_p6)
}
  0x4f   :  { %s8572_s7 = scalar_lea.vmem %s26_s19, 128  ;;  %p8577_p8 = scmp.lt.s32.totalorder %s26_s19, %s26_s19 }
  0x50   :  { %p8573_p7 = scmp.ne.s32.totalorder %s26_s19, %s8572_s7  ;;  %p8578_p9 = scmp.lt.s32.totalorder %s8572_s7, %s8572_s7 }
  0x52   :  { %p8579_p10 = por %p8578_p9, %p8577_p8 }
  0x54   :  { %p8580_p11 = pnand %p8579_p10, %p8573_p7 }
  0x56   :  { %8583 = shalt.err (!%p8580_p11)
}
  0x57   :  { %31 = dma.hbm_to_vmem [thread:$0]  %s9042_s0, 128, %s26_s19, [#allocation3], %s8708_s20, %s8708_s20, %s8714_s5  }
  0x58   :  { %s8584_s12 = scalar_lea.hbm %s9044_s2, 256 }
  0x59   :  { %p8585_p12 = scmp.ne.s32.totalorder %s9044_s2, %s8584_s12  ;;  %p8588_p13 = scmp.lt.u32.totalorder %s8584_s12, %s9044_s2 }
  0x5b   :  { %p8590_p0 = pnand %p8588_p13, %p8585_p12 }
  0x5d   :  { %8593 = shalt.err (!%p8590_p0)
}
  0x5e   :  { %s8594_s1 = scalar_lea.vmem %s51_s22, 256  ;;  %p8599_p2 = scmp.lt.s32.totalorder %s51_s22, %s51_s22 }
  0x5f   :  { %p8595_p1 = scmp.ne.s32.totalorder %s51_s22, %s8594_s1  ;;  %p8600_p3 = scmp.lt.s32.totalorder %s8594_s1, %s8594_s1 }
  0x61   :  { %p8601_p4 = por %p8600_p3, %p8599_p2 }
  0x63   :  { %p8602_p5 = pnand %p8601_p4, %p8595_p1 }
  0x65   :  { %8605 = shalt.err (!%p8602_p5)
}
  0x66   :  { %53 = dma.hbm_to_vmem [thread:$0]  %s9044_s2, 256, %s51_s22, [#allocation6]  }
  0x67   :  { %s8717_s5 = smov [#allocation10]   ;;  %s8718_s16 = smov [#allocation13]  }
  0x68   :  { %s72_s10 = sshll.u32 %s8717_s5, 4  ;;  %s94_s19 = sshll.u32 %s8718_s16, 4  ;;  %s73_s10 = int_to_ptr.vmem [resolvable:$true] %s72_s10  ;;  %s95_s19 = int_to_ptr.vmem [resolvable:$true] %s94_s19 }
  0x69   :  { %s8606_s25 = scalar_lea.hbm %s9046_s4, 64 }
  0x6a   :  { %p8607_p6 = scmp.ne.s32.totalorder %s9046_s4, %s8606_s25  ;;  %p8610_p7 = scmp.lt.u32.totalorder %s8606_s25, %s9046_s4 }
  0x6c   :  { %p8612_p8 = pnand %p8610_p7, %p8607_p6 }
  0x6e   :  { %8615 = shalt.err (!%p8612_p8)
}
  0x6f   :  { %s8616_s2 = scalar_lea.vmem %s73_s10, 64  ;;  %p8621_p10 = scmp.lt.s32.totalorder %s73_s10, %s73_s10 }
  0x70   :  { %p8617_p9 = scmp.ne.s32.totalorder %s73_s10, %s8616_s2  ;;  %p8622_p11 = scmp.lt.s32.totalorder %s8616_s2, %s8616_s2 }
  0x72   :  { %p8623_p12 = por %p8622_p11, %p8621_p10 }
  0x74   :  { %p8624_p13 = pnand %p8623_p12, %p8617_p9 }
  0x76   :  { %8627 = shalt.err (!%p8624_p13)
}
  0x77   :  { %75 = dma.hbm_to_vmem [thread:$0]  %s9046_s4, 64, %s73_s10, [#allocation9]  }
  0x78   :  { %s8628_s29 = scalar_lea.hbm %s9048_s6, 64 }
  0x79   :  { %p8629_p0 = scmp.ne.s32.totalorder %s9048_s6, %s8628_s29  ;;  %p8632_p1 = scmp.lt.u32.totalorder %s8628_s29, %s9048_s6 }
  0x7b   :  { %p8634_p2 = pnand %p8632_p1, %p8629_p0 }
  0x7d   :  { %8637 = shalt.err (!%p8634_p2)
}
  0x7e   :  { %s8638_s14 = scalar_lea.vmem %s95_s19, 64  ;;  %p8643_p4 = scmp.lt.s32.totalorder %s95_s19, %s95_s19 }
  0x7f   :  { %p8639_p3 = scmp.ne.s32.totalorder %s95_s19, %s8638_s14  ;;  %p8644_p5 = scmp.lt.s32.totalorder %s8638_s14, %s8638_s14 }
  0x81   :  { %p8645_p6 = por %p8644_p5, %p8643_p4 }
  0x83   :  { %p8646_p7 = pnand %p8645_p6, %p8639_p3 }
  0x85   :  { %8649 = shalt.err (!%p8646_p7)
}
  0x86   :  { %97 = dma.hbm_to_vmem [thread:$0]  %s9048_s6, 64, %s95_s19, [#allocation12]  }
  0x87   :  { %s8719_s17 = smov [#allocation16]   ;;  %s8650_s5 = scalar_lea.hbm %s9050_s8, 16 }
  0x88   :  { %s116_s1 = sshll.u32 %s8719_s17, 4  ;;  %p8651_p8 = scmp.ne.s32.totalorder %s9050_s8, %s8650_s5  ;;  %s117_s1 = int_to_ptr.vmem [resolvable:$true] %s116_s1 }
  0x89   :  { %p8654_p9 = scmp.lt.u32.totalorder %s8650_s5, %s9050_s8 }
  0x8b   :  { %p8656_p10 = pnand %p8654_p9, %p8651_p8 }
  0x8d   :  { %8659 = shalt.err (!%p8656_p10)
}
  0x8e   :  { %s8660_s25 = scalar_lea.vmem %s117_s1, 16  ;;  %s8664_s6 = scalar_lea.vmem %s117_s1, 32 }
  0x8f   :  { %p8661_p11 = scmp.ne.s32.totalorder %s117_s1, %s8660_s25  ;;  %p8665_p12 = scmp.lt.s32.totalorder %s117_s1, %s117_s1 }
  0x90   :  { %p8666_p13 = scmp.lt.s32.totalorder %s8664_s6, %s8660_s25 }
  0x92   :  { %p8667_p0 = por %p8666_p13, %p8665_p12 }
  0x94   :  { %p8668_p1 = pnand %p8667_p0, %p8661_p11 }
  0x96   :  { %8671 = shalt.err (!%p8668_p1)
}
  0x97   :  { %119 = dma.hbm_to_vmem [thread:$0]  %s9050_s8, 16, %s117_s1, [#allocation15]  }
  0x98   :  { %8694 = dma.done.wait [#allocation3], 128  }
  0x99   :  { %8695 = vsyncadd [#allocation3], 4294967168 }
  0x9a   :  { %8696 = dma.done.wait [#allocation6], 16640  }
  0x9b   :  { %8697 = vsyncadd [#allocation6], 4294950656 }
  0x9c   :  { %8698 = dma.done.wait [#allocation9], 65600  }
  0x9d   :  { %8699 = vsyncadd [#allocation9], 4294901696 }
  0x9e   :  { %8700 = dma.done.wait [#allocation12], 16448  }
  0x9f   :  { %8701 = vsyncadd [#allocation12], 4294950848 }
  0xa0   :  { %8702 = dma.done.wait [#allocation15], 4112  }
  0xa1   :  { %8703 = vsyncadd [#allocation15], 4294963184  ;;  %v8720_v0 = vmov 0   ;;  %v150_v1 = vld [vmem:[#allocation5] sm:$0xff]  ;;  %v151_v14 = vld [vmem:[#allocation5 + $0x8] sm:$0xff]  ;;  %s8721_s8 = smov [#allocation17]  }
  0xa2   :  { %1040 = vmatprep.mubr.bf16.mxu0 %v8720_v0  ;;  %1083 = vmatprep.mubr.bf16.mxu1 %v8720_v0  ;;  %v158_v2 = vld [vmem:[#allocation5 + $0x40] sm:$0xff]  ;;  %v159_v15 = vld [vmem:[#allocation5 + $0x48] sm:$0xff]  ;;  %v152_v58 = vld [vmem:[#allocation5 + $0x10] sm:$0xff]  ;;  %s6520_s27 = sshll.u32 %s8721_s8, 4  ;;  %s6521_s27 = int_to_ptr.vmem [resolvable:$true] %s6520_s27 }
  0xa3   :  { %v166_v3 = vld [vmem:[#allocation5 + $0x80] sm:$0xff]  ;;  %v6538_v4 = vcombine.high %v150_v1, %v158_v2  ;;  %v6537_v5 = vcombine.low %v150_v1, %v158_v2  ;;  %v6540_v16 = vcombine.high %v151_v14, %v159_v15  ;;  %v6539_v17 = vcombine.low %v151_v14, %v159_v15  ;;  %v167_v18 = vld [vmem:[#allocation5 + $0x88] sm:$0xff]  ;;  %v160_v59 = vld [vmem:[#allocation5 + $0x50] sm:$0xff]  ;;  %s8672_s3 = scalar_lea.vmem %s6521_s27, 256  ;;  %p8677_p3 = scmp.lt.s32.totalorder %s6521_s27, %s6521_s27 }
  0xa4   :  { %v174_v6 = vld [vmem:[#allocation5 + $0xc0] sm:$0xff]  ;;  %v175_v19 = vld [vmem:[#allocation5 + $0xc8] sm:$0xff]  ;;  %v6542_v1 = vcombine.high %v152_v58, %v160_v59  ;;  %p8673_p2 = scmp.ne.s32.totalorder %s6521_s27, %s8672_s3  ;;  %p8678_p4 = scmp.lt.s32.totalorder %s8672_s3, %s8672_s3 }
  0xa5   :  { %v6554_v7 = vcombine.high %v166_v3, %v174_v6  ;;  %v182_v8 = vld [vmem:[#allocation5 + $0x100] sm:$0xff]  ;;  %1008 = vmatprep.subr.bf16.mxu0 %v6538_v4  ;;  %v6553_v10 = vcombine.low %v166_v3, %v174_v6  ;;  %v6556_v21 = vcombine.high %v167_v18, %v175_v19  ;;  %v183_v22 = vld [vmem:[#allocation5 + $0x108] sm:$0xff]  ;;  %1051 = vmatprep.subr.bf16.mxu1 %v6540_v16  ;;  %v168_v3 = vld [vmem:[#allocation5 + $0x90] sm:$0xff] }
  0xa6   :  { %v190_v9 = vld [vmem:[#allocation5 + $0x140] sm:$0xff]  ;;  %1009 = vmatpush1.bf16.msra.mxu0 %v6537_v5  ;;  %v191_v23 = vld [vmem:[#allocation5 + $0x148] sm:$0xff]  ;;  %1052 = vmatpush1.bf16.msra.mxu1 %v6539_v17  ;;  %v6555_v27 = vcombine.low %v167_v18, %v175_v19  ;;  %v176_v4 = vld [vmem:[#allocation5 + $0xd0] sm:$0xff]  ;;  %p8679_p5 = por %p8678_p4, %p8677_p3 }
  0xa7   :  { %1010 = vmatprep.subr.bf16.mxu0 %v6554_v7  ;;  %v6570_v11 = vcombine.high %v182_v8, %v190_v9  ;;  %v198_v12 = vld [vmem:[#allocation5 + $0x180] sm:$0xff]  ;;  %v6569_v20 = vcombine.low %v182_v8, %v190_v9  ;;  %1053 = vmatprep.subr.bf16.mxu1 %v6556_v21  ;;  %v6572_v28 = vcombine.high %v183_v22, %v191_v23  ;;  %v199_v30 = vld [vmem:[#allocation5 + $0x188] sm:$0xff]  ;;  %v8889_v5 = vld [vmem:[#allocation2] sm:$0xff]  }
  0xa8   :  { %v206_v13 = vld [vmem:[#allocation5 + $0x1c0] sm:$0xff]  ;;  %v207_v31 = vld [vmem:[#allocation5 + $0x1c8] sm:$0xff]  ;;  %v6571_v35 = vcombine.low %v183_v22, %v191_v23  ;;  %v6541_v7 = vcombine.low %v152_v58, %v160_v59  ;;  %v153_v8 = vld [vmem:[#allocation5 + $0x18] sm:$0xff]  ;;  %v6557_v15 = vcombine.low %v168_v3, %v176_v4  ;;  %p8680_p6 = pnand %p8679_p5, %p8673_p2 }
  0xa9   :  { %v6586_v24 = vcombine.high %v198_v12, %v206_v13  ;;  %v214_v25 = vld [vmem:[#allocation5 + $0x200] sm:$0xff]  ;;  %v6585_v29 = vcombine.low %v198_v12, %v206_v13  ;;  %v6588_v36 = vcombine.high %v199_v30, %v207_v31  ;;  %v215_v38 = vld [vmem:[#allocation5 + $0x208] sm:$0xff]  ;;  %v6587_v43 = vcombine.low %v199_v30, %v207_v31  ;;  %v161_v9 = vld [vmem:[#allocation5 + $0x58] sm:$0xff] }
  0xaa   :  { %1011 = vmatpush1.bf16.msra.mxu0 %v6553_v10  ;;  %v222_v26 = vld [vmem:[#allocation5 + $0x240] sm:$0xff]  ;;  %1054 = vmatpush1.bf16.msra.mxu1 %v6555_v27  ;;  %v223_v39 = vld [vmem:[#allocation5 + $0x248] sm:$0xff]  ;;  %v6558_v10 = vcombine.high %v168_v3, %v176_v4  ;;  %v184_v12 = vld [vmem:[#allocation5 + $0x110] sm:$0xff]  ;;  %v6544_v14 = vcombine.high %v153_v8, %v161_v9  ;;  %v6543_v19 = vcombine.low %v153_v8, %v161_v9 }
  0xab   :  { %1012 = vmatprep.subr.bf16.mxu0 %v6570_v11  ;;  %v6602_v32 = vcombine.high %v214_v25, %v222_v26  ;;  %v230_v33 = vld [vmem:[#allocation5 + $0x280] sm:$0xff]  ;;  %1055 = vmatprep.subr.bf16.mxu1 %v6572_v28  ;;  %v6601_v37 = vcombine.low %v214_v25, %v222_v26  ;;  %v6604_v44 = vcombine.high %v215_v38, %v223_v39  ;;  %v231_v46 = vld [vmem:[#allocation5 + $0x288] sm:$0xff]  ;;  %v192_v13 = vld [vmem:[#allocation5 + $0x150] sm:$0xff] }
  0xac   :  { %v238_v34 = vld [vmem:[#allocation5 + $0x2c0] sm:$0xff]  ;;  %v239_v47 = vld [vmem:[#allocation5 + $0x2c8] sm:$0xff]  ;;  %v6603_v51 = vcombine.low %v215_v38, %v223_v39  ;;  %v169_v16 = vld [vmem:[#allocation5 + $0x98] sm:$0xff]  ;;  %v6574_v18 = vcombine.high %v184_v12, %v192_v13  ;;  %v6573_v23 = vcombine.low %v184_v12, %v192_v13 }
  0xad   :  { %v6618_v40 = vcombine.high %v230_v33, %v238_v34  ;;  %v246_v41 = vld [vmem:[#allocation5 + $0x300] sm:$0xff]  ;;  %v6617_v45 = vcombine.low %v230_v33, %v238_v34  ;;  %v6620_v52 = vcombine.high %v231_v46, %v239_v47  ;;  %v247_v54 = vld [vmem:[#allocation5 + $0x308] sm:$0xff]  ;;  %v6619_v57 = vcombine.low %v231_v46, %v239_v47  ;;  %v177_v17 = vld [vmem:[#allocation5 + $0xd8] sm:$0xff] }
  0xae   :  { %1013 = vmatpush1.bf16.msra.mxu0 %v6569_v20  ;;  %v254_v42 = vld [vmem:[#allocation5 + $0x340] sm:$0xff]  ;;  %1056 = vmatpush1.bf16.msra.mxu1 %v6571_v35  ;;  %v255_v55 = vld [vmem:[#allocation5 + $0x348] sm:$0xff]  ;;  %v200_v20 = vld [vmem:[#allocation5 + $0x190] sm:$0xff]  ;;  %v6560_v22 = vcombine.high %v169_v16, %v177_v17  ;;  %v6559_v27 = vcombine.low %v169_v16, %v177_v17 }
  0xaf   :  { %1014 = vmatprep.subr.bf16.mxu0 %v6586_v24  ;;  %1057 = vmatprep.subr.bf16.mxu1 %v6588_v36  ;;  %v6634_v48 = vcombine.high %v246_v41, %v254_v42  ;;  %v262_v49 = vld [vmem:[#allocation5 + $0x380] sm:$0xff]  ;;  %v6633_v53 = vcombine.low %v246_v41, %v254_v42  ;;  %v6636_v60 = vcombine.high %v247_v54, %v255_v55  ;;  %v263_v62 = vld [vmem:[#allocation5 + $0x388] sm:$0xff]  ;;  %v208_v21 = vld [vmem:[#allocation5 + $0x1d0] sm:$0xff] }
  0xb0   :  { %v270_v50 = vld [vmem:[#allocation5 + $0x3c0] sm:$0xff]  ;;  %v271_v63 = vld [vmem:[#allocation5 + $0x3c8] sm:$0xff]  ;;  %v6635_v2 = vcombine.low %v247_v54, %v255_v55  ;;  %v185_v24 = vld [vmem:[#allocation5 + $0x118] sm:$0xff]  ;;  %v6590_v26 = vcombine.high %v200_v20, %v208_v21  ;;  %v6589_v31 = vcombine.low %v200_v20, %v208_v21 }
  0xb1   :  { %v6650_v56 = vcombine.high %v262_v49, %v270_v50  ;;  %v6649_v61 = vcombine.low %v262_v49, %v270_v50  ;;  %v6652_v6 = vcombine.high %v263_v62, %v271_v63  ;;  %v6651_v11 = vcombine.low %v263_v62, %v271_v63  ;;  %v193_v25 = vld [vmem:[#allocation5 + $0x158] sm:$0xff]  ;;  %v216_v28 = vld [vmem:[#allocation5 + $0x210] sm:$0xff]  ;;  %v154_v59 = vld [vmem:[#allocation5 + $0x20] sm:$0xff] }
  0xb2   :  { %1015 = vmatpush1.bf16.msra.mxu0 %v6585_v29  ;;  %1058 = vmatpush1.bf16.msra.mxu1 %v6587_v43  ;;  %v224_v29 = vld [vmem:[#allocation5 + $0x250] sm:$0xff]  ;;  %v6576_v30 = vcombine.high %v185_v24, %v193_v25  ;;  %v209_v33 = vld [vmem:[#allocation5 + $0x1d8] sm:$0xff]  ;;  %v6575_v36 = vcombine.low %v185_v24, %v193_v25  ;;  %v170_v4 = vld [vmem:[#allocation5 + $0xa0] sm:$0xff] }
  0xb3   :  { %1016 = vmatprep.subr.bf16.mxu0 %v6602_v32  ;;  %1059 = vmatprep.subr.bf16.mxu1 %v6604_v44  ;;  %v201_v32 = vld [vmem:[#allocation5 + $0x198] sm:$0xff]  ;;  %v6606_v34 = vcombine.high %v216_v28, %v224_v29  ;;  %v232_v35 = vld [vmem:[#allocation5 + $0x290] sm:$0xff]  ;;  %v6605_v39 = vcombine.low %v216_v28, %v224_v29  ;;  %v186_v13 = vld [vmem:[#allocation5 + $0x120] sm:$0xff] }
  0xb4   :  { %v6592_v38 = vcombine.high %v201_v32, %v209_v33  ;;  %v225_v41 = vld [vmem:[#allocation5 + $0x258] sm:$0xff]  ;;  %v248_v43 = vld [vmem:[#allocation5 + $0x310] sm:$0xff]  ;;  %v6591_v44 = vcombine.low %v201_v32, %v209_v33  ;;  %v202_v21 = vld [vmem:[#allocation5 + $0x1a0] sm:$0xff] }
  0xb5   :  { %v241_v49 = vld [vmem:[#allocation5 + $0x2d8] sm:$0xff]  ;;  %v218_v29 = vld [vmem:[#allocation5 + $0x220] sm:$0xff] }
  0xb6   :  { %1017 = vmatpush1.bf16.msra.mxu0 %v6601_v37  ;;  %1060 = vmatpush1.bf16.msra.mxu1 %v6603_v51  ;;  %v240_v37 = vld [vmem:[#allocation5 + $0x2d0] sm:$0xff] }
  0xb7   :  { %1018 = vmatprep.subr.bf16.mxu0 %v6618_v40  ;;  %1061 = vmatprep.subr.bf16.mxu1 %v6620_v52  ;;  %v217_v40 = vld [vmem:[#allocation5 + $0x218] sm:$0xff]  ;;  %v6622_v42 = vcombine.high %v232_v35, %v240_v37  ;;  %v6621_v47 = vcombine.low %v232_v35, %v240_v37  ;;  %v264_v51 = vld [vmem:[#allocation5 + $0x390] sm:$0xff]  ;;  %v211_v35 = vld [vmem:[#allocation5 + $0x1e8] sm:$0xff] }
  0xb8   :  { %v6608_v46 = vcombine.high %v217_v40, %v225_v41  ;;  %v6607_v52 = vcombine.low %v217_v40, %v225_v41  ;;  %v234_v37 = vld [vmem:[#allocation5 + $0x2a0] sm:$0xff]  ;;  %v219_v41 = vld [vmem:[#allocation5 + $0x228] sm:$0xff] }
  0xba   :  { %1019 = vmatpush1.bf16.msra.mxu0 %v6617_v45  ;;  %1062 = vmatpush1.bf16.msra.mxu1 %v6619_v57  ;;  %v256_v45 = vld [vmem:[#allocation5 + $0x350] sm:$0xff]  ;;  %v257_v57 = vld [vmem:[#allocation5 + $0x358] sm:$0xff] }
  0xbb   :  { %1020 = vmatprep.subr.bf16.mxu0 %v6634_v48  ;;  %1063 = vmatprep.subr.bf16.mxu1 %v6636_v60  ;;  %v233_v48 = vld [vmem:[#allocation5 + $0x298] sm:$0xff]  ;;  %v6638_v50 = vcombine.high %v248_v43, %v256_v45  ;;  %v6637_v55 = vcombine.low %v248_v43, %v256_v45  ;;  %v227_v43 = vld [vmem:[#allocation5 + $0x268] sm:$0xff] }
  0xbc   :  { %v6624_v54 = vcombine.high %v233_v48, %v241_v49  ;;  %v6623_v60 = vcombine.low %v233_v48, %v241_v49  ;;  %v235_v48 = vld [vmem:[#allocation5 + $0x2a8] sm:$0xff] }
  0xbd   :  { %v243_v49 = vld [vmem:[#allocation5 + $0x2e8] sm:$0xff] }
  0xbe   :  { %1021 = vmatpush1.bf16.msra.mxu0 %v6633_v53  ;;  %1064 = vmatpush1.bf16.msra.mxu1 %v6635_v2  ;;  %v272_v53 = vld [vmem:[#allocation5 + $0x3d0] sm:$0xff]  ;;  %v273_v2 = vld [vmem:[#allocation5 + $0x3d8] sm:$0xff] }
  0xbf   :  { %1022 = vmatprep.subr.bf16.mxu0 %v6650_v56  ;;  %1065 = vmatprep.subr.bf16.mxu1 %v6652_v6  ;;  %v249_v56 = vld [vmem:[#allocation5 + $0x318] sm:$0xff]  ;;  %v6654_v58 = vcombine.high %v264_v51, %v272_v53  ;;  %v6653_v63 = vcombine.low %v264_v51, %v272_v53  ;;  %v274_v53 = vld [vmem:[#allocation5 + $0x3e0] sm:$0xff] }
  0xc0   :  { %v6640_v62 = vcombine.high %v249_v56, %v257_v57  ;;  %v6639_v6 = vcombine.low %v249_v56, %v257_v57  ;;  %v251_v56 = vld [vmem:[#allocation5 + $0x328] sm:$0xff] }
  0xc1   :  { %v259_v57 = vld [vmem:[#allocation5 + $0x368] sm:$0xff] }
  0xc2   :  { %1023 = vmatpush1.bf16.msra.mxu0 %v6649_v61  ;;  %1066 = vmatpush1.bf16.msra.mxu1 %v6651_v11  ;;  %v162_v61 = vld [vmem:[#allocation5 + $0x60] sm:$0xff]  ;;  %v163_v11 = vld [vmem:[#allocation5 + $0x68] sm:$0xff] }
  0xc3   :  { %1094 = vmatprep.subr.bf16.mxu0 %v6542_v1  ;;  %1137 = vmatprep.subr.bf16.mxu1 %v6544_v14  ;;  %v265_v1 = vld [vmem:[#allocation5 + $0x398] sm:$0xff]  ;;  %v6546_v3 = vcombine.high %v154_v59, %v162_v61  ;;  %v6545_v9 = vcombine.low %v154_v59, %v162_v61  ;;  %v164_v61 = vld [vmem:[#allocation5 + $0x70] sm:$0xff] }
  0xc4   :  { %v6656_v8 = vcombine.high %v265_v1, %v273_v2  ;;  %v6655_v14 = vcombine.low %v265_v1, %v273_v2  ;;  %v267_v1 = vld [vmem:[#allocation5 + $0x3a8] sm:$0xff] }
  0xc5   :  { %1041 = vmatmul.mubr.bf16.vlgmr.msra.gmra.mrb[0].mxu0 %v8889_v5  ;;  %1084 = vmatmul.mubr.bf16.vlgmr.msra.gmra.mrb[0].mxu1 %v8889_v5  ;;  %v275_v2 = vld [vmem:[#allocation5 + $0x3e8] sm:$0xff] }
  0xc6   :  { %1095 = vmatpush1.bf16.msra.mxu0 %v6541_v7  ;;  %1126 = vmatprep.mubr.bf16.mxu0 %v8720_v0  ;;  %v178_v7 = vld [vmem:[#allocation5 + $0xe0] sm:$0xff] }
  0xc7   :  { %1096 = vmatprep.subr.bf16.mxu0 %v6558_v10  ;;  %1138 = vmatpush1.bf16.msra.mxu1 %v6543_v19  ;;  %v155_v10 = vld [vmem:[#allocation5 + $0x28] sm:$0xff]  ;;  %v6562_v12 = vcombine.high %v170_v4, %v178_v7  ;;  %v6561_v17 = vcombine.low %v170_v4, %v178_v7  ;;  %v180_v7 = vld [vmem:[#allocation5 + $0xf0] sm:$0xff] }
  0xc8   :  { %1169 = vmatprep.mubr.bf16.mxu1 %v8720_v0  ;;  %1139 = vmatprep.subr.bf16.mxu1 %v6560_v22  ;;  %v6548_v16 = vcombine.high %v155_v10, %v163_v11  ;;  %v179_v19 = vld [vmem:[#allocation5 + $0xe8] sm:$0xff]  ;;  %v6547_v22 = vcombine.low %v155_v10, %v163_v11  ;;  %v157_v10 = vld [vmem:[#allocation5 + $0x38] sm:$0xff] }
  0xc9   :  { %v165_v11 = vld [vmem:[#allocation5 + $0x78] sm:$0xff] }
  0xca   :  { %1097 = vmatpush1.bf16.msra.mxu0 %v6557_v15  ;;  %v194_v15 = vld [vmem:[#allocation5 + $0x160] sm:$0xff] }
  0xcb   :  { %1098 = vmatprep.subr.bf16.mxu0 %v6574_v18  ;;  %1140 = vmatpush1.bf16.msra.mxu1 %v6559_v27  ;;  %v171_v18 = vld [vmem:[#allocation5 + $0xa8] sm:$0xff]  ;;  %v6578_v20 = vcombine.high %v186_v13, %v194_v15  ;;  %v6577_v25 = vcombine.low %v186_v13, %v194_v15  ;;  %v196_v15 = vld [vmem:[#allocation5 + $0x170] sm:$0xff] }
  0xcc   :  { %1141 = vmatprep.subr.bf16.mxu1 %v6576_v30  ;;  %v6564_v24 = vcombine.high %v171_v18, %v179_v19  ;;  %v195_v27 = vld [vmem:[#allocation5 + $0x168] sm:$0xff]  ;;  %v6563_v30 = vcombine.low %v171_v18, %v179_v19  ;;  %v173_v18 = vld [vmem:[#allocation5 + $0xb8] sm:$0xff] }
  0xcd   :  { %v181_v19 = vld [vmem:[#allocation5 + $0xf8] sm:$0xff] }
  0xce   :  { %1099 = vmatpush1.bf16.msra.mxu0 %v6573_v23  ;;  %v210_v23 = vld [vmem:[#allocation5 + $0x1e0] sm:$0xff] }
  0xcf   :  { %1100 = vmatprep.subr.bf16.mxu0 %v6590_v26  ;;  %1142 = vmatpush1.bf16.msra.mxu1 %v6575_v36  ;;  %v187_v26 = vld [vmem:[#allocation5 + $0x128] sm:$0xff]  ;;  %v6594_v28 = vcombine.high %v202_v21, %v210_v23  ;;  %v6593_v33 = vcombine.low %v202_v21, %v210_v23  ;;  %v212_v23 = vld [vmem:[#allocation5 + $0x1f0] sm:$0xff] }
  0xd0   :  { %1143 = vmatprep.subr.bf16.mxu1 %v6592_v38  ;;  %v6580_v32 = vcombine.high %v187_v26, %v195_v27  ;;  %v6579_v38 = vcombine.low %v187_v26, %v195_v27  ;;  %v189_v26 = vld [vmem:[#allocation5 + $0x138] sm:$0xff] }
  0xd1   :  { %v197_v27 = vld [vmem:[#allocation5 + $0x178] sm:$0xff] }
  0xd2   :  { %1101 = vmatpush1.bf16.msra.mxu0 %v6589_v31  ;;  %v226_v31 = vld [vmem:[#allocation5 + $0x260] sm:$0xff] }
  0xd3   :  { %1102 = vmatprep.subr.bf16.mxu0 %v6606_v34  ;;  %1144 = vmatpush1.bf16.msra.mxu1 %v6591_v44  ;;  %v203_v34 = vld [vmem:[#allocation5 + $0x1a8] sm:$0xff]  ;;  %v6610_v36 = vcombine.high %v218_v29, %v226_v31  ;;  %v250_v44 = vld [vmem:[#allocation5 + $0x320] sm:$0xff] }
  0xd4   :  { %1145 = vmatprep.subr.bf16.mxu1 %v6608_v46  ;;  %v6596_v40 = vcombine.high %v203_v34, %v211_v35  ;;  %v258_v46 = vld [vmem:[#allocation5 + $0x360] sm:$0xff] }
  0xd5   :  { %v6641_v59 = vcombine.low %v250_v44, %v258_v46 }
  0xd6   :  { %1103 = vmatpush1.bf16.msra.mxu0 %v6605_v39  ;;  %v242_v39 = vld [vmem:[#allocation5 + $0x2e0] sm:$0xff] }
  0xd7   :  { %1104 = vmatprep.subr.bf16.mxu0 %v6622_v42  ;;  %1146 = vmatpush1.bf16.msra.mxu1 %v6607_v52  ;;  %v6609_v42 = vcombine.low %v218_v29, %v226_v31  ;;  %v6626_v45 = vcombine.high %v234_v37, %v242_v39  ;;  %v6625_v51 = vcombine.low %v234_v37, %v242_v39  ;;  %v266_v52 = vld [vmem:[#allocation5 + $0x3a0] sm:$0xff]  ;;  %v228_v31 = vld [vmem:[#allocation5 + $0x270] sm:$0xff] }
  0xd8   :  { %1147 = vmatprep.subr.bf16.mxu1 %v6624_v54  ;;  %v6642_v54 = vcombine.high %v250_v44, %v258_v46  ;;  %v6657_v4 = vcombine.low %v266_v52, %v274_v53  ;;  %v244_v39 = vld [vmem:[#allocation5 + $0x2f0] sm:$0xff] }
  0xd9   :  { %v252_v46 = vld [vmem:[#allocation5 + $0x330] sm:$0xff] }
  0xda   :  { %1105 = vmatpush1.bf16.msra.mxu0 %v6621_v47  ;;  %v6595_v47 = vcombine.low %v203_v34, %v211_v35  ;;  %v205_v34 = vld [vmem:[#allocation5 + $0x1b8] sm:$0xff] }
  0xdb   :  { %1106 = vmatprep.subr.bf16.mxu0 %v6638_v50  ;;  %1148 = vmatpush1.bf16.msra.mxu1 %v6623_v60  ;;  %v6612_v50 = vcombine.high %v219_v41, %v227_v43  ;;  %v156_v60 = vld [vmem:[#allocation5 + $0x30] sm:$0xff]  ;;  %v213_v35 = vld [vmem:[#allocation5 + $0x1f8] sm:$0xff] }
  0xdc   :  { %1149 = vmatprep.subr.bf16.mxu1 %v6640_v62  ;;  %v6658_v62 = vcombine.high %v266_v52, %v274_v53  ;;  %v6549_v13 = vcombine.low %v156_v60, %v164_v61  ;;  %v6600_v44 = vcombine.high %v205_v34, %v213_v35 }
  0xde   :  { %1107 = vmatpush1.bf16.msra.mxu0 %v6637_v55  ;;  %v6611_v55 = vcombine.low %v219_v41, %v227_v43  ;;  %v6583_v41 = vcombine.low %v189_v26, %v197_v27  ;;  %v229_v43 = vld [vmem:[#allocation5 + $0x278] sm:$0xff] }
  0xdf   :  { %1108 = vmatprep.subr.bf16.mxu0 %v6654_v58  ;;  %1150 = vmatpush1.bf16.msra.mxu1 %v6639_v6  ;;  %v6628_v58 = vcombine.high %v235_v48, %v243_v49  ;;  %v172_v6 = vld [vmem:[#allocation5 + $0xb0] sm:$0xff] }
  0xe0   :  { %1151 = vmatprep.subr.bf16.mxu1 %v6656_v8  ;;  %v6550_v8 = vcombine.high %v156_v60, %v164_v61  ;;  %v6565_v21 = vcombine.low %v172_v6, %v180_v7 }
  0xe2   :  { %1109 = vmatpush1.bf16.msra.mxu0 %v6653_v63  ;;  %v6627_v63 = vcombine.low %v235_v48, %v243_v49  ;;  %v6599_v48 = vcombine.low %v205_v34, %v213_v35  ;;  %v237_v49 = vld [vmem:[#allocation5 + $0x2b8] sm:$0xff] }
  0xe3   :  { %1180 = vmatprep.subr.bf16.mxu0 %v6546_v3  ;;  %1152 = vmatpush1.bf16.msra.mxu1 %v6655_v14  ;;  %v6644_v3 = vcombine.high %v251_v56, %v259_v57  ;;  %v188_v14 = vld [vmem:[#allocation5 + $0x130] sm:$0xff]  ;;  %v7514_v34 = vld [vmem:[#allocation8 + $0xa8] ss:$16 sps:$4 sm:$0xff]   ;;  %v7522_v35 = vld [vmem:[#allocation8 + $0xcc] ss:$16 sps:$4 sm:$0xff]  }
  0xe4   :  { %1223 = vmatprep.subr.bf16.mxu1 %v6548_v16  ;;  %v6566_v16 = vcombine.high %v172_v6, %v180_v7  ;;  %v6581_v29 = vcombine.low %v188_v14, %v196_v15 }
  0xe5   :  { %1127 = vmatmul.mubr.bf16.vlgmr.msra.gmra.mrb[4].mxu0 %v8889_v5 }
  0xe6   :  { %1181 = vmatpush1.bf16.msra.mxu0 %v6545_v9  ;;  %1212 = vmatprep.mubr.bf16.mxu0 %v8720_v0  ;;  %v6643_v9 = vcombine.low %v251_v56, %v259_v57  ;;  %v276_v56 = vld [vmem:[#allocation5 + $0x3f0] sm:$0xff] }
  0xe7   :  { %1182 = vmatprep.subr.bf16.mxu0 %v6562_v12  ;;  %1170 = vmatmul.mubr.bf16.vlgmr.msra.gmra.mrb[4].mxu1 %v8889_v5  ;;  %v6660_v12 = vcombine.high %v267_v1, %v275_v2 }
  0xe8   :  { %1224 = vmatpush1.bf16.msra.mxu1 %v6547_v22  ;;  %1255 = vmatprep.mubr.bf16.mxu1 %v8720_v0  ;;  %v204_v22 = vld [vmem:[#allocation5 + $0x1b0] sm:$0xff] }
  0xe9   :  { %1225 = vmatprep.subr.bf16.mxu1 %v6564_v24  ;;  %v6582_v24 = vcombine.high %v188_v14, %v196_v15  ;;  %v6597_v37 = vcombine.low %v204_v22, %v212_v23  ;;  %v7484_v14 = vld [vmem:[#allocation8 + $0x8] ss:$16 sps:$4 sm:$0xff]   ;;  %v7492_v15 = vld [vmem:[#allocation8 + $0x2c] ss:$16 sps:$4 sm:$0xff]  }
  0xea   :  { %1183 = vmatpush1.bf16.msra.mxu0 %v6561_v17  ;;  %v6659_v17 = vcombine.low %v267_v1, %v275_v2  ;;  %v277_v2 = vld [vmem:[#allocation5 + $0x3f8] sm:$0xff] }
  0xeb   :  { %1184 = vmatprep.subr.bf16.mxu0 %v6578_v20  ;;  %v6552_v20 = vcombine.high %v157_v10, %v165_v11 }
  0xec   :  { %1226 = vmatpush1.bf16.msra.mxu1 %v6563_v30  ;;  %v220_v30 = vld [vmem:[#allocation5 + $0x230] sm:$0xff] }
  0xed   :  { %1227 = vmatprep.subr.bf16.mxu1 %v6580_v32  ;;  %v6598_v32 = vcombine.high %v204_v22, %v212_v23  ;;  %v7496_v22 = vld [vmem:[#allocation8 + $0x48] ss:$16 sps:$4 sm:$0xff]   ;;  %v7504_v23 = vld [vmem:[#allocation8 + $0x6c] ss:$16 sps:$4 sm:$0xff]  }
  0xee   :  { %1185 = vmatpush1.bf16.msra.mxu0 %v6577_v25  ;;  %v6551_v25 = vcombine.low %v157_v10, %v165_v11  ;;  %v7486_v11 = vld [vmem:[#allocation8 + $0xc] ss:$16 sps:$4 sm:$0xff]  }
  0xef   :  { %1186 = vmatprep.subr.bf16.mxu0 %v6594_v28  ;;  %v6568_v28 = vcombine.high %v173_v18, %v181_v19 }
  0xf0   :  { %1228 = vmatpush1.bf16.msra.mxu1 %v6579_v38  ;;  %v236_v38 = vld [vmem:[#allocation5 + $0x2b0] sm:$0xff] }
  0xf1   :  { %1229 = vmatprep.subr.bf16.mxu1 %v6596_v40  ;;  %v6614_v40 = vcombine.high %v220_v30, %v228_v31  ;;  %v6629_v52 = vcombine.low %v236_v38, %v244_v39 }
  0xf2   :  { %1187 = vmatpush1.bf16.msra.mxu0 %v6593_v33  ;;  %v6567_v33 = vcombine.low %v173_v18, %v181_v19  ;;  %v8473_v18 = vld [vmem:[#allocation2] sm:$0xff]  }
  0xf3   :  { %1188 = vmatprep.subr.bf16.mxu0 %v6610_v36  ;;  %v6584_v36 = vcombine.high %v189_v26, %v197_v27  ;;  %v7490_v19 = vld [vmem:[#allocation8 + $0x28] ss:$16 sps:$4 sm:$0xff]   ;;  %v7510_v27 = vld [vmem:[#allocation8 + $0x8c] ss:$16 sps:$4 sm:$0xff]  }
  0xf4   :  { %1230 = vmatpush1.bf16.msra.mxu1 %v6595_v47  ;;  %v260_v47 = vld [vmem:[#allocation5 + $0x370] sm:$0xff]  ;;  %v7502_v26 = vld [vmem:[#allocation8 + $0x68] ss:$16 sps:$4 sm:$0xff]  }
  0xf5   :  { %1231 = vmatprep.subr.bf16.mxu1 %v6612_v50  ;;  %v245_v50 = vld [vmem:[#allocation5 + $0x2f8] sm:$0xff]  ;;  %v6646_v53 = vcombine.high %v252_v46, %v260_v47  ;;  %v6645_v60 = vcombine.low %v252_v46, %v260_v47 }
  0xf6   :  { %1189 = vmatpush1.bf16.msra.mxu0 %v6609_v42  ;;  %v221_v42 = vld [vmem:[#allocation5 + $0x238] sm:$0xff]  ;;  %v6632_v57 = vcombine.high %v237_v49, %v245_v50 }
  0xf7   :  { %1190 = vmatprep.subr.bf16.mxu0 %v6626_v45  ;;  %v6613_v45 = vcombine.low %v220_v30, %v228_v31  ;;  %v7508_v30 = vld [vmem:[#allocation8 + $0x88] ss:$16 sps:$4 sm:$0xff]   ;;  %v7516_v31 = vld [vmem:[#allocation8 + $0xac] ss:$16 sps:$4 sm:$0xff]  }
  0xf8   :  { %1232 = vmatpush1.bf16.msra.mxu1 %v6611_v55  ;;  %v268_v55 = vld [vmem:[#allocation5 + $0x3b0] sm:$0xff]  ;;  %v7532_v46 = vld [vmem:[#allocation8 + $0x108] ss:$16 sps:$4 sm:$0xff]   ;;  %v7540_v47 = vld [vmem:[#allocation8 + $0x12c] ss:$16 sps:$4 sm:$0xff]  }
  0xf9   :  { %1233 = vmatprep.subr.bf16.mxu1 %v6628_v58  ;;  %v253_v58 = vld [vmem:[#allocation5 + $0x338] sm:$0xff]  ;;  %v6662_v61 = vcombine.high %v268_v55, %v276_v56 }
  0xfa   :  { %1191 = vmatpush1.bf16.msra.mxu0 %v6625_v51  ;;  %v6616_v51 = vcombine.high %v221_v42, %v229_v43 }
  0xfb   :  { %1192 = vmatprep.subr.bf16.mxu0 %v6642_v54  ;;  %v6615_v54 = vcombine.low %v221_v42, %v229_v43  ;;  %v7526_v42 = vld [vmem:[#allocation8 + $0xe8] ss:$16 sps:$4 sm:$0xff]   ;;  %v7534_v43 = vld [vmem:[#allocation8 + $0x10c] ss:$16 sps:$4 sm:$0xff]  }
  0xfc   :  { %1234 = vmatpush1.bf16.msra.mxu1 %v6627_v63  ;;  %v269_v63 = vld [vmem:[#allocation5 + $0x3b8] sm:$0xff] }
  0xfd   :  { %1235 = vmatprep.subr.bf16.mxu1 %v6644_v3  ;;  %v7483_v3 = vld [vmem:[#allocation8 + $0x4] ss:$16 sps:$4 sm:$0xff]   ;;  %v6664_v7 = vcombine.high %v269_v63, %v277_v2  ;;  %v6663_v10 = vcombine.low %v269_v63, %v277_v2  ;;  %v7565_v63 = vld [vmem:[#allocation8 + $0x1c0] ss:$16 sps:$4 sm:$0xff]   ;;  %v7562_v2 = vld [vmem:[#allocation8 + $0x1a8] ss:$16 sps:$4 sm:$0xff]  }
  0xfe   :  { %1193 = vmatpush1.bf16.msra.mxu0 %v6641_v59  ;;  %v261_v59 = vld [vmem:[#allocation5 + $0x378] sm:$0xff] }
  0xff   :  { %1194 = vmatprep.subr.bf16.mxu0 %v6658_v62  ;;  %v6631_v62 = vcombine.low %v237_v49, %v245_v50  ;;  %v6648_v1 = vcombine.high %v253_v58, %v261_v59  ;;  %v6647_v6 = vcombine.low %v253_v58, %v261_v59  ;;  %v7538_v49 = vld [vmem:[#allocation8 + $0x128] ss:$16 sps:$4 sm:$0xff]   ;;  %v7546_v50 = vld [vmem:[#allocation8 + $0x14c] ss:$16 sps:$4 sm:$0xff]   ;;  %v7559_v59 = vld [vmem:[#allocation8 + $0x1a0] ss:$16 sps:$4 sm:$0xff]  }
 0x100   :  { %1236 = vmatpush1.bf16.msra.mxu1 %v6643_v9  ;;  %v7489_v9 = vld [vmem:[#allocation8 + $0x24] ss:$16 sps:$4 sm:$0xff]   ;;  %v7558_v58 = vld [vmem:[#allocation8 + $0x18c] ss:$16 sps:$4 sm:$0xff]  }
 0x101   :  { %1237 = vmatprep.subr.bf16.mxu1 %v6660_v12  ;;  %v7487_v12 = vld [vmem:[#allocation8 + $0x20] ss:$16 sps:$4 sm:$0xff]  }
 0x102   :  { %1195 = vmatpush1.bf16.msra.mxu0 %v6657_v4  ;;  %v6661_v4 = vcombine.low %v268_v55, %v276_v56  ;;  %v7553_v55 = vld [vmem:[#allocation8 + $0x180] ss:$16 sps:$4 sm:$0xff]   ;;  %v7561_v56 = vld [vmem:[#allocation8 + $0x1a4] ss:$16 sps:$4 sm:$0xff]  }
 0x103   :  { %1266 = vmatprep.subr.bf16.mxu0 %v6550_v8  ;;  %v7481_v8 = vld [vmem:[#allocation8] ss:$16 sps:$4 sm:$0xff]  }
 0x104   :  { %1238 = vmatpush1.bf16.msra.mxu1 %v6659_v17  ;;  %v7501_v17 = vld [vmem:[#allocation8 + $0x64] ss:$16 sps:$4 sm:$0xff]  }
 0x105   :  { %1213 = vmatmul.mubr.bf16.vlgmr.msra.gmra.mrb[8].mxu0 %v8889_v5  ;;  %1309 = vmatprep.subr.bf16.mxu1 %v6552_v20  ;;  %v7498_v20 = vld [vmem:[#allocation8 + $0x4c] ss:$16 sps:$4 sm:$0xff]  }
 0x106   :  { %1267 = vmatpush1.bf16.msra.mxu0 %v6549_v13  ;;  %1298 = vmatprep.mubr.bf16.mxu0 %v8720_v0  ;;  %v7495_v13 = vld [vmem:[#allocation8 + $0x44] ss:$16 sps:$4 sm:$0xff]  }
 0x107   :  { %1268 = vmatprep.subr.bf16.mxu0 %v6566_v16  ;;  %1256 = vmatmul.mubr.bf16.vlgmr.msra.gmra.mrb[8].mxu1 %v8889_v5  ;;  %v7493_v16 = vld [vmem:[#allocation8 + $0x40] ss:$16 sps:$4 sm:$0xff]  }
 0x108   :  { %1310 = vmatpush1.bf16.msra.mxu1 %v6551_v25  ;;  %1341 = vmatprep.mubr.bf16.mxu1 %v8720_v0  ;;  %v6630_v0 = vcombine.high %v236_v38, %v244_v39  ;;  %v7513_v25 = vld [vmem:[#allocation8 + $0xa4] ss:$16 sps:$4 sm:$0xff]   ;;  %v7520_v38 = vld [vmem:[#allocation8 + $0xc8] ss:$16 sps:$4 sm:$0xff]   ;;  %v7528_v39 = vld [vmem:[#allocation8 + $0xec] ss:$16 sps:$4 sm:$0xff]  }
 0x109   :  { %1311 = vmatprep.subr.bf16.mxu1 %v6568_v28  ;;  %v7511_v28 = vld [vmem:[#allocation8 + $0xa0] ss:$16 sps:$4 sm:$0xff]  }
 0x10a   :  { %1269 = vmatpush1.bf16.msra.mxu0 %v6565_v21  ;;  %v7499_v21 = vld [vmem:[#allocation8 + $0x60] ss:$16 sps:$4 sm:$0xff]  }
 0x10b   :  { %1270 = vmatprep.subr.bf16.mxu0 %v6582_v24  ;;  %v7505_v24 = vld [vmem:[#allocation8 + $0x80] ss:$16 sps:$4 sm:$0xff]  }
 0x10c   :  { %1312 = vmatpush1.bf16.msra.mxu1 %v6567_v33  ;;  %v7525_v33 = vld [vmem:[#allocation8 + $0xe4] ss:$16 sps:$4 sm:$0xff]  }
 0x10d   :  { %1313 = vmatprep.subr.bf16.mxu1 %v6584_v36  ;;  %v7523_v36 = vld [vmem:[#allocation8 + $0xe0] ss:$16 sps:$4 sm:$0xff]  }
 0x10e   :  { %1271 = vmatpush1.bf16.msra.mxu0 %v6581_v29  ;;  %v7519_v29 = vld [vmem:[#allocation8 + $0xc4] ss:$16 sps:$4 sm:$0xff]  }
 0x10f   :  { %1272 = vmatprep.subr.bf16.mxu0 %v6598_v32  ;;  %v7517_v32 = vld [vmem:[#allocation8 + $0xc0] ss:$16 sps:$4 sm:$0xff]  }
 0x110   :  { %1314 = vmatpush1.bf16.msra.mxu1 %v6583_v41  ;;  %v7537_v41 = vld [vmem:[#allocation8 + $0x124] ss:$16 sps:$4 sm:$0xff]  }
 0x111   :  { %1315 = vmatprep.subr.bf16.mxu1 %v6600_v44  ;;  %v7535_v44 = vld [vmem:[#allocation8 + $0x120] ss:$16 sps:$4 sm:$0xff]  }
 0x112   :  { %1273 = vmatpush1.bf16.msra.mxu0 %v6597_v37  ;;  %v7531_v37 = vld [vmem:[#allocation8 + $0x104] ss:$16 sps:$4 sm:$0xff]  }
 0x113   :  { %1274 = vmatprep.subr.bf16.mxu0 %v6614_v40  ;;  %v7529_v40 = vld [vmem:[#allocation8 + $0x100] ss:$16 sps:$4 sm:$0xff]  }
 0x114   :  { %1316 = vmatpush1.bf16.msra.mxu1 %v6599_v48  ;;  %v7549_v48 = vld [vmem:[#allocation8 + $0x164] ss:$16 sps:$4 sm:$0xff]  }
 0x115   :  { %1317 = vmatprep.subr.bf16.mxu1 %v6616_v51  ;;  %v7547_v51 = vld [vmem:[#allocation8 + $0x160] ss:$16 sps:$4 sm:$0xff]  }
 0x116   :  { %1275 = vmatpush1.bf16.msra.mxu0 %v6613_v45  ;;  %v7543_v45 = vld [vmem:[#allocation8 + $0x144] ss:$16 sps:$4 sm:$0xff]  }
 0x117   :  { %1276 = vmatprep.subr.bf16.mxu0 %v6630_v0  ;;  %v7541_v0 = vld [vmem:[#allocation8 + $0x140] ss:$16 sps:$4 sm:$0xff]  }
 0x118   :  { %1318 = vmatpush1.bf16.msra.mxu1 %v6615_v54  ;;  %v7552_v54 = vld [vmem:[#allocation8 + $0x16c] ss:$16 sps:$4 sm:$0xff]  }
 0x119   :  { %1319 = vmatprep.subr.bf16.mxu1 %v6632_v57  ;;  %v7550_v57 = vld [vmem:[#allocation8 + $0x168] ss:$16 sps:$4 sm:$0xff]  }
 0x11a   :  { %1277 = vmatpush1.bf16.msra.mxu0 %v6629_v52  ;;  %v7555_v52 = vld [vmem:[#allocation8 + $0x184] ss:$16 sps:$4 sm:$0xff]  }
 0x11b   :  { %1278 = vmatprep.subr.bf16.mxu0 %v6646_v53  ;;  %v7544_v53 = vld [vmem:[#allocation8 + $0x148] ss:$16 sps:$4 sm:$0xff]  }
 0x11c   :  { %1320 = vmatpush1.bf16.msra.mxu1 %v6631_v62  ;;  %v7564_v62 = vld [vmem:[#allocation8 + $0x1ac] ss:$16 sps:$4 sm:$0xff]  }
 0x11d   :  { %1321 = vmatprep.subr.bf16.mxu1 %v6648_v1  ;;  %v7573_v1 = vld [vmem:[#allocation8 + $0x1e4] ss:$16 sps:$4 sm:$0xff]  }
 0x11e   :  { %1279 = vmatpush1.bf16.msra.mxu0 %v6645_v60  ;;  %v7567_v60 = vld [vmem:[#allocation8 + $0x1c4] ss:$16 sps:$4 sm:$0xff]  }
 0x11f   :  { %1280 = vmatprep.subr.bf16.mxu0 %v6662_v61  ;;  %v7556_v61 = vld [vmem:[#allocation8 + $0x188] ss:$16 sps:$4 sm:$0xff]  }
 0x120   :  { %1322 = vmatpush1.bf16.msra.mxu1 %v6647_v6  ;;  %v7579_v6 = vld [vmem:[#allocation8 + $0x204] ss:$16 sps:$4 sm:$0xff]  }
 0x121   :  { %1323 = vmatprep.subr.bf16.mxu1 %v6664_v7  ;;  %v7568_v7 = vld [vmem:[#allocation8 + $0x1c8] ss:$16 sps:$4 sm:$0xff]  }
 0x122   :  { %1281 = vmatpush1.bf16.msra.mxu0 %v6661_v4  ;;  %v7571_v4 = vld [vmem:[#allocation8 + $0x1e0] ss:$16 sps:$4 sm:$0xff]  }
 0x123   :  { %4494 = vmatprep.subr.bf16.mxu0 %v7483_v3  ;;  %v7570_v3 = vld [vmem:[#allocation8 + $0x1cc] ss:$16 sps:$4 sm:$0xff]  }
 0x124   :  { %1324 = vmatpush1.bf16.msra.mxu1 %v6663_v10  ;;  %v7582_v10 = vld [vmem:[#allocation8 + $0x20c] ss:$16 sps:$4 sm:$0xff]  }
 0x125   :  { %1299 = vmatmul.mubr.bf16.vlgmr.msra.gmra.mrb[12].mxu0 %v8889_v5  ;;  %4838 = vmatprep.subr.bf16.mxu1 %v7486_v11  ;;  %v7507_v5 = vld [vmem:[#allocation8 + $0x84] ss:$16 sps:$4 sm:$0xff]   ;;  %v282_v11 = vlaneseq }
 0x126   :  { %4495 = vmatpush1.bf16.msra.mxu0 %v7481_v8  ;;  %v7576_v8 = vld [vmem:[#allocation8 + $0x1ec] ss:$16 sps:$4 sm:$0xff]  }
 0x127   :  { %4496 = vmatprep.subr.bf16.mxu0 %v7489_v9  ;;  %1342 = vmatmul.mubr.bf16.vlgmr.msra.gmra.mrb[12].mxu1 %v8473_v18  ;;  %v7574_v9 = vld [vmem:[#allocation8 + $0x1e8] ss:$16 sps:$4 sm:$0xff]  }
 0x128   :  { %4839 = vmatpush1.bf16.msra.mxu1 %v7484_v14 }
 0x129   :  { %4840 = vmatprep.subr.bf16.mxu1 %v7492_v15 }
 0x12a   :  { %4497 = vmatpush1.bf16.msra.mxu0 %v7487_v12  ;;  %v8904_v12 = vshrl.u32 %v282_v11, 7  ;;  %v7618_v11 = vld [vmem:[#allocation8 + $0x2cc] ss:$16 sps:$4 sm:$0xff]  }
 0x12b   :  { %4498 = vmatprep.subr.bf16.mxu0 %v7495_v13  ;;  %v8906_v13 = vld [vmem:[#allocation7] sm:$0xff] }
 0x12c   :  { %4841 = vmatpush1.bf16.msra.mxu1 %v7490_v19  ;;  %v8909_v14 = vsub.s32 0, %v8904_v12  ;;  %v8912_v15 = vsub.s32 1, %v8904_v12  ;;  %v8919_v18 = vsub.s32 2, %v8904_v12 }
 0x12d   :  { %4842 = vmatprep.subr.bf16.mxu1 %v7498_v20  ;;  %v8922_v20 = vsub.s32 3, %v8904_v12 }
 0x12e   :  { %4499 = vmatpush1.bf16.msra.mxu0 %v7493_v16  ;;  %v285_v16 = vrot.slane %v8906_v13, %v8909_v14 }
 0x12f   :  { %4500 = vmatprep.subr.bf16.mxu0 %v7501_v17  ;;  %v289_v17 = vrot.slane %v8906_v13, %v8912_v15 }
 0x130   :  { %4843 = vmatpush1.bf16.msra.mxu1 %v7496_v22 }
 0x131   :  { %4844 = vmatprep.subr.bf16.mxu1 %v7504_v23 }
 0x132   :  { %4501 = vmatpush1.bf16.msra.mxu0 %v7499_v21 }
 0x133   :  { %4502 = vmatprep.subr.bf16.mxu0 %v7507_v5 }
 0x134   :  { %4845 = vmatpush1.bf16.msra.mxu1 %v7502_v26  ;;  %v293_v26 = vrot.slane %v8906_v13, %v8919_v18 }
 0x135   :  { %4846 = vmatprep.subr.bf16.mxu1 %v7510_v27 }
 0x136   :  { %4503 = vmatpush1.bf16.msra.mxu0 %v7505_v24 }
 0x137   :  { %4504 = vmatprep.subr.bf16.mxu0 %v7513_v25 }
 0x138   :  { %4847 = vmatpush1.bf16.msra.mxu1 %v7508_v30 }
 0x139   :  { %4848 = vmatprep.subr.bf16.mxu1 %v7516_v31 }
 0x13a   :  { %4505 = vmatpush1.bf16.msra.mxu0 %v7511_v28  ;;  %v297_v28 = vrot.slane %v8906_v13, %v8922_v20 }
 0x13b   :  { %4506 = vmatprep.subr.bf16.mxu0 %v7519_v29 }
 0x13c   :  { %4849 = vmatpush1.bf16.msra.mxu1 %v7514_v34  ;;  %v7580_v34 = vld [vmem:[#allocation8 + $0x208] ss:$16 sps:$4 sm:$0xff]  }
 0x13d   :  { %4850 = vmatprep.subr.bf16.mxu1 %v7522_v35 }
 0x13e   :  { %4507 = vmatpush1.bf16.msra.mxu0 %v7517_v32 }
 0x13f   :  { %4508 = vmatprep.subr.bf16.mxu0 %v7525_v33  ;;  %v7577_v33 = vld [vmem:[#allocation8 + $0x200] ss:$16 sps:$4 sm:$0xff]  }
 0x140   :  { %4851 = vmatpush1.bf16.msra.mxu1 %v7520_v38 }
 0x141   :  { %4852 = vmatprep.subr.bf16.mxu1 %v7528_v39 }
 0x142   :  { %4509 = vmatpush1.bf16.msra.mxu0 %v7523_v36 }
 0x143   :  { %4510 = vmatprep.subr.bf16.mxu0 %v7531_v37 }
 0x144   :  { %4853 = vmatpush1.bf16.msra.mxu1 %v7526_v42  ;;  %v7585_v42 = vld [vmem:[#allocation8 + $0x224] ss:$16 sps:$4 sm:$0xff]  }
 0x145   :  { %4854 = vmatprep.subr.bf16.mxu1 %v7534_v43  ;;  %v7588_v43 = vld [vmem:[#allocation8 + $0x22c] ss:$16 sps:$4 sm:$0xff]  }
 0x146   :  { %4511 = vmatpush1.bf16.msra.mxu0 %v7529_v40 }
 0x147   :  { %4512 = vmatprep.subr.bf16.mxu0 %v7537_v41 }
 0x148   :  { %4855 = vmatpush1.bf16.msra.mxu1 %v7532_v46 }
 0x149   :  { %4856 = vmatprep.subr.bf16.mxu1 %v7540_v47 }
 0x14a   :  { %4513 = vmatpush1.bf16.msra.mxu0 %v7535_v44 }
 0x14b   :  { %4514 = vmatprep.subr.bf16.mxu0 %v7543_v45 }
 0x14c   :  { %4857 = vmatpush1.bf16.msra.mxu1 %v7538_v49  ;;  %v7583_v49 = vld [vmem:[#allocation8 + $0x220] ss:$16 sps:$4 sm:$0xff]  }
 0x14d   :  { %4858 = vmatprep.subr.bf16.mxu1 %v7546_v50  ;;  %v7586_v50 = vld [vmem:[#allocation8 + $0x228] ss:$16 sps:$4 sm:$0xff]  }
 0x14e   :  { %4515 = vmatpush1.bf16.msra.mxu0 %v7541_v0 }
 0x14f   :  { %4516 = vmatprep.subr.bf16.mxu0 %v7549_v48 }
 0x150   :  { %4859 = vmatpush1.bf16.msra.mxu1 %v7544_v53  ;;  %v7594_v53 = vld [vmem:[#allocation8 + $0x24c] ss:$16 sps:$4 sm:$0xff]  }
 0x151   :  { %4860 = vmatprep.subr.bf16.mxu1 %v7552_v54 }
 0x152   :  { %4517 = vmatpush1.bf16.msra.mxu0 %v7547_v51 }
 0x153   :  { %4518 = vmatprep.subr.bf16.mxu0 %v7555_v52  ;;  %v7591_v52 = vld [vmem:[#allocation8 + $0x244] ss:$16 sps:$4 sm:$0xff]  }
 0x154   :  { %4861 = vmatpush1.bf16.msra.mxu1 %v7550_v57  ;;  %v7592_v57 = vld [vmem:[#allocation8 + $0x248] ss:$16 sps:$4 sm:$0xff]  }
 0x155   :  { %4862 = vmatprep.subr.bf16.mxu1 %v7558_v58  ;;  %v7597_v58 = vld [vmem:[#allocation8 + $0x264] ss:$16 sps:$4 sm:$0xff]  }
 0x156   :  { %4519 = vmatpush1.bf16.msra.mxu0 %v7553_v55 }
 0x157   :  { %4520 = vmatprep.subr.bf16.mxu0 %v7561_v56  ;;  %v7589_v56 = vld [vmem:[#allocation8 + $0x240] ss:$16 sps:$4 sm:$0xff]  }
 0x158   :  { %4863 = vmatpush1.bf16.msra.mxu1 %v7556_v61  ;;  %v7598_v61 = vld [vmem:[#allocation8 + $0x268] ss:$16 sps:$4 sm:$0xff]  }
 0x159   :  { %4864 = vmatprep.subr.bf16.mxu1 %v7564_v62  ;;  %v7603_v62 = vld [vmem:[#allocation8 + $0x284] ss:$16 sps:$4 sm:$0xff]  }
 0x15a   :  { %4521 = vmatpush1.bf16.msra.mxu0 %v7559_v59  ;;  %v7600_v59 = vld [vmem:[#allocation8 + $0x26c] ss:$16 sps:$4 sm:$0xff]  }
 0x15b   :  { %4522 = vmatprep.subr.bf16.mxu0 %v7567_v60  ;;  %v7595_v60 = vld [vmem:[#allocation8 + $0x260] ss:$16 sps:$4 sm:$0xff]  }
 0x15c   :  { %4865 = vmatpush1.bf16.msra.mxu1 %v7562_v2  ;;  %v7604_v2 = vld [vmem:[#allocation8 + $0x288] ss:$16 sps:$4 sm:$0xff]  }
 0x15d   :  { %4866 = vmatprep.subr.bf16.mxu1 %v7570_v3  ;;  %v7609_v3 = vld [vmem:[#allocation8 + $0x2a4] ss:$16 sps:$4 sm:$0xff]  }
 0x15e   :  { %4523 = vmatpush1.bf16.msra.mxu0 %v7565_v63  ;;  %v7606_v63 = vld [vmem:[#allocation8 + $0x28c] ss:$16 sps:$4 sm:$0xff]  }
 0x15f   :  { %4524 = vmatprep.subr.bf16.mxu0 %v7573_v1  ;;  %v7601_v1 = vld [vmem:[#allocation8 + $0x280] ss:$16 sps:$4 sm:$0xff]  }
 0x160   :  { %4867 = vmatpush1.bf16.msra.mxu1 %v7568_v7  ;;  %v304_v7 = vsub.s32 5, %v8904_v12 }
 0x161   :  { %4868 = vmatprep.subr.bf16.mxu1 %v7576_v8  ;;  %v7607_v8 = vld [vmem:[#allocation8 + $0x2a0] ss:$16 sps:$4 sm:$0xff]  }
 0x162   :  { %4525 = vmatpush1.bf16.msra.mxu0 %v7571_v4  ;;  %v7612_v4 = vld [vmem:[#allocation8 + $0x2ac] ss:$16 sps:$4 sm:$0xff]  }
 0x163   :  { %4537 = vmatprep.subr.bf16.mxu0 %v7579_v6  ;;  %v300_v6 = vsub.s32 4, %v8904_v12 }
 0x164   :  { %4869 = vmatpush1.bf16.msra.mxu1 %v7574_v9  ;;  %v7610_v9 = vld [vmem:[#allocation8 + $0x2a8] ss:$16 sps:$4 sm:$0xff]  }
 0x165   :  { %4881 = vmatprep.subr.bf16.mxu1 %v7582_v10  ;;  %v7615_v10 = vld [vmem:[#allocation8 + $0x2c4] ss:$16 sps:$4 sm:$0xff]  }
 0x198   :  { %v1042_v19 = vpop.f32.mrb[0].mxu0  ;;  %v1085_v35 = vpop.f32.mrb[0].mxu1 }
 0x199   :  { %v1043_v21 = vadd.f32 %v1042_v19, %v285_v16  ;;  %v1044_v5 = vpop.f32.mrb[1].mxu0  ;;  %v1086_v37 = vadd.f32 %v1085_v35, %v293_v26  ;;  %v1087_v38 = vpop.f32.mrb[1].mxu1  ;;  %v305_v19 = vrot.slane %v8906_v13, %v304_v7  ;;  %v7622_v35 = vld [vmem:[#allocation8 + $0x2e8] ss:$16 sps:$4 sm:$0xff]  }
 0x19a   :  { %v1045_v22 = vadd.f32 %v1044_v5, %v289_v17  ;;  %v1046_v23 = vpop.f32.mrb[2].mxu0  ;;  %v1088_v40 = vadd.f32 %v1087_v38, %v297_v28  ;;  %v1089_v41 = vpop.f32.mrb[2].mxu1  ;;  %v7616_v5 = vld [vmem:[#allocation8 + $0x2c8] ss:$16 sps:$4 sm:$0xff]  }
 0x19b   :  { %v1047_v24 = vadd.f32 %v1046_v23, %v285_v16  ;;  %v1048_v25 = vpop.f32.mrb[3].mxu0  ;;  %v1352_v29 = vmax.f32 %v1043_v21, 0.0  ;;  %v1354_v44 = vmax.f32 %v1086_v37, 0.0  ;;  %v1090_v45 = vadd.f32 %v1089_v41, %v293_v26  ;;  %v1091_v46 = vpop.f32.mrb[3].mxu1 }
 0x19c   :  { %v1049_v27 = vadd.f32 %v1048_v25, %v289_v17  ;;  %v1353_v31 = vmax.f32 %v1045_v22, 0.0  ;;  %v1355_v47 = vmax.f32 %v1088_v40, 0.0  ;;  %v1092_v0 = vadd.f32 %v1091_v46, %v297_v28  ;;  %v7613_v17 = vld [vmem:[#allocation8 + $0x2c0] ss:$16 sps:$4 sm:$0xff]   ;;  %v7624_v25 = vld [vmem:[#allocation8 + $0x2ec] ss:$16 sps:$4 sm:$0xff]  }
 0x19d   :  { %v1368_v30 = vmax.f32 %v1047_v24, 0.0  ;;  %v1370_v48 = vmax.f32 %v1090_v45, 0.0  ;;  %v301_v16 = vrot.slane %v8906_v13, %v300_v6  ;;  %v308_v21 = vsub.s32 6, %v8904_v12  ;;  %v7621_v24 = vld [vmem:[#allocation8 + $0x2e4] ss:$16 sps:$4 sm:$0xff]  }
 0x19e   :  { %v1369_v32 = vmax.f32 %v1049_v27, 0.0  ;;  %v1371_v51 = vmax.f32 %v1092_v0, 0.0  ;;  %v312_v23 = vsub.s32 7, %v8904_v12  ;;  %v7630_v40 = vld [vmem:[#allocation8 + $0x30c] ss:$16 sps:$4 sm:$0xff]  }
 0x19f   :  { %v1384_v36 = vpack.c.bf16 %v1368_v30, %v1352_v29  ;;  %v8928_v54 = vpack.c.bf16 %v1370_v48, %v1354_v44  ;;  %v7628_v0 = vld [vmem:[#allocation8 + $0x308] ss:$16 sps:$4 sm:$0xff]  }
 0x1a0   :  { %v1385_v39 = vpack.c.bf16 %v1369_v32, %v1353_v31  ;;  %v1387_v55 = vpack.c.bf16 %v1371_v51, %v1355_v47  ;;  %v313_v38 = vrot.slane %v8906_v13, %v312_v23  ;;  %v7625_v47 = vld [vmem:[#allocation8 + $0x300] ss:$16 sps:$4 sm:$0xff]   ;;  %v7636_v51 = vld [vmem:[#allocation8 + $0x32c] ss:$16 sps:$4 sm:$0xff]  }
 0x1a2   :  { %4526 = vmatprep.mubr.bf16.mxu0 %v1385_v39  ;;  %4870 = vmatprep.mubr.bf16.mxu1 %v1385_v39  ;;  %v7627_v39 = vld [vmem:[#allocation8 + $0x304] ss:$16 sps:$4 sm:$0xff]  }
 0x1a3   :  { %4527 = vmatmul.mubr.bf16.vlgmr.msra.gmra.mrb[16].mxu0 %v1384_v36  ;;  %4871 = vmatmul.mubr.bf16.vlgmr.msra.gmra.mrb[16].mxu1 %v1384_v36 }
 0x1a4   :  { %4538 = vmatpush1.bf16.msra.mxu0 %v7577_v33  ;;  %4882 = vmatpush1.bf16.msra.mxu1 %v7580_v34  ;;  %v309_v33 = vrot.slane %v8906_v13, %v308_v21  ;;  %v7619_v34 = vld [vmem:[#allocation8 + $0x2e0] ss:$16 sps:$4 sm:$0xff]   ;;  %v7633_v13 = vld [vmem:[#allocation8 + $0x324] ss:$16 sps:$4 sm:$0xff]  }
 0x1a5   :  { %4539 = vmatprep.subr.bf16.mxu0 %v7585_v42  ;;  %4883 = vmatprep.subr.bf16.mxu1 %v7588_v43 }
 0x1a6   :  { %4569 = vmatprep.mubr.bf16.mxu0 %v1387_v55  ;;  %4913 = vmatprep.mubr.bf16.mxu1 %v1387_v55 }
 0x1a8   :  { %4540 = vmatpush1.bf16.msra.mxu0 %v7583_v49  ;;  %4884 = vmatpush1.bf16.msra.mxu1 %v7586_v50 }
 0x1a9   :  { %4541 = vmatprep.subr.bf16.mxu0 %v7591_v52  ;;  %4885 = vmatprep.subr.bf16.mxu1 %v7594_v53 }
 0x1ac   :  { %4542 = vmatpush1.bf16.msra.mxu0 %v7589_v56  ;;  %4886 = vmatpush1.bf16.msra.mxu1 %v7592_v57 }
 0x1ad   :  { %4543 = vmatprep.subr.bf16.mxu0 %v7597_v58  ;;  %4887 = vmatprep.subr.bf16.mxu1 %v7600_v59  ;;  %v7631_v59 = vld [vmem:[#allocation8 + $0x320] ss:$16 sps:$4 sm:$0xff]  }
 0x1b0   :  { %4544 = vmatpush1.bf16.msra.mxu0 %v7595_v60  ;;  %4888 = vmatpush1.bf16.msra.mxu1 %v7598_v61  ;;  %v7634_v60 = vld [vmem:[#allocation8 + $0x328] ss:$16 sps:$4 sm:$0xff]  }
 0x1b1   :  { %4545 = vmatprep.subr.bf16.mxu0 %v7603_v62  ;;  %4889 = vmatprep.subr.bf16.mxu1 %v7606_v63  ;;  %v7639_v62 = vld [vmem:[#allocation8 + $0x344] ss:$16 sps:$4 sm:$0xff]   ;;  %v7642_v63 = vld [vmem:[#allocation8 + $0x34c] ss:$16 sps:$4 sm:$0xff]  }
 0x1b4   :  { %4546 = vmatpush1.bf16.msra.mxu0 %v7601_v1  ;;  %4890 = vmatpush1.bf16.msra.mxu1 %v7604_v2 }
 0x1b5   :  { %4547 = vmatprep.subr.bf16.mxu0 %v7609_v3  ;;  %4891 = vmatprep.subr.bf16.mxu1 %v7612_v4  ;;  %v7637_v3 = vld [vmem:[#allocation8 + $0x340] ss:$16 sps:$4 sm:$0xff]   ;;  %v7640_v4 = vld [vmem:[#allocation8 + $0x348] ss:$16 sps:$4 sm:$0xff]  }
 0x1b8   :  { %4548 = vmatpush1.bf16.msra.mxu0 %v7607_v8  ;;  %4892 = vmatpush1.bf16.msra.mxu1 %v7610_v9  ;;  %v1128_v22 = vpop.f32.mrb[4].mxu0  ;;  %v7645_v8 = vld [vmem:[#allocation8 + $0x364] ss:$16 sps:$4 sm:$0xff]   ;;  %v7648_v9 = vld [vmem:[#allocation8 + $0x36c] ss:$16 sps:$4 sm:$0xff]  }
 0x1b9   :  { %4549 = vmatprep.subr.bf16.mxu0 %v7615_v10  ;;  %4893 = vmatprep.subr.bf16.mxu1 %v7618_v11  ;;  %v1129_v26 = vadd.f32 %v1128_v22, %v301_v16  ;;  %v1130_v27 = vpop.f32.mrb[5].mxu0  ;;  %v7643_v10 = vld [vmem:[#allocation8 + $0x360] ss:$16 sps:$4 sm:$0xff]   ;;  %v7646_v11 = vld [vmem:[#allocation8 + $0x368] ss:$16 sps:$4 sm:$0xff]  }
 0x1ba   :  { %v1131_v28 = vadd.f32 %v1130_v27, %v305_v19  ;;  %v1132_v29 = vpop.f32.mrb[6].mxu0  ;;  %v1171_v43 = vpop.f32.mrb[4].mxu1  ;;  %v7657_v22 = vld [vmem:[#allocation8 + $0x3a4] ss:$16 sps:$4 sm:$0xff]   ;;  %v7658_v27 = vld [vmem:[#allocation8 + $0x3a8] ss:$16 sps:$4 sm:$0xff]  }
 0x1bb   :  { %v1356_v30 = vmax.f32 %v1129_v26, 0.0  ;;  %v1133_v31 = vadd.f32 %v1132_v29, %v301_v16  ;;  %v1134_v32 = vpop.f32.mrb[7].mxu0  ;;  %v1172_v45 = vadd.f32 %v1171_v43, %v309_v33  ;;  %v1173_v46 = vpop.f32.mrb[5].mxu1  ;;  %v7651_v16 = vld [vmem:[#allocation8 + $0x384] ss:$16 sps:$4 sm:$0xff]  }
 0x1bc   :  { %4550 = vmatpush1.bf16.msra.mxu0 %v7613_v17  ;;  %4894 = vmatpush1.bf16.msra.mxu1 %v7616_v5  ;;  %v1357_v36 = vmax.f32 %v1131_v28, 0.0  ;;  %v1135_v37 = vadd.f32 %v1134_v32, %v305_v19  ;;  %v1174_v49 = vadd.f32 %v1173_v46, %v313_v38  ;;  %v1175_v50 = vpop.f32.mrb[6].mxu1  ;;  %v7654_v17 = vld [vmem:[#allocation8 + $0x38c] ss:$16 sps:$4 sm:$0xff]   ;;  %v7649_v19 = vld [vmem:[#allocation8 + $0x380] ss:$16 sps:$4 sm:$0xff]  }
 0x1bd   :  { %4551 = vmatprep.subr.bf16.mxu0 %v7621_v24  ;;  %4895 = vmatprep.subr.bf16.mxu1 %v7624_v25  ;;  %v1372_v41 = vmax.f32 %v1133_v31, 0.0  ;;  %v1358_v52 = vmax.f32 %v1172_v45, 0.0  ;;  %v1176_v53 = vadd.f32 %v1175_v50, %v309_v33  ;;  %v1177_v55 = vpop.f32.mrb[7].mxu1  ;;  %v7652_v5 = vld [vmem:[#allocation8 + $0x388] ss:$16 sps:$4 sm:$0xff]  }
 0x1be   :  { %v1373_v42 = vmax.f32 %v1135_v37, 0.0  ;;  %v1359_v56 = vmax.f32 %v1174_v49, 0.0  ;;  %v1178_v57 = vadd.f32 %v1177_v55, %v313_v38  ;;  %v7660_v24 = vld [vmem:[#allocation8 + $0x3ac] ss:$16 sps:$4 sm:$0xff]   ;;  %v7655_v26 = vld [vmem:[#allocation8 + $0x3a0] ss:$16 sps:$4 sm:$0xff]  }
 0x1bf   :  { %v8946_v44 = vpack.c.bf16 %v1372_v41, %v1356_v30  ;;  %v1374_v58 = vmax.f32 %v1176_v53, 0.0  ;;  %v8954_v25 = vld [vmem:[#allocation7 + $0x8] sm:$0xff]  ;;  %v7663_v28 = vld [vmem:[#allocation8 + $0x3c4] ss:$16 sps:$4 sm:$0xff]   ;;  %v7661_v32 = vld [vmem:[#allocation8 + $0x3c0] ss:$16 sps:$4 sm:$0xff]  }
 0x1c0   :  { %4552 = vmatpush1.bf16.msra.mxu0 %v7619_v34  ;;  %4896 = vmatpush1.bf16.msra.mxu1 %v7622_v35  ;;  %v8948_v48 = vpack.c.bf16 %v1373_v42, %v1357_v36  ;;  %v1375_v61 = vmax.f32 %v1178_v57, 0.0  ;;  %v7666_v29 = vld [vmem:[#allocation8 + $0x3cc] ss:$16 sps:$4 sm:$0xff]   ;;  %v317_v30 = vrot.slane %v8954_v25, %v8909_v14  ;;  %v321_v31 = vrot.slane %v8954_v25, %v8912_v15  ;;  %v7664_v33 = vld [vmem:[#allocation8 + $0x3c8] ss:$16 sps:$4 sm:$0xff]  }
 0x1c1   :  { %4553 = vmatprep.subr.bf16.mxu0 %v7627_v39  ;;  %4897 = vmatprep.subr.bf16.mxu1 %v7630_v40  ;;  %v8950_v1 = vpack.c.bf16 %v1374_v58, %v1358_v52  ;;  %v7669_v35 = vld [vmem:[#allocation8 + $0x3e4] ss:$16 sps:$4 sm:$0xff]   ;;  %v7672_v36 = vld [vmem:[#allocation8 + $0x3ec] ss:$16 sps:$4 sm:$0xff]   ;;  %v325_v45 = vrot.slane %v8954_v25, %v8919_v18  ;;  %v7667_v46 = vld [vmem:[#allocation8 + $0x3e0] ss:$16 sps:$4 sm:$0xff]   ;;  %v329_v50 = vrot.slane %v8954_v25, %v8922_v20 }
 0x1c2   :  { %v8952_v2 = vpack.c.bf16 %v1375_v61, %v1359_v56  ;;  %v7673_v53 = vld [vmem:[#allocation8 + $0x400] ss:$16 sps:$4 sm:$0xff]   ;;  %v7676_v55 = vld [vmem:[#allocation8 + $0x408] ss:$16 sps:$4 sm:$0xff]  }
 0x1c4   :  { %4554 = vmatpush1.bf16.msra.mxu0 %v7625_v47  ;;  %4898 = vmatpush1.bf16.msra.mxu1 %v7628_v0  ;;  %v7670_v47 = vld [vmem:[#allocation8 + $0x3e8] ss:$16 sps:$4 sm:$0xff]  }
 0x1c5   :  { %4555 = vmatprep.subr.bf16.mxu0 %v7633_v13  ;;  %4899 = vmatprep.subr.bf16.mxu1 %v7636_v51  ;;  %v7675_v13 = vld [vmem:[#allocation8 + $0x404] ss:$16 sps:$4 sm:$0xff]   ;;  %v7678_v51 = vld [vmem:[#allocation8 + $0x40c] ss:$16 sps:$4 sm:$0xff]  }
 0x1c8   :  { %4556 = vmatpush1.bf16.msra.mxu0 %v7631_v59  ;;  %4900 = vmatpush1.bf16.msra.mxu1 %v7634_v60 }
 0x1c9   :  { %4557 = vmatprep.subr.bf16.mxu0 %v7639_v62  ;;  %4901 = vmatprep.subr.bf16.mxu1 %v7642_v63 }
 0x1cc   :  { %4558 = vmatpush1.bf16.msra.mxu0 %v7637_v3  ;;  %4902 = vmatpush1.bf16.msra.mxu1 %v7640_v4  ;;  %v7681_v3 = vld [vmem:[#allocation8 + $0x424] ss:$16 sps:$4 sm:$0xff]   ;;  %v7684_v4 = vld [vmem:[#allocation8 + $0x42c] ss:$16 sps:$4 sm:$0xff]  }
 0x1cd   :  { %4559 = vmatprep.subr.bf16.mxu0 %v7645_v8  ;;  %4903 = vmatprep.subr.bf16.mxu1 %v7648_v9 }
 0x1d0   :  { %4560 = vmatpush1.bf16.msra.mxu0 %v7643_v10  ;;  %4904 = vmatpush1.bf16.msra.mxu1 %v7646_v11  ;;  %v7679_v11 = vld [vmem:[#allocation8 + $0x420] ss:$16 sps:$4 sm:$0xff]  }
 0x1d1   :  { %4561 = vmatprep.subr.bf16.mxu0 %v7651_v16  ;;  %4905 = vmatprep.subr.bf16.mxu1 %v7654_v17  ;;  %v7682_v16 = vld [vmem:[#allocation8 + $0x428] ss:$16 sps:$4 sm:$0xff]  }
 0x1d4   :  { %4562 = vmatpush1.bf16.msra.mxu0 %v7649_v19  ;;  %4906 = vmatpush1.bf16.msra.mxu1 %v7652_v5 }
 0x1d5   :  { %4563 = vmatprep.subr.bf16.mxu0 %v7657_v22  ;;  %4907 = vmatprep.subr.bf16.mxu1 %v7660_v24  ;;  %v7687_v24 = vld [vmem:[#allocation8 + $0x444] ss:$16 sps:$4 sm:$0xff]  }
 0x1d8   :  { %4564 = vmatpush1.bf16.msra.mxu0 %v7655_v26  ;;  %4908 = vmatpush1.bf16.msra.mxu1 %v7658_v27  ;;  %v1214_v34 = vpop.f32.mrb[8].mxu0  ;;  %v7690_v26 = vld [vmem:[#allocation8 + $0x44c] ss:$16 sps:$4 sm:$0xff]  }
 0x1d9   :  { %4565 = vmatprep.subr.bf16.mxu0 %v7663_v28  ;;  %4909 = vmatprep.subr.bf16.mxu1 %v7666_v29  ;;  %v1215_v37 = vadd.f32 %v1214_v34, %v317_v30  ;;  %v1216_v38 = vpop.f32.mrb[9].mxu0  ;;  %v7685_v28 = vld [vmem:[#allocation8 + $0x440] ss:$16 sps:$4 sm:$0xff]   ;;  %v7688_v29 = vld [vmem:[#allocation8 + $0x448] ss:$16 sps:$4 sm:$0xff]  }
 0x1da   :  { %v1217_v39 = vadd.f32 %v1216_v38, %v321_v31  ;;  %v1218_v40 = vpop.f32.mrb[10].mxu0  ;;  %v1257_v57 = vpop.f32.mrb[8].mxu1  ;;  %v7699_v34 = vld [vmem:[#allocation8 + $0x484] ss:$16 sps:$4 sm:$0xff]   ;;  %v7708_v38 = vld [vmem:[#allocation8 + $0x4ac] ss:$16 sps:$4 sm:$0xff]  }
 0x1db   :  { %v1360_v41 = vmax.f32 %v1215_v37, 0.0  ;;  %v1219_v42 = vadd.f32 %v1218_v40, %v317_v30  ;;  %v1220_v43 = vpop.f32.mrb[11].mxu0  ;;  %v1258_v59 = vadd.f32 %v1257_v57, %v325_v45  ;;  %v1259_v60 = vpop.f32.mrb[9].mxu1  ;;  %v7700_v37 = vld [vmem:[#allocation8 + $0x488] ss:$16 sps:$4 sm:$0xff]  }
 0x1dc   :  { %4566 = vmatpush1.bf16.msra.mxu0 %v7661_v32  ;;  %4910 = vmatpush1.bf16.msra.mxu1 %v7664_v33  ;;  %v1361_v0 = vmax.f32 %v1217_v39, 0.0  ;;  %v1221_v49 = vadd.f32 %v1220_v43, %v321_v31  ;;  %v1260_v62 = vadd.f32 %v1259_v60, %v329_v50  ;;  %v1261_v63 = vpop.f32.mrb[10].mxu1  ;;  %v7696_v31 = vld [vmem:[#allocation8 + $0x46c] ss:$16 sps:$4 sm:$0xff]   ;;  %v7691_v32 = vld [vmem:[#allocation8 + $0x460] ss:$16 sps:$4 sm:$0xff]   ;;  %v333_v43 = vrot.slane %v8954_v25, %v300_v6 }
 0x1dd   :  { %4567 = vmatprep.subr.bf16.mxu0 %v7669_v35  ;;  %4911 = vmatprep.subr.bf16.mxu1 %v7672_v36  ;;  %v1376_v52 = vmax.f32 %v1219_v42, 0.0  ;;  %v1362_v8 = vmax.f32 %v1258_v59, 0.0  ;;  %v1262_v9 = vadd.f32 %v1261_v63, %v325_v45  ;;  %v1263_v10 = vpop.f32.mrb[11].mxu1  ;;  %v7694_v33 = vld [vmem:[#allocation8 + $0x468] ss:$16 sps:$4 sm:$0xff]   ;;  %v345_v63 = vrot.slane %v8954_v25, %v312_v23 }
 0x1de   :  { %v1377_v56 = vmax.f32 %v1221_v49, 0.0  ;;  %v1363_v17 = vmax.f32 %v1260_v62, 0.0  ;;  %v1264_v19 = vadd.f32 %v1263_v10, %v329_v50  ;;  %v7702_v35 = vld [vmem:[#allocation8 + $0x48c] ss:$16 sps:$4 sm:$0xff]   ;;  %v7697_v36 = vld [vmem:[#allocation8 + $0x480] ss:$16 sps:$4 sm:$0xff]  }
 0x1df   :  { %v8964_v58 = vpack.c.bf16 %v1376_v52, %v1360_v41  ;;  %v1378_v5 = vmax.f32 %v1262_v9, 0.0  ;;  %v7703_v39 = vld [vmem:[#allocation8 + $0x4a0] ss:$16 sps:$4 sm:$0xff]   ;;  %v7706_v40 = vld [vmem:[#allocation8 + $0x4a8] ss:$16 sps:$4 sm:$0xff]  }
 0x1e0   :  { %4568 = vmatpush1.bf16.msra.mxu0 %v7667_v46  ;;  %4912 = vmatpush1.bf16.msra.mxu1 %v7670_v47  ;;  %v8966_v61 = vpack.c.bf16 %v1377_v56, %v1361_v0  ;;  %v1379_v22 = vmax.f32 %v1264_v19, 0.0  ;;  %v7711_v41 = vld [vmem:[#allocation8 + $0x4c4] ss:$16 sps:$4 sm:$0xff]   ;;  %v7714_v42 = vld [vmem:[#allocation8 + $0x4cc] ss:$16 sps:$4 sm:$0xff]   ;;  %v337_v47 = vrot.slane %v8954_v25, %v304_v7  ;;  %v341_v7 = vrot.slane %v8954_v25, %v308_v21 }
 0x1e1   :  { %4580 = vmatprep.subr.bf16.mxu0 %v7675_v13  ;;  %4924 = vmatprep.subr.bf16.mxu1 %v7678_v51  ;;  %v8970_v27 = vpack.c.bf16 %v1378_v5, %v1362_v8  ;;  %v7709_v45 = vld [vmem:[#allocation8 + $0x4c0] ss:$16 sps:$4 sm:$0xff]   ;;  %v7712_v46 = vld [vmem:[#allocation8 + $0x4c8] ss:$16 sps:$4 sm:$0xff]   ;;  %v7717_v49 = vld [vmem:[#allocation8 + $0x4e4] ss:$16 sps:$4 sm:$0xff]  }
 0x1e2   :  { %v8974_v30 = vpack.c.bf16 %v1379_v22, %v1363_v17  ;;  %v7720_v50 = vld [vmem:[#allocation8 + $0x4ec] ss:$16 sps:$4 sm:$0xff]   ;;  %v7715_v52 = vld [vmem:[#allocation8 + $0x4e0] ss:$16 sps:$4 sm:$0xff]   ;;  %v7724_v10 = vld [vmem:[#allocation8 + $0x508] ss:$16 sps:$4 sm:$0xff]  }
 0x1e3   :  { %4570 = vmatmul.mubr.bf16.vlgmr.msra.gmra.mrb[16].mxu0 %v8928_v54  ;;  %4914 = vmatmul.mubr.bf16.vlgmr.msra.gmra.mrb[16].mxu1 %v8928_v54  ;;  %v7693_v54 = vld [vmem:[#allocation8 + $0x464] ss:$16 sps:$4 sm:$0xff]   ;;  %v7721_v9 = vld [vmem:[#allocation8 + $0x500] ss:$16 sps:$4 sm:$0xff]   ;;  %v7732_v25 = vld [vmem:[#allocation8 + $0x52c] ss:$16 sps:$4 sm:$0xff]  }
 0x1e4   :  { %4581 = vmatpush1.bf16.msra.mxu0 %v7673_v53  ;;  %4925 = vmatpush1.bf16.msra.mxu1 %v7676_v55  ;;  %v7718_v53 = vld [vmem:[#allocation8 + $0x4e8] ss:$16 sps:$4 sm:$0xff]   ;;  %v7729_v23 = vld [vmem:[#allocation8 + $0x524] ss:$16 sps:$4 sm:$0xff]  }
 0x1e5   :  { %4582 = vmatprep.subr.bf16.mxu0 %v7681_v3  ;;  %4926 = vmatprep.subr.bf16.mxu1 %v7684_v4  ;;  %v7723_v3 = vld [vmem:[#allocation8 + $0x504] ss:$16 sps:$4 sm:$0xff]   ;;  %v7726_v4 = vld [vmem:[#allocation8 + $0x50c] ss:$16 sps:$4 sm:$0xff]  }
 0x1e6   :  { %4612 = vmatprep.mubr.bf16.mxu0 %v8948_v48  ;;  %4956 = vmatprep.mubr.bf16.mxu1 %v8948_v48  ;;  %v7705_v48 = vld [vmem:[#allocation8 + $0x4a4] ss:$16 sps:$4 sm:$0xff]  }
 0x1e8   :  { %4583 = vmatpush1.bf16.msra.mxu0 %v7679_v11  ;;  %4927 = vmatpush1.bf16.msra.mxu1 %v7682_v16 }
 0x1e9   :  { %4584 = vmatprep.subr.bf16.mxu0 %v7687_v24  ;;  %4928 = vmatprep.subr.bf16.mxu1 %v7690_v26 }
 0x1ec   :  { %4585 = vmatpush1.bf16.msra.mxu0 %v7685_v28  ;;  %4929 = vmatpush1.bf16.msra.mxu1 %v7688_v29  ;;  %v7727_v29 = vld [vmem:[#allocation8 + $0x520] ss:$16 sps:$4 sm:$0xff]  }
 0x1ed   :  { %4586 = vmatprep.subr.bf16.mxu0 %v7693_v54  ;;  %4930 = vmatprep.subr.bf16.mxu1 %v7696_v31  ;;  %v7730_v54 = vld [vmem:[#allocation8 + $0x528] ss:$16 sps:$4 sm:$0xff]  }
 0x1f0   :  { %4587 = vmatpush1.bf16.msra.mxu0 %v7691_v32  ;;  %4931 = vmatpush1.bf16.msra.mxu1 %v7694_v33 }
 0x1f1   :  { %4588 = vmatprep.subr.bf16.mxu0 %v7699_v34  ;;  %4932 = vmatprep.subr.bf16.mxu1 %v7702_v35  ;;  %v7735_v35 = vld [vmem:[#allocation8 + $0x544] ss:$16 sps:$4 sm:$0xff]  }
 0x1f4   :  { %4589 = vmatpush1.bf16.msra.mxu0 %v7697_v36  ;;  %4933 = vmatpush1.bf16.msra.mxu1 %v7700_v37  ;;  %v7738_v36 = vld [vmem:[#allocation8 + $0x54c] ss:$16 sps:$4 sm:$0xff]  }
 0x1f5   :  { %4590 = vmatprep.subr.bf16.mxu0 %v7705_v48  ;;  %4934 = vmatprep.subr.bf16.mxu1 %v7708_v38  ;;  %v7733_v48 = vld [vmem:[#allocation8 + $0x540] ss:$16 sps:$4 sm:$0xff]   ;;  %v7736_v38 = vld [vmem:[#allocation8 + $0x548] ss:$16 sps:$4 sm:$0xff]  }
 0x1f8   :  { %4591 = vmatpush1.bf16.msra.mxu0 %v7703_v39  ;;  %4935 = vmatpush1.bf16.msra.mxu1 %v7706_v40  ;;  %v1300_v0 = vpop.f32.mrb[12].mxu0  ;;  %v7741_v40 = vld [vmem:[#allocation8 + $0x564] ss:$16 sps:$4 sm:$0xff]  }
 0x1f9   :  { %4592 = vmatprep.subr.bf16.mxu0 %v7711_v41  ;;  %4936 = vmatprep.subr.bf16.mxu1 %v7714_v42  ;;  %v1301_v13 = vadd.f32 %v1300_v0, %v333_v43  ;;  %v1302_v51 = vpop.f32.mrb[13].mxu0  ;;  %v7744_v41 = vld [vmem:[#allocation8 + $0x56c] ss:$16 sps:$4 sm:$0xff]   ;;  %v7739_v42 = vld [vmem:[#allocation8 + $0x560] ss:$16 sps:$4 sm:$0xff]  }
 0x1fa   :  { %v1303_v55 = vadd.f32 %v1302_v51, %v337_v47  ;;  %v1304_v56 = vpop.f32.mrb[14].mxu0  ;;  %v1343_v16 = vpop.f32.mrb[12].mxu1  ;;  %v7748_v0 = vld [vmem:[#allocation8 + $0x588] ss:$16 sps:$4 sm:$0xff]  }
 0x1fb   :  { %v1364_v6 = vmax.f32 %v1301_v13, 0.0  ;;  %v1305_v57 = vadd.f32 %v1304_v56, %v333_v43  ;;  %v1306_v59 = vpop.f32.mrb[15].mxu0  ;;  %v1344_v21 = vadd.f32 %v1343_v16, %v341_v7  ;;  %v1345_v19 = vpop.f32.mrb[13].mxu1  ;;  %v7742_v43 = vld [vmem:[#allocation8 + $0x568] ss:$16 sps:$4 sm:$0xff]  }
 0x1fc   :  { %4593 = vmatpush1.bf16.msra.mxu0 %v7709_v45  ;;  %4937 = vmatpush1.bf16.msra.mxu1 %v7712_v46  ;;  %v1365_v60 = vmax.f32 %v1303_v55, 0.0  ;;  %v1307_v62 = vadd.f32 %v1306_v59, %v337_v47  ;;  %v1346_v12 = vadd.f32 %v1345_v19, %v345_v63  ;;  %v1347_v22 = vpop.f32.mrb[14].mxu1  ;;  %v7747_v45 = vld [vmem:[#allocation8 + $0x584] ss:$16 sps:$4 sm:$0xff]   ;;  %v7750_v46 = vld [vmem:[#allocation8 + $0x58c] ss:$16 sps:$4 sm:$0xff]  }
 0x1fd   :  { %4594 = vmatprep.subr.bf16.mxu0 %v7717_v49  ;;  %4938 = vmatprep.subr.bf16.mxu1 %v7720_v50  ;;  %v1380_v8 = vmax.f32 %v1305_v57, 0.0  ;;  %v1366_v24 = vmax.f32 %v1344_v21, 0.0  ;;  %v1348_v26 = vadd.f32 %v1347_v22, %v341_v7  ;;  %v1349_v28 = vpop.f32.mrb[15].mxu1  ;;  %v7745_v47 = vld [vmem:[#allocation8 + $0x580] ss:$16 sps:$4 sm:$0xff]  }
 0x1fe   :  { %v1381_v11 = vmax.f32 %v1307_v62, 0.0  ;;  %v1367_v31 = vmax.f32 %v1346_v12, 0.0  ;;  %v1350_v32 = vadd.f32 %v1349_v28, %v345_v63  ;;  %v7753_v49 = vld [vmem:[#allocation8 + $0x5a4] ss:$16 sps:$4 sm:$0xff]   ;;  %v7756_v50 = vld [vmem:[#allocation8 + $0x5ac] ss:$16 sps:$4 sm:$0xff]  }
 0x1ff   :  { %v8988_v17 = vpack.c.bf16 %v1380_v8, %v1364_v6  ;;  %v1382_v33 = vmax.f32 %v1348_v26, 0.0  ;;  %v7751_v13 = vld [vmem:[#allocation8 + $0x5a0] ss:$16 sps:$4 sm:$0xff]   ;;  %v7754_v51 = vld [vmem:[#allocation8 + $0x5a8] ss:$16 sps:$4 sm:$0xff]  }
 0x200   :  { %4595 = vmatpush1.bf16.msra.mxu0 %v7715_v52  ;;  %4939 = vmatpush1.bf16.msra.mxu1 %v7718_v53  ;;  %v8990_v5 = vpack.c.bf16 %v1381_v11, %v1365_v60  ;;  %v1383_v34 = vmax.f32 %v1350_v32, 0.0  ;;  %v7759_v52 = vld [vmem:[#allocation8 + $0x5c4] ss:$16 sps:$4 sm:$0xff]   ;;  %v7762_v53 = vld [vmem:[#allocation8 + $0x5cc] ss:$16 sps:$4 sm:$0xff]  }
 0x201   :  { %4596 = vmatprep.subr.bf16.mxu0 %v7723_v3  ;;  %4940 = vmatprep.subr.bf16.mxu1 %v7726_v4  ;;  %v8992_v37 = vpack.c.bf16 %v1382_v33, %v1366_v24  ;;  %v7757_v55 = vld [vmem:[#allocation8 + $0x5c0] ss:$16 sps:$4 sm:$0xff]   ;;  %v7760_v56 = vld [vmem:[#allocation8 + $0x5c8] ss:$16 sps:$4 sm:$0xff]   ;;  %v7765_v6 = vld [vmem:[#allocation8 + $0x5e4] ss:$16 sps:$4 sm:$0xff]  }
 0x202   :  { %v8994_v39 = vpack.c.bf16 %v1383_v34, %v1367_v31  ;;  %v7768_v57 = vld [vmem:[#allocation8 + $0x5ec] ss:$16 sps:$4 sm:$0xff]   ;;  %v7763_v59 = vld [vmem:[#allocation8 + $0x5e0] ss:$16 sps:$4 sm:$0xff]   ;;  %v7766_v7 = vld [vmem:[#allocation8 + $0x5e8] ss:$16 sps:$4 sm:$0xff]  }
 0x203   :  { %v7771_v60 = vld [vmem:[#allocation8 + $0x604] ss:$16 sps:$4 sm:$0xff]   ;;  %v7774_v62 = vld [vmem:[#allocation8 + $0x60c] ss:$16 sps:$4 sm:$0xff]   ;;  %v7769_v63 = vld [vmem:[#allocation8 + $0x600] ss:$16 sps:$4 sm:$0xff]  }
 0x204   :  { %4597 = vmatpush1.bf16.msra.mxu0 %v7721_v9  ;;  %4941 = vmatpush1.bf16.msra.mxu1 %v7724_v10  ;;  %v7772_v3 = vld [vmem:[#allocation8 + $0x608] ss:$16 sps:$4 sm:$0xff]   ;;  %v7777_v4 = vld [vmem:[#allocation8 + $0x624] ss:$16 sps:$4 sm:$0xff]   ;;  %v7780_v8 = vld [vmem:[#allocation8 + $0x62c] ss:$16 sps:$4 sm:$0xff]  }
 0x205   :  { %4598 = vmatprep.subr.bf16.mxu0 %v7729_v23  ;;  %4942 = vmatprep.subr.bf16.mxu1 %v7732_v25  ;;  %v7775_v9 = vld [vmem:[#allocation8 + $0x620] ss:$16 sps:$4 sm:$0xff]   ;;  %v7778_v10 = vld [vmem:[#allocation8 + $0x628] ss:$16 sps:$4 sm:$0xff]   ;;  %v7783_v11 = vld [vmem:[#allocation8 + $0x644] ss:$16 sps:$4 sm:$0xff]  }
 0x206   :  { %v7786_v16 = vld [vmem:[#allocation8 + $0x64c] ss:$16 sps:$4 sm:$0xff]   ;;  %v7781_v21 = vld [vmem:[#allocation8 + $0x640] ss:$16 sps:$4 sm:$0xff]   ;;  %v7784_v19 = vld [vmem:[#allocation8 + $0x648] ss:$16 sps:$4 sm:$0xff]  }
 0x207   :  { %v7789_v12 = vld [vmem:[#allocation8 + $0x664] ss:$16 sps:$4 sm:$0xff]   ;;  %v7792_v22 = vld [vmem:[#allocation8 + $0x66c] ss:$16 sps:$4 sm:$0xff]   ;;  %v7790_v23 = vld [vmem:[#allocation8 + $0x668] ss:$16 sps:$4 sm:$0xff]  }
 0x208   :  { %4599 = vmatpush1.bf16.msra.mxu0 %v7727_v29  ;;  %4943 = vmatpush1.bf16.msra.mxu1 %v7730_v54  ;;  %v7795_v25 = vld [vmem:[#allocation8 + $0x684] ss:$16 sps:$4 sm:$0xff]   ;;  %v7798_v24 = vld [vmem:[#allocation8 + $0x68c] ss:$16 sps:$4 sm:$0xff]   ;;  %v7793_v26 = vld [vmem:[#allocation8 + $0x680] ss:$16 sps:$4 sm:$0xff]  }
 0x209   :  { %4600 = vmatprep.subr.bf16.mxu0 %v7735_v35  ;;  %4944 = vmatprep.subr.bf16.mxu1 %v7738_v36  ;;  %v7801_v28 = vld [vmem:[#allocation8 + $0x6a4] ss:$16 sps:$4 sm:$0xff]   ;;  %v7804_v29 = vld [vmem:[#allocation8 + $0x6ac] ss:$16 sps:$4 sm:$0xff]   ;;  %v7799_v54 = vld [vmem:[#allocation8 + $0x6a0] ss:$16 sps:$4 sm:$0xff]  }
 0x20a   :  { %v7802_v31 = vld [vmem:[#allocation8 + $0x6a8] ss:$16 sps:$4 sm:$0xff]   ;;  %v7807_v32 = vld [vmem:[#allocation8 + $0x6c4] ss:$16 sps:$4 sm:$0xff]   ;;  %v7810_v33 = vld [vmem:[#allocation8 + $0x6cc] ss:$16 sps:$4 sm:$0xff]  }
 0x20b   :  { %v7805_v34 = vld [vmem:[#allocation8 + $0x6c0] ss:$16 sps:$4 sm:$0xff]   ;;  %v7808_v35 = vld [vmem:[#allocation8 + $0x6c8] ss:$16 sps:$4 sm:$0xff]   ;;  %v7813_v36 = vld [vmem:[#allocation8 + $0x6e4] ss:$16 sps:$4 sm:$0xff]  }
 0x20c   :  { %4601 = vmatpush1.bf16.msra.mxu0 %v7733_v48  ;;  %4945 = vmatpush1.bf16.msra.mxu1 %v7736_v38  ;;  %v7816_v48 = vld [vmem:[#allocation8 + $0x6ec] ss:$16 sps:$4 sm:$0xff]   ;;  %v7811_v38 = vld [vmem:[#allocation8 + $0x6e0] ss:$16 sps:$4 sm:$0xff]  }
 0x20d   :  { %4602 = vmatprep.subr.bf16.mxu0 %v7741_v40  ;;  %4946 = vmatprep.subr.bf16.mxu1 %v7744_v41  ;;  %v7814_v40 = vld [vmem:[#allocation8 + $0x6e8] ss:$16 sps:$4 sm:$0xff]   ;;  %v7819_v41 = vld [vmem:[#allocation8 + $0x704] ss:$16 sps:$4 sm:$0xff]  }
 0x210   :  { %4603 = vmatpush1.bf16.msra.mxu0 %v7739_v42  ;;  %4947 = vmatpush1.bf16.msra.mxu1 %v7742_v43  ;;  %v7822_v42 = vld [vmem:[#allocation8 + $0x70c] ss:$16 sps:$4 sm:$0xff]   ;;  %v7817_v43 = vld [vmem:[#allocation8 + $0x700] ss:$16 sps:$4 sm:$0xff]  }
 0x211   :  { %4604 = vmatprep.subr.bf16.mxu0 %v7747_v45  ;;  %4948 = vmatprep.subr.bf16.mxu1 %v7750_v46  ;;  %v7820_v45 = vld [vmem:[#allocation8 + $0x708] ss:$16 sps:$4 sm:$0xff]   ;;  %v7825_v46 = vld [vmem:[#allocation8 + $0x724] ss:$16 sps:$4 sm:$0xff]  }
 0x214   :  { %4605 = vmatpush1.bf16.msra.mxu0 %v7745_v47  ;;  %4949 = vmatpush1.bf16.msra.mxu1 %v7748_v0  ;;  %v7828_v47 = vld [vmem:[#allocation8 + $0x72c] ss:$16 sps:$4 sm:$0xff]   ;;  %v7823_v0 = vld [vmem:[#allocation8 + $0x720] ss:$16 sps:$4 sm:$0xff]  }
 0x215   :  { %4606 = vmatprep.subr.bf16.mxu0 %v7753_v49  ;;  %4950 = vmatprep.subr.bf16.mxu1 %v7756_v50  ;;  %v7826_v49 = vld [vmem:[#allocation8 + $0x728] ss:$16 sps:$4 sm:$0xff]   ;;  %v7831_v50 = vld [vmem:[#allocation8 + $0x744] ss:$16 sps:$4 sm:$0xff]  }
 0x218   :  { %4607 = vmatpush1.bf16.msra.mxu0 %v7751_v13  ;;  %4951 = vmatpush1.bf16.msra.mxu1 %v7754_v51  ;;  %v7834_v13 = vld [vmem:[#allocation8 + $0x74c] ss:$16 sps:$4 sm:$0xff]   ;;  %v7829_v51 = vld [vmem:[#allocation8 + $0x740] ss:$16 sps:$4 sm:$0xff]  }
 0x219   :  { %4608 = vmatprep.subr.bf16.mxu0 %v7759_v52  ;;  %4952 = vmatprep.subr.bf16.mxu1 %v7762_v53  ;;  %v7832_v52 = vld [vmem:[#allocation8 + $0x748] ss:$16 sps:$4 sm:$0xff]   ;;  %v7837_v53 = vld [vmem:[#allocation8 + $0x764] ss:$16 sps:$4 sm:$0xff]  }
 0x21c   :  { %4609 = vmatpush1.bf16.msra.mxu0 %v7757_v55  ;;  %4953 = vmatpush1.bf16.msra.mxu1 %v7760_v56  ;;  %v7840_v55 = vld [vmem:[#allocation8 + $0x76c] ss:$16 sps:$4 sm:$0xff]   ;;  %v7835_v56 = vld [vmem:[#allocation8 + $0x760] ss:$16 sps:$4 sm:$0xff]  }
 0x21d   :  { %4610 = vmatprep.subr.bf16.mxu0 %v7765_v6  ;;  %4954 = vmatprep.subr.bf16.mxu1 %v7768_v57  ;;  %v7838_v6 = vld [vmem:[#allocation8 + $0x768] ss:$16 sps:$4 sm:$0xff]   ;;  %v7843_v57 = vld [vmem:[#allocation8 + $0x784] ss:$16 sps:$4 sm:$0xff]  }
 0x220   :  { %4611 = vmatpush1.bf16.msra.mxu0 %v7763_v59  ;;  %4955 = vmatpush1.bf16.msra.mxu1 %v7766_v7  ;;  %v7846_v59 = vld [vmem:[#allocation8 + $0x78c] ss:$16 sps:$4 sm:$0xff]   ;;  %v7841_v7 = vld [vmem:[#allocation8 + $0x780] ss:$16 sps:$4 sm:$0xff]  }
 0x221   :  { %4623 = vmatprep.subr.bf16.mxu0 %v7771_v60  ;;  %4967 = vmatprep.subr.bf16.mxu1 %v7774_v62  ;;  %v7844_v60 = vld [vmem:[#allocation8 + $0x788] ss:$16 sps:$4 sm:$0xff]   ;;  %v7849_v62 = vld [vmem:[#allocation8 + $0x7a4] ss:$16 sps:$4 sm:$0xff]  }
 0x223   :  { %4613 = vmatmul.mubr.bf16.vlgmr.msra.gmra.mrb[16].mxu0 %v8946_v44  ;;  %4957 = vmatmul.mubr.bf16.vlgmr.msra.gmra.mrb[16].mxu1 %v8946_v44  ;;  %v7787_v44 = vld [vmem:[#allocation8 + $0x660] ss:$16 sps:$4 sm:$0xff]  }
 0x224   :  { %4624 = vmatpush1.bf16.msra.mxu0 %v7769_v63  ;;  %4968 = vmatpush1.bf16.msra.mxu1 %v7772_v3  ;;  %v7852_v63 = vld [vmem:[#allocation8 + $0x7ac] ss:$16 sps:$4 sm:$0xff]   ;;  %v7847_v3 = vld [vmem:[#allocation8 + $0x7a0] ss:$16 sps:$4 sm:$0xff]  }
 0x225   :  { %4625 = vmatprep.subr.bf16.mxu0 %v7777_v4  ;;  %4969 = vmatprep.subr.bf16.mxu1 %v7780_v8  ;;  %v7850_v4 = vld [vmem:[#allocation8 + $0x7a8] ss:$16 sps:$4 sm:$0xff]   ;;  %v7855_v8 = vld [vmem:[#allocation8 + $0x7c4] ss:$16 sps:$4 sm:$0xff]  }
 0x226   :  { %4655 = vmatprep.mubr.bf16.mxu0 %v8952_v2  ;;  %4999 = vmatprep.mubr.bf16.mxu1 %v8952_v2  ;;  %v7796_v2 = vld [vmem:[#allocation8 + $0x688] ss:$16 sps:$4 sm:$0xff]  }
 0x228   :  { %4626 = vmatpush1.bf16.msra.mxu0 %v7775_v9  ;;  %4970 = vmatpush1.bf16.msra.mxu1 %v7778_v10  ;;  %v7858_v9 = vld [vmem:[#allocation8 + $0x7cc] ss:$16 sps:$4 sm:$0xff]   ;;  %v7853_v10 = vld [vmem:[#allocation8 + $0x7c0] ss:$16 sps:$4 sm:$0xff]  }
 0x229   :  { %4627 = vmatprep.subr.bf16.mxu0 %v7783_v11  ;;  %4971 = vmatprep.subr.bf16.mxu1 %v7786_v16  ;;  %v7856_v11 = vld [vmem:[#allocation8 + $0x7c8] ss:$16 sps:$4 sm:$0xff]   ;;  %v7861_v16 = vld [vmem:[#allocation8 + $0x7e4] ss:$16 sps:$4 sm:$0xff]  }
 0x22c   :  { %4628 = vmatpush1.bf16.msra.mxu0 %v7781_v21  ;;  %4972 = vmatpush1.bf16.msra.mxu1 %v7784_v19  ;;  %v7864_v21 = vld [vmem:[#allocation8 + $0x7ec] ss:$16 sps:$4 sm:$0xff]   ;;  %v7859_v19 = vld [vmem:[#allocation8 + $0x7e0] ss:$16 sps:$4 sm:$0xff]  }
 0x22d   :  { %4629 = vmatprep.subr.bf16.mxu0 %v7789_v12  ;;  %4973 = vmatprep.subr.bf16.mxu1 %v7792_v22  ;;  %v7862_v12 = vld [vmem:[#allocation8 + $0x7e8] ss:$16 sps:$4 sm:$0xff]   ;;  %v7867_v22 = vld [vmem:[#allocation8 + $0x804] ss:$16 sps:$4 sm:$0xff]  }
 0x230   :  { %4630 = vmatpush1.bf16.msra.mxu0 %v7787_v44  ;;  %4974 = vmatpush1.bf16.msra.mxu1 %v7790_v23  ;;  %v7870_v44 = vld [vmem:[#allocation8 + $0x80c] ss:$16 sps:$4 sm:$0xff]   ;;  %v7865_v23 = vld [vmem:[#allocation8 + $0x800] ss:$16 sps:$4 sm:$0xff]  }
 0x231   :  { %4631 = vmatprep.subr.bf16.mxu0 %v7795_v25  ;;  %4975 = vmatprep.subr.bf16.mxu1 %v7798_v24  ;;  %v7868_v25 = vld [vmem:[#allocation8 + $0x808] ss:$16 sps:$4 sm:$0xff]   ;;  %v7873_v24 = vld [vmem:[#allocation8 + $0x824] ss:$16 sps:$4 sm:$0xff]  }
 0x234   :  { %4632 = vmatpush1.bf16.msra.mxu0 %v7793_v26  ;;  %4976 = vmatpush1.bf16.msra.mxu1 %v7796_v2  ;;  %v7876_v26 = vld [vmem:[#allocation8 + $0x82c] ss:$16 sps:$4 sm:$0xff]   ;;  %v7871_v2 = vld [vmem:[#allocation8 + $0x820] ss:$16 sps:$4 sm:$0xff]  }
 0x235   :  { %4633 = vmatprep.subr.bf16.mxu0 %v7801_v28  ;;  %4977 = vmatprep.subr.bf16.mxu1 %v7804_v29  ;;  %v7874_v28 = vld [vmem:[#allocation8 + $0x828] ss:$16 sps:$4 sm:$0xff]   ;;  %v7879_v29 = vld [vmem:[#allocation8 + $0x844] ss:$16 sps:$4 sm:$0xff]  }
 0x238   :  { %4634 = vmatpush1.bf16.msra.mxu0 %v7799_v54  ;;  %4978 = vmatpush1.bf16.msra.mxu1 %v7802_v31  ;;  %v7882_v54 = vld [vmem:[#allocation8 + $0x84c] ss:$16 sps:$4 sm:$0xff]   ;;  %v7877_v31 = vld [vmem:[#allocation8 + $0x840] ss:$16 sps:$4 sm:$0xff]  }
 0x239   :  { %4635 = vmatprep.subr.bf16.mxu0 %v7807_v32  ;;  %4979 = vmatprep.subr.bf16.mxu1 %v7810_v33  ;;  %v7880_v32 = vld [vmem:[#allocation8 + $0x848] ss:$16 sps:$4 sm:$0xff]   ;;  %v7885_v33 = vld [vmem:[#allocation8 + $0x864] ss:$16 sps:$4 sm:$0xff]  }
 0x23c   :  { %4636 = vmatpush1.bf16.msra.mxu0 %v7805_v34  ;;  %4980 = vmatpush1.bf16.msra.mxu1 %v7808_v35  ;;  %v7883_v34 = vld [vmem:[#allocation8 + $0x860] ss:$16 sps:$4 sm:$0xff]   ;;  %v7886_v35 = vld [vmem:[#allocation8 + $0x868] ss:$16 sps:$4 sm:$0xff]  }
 0x23d   :  { %4637 = vmatprep.subr.bf16.mxu0 %v7813_v36  ;;  %4981 = vmatprep.subr.bf16.mxu1 %v7816_v48  ;;  %v7891_v36 = vld [vmem:[#allocation8 + $0x884] ss:$16 sps:$4 sm:$0xff]   ;;  %v7889_v48 = vld [vmem:[#allocation8 + $0x880] ss:$16 sps:$4 sm:$0xff]  }
 0x240   :  { %4638 = vmatpush1.bf16.msra.mxu0 %v7811_v38  ;;  %4982 = vmatpush1.bf16.msra.mxu1 %v7814_v40  ;;  %v7892_v38 = vld [vmem:[#allocation8 + $0x888] ss:$16 sps:$4 sm:$0xff]   ;;  %v7897_v40 = vld [vmem:[#allocation8 + $0x8a4] ss:$16 sps:$4 sm:$0xff]  }
 0x241   :  { %4639 = vmatprep.subr.bf16.mxu0 %v7819_v41  ;;  %4983 = vmatprep.subr.bf16.mxu1 %v7822_v42  ;;  %v7900_v41 = vld [vmem:[#allocation8 + $0x8ac] ss:$16 sps:$4 sm:$0xff]   ;;  %v7895_v42 = vld [vmem:[#allocation8 + $0x8a0] ss:$16 sps:$4 sm:$0xff]  }
 0x244   :  { %4640 = vmatpush1.bf16.msra.mxu0 %v7817_v43  ;;  %4984 = vmatpush1.bf16.msra.mxu1 %v7820_v45  ;;  %v7898_v43 = vld [vmem:[#allocation8 + $0x8a8] ss:$16 sps:$4 sm:$0xff]   ;;  %v7903_v45 = vld [vmem:[#allocation8 + $0x8c4] ss:$16 sps:$4 sm:$0xff]  }
 0x245   :  { %4641 = vmatprep.subr.bf16.mxu0 %v7825_v46  ;;  %4985 = vmatprep.subr.bf16.mxu1 %v7828_v47  ;;  %v7906_v46 = vld [vmem:[#allocation8 + $0x8cc] ss:$16 sps:$4 sm:$0xff]   ;;  %v7901_v47 = vld [vmem:[#allocation8 + $0x8c0] ss:$16 sps:$4 sm:$0xff]  }
 0x248   :  { %4642 = vmatpush1.bf16.msra.mxu0 %v7823_v0  ;;  %4986 = vmatpush1.bf16.msra.mxu1 %v7826_v49  ;;  %v7904_v0 = vld [vmem:[#allocation8 + $0x8c8] ss:$16 sps:$4 sm:$0xff]   ;;  %v7909_v49 = vld [vmem:[#allocation8 + $0x8e4] ss:$16 sps:$4 sm:$0xff]  }
 0x249   :  { %4643 = vmatprep.subr.bf16.mxu0 %v7831_v50  ;;  %4987 = vmatprep.subr.bf16.mxu1 %v7834_v13  ;;  %v7912_v50 = vld [vmem:[#allocation8 + $0x8ec] ss:$16 sps:$4 sm:$0xff]   ;;  %v7907_v13 = vld [vmem:[#allocation8 + $0x8e0] ss:$16 sps:$4 sm:$0xff]  }
 0x24c   :  { %4644 = vmatpush1.bf16.msra.mxu0 %v7829_v51  ;;  %4988 = vmatpush1.bf16.msra.mxu1 %v7832_v52  ;;  %v7910_v51 = vld [vmem:[#allocation8 + $0x8e8] ss:$16 sps:$4 sm:$0xff]   ;;  %v7915_v52 = vld [vmem:[#allocation8 + $0x904] ss:$16 sps:$4 sm:$0xff]  }
 0x24d   :  { %4645 = vmatprep.subr.bf16.mxu0 %v7837_v53  ;;  %4989 = vmatprep.subr.bf16.mxu1 %v7840_v55  ;;  %v7918_v53 = vld [vmem:[#allocation8 + $0x90c] ss:$16 sps:$4 sm:$0xff]   ;;  %v7913_v55 = vld [vmem:[#allocation8 + $0x900] ss:$16 sps:$4 sm:$0xff]  }
 0x250   :  { %4646 = vmatpush1.bf16.msra.mxu0 %v7835_v56  ;;  %4990 = vmatpush1.bf16.msra.mxu1 %v7838_v6  ;;  %v7916_v56 = vld [vmem:[#allocation8 + $0x908] ss:$16 sps:$4 sm:$0xff]   ;;  %v7921_v6 = vld [vmem:[#allocation8 + $0x924] ss:$16 sps:$4 sm:$0xff]  }
 0x251   :  { %4647 = vmatprep.subr.bf16.mxu0 %v7843_v57  ;;  %4991 = vmatprep.subr.bf16.mxu1 %v7846_v59  ;;  %v7924_v57 = vld [vmem:[#allocation8 + $0x92c] ss:$16 sps:$4 sm:$0xff]   ;;  %v7919_v59 = vld [vmem:[#allocation8 + $0x920] ss:$16 sps:$4 sm:$0xff]  }
 0x254   :  { %4648 = vmatpush1.bf16.msra.mxu0 %v7841_v7  ;;  %4992 = vmatpush1.bf16.msra.mxu1 %v7844_v60  ;;  %v7922_v7 = vld [vmem:[#allocation8 + $0x928] ss:$16 sps:$4 sm:$0xff]   ;;  %v7927_v60 = vld [vmem:[#allocation8 + $0x944] ss:$16 sps:$4 sm:$0xff]  }
 0x255   :  { %4649 = vmatprep.subr.bf16.mxu0 %v7849_v62  ;;  %4993 = vmatprep.subr.bf16.mxu1 %v7852_v63  ;;  %v7930_v62 = vld [vmem:[#allocation8 + $0x94c] ss:$16 sps:$4 sm:$0xff]   ;;  %v7925_v63 = vld [vmem:[#allocation8 + $0x940] ss:$16 sps:$4 sm:$0xff]  }
 0x258   :  { %4650 = vmatpush1.bf16.msra.mxu0 %v7847_v3  ;;  %4994 = vmatpush1.bf16.msra.mxu1 %v7850_v4  ;;  %v7928_v3 = vld [vmem:[#allocation8 + $0x948] ss:$16 sps:$4 sm:$0xff]   ;;  %v7933_v4 = vld [vmem:[#allocation8 + $0x964] ss:$16 sps:$4 sm:$0xff]  }
 0x259   :  { %4651 = vmatprep.subr.bf16.mxu0 %v7855_v8  ;;  %4995 = vmatprep.subr.bf16.mxu1 %v7858_v9  ;;  %v7936_v8 = vld [vmem:[#allocation8 + $0x96c] ss:$16 sps:$4 sm:$0xff]   ;;  %v7931_v9 = vld [vmem:[#allocation8 + $0x960] ss:$16 sps:$4 sm:$0xff]  }
 0x25c   :  { %4652 = vmatpush1.bf16.msra.mxu0 %v7853_v10  ;;  %4996 = vmatpush1.bf16.msra.mxu1 %v7856_v11  ;;  %v7934_v10 = vld [vmem:[#allocation8 + $0x968] ss:$16 sps:$4 sm:$0xff]   ;;  %v7939_v11 = vld [vmem:[#allocation8 + $0x984] ss:$16 sps:$4 sm:$0xff]  }
 0x25d   :  { %4653 = vmatprep.subr.bf16.mxu0 %v7861_v16  ;;  %4997 = vmatprep.subr.bf16.mxu1 %v7864_v21  ;;  %v7942_v16 = vld [vmem:[#allocation8 + $0x98c] ss:$16 sps:$4 sm:$0xff]   ;;  %v7937_v21 = vld [vmem:[#allocation8 + $0x980] ss:$16 sps:$4 sm:$0xff]  }
 0x260   :  { %4654 = vmatpush1.bf16.msra.mxu0 %v7859_v19  ;;  %4998 = vmatpush1.bf16.msra.mxu1 %v7862_v12  ;;  %v7940_v19 = vld [vmem:[#allocation8 + $0x988] ss:$16 sps:$4 sm:$0xff]   ;;  %v7945_v12 = vld [vmem:[#allocation8 + $0x9a4] ss:$16 sps:$4 sm:$0xff]  }
 0x261   :  { %4666 = vmatprep.subr.bf16.mxu0 %v7867_v22  ;;  %5010 = vmatprep.subr.bf16.mxu1 %v7870_v44  ;;  %v7948_v22 = vld [vmem:[#allocation8 + $0x9ac] ss:$16 sps:$4 sm:$0xff]   ;;  %v7943_v44 = vld [vmem:[#allocation8 + $0x9a0] ss:$16 sps:$4 sm:$0xff]  }
 0x263   :  { %4656 = vmatmul.mubr.bf16.vlgmr.msra.gmra.mrb[16].mxu0 %v8950_v1  ;;  %5000 = vmatmul.mubr.bf16.vlgmr.msra.gmra.mrb[16].mxu1 %v8950_v1  ;;  %v7888_v1 = vld [vmem:[#allocation8 + $0x86c] ss:$16 sps:$4 sm:$0xff]  }
 0x264   :  { %4667 = vmatpush1.bf16.msra.mxu0 %v7865_v23  ;;  %4698 = vmatprep.mubr.bf16.mxu0 %v8966_v61  ;;  %v7946_v23 = vld [vmem:[#allocation8 + $0x9a8] ss:$16 sps:$4 sm:$0xff]  }
 0x265   :  { %5011 = vmatpush1.bf16.msra.mxu1 %v7868_v25  ;;  %5042 = vmatprep.mubr.bf16.mxu1 %v8966_v61  ;;  %v7894_v61 = vld [vmem:[#allocation8 + $0x88c] ss:$16 sps:$4 sm:$0xff]   ;;  %v7951_v25 = vld [vmem:[#allocation8 + $0x9c4] ss:$16 sps:$4 sm:$0xff]  }
 0x266   :  { %4668 = vmatprep.subr.bf16.mxu0 %v7873_v24  ;;  %5012 = vmatprep.subr.bf16.mxu1 %v7876_v26  ;;  %v7954_v24 = vld [vmem:[#allocation8 + $0x9cc] ss:$16 sps:$4 sm:$0xff]   ;;  %v7949_v26 = vld [vmem:[#allocation8 + $0x9c0] ss:$16 sps:$4 sm:$0xff]  }
 0x268   :  { %4669 = vmatpush1.bf16.msra.mxu0 %v7871_v2  ;;  %v7952_v2 = vld [vmem:[#allocation8 + $0x9c8] ss:$16 sps:$4 sm:$0xff]  }
 0x269   :  { %5013 = vmatpush1.bf16.msra.mxu1 %v7874_v28  ;;  %4670 = vmatprep.subr.bf16.mxu0 %v7879_v29  ;;  %v7957_v28 = vld [vmem:[#allocation8 + $0x9e4] ss:$16 sps:$4 sm:$0xff]   ;;  %v7960_v29 = vld [vmem:[#allocation8 + $0x9ec] ss:$16 sps:$4 sm:$0xff]  }
 0x26a   :  { %5014 = vmatprep.subr.bf16.mxu1 %v7882_v54  ;;  %v7955_v54 = vld [vmem:[#allocation8 + $0x9e0] ss:$16 sps:$4 sm:$0xff]  }
 0x26c   :  { %4671 = vmatpush1.bf16.msra.mxu0 %v7877_v31  ;;  %v7958_v31 = vld [vmem:[#allocation8 + $0x9e8] ss:$16 sps:$4 sm:$0xff]  }
 0x26d   :  { %5015 = vmatpush1.bf16.msra.mxu1 %v7880_v32  ;;  %4672 = vmatprep.subr.bf16.mxu0 %v7885_v33  ;;  %v7963_v32 = vld [vmem:[#allocation8 + $0xa04] ss:$16 sps:$4 sm:$0xff]   ;;  %v7966_v33 = vld [vmem:[#allocation8 + $0xa0c] ss:$16 sps:$4 sm:$0xff]  }
 0x26e   :  { %5016 = vmatprep.subr.bf16.mxu1 %v7888_v1  ;;  %v7961_v1 = vld [vmem:[#allocation8 + $0xa00] ss:$16 sps:$4 sm:$0xff]  }
 0x270   :  { %4673 = vmatpush1.bf16.msra.mxu0 %v7883_v34  ;;  %v7964_v34 = vld [vmem:[#allocation8 + $0xa08] ss:$16 sps:$4 sm:$0xff]  }
 0x271   :  { %5017 = vmatpush1.bf16.msra.mxu1 %v7886_v35  ;;  %4674 = vmatprep.subr.bf16.mxu0 %v7891_v36  ;;  %v7969_v35 = vld [vmem:[#allocation8 + $0xa24] ss:$16 sps:$4 sm:$0xff]   ;;  %v7972_v36 = vld [vmem:[#allocation8 + $0xa2c] ss:$16 sps:$4 sm:$0xff]  }
 0x272   :  { %5018 = vmatprep.subr.bf16.mxu1 %v7894_v61  ;;  %v7967_v61 = vld [vmem:[#allocation8 + $0xa20] ss:$16 sps:$4 sm:$0xff]  }
 0x274   :  { %4675 = vmatpush1.bf16.msra.mxu0 %v7889_v48  ;;  %v7970_v48 = vld [vmem:[#allocation8 + $0xa28] ss:$16 sps:$4 sm:$0xff]  }
 0x275   :  { %5019 = vmatpush1.bf16.msra.mxu1 %v7892_v38  ;;  %4676 = vmatprep.subr.bf16.mxu0 %v7897_v40  ;;  %v7975_v38 = vld [vmem:[#allocation8 + $0xa44] ss:$16 sps:$4 sm:$0xff]   ;;  %v7978_v40 = vld [vmem:[#allocation8 + $0xa4c] ss:$16 sps:$4 sm:$0xff]  }
 0x276   :  { %5020 = vmatprep.subr.bf16.mxu1 %v7900_v41  ;;  %v7973_v41 = vld [vmem:[#allocation8 + $0xa40] ss:$16 sps:$4 sm:$0xff]  }
 0x278   :  { %4677 = vmatpush1.bf16.msra.mxu0 %v7895_v42  ;;  %v7976_v42 = vld [vmem:[#allocation8 + $0xa48] ss:$16 sps:$4 sm:$0xff]  }
 0x279   :  { %5021 = vmatpush1.bf16.msra.mxu1 %v7898_v43  ;;  %4678 = vmatprep.subr.bf16.mxu0 %v7903_v45  ;;  %v7981_v43 = vld [vmem:[#allocation8 + $0xa64] ss:$16 sps:$4 sm:$0xff]   ;;  %v7979_v45 = vld [vmem:[#allocation8 + $0xa60] ss:$16 sps:$4 sm:$0xff]  }
 0x27a   :  { %5022 = vmatprep.subr.bf16.mxu1 %v7906_v46  ;;  %v7982_v46 = vld [vmem:[#allocation8 + $0xa68] ss:$16 sps:$4 sm:$0xff]  }
 0x27c   :  { %4679 = vmatpush1.bf16.msra.mxu0 %v7901_v47  ;;  %v7987_v47 = vld [vmem:[#allocation8 + $0xa84] ss:$16 sps:$4 sm:$0xff]  }
 0x27d   :  { %5023 = vmatpush1.bf16.msra.mxu1 %v7904_v0  ;;  %4680 = vmatprep.subr.bf16.mxu0 %v7909_v49  ;;  %v7990_v0 = vld [vmem:[#allocation8 + $0xa8c] ss:$16 sps:$4 sm:$0xff]   ;;  %v7988_v49 = vld [vmem:[#allocation8 + $0xa88] ss:$16 sps:$4 sm:$0xff]  }
 0x27e   :  { %5024 = vmatprep.subr.bf16.mxu1 %v7912_v50  ;;  %v7993_v50 = vld [vmem:[#allocation8 + $0xaa4] ss:$16 sps:$4 sm:$0xff]  }
 0x280   :  { %4681 = vmatpush1.bf16.msra.mxu0 %v7907_v13  ;;  %v7996_v13 = vld [vmem:[#allocation8 + $0xaac] ss:$16 sps:$4 sm:$0xff]  }
 0x281   :  { %5025 = vmatpush1.bf16.msra.mxu1 %v7910_v51  ;;  %4682 = vmatprep.subr.bf16.mxu0 %v7915_v52  ;;  %v7991_v51 = vld [vmem:[#allocation8 + $0xaa0] ss:$16 sps:$4 sm:$0xff]   ;;  %v7994_v52 = vld [vmem:[#allocation8 + $0xaa8] ss:$16 sps:$4 sm:$0xff]  }
 0x282   :  { %5026 = vmatprep.subr.bf16.mxu1 %v7918_v53  ;;  %v7999_v53 = vld [vmem:[#allocation8 + $0xac4] ss:$16 sps:$4 sm:$0xff]  }
 0x284   :  { %4683 = vmatpush1.bf16.msra.mxu0 %v7913_v55  ;;  %v8002_v55 = vld [vmem:[#allocation8 + $0xacc] ss:$16 sps:$4 sm:$0xff]  }
 0x285   :  { %5027 = vmatpush1.bf16.msra.mxu1 %v7916_v56  ;;  %4684 = vmatprep.subr.bf16.mxu0 %v7921_v6  ;;  %v7997_v56 = vld [vmem:[#allocation8 + $0xac0] ss:$16 sps:$4 sm:$0xff]   ;;  %v8000_v6 = vld [vmem:[#allocation8 + $0xac8] ss:$16 sps:$4 sm:$0xff]  }
 0x286   :  { %5028 = vmatprep.subr.bf16.mxu1 %v7924_v57  ;;  %v8005_v57 = vld [vmem:[#allocation8 + $0xae4] ss:$16 sps:$4 sm:$0xff]  }
 0x288   :  { %4685 = vmatpush1.bf16.msra.mxu0 %v7919_v59  ;;  %v8008_v59 = vld [vmem:[#allocation8 + $0xaec] ss:$16 sps:$4 sm:$0xff]  }
 0x289   :  { %5029 = vmatpush1.bf16.msra.mxu1 %v7922_v7  ;;  %4686 = vmatprep.subr.bf16.mxu0 %v7927_v60  ;;  %v8003_v7 = vld [vmem:[#allocation8 + $0xae0] ss:$16 sps:$4 sm:$0xff]   ;;  %v8006_v60 = vld [vmem:[#allocation8 + $0xae8] ss:$16 sps:$4 sm:$0xff]  }
 0x28a   :  { %5030 = vmatprep.subr.bf16.mxu1 %v7930_v62  ;;  %v8011_v62 = vld [vmem:[#allocation8 + $0xb04] ss:$16 sps:$4 sm:$0xff]  }
 0x28c   :  { %4687 = vmatpush1.bf16.msra.mxu0 %v7925_v63  ;;  %v8014_v63 = vld [vmem:[#allocation8 + $0xb0c] ss:$16 sps:$4 sm:$0xff]  }
 0x28d   :  { %5031 = vmatpush1.bf16.msra.mxu1 %v7928_v3  ;;  %4688 = vmatprep.subr.bf16.mxu0 %v7933_v4  ;;  %v8009_v3 = vld [vmem:[#allocation8 + $0xb00] ss:$16 sps:$4 sm:$0xff]   ;;  %v8012_v4 = vld [vmem:[#allocation8 + $0xb08] ss:$16 sps:$4 sm:$0xff]  }
 0x28e   :  { %5032 = vmatprep.subr.bf16.mxu1 %v7936_v8  ;;  %v8017_v8 = vld [vmem:[#allocation8 + $0xb24] ss:$16 sps:$4 sm:$0xff]  }
 0x290   :  { %4689 = vmatpush1.bf16.msra.mxu0 %v7931_v9  ;;  %v8020_v9 = vld [vmem:[#allocation8 + $0xb2c] ss:$16 sps:$4 sm:$0xff]  }
 0x291   :  { %5033 = vmatpush1.bf16.msra.mxu1 %v7934_v10  ;;  %4690 = vmatprep.subr.bf16.mxu0 %v7939_v11  ;;  %v8015_v10 = vld [vmem:[#allocation8 + $0xb20] ss:$16 sps:$4 sm:$0xff]   ;;  %v8018_v11 = vld [vmem:[#allocation8 + $0xb28] ss:$16 sps:$4 sm:$0xff]  }
 0x292   :  { %5034 = vmatprep.subr.bf16.mxu1 %v7942_v16  ;;  %v8023_v16 = vld [vmem:[#allocation8 + $0xb44] ss:$16 sps:$4 sm:$0xff]  }
 0x294   :  { %4691 = vmatpush1.bf16.msra.mxu0 %v7937_v21  ;;  %v8026_v21 = vld [vmem:[#allocation8 + $0xb4c] ss:$16 sps:$4 sm:$0xff]  }
 0x295   :  { %5035 = vmatpush1.bf16.msra.mxu1 %v7940_v19  ;;  %4692 = vmatprep.subr.bf16.mxu0 %v7945_v12  ;;  %v8021_v19 = vld [vmem:[#allocation8 + $0xb40] ss:$16 sps:$4 sm:$0xff]   ;;  %v8024_v12 = vld [vmem:[#allocation8 + $0xb48] ss:$16 sps:$4 sm:$0xff]  }
 0x296   :  { %5036 = vmatprep.subr.bf16.mxu1 %v7948_v22  ;;  %v8029_v22 = vld [vmem:[#allocation8 + $0xb64] ss:$16 sps:$4 sm:$0xff]  }
 0x298   :  { %4693 = vmatpush1.bf16.msra.mxu0 %v7943_v44  ;;  %v8032_v44 = vld [vmem:[#allocation8 + $0xb6c] ss:$16 sps:$4 sm:$0xff]  }
 0x299   :  { %5037 = vmatpush1.bf16.msra.mxu1 %v7946_v23  ;;  %4694 = vmatprep.subr.bf16.mxu0 %v7951_v25  ;;  %v8027_v23 = vld [vmem:[#allocation8 + $0xb60] ss:$16 sps:$4 sm:$0xff]   ;;  %v8030_v25 = vld [vmem:[#allocation8 + $0xb68] ss:$16 sps:$4 sm:$0xff]  }
 0x29a   :  { %5038 = vmatprep.subr.bf16.mxu1 %v7954_v24  ;;  %v8035_v24 = vld [vmem:[#allocation8 + $0xb84] ss:$16 sps:$4 sm:$0xff]  }
 0x29c   :  { %4695 = vmatpush1.bf16.msra.mxu0 %v7949_v26  ;;  %v8038_v26 = vld [vmem:[#allocation8 + $0xb8c] ss:$16 sps:$4 sm:$0xff]  }
 0x29d   :  { %5039 = vmatpush1.bf16.msra.mxu1 %v7952_v2  ;;  %4696 = vmatprep.subr.bf16.mxu0 %v7957_v28  ;;  %v8033_v2 = vld [vmem:[#allocation8 + $0xb80] ss:$16 sps:$4 sm:$0xff]   ;;  %v8036_v28 = vld [vmem:[#allocation8 + $0xb88] ss:$16 sps:$4 sm:$0xff]  }
 0x29e   :  { %5040 = vmatprep.subr.bf16.mxu1 %v7960_v29  ;;  %v8041_v29 = vld [vmem:[#allocation8 + $0xba4] ss:$16 sps:$4 sm:$0xff]  }
 0x2a0   :  { %4697 = vmatpush1.bf16.msra.mxu0 %v7955_v54  ;;  %v8044_v54 = vld [vmem:[#allocation8 + $0xbac] ss:$16 sps:$4 sm:$0xff]  }
 0x2a1   :  { %5041 = vmatpush1.bf16.msra.mxu1 %v7958_v31  ;;  %4709 = vmatprep.subr.bf16.mxu0 %v7963_v32  ;;  %v8039_v31 = vld [vmem:[#allocation8 + $0xba0] ss:$16 sps:$4 sm:$0xff]   ;;  %v8042_v32 = vld [vmem:[#allocation8 + $0xba8] ss:$16 sps:$4 sm:$0xff]  }
 0x2a2   :  { %5053 = vmatprep.subr.bf16.mxu1 %v7966_v33  ;;  %v8047_v33 = vld [vmem:[#allocation8 + $0xbc4] ss:$16 sps:$4 sm:$0xff]  }
 0x2a3   :  { %4699 = vmatmul.mubr.bf16.vlgmr.msra.gmra.mrb[16].mxu0 %v8964_v58 }
 0x2a4   :  { %5043 = vmatmul.mubr.bf16.vlgmr.msra.gmra.mrb[16].mxu1 %v8964_v58  ;;  %4710 = vmatpush1.bf16.msra.mxu0 %v7961_v1  ;;  %v7984_v58 = vld [vmem:[#allocation8 + $0xa6c] ss:$16 sps:$4 sm:$0xff]  }
 0x2a5   :  { %4741 = vmatprep.mubr.bf16.mxu0 %v8974_v30  ;;  %5054 = vmatpush1.bf16.msra.mxu1 %v7964_v34  ;;  %v8050_v1 = vld [vmem:[#allocation8 + $0xbcc] ss:$16 sps:$4 sm:$0xff]   ;;  %v8045_v34 = vld [vmem:[#allocation8 + $0xbc0] ss:$16 sps:$4 sm:$0xff]  }
 0x2a6   :  { %5085 = vmatprep.mubr.bf16.mxu1 %v8974_v30  ;;  %4711 = vmatprep.subr.bf16.mxu0 %v7969_v35  ;;  %v7985_v30 = vld [vmem:[#allocation8 + $0xa80] ss:$16 sps:$4 sm:$0xff]   ;;  %v8048_v35 = vld [vmem:[#allocation8 + $0xbc8] ss:$16 sps:$4 sm:$0xff]  }
 0x2a7   :  { %5055 = vmatprep.subr.bf16.mxu1 %v7972_v36  ;;  %v8053_v36 = vld [vmem:[#allocation8 + $0xbe4] ss:$16 sps:$4 sm:$0xff]  }
 0x2a8   :  { %4712 = vmatpush1.bf16.msra.mxu0 %v7967_v61  ;;  %v8056_v61 = vld [vmem:[#allocation8 + $0xbec] ss:$16 sps:$4 sm:$0xff]  }
 0x2a9   :  { %5056 = vmatpush1.bf16.msra.mxu1 %v7970_v48  ;;  %4713 = vmatprep.subr.bf16.mxu0 %v7975_v38  ;;  %v8051_v48 = vld [vmem:[#allocation8 + $0xbe0] ss:$16 sps:$4 sm:$0xff]   ;;  %v8054_v38 = vld [vmem:[#allocation8 + $0xbe8] ss:$16 sps:$4 sm:$0xff]  }
 0x2aa   :  { %5057 = vmatprep.subr.bf16.mxu1 %v7978_v40  ;;  %v8059_v40 = vld [vmem:[#allocation8 + $0xc04] ss:$16 sps:$4 sm:$0xff]  }
 0x2ac   :  { %4714 = vmatpush1.bf16.msra.mxu0 %v7973_v41  ;;  %v8062_v41 = vld [vmem:[#allocation8 + $0xc0c] ss:$16 sps:$4 sm:$0xff]  }
 0x2ad   :  { %5058 = vmatpush1.bf16.msra.mxu1 %v7976_v42  ;;  %4715 = vmatprep.subr.bf16.mxu0 %v7981_v43  ;;  %v8057_v42 = vld [vmem:[#allocation8 + $0xc00] ss:$16 sps:$4 sm:$0xff]   ;;  %v8060_v43 = vld [vmem:[#allocation8 + $0xc08] ss:$16 sps:$4 sm:$0xff]  }
 0x2ae   :  { %5059 = vmatprep.subr.bf16.mxu1 %v7984_v58  ;;  %v8065_v58 = vld [vmem:[#allocation8 + $0xc24] ss:$16 sps:$4 sm:$0xff]  }
 0x2b0   :  { %4716 = vmatpush1.bf16.msra.mxu0 %v7979_v45  ;;  %v8068_v45 = vld [vmem:[#allocation8 + $0xc2c] ss:$16 sps:$4 sm:$0xff]  }
 0x2b1   :  { %5060 = vmatpush1.bf16.msra.mxu1 %v7982_v46  ;;  %4717 = vmatprep.subr.bf16.mxu0 %v7987_v47  ;;  %v8063_v46 = vld [vmem:[#allocation8 + $0xc20] ss:$16 sps:$4 sm:$0xff]   ;;  %v8066_v47 = vld [vmem:[#allocation8 + $0xc28] ss:$16 sps:$4 sm:$0xff]  }
 0x2b2   :  { %5061 = vmatprep.subr.bf16.mxu1 %v7990_v0  ;;  %v8071_v0 = vld [vmem:[#allocation8 + $0xc44] ss:$16 sps:$4 sm:$0xff]  }
 0x2b4   :  { %4718 = vmatpush1.bf16.msra.mxu0 %v7985_v30  ;;  %v8074_v30 = vld [vmem:[#allocation8 + $0xc4c] ss:$16 sps:$4 sm:$0xff]  }
 0x2b5   :  { %5062 = vmatpush1.bf16.msra.mxu1 %v7988_v49  ;;  %4719 = vmatprep.subr.bf16.mxu0 %v7993_v50  ;;  %v8069_v49 = vld [vmem:[#allocation8 + $0xc40] ss:$16 sps:$4 sm:$0xff]   ;;  %v8072_v50 = vld [vmem:[#allocation8 + $0xc48] ss:$16 sps:$4 sm:$0xff]  }
 0x2b6   :  { %5063 = vmatprep.subr.bf16.mxu1 %v7996_v13  ;;  %v8077_v13 = vld [vmem:[#allocation8 + $0xc64] ss:$16 sps:$4 sm:$0xff]  }
 0x2b8   :  { %4720 = vmatpush1.bf16.msra.mxu0 %v7991_v51  ;;  %v8075_v51 = vld [vmem:[#allocation8 + $0xc60] ss:$16 sps:$4 sm:$0xff]  }
 0x2b9   :  { %5064 = vmatpush1.bf16.msra.mxu1 %v7994_v52  ;;  %4721 = vmatprep.subr.bf16.mxu0 %v7999_v53  ;;  %v8078_v52 = vld [vmem:[#allocation8 + $0xc68] ss:$16 sps:$4 sm:$0xff]   ;;  %v8083_v53 = vld [vmem:[#allocation8 + $0xc84] ss:$16 sps:$4 sm:$0xff]  }
 0x2ba   :  { %5065 = vmatprep.subr.bf16.mxu1 %v8002_v55  ;;  %v8086_v55 = vld [vmem:[#allocation8 + $0xc8c] ss:$16 sps:$4 sm:$0xff]  }
 0x2bc   :  { %4722 = vmatpush1.bf16.msra.mxu0 %v7997_v56  ;;  %v8084_v56 = vld [vmem:[#allocation8 + $0xc88] ss:$16 sps:$4 sm:$0xff]  }
 0x2bd   :  { %5066 = vmatpush1.bf16.msra.mxu1 %v8000_v6  ;;  %4723 = vmatprep.subr.bf16.mxu0 %v8005_v57  ;;  %v8089_v6 = vld [vmem:[#allocation8 + $0xca4] ss:$16 sps:$4 sm:$0xff]   ;;  %v8092_v57 = vld [vmem:[#allocation8 + $0xcac] ss:$16 sps:$4 sm:$0xff]  }
 0x2be   :  { %5067 = vmatprep.subr.bf16.mxu1 %v8008_v59  ;;  %v8087_v59 = vld [vmem:[#allocation8 + $0xca0] ss:$16 sps:$4 sm:$0xff]  }
 0x2c0   :  { %4724 = vmatpush1.bf16.msra.mxu0 %v8003_v7  ;;  %v8090_v7 = vld [vmem:[#allocation8 + $0xca8] ss:$16 sps:$4 sm:$0xff]  }
 0x2c1   :  { %5068 = vmatpush1.bf16.msra.mxu1 %v8006_v60  ;;  %4725 = vmatprep.subr.bf16.mxu0 %v8011_v62  ;;  %v8095_v60 = vld [vmem:[#allocation8 + $0xcc4] ss:$16 sps:$4 sm:$0xff]   ;;  %v8098_v62 = vld [vmem:[#allocation8 + $0xccc] ss:$16 sps:$4 sm:$0xff]  }
 0x2c2   :  { %5069 = vmatprep.subr.bf16.mxu1 %v8014_v63  ;;  %v8093_v63 = vld [vmem:[#allocation8 + $0xcc0] ss:$16 sps:$4 sm:$0xff]  }
 0x2c4   :  { %4726 = vmatpush1.bf16.msra.mxu0 %v8009_v3  ;;  %v8096_v3 = vld [vmem:[#allocation8 + $0xcc8] ss:$16 sps:$4 sm:$0xff]  }
 0x2c5   :  { %5070 = vmatpush1.bf16.msra.mxu1 %v8012_v4  ;;  %4727 = vmatprep.subr.bf16.mxu0 %v8017_v8  ;;  %v8101_v4 = vld [vmem:[#allocation8 + $0xce4] ss:$16 sps:$4 sm:$0xff]   ;;  %v8104_v8 = vld [vmem:[#allocation8 + $0xcec] ss:$16 sps:$4 sm:$0xff]  }
 0x2c6   :  { %5071 = vmatprep.subr.bf16.mxu1 %v8020_v9  ;;  %v8099_v9 = vld [vmem:[#allocation8 + $0xce0] ss:$16 sps:$4 sm:$0xff]  }
 0x2c8   :  { %4728 = vmatpush1.bf16.msra.mxu0 %v8015_v10  ;;  %v8102_v10 = vld [vmem:[#allocation8 + $0xce8] ss:$16 sps:$4 sm:$0xff]  }
 0x2c9   :  { %5072 = vmatpush1.bf16.msra.mxu1 %v8018_v11  ;;  %4729 = vmatprep.subr.bf16.mxu0 %v8023_v16  ;;  %v8107_v11 = vld [vmem:[#allocation8 + $0xd04] ss:$16 sps:$4 sm:$0xff]   ;;  %v8110_v16 = vld [vmem:[#allocation8 + $0xd0c] ss:$16 sps:$4 sm:$0xff]  }
 0x2ca   :  { %5073 = vmatprep.subr.bf16.mxu1 %v8026_v21  ;;  %v8105_v21 = vld [vmem:[#allocation8 + $0xd00] ss:$16 sps:$4 sm:$0xff]  }
 0x2cc   :  { %4730 = vmatpush1.bf16.msra.mxu0 %v8021_v19  ;;  %v8108_v19 = vld [vmem:[#allocation8 + $0xd08] ss:$16 sps:$4 sm:$0xff]  }
 0x2cd   :  { %5074 = vmatpush1.bf16.msra.mxu1 %v8024_v12  ;;  %4731 = vmatprep.subr.bf16.mxu0 %v8029_v22  ;;  %v8113_v12 = vld [vmem:[#allocation8 + $0xd24] ss:$16 sps:$4 sm:$0xff]   ;;  %v8116_v22 = vld [vmem:[#allocation8 + $0xd2c] ss:$16 sps:$4 sm:$0xff]  }
 0x2ce   :  { %5075 = vmatprep.subr.bf16.mxu1 %v8032_v44  ;;  %v8111_v44 = vld [vmem:[#allocation8 + $0xd20] ss:$16 sps:$4 sm:$0xff]  }
 0x2d0   :  { %4732 = vmatpush1.bf16.msra.mxu0 %v8027_v23  ;;  %v8114_v23 = vld [vmem:[#allocation8 + $0xd28] ss:$16 sps:$4 sm:$0xff]  }
 0x2d1   :  { %5076 = vmatpush1.bf16.msra.mxu1 %v8030_v25  ;;  %4733 = vmatprep.subr.bf16.mxu0 %v8035_v24  ;;  %v8119_v25 = vld [vmem:[#allocation8 + $0xd44] ss:$16 sps:$4 sm:$0xff]   ;;  %v8122_v24 = vld [vmem:[#allocation8 + $0xd4c] ss:$16 sps:$4 sm:$0xff]  }
 0x2d2   :  { %5077 = vmatprep.subr.bf16.mxu1 %v8038_v26  ;;  %v8117_v26 = vld [vmem:[#allocation8 + $0xd40] ss:$16 sps:$4 sm:$0xff]  }
 0x2d4   :  { %4734 = vmatpush1.bf16.msra.mxu0 %v8033_v2  ;;  %v8120_v2 = vld [vmem:[#allocation8 + $0xd48] ss:$16 sps:$4 sm:$0xff]  }
 0x2d5   :  { %5078 = vmatpush1.bf16.msra.mxu1 %v8036_v28  ;;  %4735 = vmatprep.subr.bf16.mxu0 %v8041_v29  ;;  %v8125_v28 = vld [vmem:[#allocation8 + $0xd64] ss:$16 sps:$4 sm:$0xff]   ;;  %v8128_v29 = vld [vmem:[#allocation8 + $0xd6c] ss:$16 sps:$4 sm:$0xff]  }
 0x2d6   :  { %5079 = vmatprep.subr.bf16.mxu1 %v8044_v54  ;;  %v8123_v54 = vld [vmem:[#allocation8 + $0xd60] ss:$16 sps:$4 sm:$0xff]  }
 0x2d8   :  { %4736 = vmatpush1.bf16.msra.mxu0 %v8039_v31  ;;  %v8126_v31 = vld [vmem:[#allocation8 + $0xd68] ss:$16 sps:$4 sm:$0xff]  }
 0x2d9   :  { %5080 = vmatpush1.bf16.msra.mxu1 %v8042_v32  ;;  %4737 = vmatprep.subr.bf16.mxu0 %v8047_v33  ;;  %v8131_v32 = vld [vmem:[#allocation8 + $0xd84] ss:$16 sps:$4 sm:$0xff]   ;;  %v8134_v33 = vld [vmem:[#allocation8 + $0xd8c] ss:$16 sps:$4 sm:$0xff]  }
 0x2da   :  { %5081 = vmatprep.subr.bf16.mxu1 %v8050_v1  ;;  %v8129_v1 = vld [vmem:[#allocation8 + $0xd80] ss:$16 sps:$4 sm:$0xff]  }
 0x2dc   :  { %4738 = vmatpush1.bf16.msra.mxu0 %v8045_v34  ;;  %v8132_v34 = vld [vmem:[#allocation8 + $0xd88] ss:$16 sps:$4 sm:$0xff]  }
 0x2dd   :  { %5082 = vmatpush1.bf16.msra.mxu1 %v8048_v35  ;;  %4739 = vmatprep.subr.bf16.mxu0 %v8053_v36  ;;  %v8137_v35 = vld [vmem:[#allocation8 + $0xda4] ss:$16 sps:$4 sm:$0xff]   ;;  %v8140_v36 = vld [vmem:[#allocation8 + $0xdac] ss:$16 sps:$4 sm:$0xff]  }
 0x2de   :  { %5083 = vmatprep.subr.bf16.mxu1 %v8056_v61  ;;  %v8135_v61 = vld [vmem:[#allocation8 + $0xda0] ss:$16 sps:$4 sm:$0xff]  }
 0x2e0   :  { %4740 = vmatpush1.bf16.msra.mxu0 %v8051_v48  ;;  %v8138_v48 = vld [vmem:[#allocation8 + $0xda8] ss:$16 sps:$4 sm:$0xff]  }
 0x2e1   :  { %5084 = vmatpush1.bf16.msra.mxu1 %v8054_v38  ;;  %4752 = vmatprep.subr.bf16.mxu0 %v8059_v40  ;;  %v8143_v38 = vld [vmem:[#allocation8 + $0xdc4] ss:$16 sps:$4 sm:$0xff]   ;;  %v8146_v40 = vld [vmem:[#allocation8 + $0xdcc] ss:$16 sps:$4 sm:$0xff]  }
 0x2e2   :  { %5096 = vmatprep.subr.bf16.mxu1 %v8062_v41  ;;  %v8141_v41 = vld [vmem:[#allocation8 + $0xdc0] ss:$16 sps:$4 sm:$0xff]  }
 0x2e3   :  { %4742 = vmatmul.mubr.bf16.vlgmr.msra.gmra.mrb[16].mxu0 %v8970_v27 }
 0x2e4   :  { %5086 = vmatmul.mubr.bf16.vlgmr.msra.gmra.mrb[16].mxu1 %v8970_v27  ;;  %4753 = vmatpush1.bf16.msra.mxu0 %v8057_v42  ;;  %v8080_v27 = vld [vmem:[#allocation8 + $0xc6c] ss:$16 sps:$4 sm:$0xff]   ;;  %v8144_v42 = vld [vmem:[#allocation8 + $0xdc8] ss:$16 sps:$4 sm:$0xff]  }
 0x2e5   :  { %4784 = vmatprep.mubr.bf16.mxu0 %v8990_v5  ;;  %5097 = vmatpush1.bf16.msra.mxu1 %v8060_v43  ;;  %v8149_v43 = vld [vmem:[#allocation8 + $0xde4] ss:$16 sps:$4 sm:$0xff]  }
 0x2e6   :  { %5128 = vmatprep.mubr.bf16.mxu1 %v8990_v5  ;;  %4754 = vmatprep.subr.bf16.mxu0 %v8065_v58  ;;  %v8081_v5 = vld [vmem:[#allocation8 + $0xc80] ss:$16 sps:$4 sm:$0xff]   ;;  %v8152_v58 = vld [vmem:[#allocation8 + $0xdec] ss:$16 sps:$4 sm:$0xff]  }
 0x2e7   :  { %5098 = vmatprep.subr.bf16.mxu1 %v8068_v45  ;;  %v8147_v45 = vld [vmem:[#allocation8 + $0xde0] ss:$16 sps:$4 sm:$0xff]  }
 0x2e8   :  { %4755 = vmatpush1.bf16.msra.mxu0 %v8063_v46  ;;  %v8150_v46 = vld [vmem:[#allocation8 + $0xde8] ss:$16 sps:$4 sm:$0xff]  }
 0x2e9   :  { %5099 = vmatpush1.bf16.msra.mxu1 %v8066_v47  ;;  %4756 = vmatprep.subr.bf16.mxu0 %v8071_v0  ;;  %v8155_v47 = vld [vmem:[#allocation8 + $0xe04] ss:$16 sps:$4 sm:$0xff]   ;;  %v8158_v0 = vld [vmem:[#allocation8 + $0xe0c] ss:$16 sps:$4 sm:$0xff]  }
 0x2ea   :  { %5100 = vmatprep.subr.bf16.mxu1 %v8074_v30  ;;  %v8153_v30 = vld [vmem:[#allocation8 + $0xe00] ss:$16 sps:$4 sm:$0xff]  }
 0x2ec   :  { %4757 = vmatpush1.bf16.msra.mxu0 %v8069_v49  ;;  %v8156_v49 = vld [vmem:[#allocation8 + $0xe08] ss:$16 sps:$4 sm:$0xff]  }
 0x2ed   :  { %5101 = vmatpush1.bf16.msra.mxu1 %v8072_v50  ;;  %4758 = vmatprep.subr.bf16.mxu0 %v8077_v13  ;;  %v8161_v50 = vld [vmem:[#allocation8 + $0xe24] ss:$16 sps:$4 sm:$0xff]   ;;  %v8164_v13 = vld [vmem:[#allocation8 + $0xe2c] ss:$16 sps:$4 sm:$0xff]  }
 0x2ee   :  { %5102 = vmatprep.subr.bf16.mxu1 %v8080_v27  ;;  %v8159_v27 = vld [vmem:[#allocation8 + $0xe20] ss:$16 sps:$4 sm:$0xff]  }
 0x2f0   :  { %4759 = vmatpush1.bf16.msra.mxu0 %v8075_v51  ;;  %v8162_v51 = vld [vmem:[#allocation8 + $0xe28] ss:$16 sps:$4 sm:$0xff]  }
 0x2f1   :  { %5103 = vmatpush1.bf16.msra.mxu1 %v8078_v52  ;;  %4760 = vmatprep.subr.bf16.mxu0 %v8083_v53  ;;  %v8167_v52 = vld [vmem:[#allocation8 + $0xe44] ss:$16 sps:$4 sm:$0xff]   ;;  %v8170_v53 = vld [vmem:[#allocation8 + $0xe4c] ss:$16 sps:$4 sm:$0xff]  }
 0x2f2   :  { %5104 = vmatprep.subr.bf16.mxu1 %v8086_v55  ;;  %v8165_v55 = vld [vmem:[#allocation8 + $0xe40] ss:$16 sps:$4 sm:$0xff]  }
 0x2f4   :  { %4761 = vmatpush1.bf16.msra.mxu0 %v8081_v5  ;;  %v8168_v5 = vld [vmem:[#allocation8 + $0xe48] ss:$16 sps:$4 sm:$0xff]  }
 0x2f5   :  { %5105 = vmatpush1.bf16.msra.mxu1 %v8084_v56  ;;  %4762 = vmatprep.subr.bf16.mxu0 %v8089_v6  ;;  %v8173_v56 = vld [vmem:[#allocation8 + $0xe64] ss:$16 sps:$4 sm:$0xff]   ;;  %v8171_v6 = vld [vmem:[#allocation8 + $0xe60] ss:$16 sps:$4 sm:$0xff]  }
 0x2f6   :  { %5106 = vmatprep.subr.bf16.mxu1 %v8092_v57  ;;  %v8174_v57 = vld [vmem:[#allocation8 + $0xe68] ss:$16 sps:$4 sm:$0xff]  }
 0x2f8   :  { %4763 = vmatpush1.bf16.msra.mxu0 %v8087_v59  ;;  %v8179_v59 = vld [vmem:[#allocation8 + $0xe84] ss:$16 sps:$4 sm:$0xff]  }
 0x2f9   :  { %5107 = vmatpush1.bf16.msra.mxu1 %v8090_v7  ;;  %4764 = vmatprep.subr.bf16.mxu0 %v8095_v60  ;;  %v8182_v7 = vld [vmem:[#allocation8 + $0xe8c] ss:$16 sps:$4 sm:$0xff]   ;;  %v8180_v60 = vld [vmem:[#allocation8 + $0xe88] ss:$16 sps:$4 sm:$0xff]  }
 0x2fa   :  { %5108 = vmatprep.subr.bf16.mxu1 %v8098_v62  ;;  %v8185_v62 = vld [vmem:[#allocation8 + $0xea4] ss:$16 sps:$4 sm:$0xff]  }
 0x2fc   :  { %4765 = vmatpush1.bf16.msra.mxu0 %v8093_v63  ;;  %v8188_v63 = vld [vmem:[#allocation8 + $0xeac] ss:$16 sps:$4 sm:$0xff]  }
 0x2fd   :  { %5109 = vmatpush1.bf16.msra.mxu1 %v8096_v3  ;;  %4766 = vmatprep.subr.bf16.mxu0 %v8101_v4  ;;  %v8183_v3 = vld [vmem:[#allocation8 + $0xea0] ss:$16 sps:$4 sm:$0xff]   ;;  %v8186_v4 = vld [vmem:[#allocation8 + $0xea8] ss:$16 sps:$4 sm:$0xff]  }
 0x2fe   :  { %5110 = vmatprep.subr.bf16.mxu1 %v8104_v8  ;;  %v8191_v8 = vld [vmem:[#allocation8 + $0xec4] ss:$16 sps:$4 sm:$0xff]  }
 0x300   :  { %4767 = vmatpush1.bf16.msra.mxu0 %v8099_v9  ;;  %v8194_v9 = vld [vmem:[#allocation8 + $0xecc] ss:$16 sps:$4 sm:$0xff]  }
 0x301   :  { %5111 = vmatpush1.bf16.msra.mxu1 %v8102_v10  ;;  %4768 = vmatprep.subr.bf16.mxu0 %v8107_v11  ;;  %v8189_v10 = vld [vmem:[#allocation8 + $0xec0] ss:$16 sps:$4 sm:$0xff]   ;;  %v8192_v11 = vld [vmem:[#allocation8 + $0xec8] ss:$16 sps:$4 sm:$0xff]  }
 0x302   :  { %5112 = vmatprep.subr.bf16.mxu1 %v8110_v16  ;;  %v8197_v16 = vld [vmem:[#allocation8 + $0xee4] ss:$16 sps:$4 sm:$0xff]  }
 0x304   :  { %4769 = vmatpush1.bf16.msra.mxu0 %v8105_v21  ;;  %v8200_v21 = vld [vmem:[#allocation8 + $0xeec] ss:$16 sps:$4 sm:$0xff]  }
 0x305   :  { %5113 = vmatpush1.bf16.msra.mxu1 %v8108_v19  ;;  %4770 = vmatprep.subr.bf16.mxu0 %v8113_v12  ;;  %v8195_v19 = vld [vmem:[#allocation8 + $0xee0] ss:$16 sps:$4 sm:$0xff]   ;;  %v8198_v12 = vld [vmem:[#allocation8 + $0xee8] ss:$16 sps:$4 sm:$0xff]  }
 0x306   :  { %5114 = vmatprep.subr.bf16.mxu1 %v8116_v22  ;;  %v8203_v22 = vld [vmem:[#allocation8 + $0xf04] ss:$16 sps:$4 sm:$0xff]  }
 0x308   :  { %4771 = vmatpush1.bf16.msra.mxu0 %v8111_v44  ;;  %v8206_v44 = vld [vmem:[#allocation8 + $0xf0c] ss:$16 sps:$4 sm:$0xff]  }
 0x309   :  { %5115 = vmatpush1.bf16.msra.mxu1 %v8114_v23  ;;  %4772 = vmatprep.subr.bf16.mxu0 %v8119_v25  ;;  %v8201_v23 = vld [vmem:[#allocation8 + $0xf00] ss:$16 sps:$4 sm:$0xff]   ;;  %v8204_v25 = vld [vmem:[#allocation8 + $0xf08] ss:$16 sps:$4 sm:$0xff]  }
 0x30a   :  { %5116 = vmatprep.subr.bf16.mxu1 %v8122_v24  ;;  %v8209_v24 = vld [vmem:[#allocation8 + $0xf24] ss:$16 sps:$4 sm:$0xff]  }
 0x30c   :  { %4773 = vmatpush1.bf16.msra.mxu0 %v8117_v26  ;;  %v8212_v26 = vld [vmem:[#allocation8 + $0xf2c] ss:$16 sps:$4 sm:$0xff]  }
 0x30d   :  { %5117 = vmatpush1.bf16.msra.mxu1 %v8120_v2  ;;  %4774 = vmatprep.subr.bf16.mxu0 %v8125_v28  ;;  %v8207_v2 = vld [vmem:[#allocation8 + $0xf20] ss:$16 sps:$4 sm:$0xff]   ;;  %v8210_v28 = vld [vmem:[#allocation8 + $0xf28] ss:$16 sps:$4 sm:$0xff]  }
 0x30e   :  { %5118 = vmatprep.subr.bf16.mxu1 %v8128_v29  ;;  %v8215_v29 = vld [vmem:[#allocation8 + $0xf44] ss:$16 sps:$4 sm:$0xff]  }
 0x310   :  { %4775 = vmatpush1.bf16.msra.mxu0 %v8123_v54  ;;  %v8218_v54 = vld [vmem:[#allocation8 + $0xf4c] ss:$16 sps:$4 sm:$0xff]  }
 0x311   :  { %5119 = vmatpush1.bf16.msra.mxu1 %v8126_v31  ;;  %4776 = vmatprep.subr.bf16.mxu0 %v8131_v32  ;;  %v8213_v31 = vld [vmem:[#allocation8 + $0xf40] ss:$16 sps:$4 sm:$0xff]   ;;  %v8216_v32 = vld [vmem:[#allocation8 + $0xf48] ss:$16 sps:$4 sm:$0xff]  }
 0x312   :  { %5120 = vmatprep.subr.bf16.mxu1 %v8134_v33  ;;  %v8221_v33 = vld [vmem:[#allocation8 + $0xf64] ss:$16 sps:$4 sm:$0xff]  }
 0x314   :  { %4777 = vmatpush1.bf16.msra.mxu0 %v8129_v1  ;;  %v8224_v1 = vld [vmem:[#allocation8 + $0xf6c] ss:$16 sps:$4 sm:$0xff]  }
 0x315   :  { %5121 = vmatpush1.bf16.msra.mxu1 %v8132_v34  ;;  %4778 = vmatprep.subr.bf16.mxu0 %v8137_v35  ;;  %v8219_v34 = vld [vmem:[#allocation8 + $0xf60] ss:$16 sps:$4 sm:$0xff]   ;;  %v8222_v35 = vld [vmem:[#allocation8 + $0xf68] ss:$16 sps:$4 sm:$0xff]  }
 0x316   :  { %5122 = vmatprep.subr.bf16.mxu1 %v8140_v36  ;;  %v8227_v36 = vld [vmem:[#allocation8 + $0xf84] ss:$16 sps:$4 sm:$0xff]  }
 0x318   :  { %4779 = vmatpush1.bf16.msra.mxu0 %v8135_v61  ;;  %v8230_v61 = vld [vmem:[#allocation8 + $0xf8c] ss:$16 sps:$4 sm:$0xff]  }
 0x319   :  { %5123 = vmatpush1.bf16.msra.mxu1 %v8138_v48  ;;  %4780 = vmatprep.subr.bf16.mxu0 %v8143_v38  ;;  %v8225_v48 = vld [vmem:[#allocation8 + $0xf80] ss:$16 sps:$4 sm:$0xff]   ;;  %v8228_v38 = vld [vmem:[#allocation8 + $0xf88] ss:$16 sps:$4 sm:$0xff]  }
 0x31a   :  { %5124 = vmatprep.subr.bf16.mxu1 %v8146_v40  ;;  %v8233_v40 = vld [vmem:[#allocation8 + $0xfa4] ss:$16 sps:$4 sm:$0xff]  }
 0x31c   :  { %4781 = vmatpush1.bf16.msra.mxu0 %v8141_v41  ;;  %v8236_v41 = vld [vmem:[#allocation8 + $0xfac] ss:$16 sps:$4 sm:$0xff]  }
 0x31d   :  { %5125 = vmatpush1.bf16.msra.mxu1 %v8144_v42  ;;  %4782 = vmatprep.subr.bf16.mxu0 %v8149_v43  ;;  %v8231_v42 = vld [vmem:[#allocation8 + $0xfa0] ss:$16 sps:$4 sm:$0xff]   ;;  %v8234_v43 = vld [vmem:[#allocation8 + $0xfa8] ss:$16 sps:$4 sm:$0xff]  }
 0x31e   :  { %5126 = vmatprep.subr.bf16.mxu1 %v8152_v58  ;;  %v8239_v58 = vld [vmem:[#allocation8 + $0xfc4] ss:$16 sps:$4 sm:$0xff]  }
 0x320   :  { %4783 = vmatpush1.bf16.msra.mxu0 %v8147_v45  ;;  %v8242_v45 = vld [vmem:[#allocation8 + $0xfcc] ss:$16 sps:$4 sm:$0xff]  }
 0x321   :  { %5127 = vmatpush1.bf16.msra.mxu1 %v8150_v46  ;;  %4795 = vmatprep.subr.bf16.mxu0 %v8155_v47  ;;  %v8237_v46 = vld [vmem:[#allocation8 + $0xfc0] ss:$16 sps:$4 sm:$0xff]   ;;  %v8240_v47 = vld [vmem:[#allocation8 + $0xfc8] ss:$16 sps:$4 sm:$0xff]  }
 0x322   :  { %5139 = vmatprep.subr.bf16.mxu1 %v8158_v0  ;;  %v8245_v0 = vld [vmem:[#allocation8 + $0xfe4] ss:$16 sps:$4 sm:$0xff]  }
 0x323   :  { %4785 = vmatmul.mubr.bf16.vlgmr.msra.gmra.mrb[16].mxu0 %v8988_v17 }
 0x324   :  { %5129 = vmatmul.mubr.bf16.vlgmr.msra.gmra.mrb[16].mxu1 %v8988_v17  ;;  %4796 = vmatpush1.bf16.msra.mxu0 %v8153_v30  ;;  %v8176_v17 = vld [vmem:[#allocation8 + $0xe6c] ss:$16 sps:$4 sm:$0xff]  }
 0x325   :  { %4827 = vmatprep.mubr.bf16.mxu0 %v8994_v39  ;;  %5140 = vmatpush1.bf16.msra.mxu1 %v8156_v49  ;;  %v8248_v30 = vld [vmem:[#allocation8 + $0xfec] ss:$16 sps:$4 sm:$0xff]   ;;  %v8243_v49 = vld [vmem:[#allocation8 + $0xfe0] ss:$16 sps:$4 sm:$0xff]  }
 0x326   :  { %5171 = vmatprep.mubr.bf16.mxu1 %v8994_v39  ;;  %4797 = vmatprep.subr.bf16.mxu0 %v8161_v50  ;;  %v8177_v39 = vld [vmem:[#allocation8 + $0xe80] ss:$16 sps:$4 sm:$0xff]   ;;  %v8246_v50 = vld [vmem:[#allocation8 + $0xfe8] ss:$16 sps:$4 sm:$0xff]  }
 0x327   :  { %5141 = vmatprep.subr.bf16.mxu1 %v8164_v13  ;;  %v8251_v13 = vld [vmem:[#allocation11 + $0x4] ss:$16 sps:$4 sm:$0xff]  }
 0x328   :  { %4798 = vmatpush1.bf16.msra.mxu0 %v8159_v27  ;;  %v8254_v27 = vld [vmem:[#allocation11 + $0xc] ss:$16 sps:$4 sm:$0xff]  }
 0x329   :  { %5142 = vmatpush1.bf16.msra.mxu1 %v8162_v51  ;;  %4799 = vmatprep.subr.bf16.mxu0 %v8167_v52  ;;  %v8249_v51 = vld [vmem:[#allocation11] ss:$16 sps:$4 sm:$0xff]   ;;  %v8252_v52 = vld [vmem:[#allocation11 + $0x8] ss:$16 sps:$4 sm:$0xff]  }
 0x32a   :  { %5143 = vmatprep.subr.bf16.mxu1 %v8170_v53  ;;  %v8257_v53 = vld [vmem:[#allocation11 + $0x24] ss:$16 sps:$4 sm:$0xff]  }
 0x32c   :  { %4800 = vmatpush1.bf16.msra.mxu0 %v8165_v55  ;;  %v8260_v55 = vld [vmem:[#allocation11 + $0x2c] ss:$16 sps:$4 sm:$0xff]  }
 0x32d   :  { %5144 = vmatpush1.bf16.msra.mxu1 %v8168_v5  ;;  %4801 = vmatprep.subr.bf16.mxu0 %v8173_v56  ;;  %v8255_v5 = vld [vmem:[#allocation11 + $0x20] ss:$16 sps:$4 sm:$0xff]   ;;  %v8258_v56 = vld [vmem:[#allocation11 + $0x28] ss:$16 sps:$4 sm:$0xff]  }
 0x32e   :  { %5145 = vmatprep.subr.bf16.mxu1 %v8176_v17  ;;  %v8263_v17 = vld [vmem:[#allocation11 + $0x44] ss:$16 sps:$4 sm:$0xff]  }
 0x330   :  { %4802 = vmatpush1.bf16.msra.mxu0 %v8171_v6  ;;  %v8266_v6 = vld [vmem:[#allocation11 + $0x4c] ss:$16 sps:$4 sm:$0xff]  }
 0x331   :  { %5146 = vmatpush1.bf16.msra.mxu1 %v8174_v57  ;;  %4803 = vmatprep.subr.bf16.mxu0 %v8179_v59  ;;  %v8261_v57 = vld [vmem:[#allocation11 + $0x40] ss:$16 sps:$4 sm:$0xff]   ;;  %v8264_v59 = vld [vmem:[#allocation11 + $0x48] ss:$16 sps:$4 sm:$0xff]  }
 0x332   :  { %5147 = vmatprep.subr.bf16.mxu1 %v8182_v7  ;;  %v8269_v7 = vld [vmem:[#allocation11 + $0x64] ss:$16 sps:$4 sm:$0xff]  }
 0x334   :  { %4804 = vmatpush1.bf16.msra.mxu0 %v8177_v39  ;;  %v8272_v39 = vld [vmem:[#allocation11 + $0x6c] ss:$16 sps:$4 sm:$0xff]  }
 0x335   :  { %5148 = vmatpush1.bf16.msra.mxu1 %v8180_v60  ;;  %4805 = vmatprep.subr.bf16.mxu0 %v8185_v62  ;;  %v8267_v60 = vld [vmem:[#allocation11 + $0x60] ss:$16 sps:$4 sm:$0xff]   ;;  %v8275_v62 = vld [vmem:[#allocation11 + $0x84] ss:$16 sps:$4 sm:$0xff]  }
 0x336   :  { %5149 = vmatprep.subr.bf16.mxu1 %v8188_v63  ;;  %v8278_v63 = vld [vmem:[#allocation11 + $0x8c] ss:$16 sps:$4 sm:$0xff]  }
 0x338   :  { %4806 = vmatpush1.bf16.msra.mxu0 %v8183_v3  ;;  %v8273_v3 = vld [vmem:[#allocation11 + $0x80] ss:$16 sps:$4 sm:$0xff]  }
 0x339   :  { %5150 = vmatpush1.bf16.msra.mxu1 %v8186_v4  ;;  %4807 = vmatprep.subr.bf16.mxu0 %v8191_v8  ;;  %v8276_v4 = vld [vmem:[#allocation11 + $0x88] ss:$16 sps:$4 sm:$0xff]   ;;  %v8281_v8 = vld [vmem:[#allocation11 + $0xa4] ss:$16 sps:$4 sm:$0xff]  }
 0x33a   :  { %5151 = vmatprep.subr.bf16.mxu1 %v8194_v9  ;;  %v8284_v9 = vld [vmem:[#allocation11 + $0xac] ss:$16 sps:$4 sm:$0xff]  }
 0x33c   :  { %4808 = vmatpush1.bf16.msra.mxu0 %v8189_v10  ;;  %v8279_v10 = vld [vmem:[#allocation11 + $0xa0] ss:$16 sps:$4 sm:$0xff]  }
 0x33d   :  { %5152 = vmatpush1.bf16.msra.mxu1 %v8192_v11  ;;  %4809 = vmatprep.subr.bf16.mxu0 %v8197_v16  ;;  %v8282_v11 = vld [vmem:[#allocation11 + $0xa8] ss:$16 sps:$4 sm:$0xff]   ;;  %v8287_v16 = vld [vmem:[#allocation11 + $0xc4] ss:$16 sps:$4 sm:$0xff]  }
 0x33e   :  { %5153 = vmatprep.subr.bf16.mxu1 %v8200_v21  ;;  %v8290_v21 = vld [vmem:[#allocation11 + $0xcc] ss:$16 sps:$4 sm:$0xff]  }
 0x340   :  { %4810 = vmatpush1.bf16.msra.mxu0 %v8195_v19  ;;  %v8285_v19 = vld [vmem:[#allocation11 + $0xc0] ss:$16 sps:$4 sm:$0xff]  }
 0x341   :  { %5154 = vmatpush1.bf16.msra.mxu1 %v8198_v12  ;;  %4811 = vmatprep.subr.bf16.mxu0 %v8203_v22  ;;  %v8288_v12 = vld [vmem:[#allocation11 + $0xc8] ss:$16 sps:$4 sm:$0xff]   ;;  %v8293_v22 = vld [vmem:[#allocation11 + $0xe4] ss:$16 sps:$4 sm:$0xff]  }
 0x342   :  { %5155 = vmatprep.subr.bf16.mxu1 %v8206_v44  ;;  %v8296_v44 = vld [vmem:[#allocation11 + $0xec] ss:$16 sps:$4 sm:$0xff]  }
 0x344   :  { %4812 = vmatpush1.bf16.msra.mxu0 %v8201_v23  ;;  %v8291_v23 = vld [vmem:[#allocation11 + $0xe0] ss:$16 sps:$4 sm:$0xff]  }
 0x345   :  { %5156 = vmatpush1.bf16.msra.mxu1 %v8204_v25  ;;  %4813 = vmatprep.subr.bf16.mxu0 %v8209_v24  ;;  %v8294_v25 = vld [vmem:[#allocation11 + $0xe8] ss:$16 sps:$4 sm:$0xff]   ;;  %v8299_v24 = vld [vmem:[#allocation11 + $0x104] ss:$16 sps:$4 sm:$0xff]  }
 0x346   :  { %5157 = vmatprep.subr.bf16.mxu1 %v8212_v26  ;;  %v8302_v26 = vld [vmem:[#allocation11 + $0x10c] ss:$16 sps:$4 sm:$0xff]  }
 0x348   :  { %4814 = vmatpush1.bf16.msra.mxu0 %v8207_v2  ;;  %v8297_v2 = vld [vmem:[#allocation11 + $0x100] ss:$16 sps:$4 sm:$0xff]  }
 0x349   :  { %5158 = vmatpush1.bf16.msra.mxu1 %v8210_v28  ;;  %4815 = vmatprep.subr.bf16.mxu0 %v8215_v29  ;;  %v8300_v28 = vld [vmem:[#allocation11 + $0x108] ss:$16 sps:$4 sm:$0xff]   ;;  %v8305_v29 = vld [vmem:[#allocation11 + $0x124] ss:$16 sps:$4 sm:$0xff]  }
 0x34a   :  { %5159 = vmatprep.subr.bf16.mxu1 %v8218_v54  ;;  %v8308_v54 = vld [vmem:[#allocation11 + $0x12c] ss:$16 sps:$4 sm:$0xff]  }
 0x34c   :  { %4816 = vmatpush1.bf16.msra.mxu0 %v8213_v31  ;;  %v8303_v31 = vld [vmem:[#allocation11 + $0x120] ss:$16 sps:$4 sm:$0xff]  }
 0x34d   :  { %5160 = vmatpush1.bf16.msra.mxu1 %v8216_v32  ;;  %4817 = vmatprep.subr.bf16.mxu0 %v8221_v33  ;;  %v8306_v32 = vld [vmem:[#allocation11 + $0x128] ss:$16 sps:$4 sm:$0xff]   ;;  %v8311_v33 = vld [vmem:[#allocation11 + $0x144] ss:$16 sps:$4 sm:$0xff]  }
 0x34e   :  { %5161 = vmatprep.subr.bf16.mxu1 %v8224_v1  ;;  %v8314_v1 = vld [vmem:[#allocation11 + $0x14c] ss:$16 sps:$4 sm:$0xff]  }
 0x350   :  { %4818 = vmatpush1.bf16.msra.mxu0 %v8219_v34  ;;  %v8309_v34 = vld [vmem:[#allocation11 + $0x140] ss:$16 sps:$4 sm:$0xff]  }
 0x351   :  { %5162 = vmatpush1.bf16.msra.mxu1 %v8222_v35  ;;  %4819 = vmatprep.subr.bf16.mxu0 %v8227_v36  ;;  %v8312_v35 = vld [vmem:[#allocation11 + $0x148] ss:$16 sps:$4 sm:$0xff]   ;;  %v8317_v36 = vld [vmem:[#allocation11 + $0x164] ss:$16 sps:$4 sm:$0xff]  }
 0x352   :  { %5163 = vmatprep.subr.bf16.mxu1 %v8230_v61  ;;  %v8320_v61 = vld [vmem:[#allocation11 + $0x16c] ss:$16 sps:$4 sm:$0xff]  }
 0x354   :  { %4820 = vmatpush1.bf16.msra.mxu0 %v8225_v48  ;;  %v8315_v48 = vld [vmem:[#allocation11 + $0x160] ss:$16 sps:$4 sm:$0xff]  }
 0x355   :  { %5164 = vmatpush1.bf16.msra.mxu1 %v8228_v38  ;;  %4821 = vmatprep.subr.bf16.mxu0 %v8233_v40  ;;  %v8318_v38 = vld [vmem:[#allocation11 + $0x168] ss:$16 sps:$4 sm:$0xff]   ;;  %v8323_v40 = vld [vmem:[#allocation11 + $0x184] ss:$16 sps:$4 sm:$0xff]  }
 0x356   :  { %5165 = vmatprep.subr.bf16.mxu1 %v8236_v41  ;;  %v8326_v41 = vld [vmem:[#allocation11 + $0x18c] ss:$16 sps:$4 sm:$0xff]  }
 0x358   :  { %4822 = vmatpush1.bf16.msra.mxu0 %v8231_v42  ;;  %v8321_v42 = vld [vmem:[#allocation11 + $0x180] ss:$16 sps:$4 sm:$0xff]  }
 0x359   :  { %5166 = vmatpush1.bf16.msra.mxu1 %v8234_v43  ;;  %4823 = vmatprep.subr.bf16.mxu0 %v8239_v58  ;;  %v8324_v43 = vld [vmem:[#allocation11 + $0x188] ss:$16 sps:$4 sm:$0xff]   ;;  %v8329_v58 = vld [vmem:[#allocation11 + $0x1a4] ss:$16 sps:$4 sm:$0xff]  }
 0x35a   :  { %5167 = vmatprep.subr.bf16.mxu1 %v8242_v45  ;;  %v8332_v45 = vld [vmem:[#allocation11 + $0x1ac] ss:$16 sps:$4 sm:$0xff]  }
 0x35c   :  { %4824 = vmatpush1.bf16.msra.mxu0 %v8237_v46  ;;  %v8327_v46 = vld [vmem:[#allocation11 + $0x1a0] ss:$16 sps:$4 sm:$0xff]  }
 0x35d   :  { %5168 = vmatpush1.bf16.msra.mxu1 %v8240_v47  ;;  %4825 = vmatprep.subr.bf16.mxu0 %v8245_v0  ;;  %v8330_v47 = vld [vmem:[#allocation11 + $0x1a8] ss:$16 sps:$4 sm:$0xff]   ;;  %v8335_v0 = vld [vmem:[#allocation11 + $0x1c4] ss:$16 sps:$4 sm:$0xff]  }
 0x35e   :  { %5169 = vmatprep.subr.bf16.mxu1 %v8248_v30  ;;  %v8338_v30 = vld [vmem:[#allocation11 + $0x1cc] ss:$16 sps:$4 sm:$0xff]  }
 0x360   :  { %4826 = vmatpush1.bf16.msra.mxu0 %v8243_v49  ;;  %v8333_v49 = vld [vmem:[#allocation11 + $0x1c0] ss:$16 sps:$4 sm:$0xff]  }
 0x361   :  { %5170 = vmatpush1.bf16.msra.mxu1 %v8246_v50  ;;  %5984 = vmatprep.subr.bf16.mxu0 %v8251_v13  ;;  %v8336_v50 = vld [vmem:[#allocation11 + $0x1c8] ss:$16 sps:$4 sm:$0xff]   ;;  %v8341_v13 = vld [vmem:[#allocation11 + $0x1e4] ss:$16 sps:$4 sm:$0xff]  }
 0x362   :  { %6070 = vmatprep.subr.bf16.mxu1 %v8254_v27  ;;  %v8344_v27 = vld [vmem:[#allocation11 + $0x1ec] ss:$16 sps:$4 sm:$0xff]  }
 0x363   :  { %4828 = vmatmul.mubr.bf16.vlgmr.msra.gmra.mrb[16].mxu0 %v8992_v37 }
 0x364   :  { %5172 = vmatmul.mubr.bf16.vlgmr.msra.gmra.mrb[16].mxu1 %v8992_v37  ;;  %5985 = vmatpush1.bf16.msra.mxu0 %v8249_v51  ;;  %v8270_v37 = vld [vmem:[#allocation11 + $0x68] ss:$16 sps:$4 sm:$0xff]   ;;  %v8339_v51 = vld [vmem:[#allocation11 + $0x1e0] ss:$16 sps:$4 sm:$0xff]  }
 0x365   :  { %6071 = vmatpush1.bf16.msra.mxu1 %v8252_v52  ;;  %5986 = vmatprep.subr.bf16.mxu0 %v8257_v53  ;;  %v8342_v52 = vld [vmem:[#allocation11 + $0x1e8] ss:$16 sps:$4 sm:$0xff]   ;;  %v8347_v53 = vld [vmem:[#allocation11 + $0x204] ss:$16 sps:$4 sm:$0xff]  }
 0x366   :  { %6072 = vmatprep.subr.bf16.mxu1 %v8260_v55  ;;  %v8350_v55 = vld [vmem:[#allocation11 + $0x20c] ss:$16 sps:$4 sm:$0xff]  }
 0x368   :  { %5987 = vmatpush1.bf16.msra.mxu0 %v8255_v5  ;;  %v1912_v5 = vld [vmem:[#allocation10] sm:$0xf] }
 0x369   :  { %6073 = vmatpush1.bf16.msra.mxu1 %v8258_v56  ;;  %5988 = vmatprep.subr.bf16.mxu0 %v8263_v17  ;;  %v1917_v56 = vrot.slane %v1912_v5, %v8909_v14  ;;  %v1925_v17 = vrot.slane %v1912_v5, %v8919_v18 }
 0x36a   :  { %6074 = vmatprep.subr.bf16.mxu1 %v8266_v6  ;;  %v1921_v6 = vrot.slane %v1912_v5, %v8912_v15 }
 0x36c   :  { %5989 = vmatpush1.bf16.msra.mxu0 %v8261_v57  ;;  %v1929_v57 = vrot.slane %v1912_v5, %v8922_v20  ;;  %v8392_v5 = vld [vmem:[#allocation11 + $0x2ec] ss:$16 sps:$4 sm:$0xff]  }
 0x36d   :  { %6075 = vmatpush1.bf16.msra.mxu1 %v8264_v59  ;;  %5990 = vmatprep.subr.bf16.mxu0 %v8269_v7 }
 0x36e   :  { %6076 = vmatprep.subr.bf16.mxu1 %v8272_v39 }
 0x370   :  { %5991 = vmatpush1.bf16.msra.mxu0 %v8267_v60 }
 0x371   :  { %6077 = vmatpush1.bf16.msra.mxu1 %v8270_v37  ;;  %5992 = vmatprep.subr.bf16.mxu0 %v8275_v62 }
 0x372   :  { %6078 = vmatprep.subr.bf16.mxu1 %v8278_v63 }
 0x374   :  { %5993 = vmatpush1.bf16.msra.mxu0 %v8273_v3 }
 0x375   :  { %6079 = vmatpush1.bf16.msra.mxu1 %v8276_v4  ;;  %5994 = vmatprep.subr.bf16.mxu0 %v8281_v8 }
 0x376   :  { %6080 = vmatprep.subr.bf16.mxu1 %v8284_v9 }
 0x378   :  { %5995 = vmatpush1.bf16.msra.mxu0 %v8279_v10 }
 0x379   :  { %6081 = vmatpush1.bf16.msra.mxu1 %v8282_v11  ;;  %5996 = vmatprep.subr.bf16.mxu0 %v8287_v16 }
 0x37a   :  { %6082 = vmatprep.subr.bf16.mxu1 %v8290_v21 }
 0x37c   :  { %5997 = vmatpush1.bf16.msra.mxu0 %v8285_v19 }
 0x37d   :  { %6083 = vmatpush1.bf16.msra.mxu1 %v8288_v12  ;;  %5998 = vmatprep.subr.bf16.mxu0 %v8293_v22 }
 0x37e   :  { %6084 = vmatprep.subr.bf16.mxu1 %v8296_v44 }
 0x380   :  { %5999 = vmatpush1.bf16.msra.mxu0 %v8291_v23 }
 0x381   :  { %6085 = vmatpush1.bf16.msra.mxu1 %v8294_v25  ;;  %6000 = vmatprep.subr.bf16.mxu0 %v8299_v24 }
 0x382   :  { %6086 = vmatprep.subr.bf16.mxu1 %v8302_v26 }
 0x384   :  { %6001 = vmatpush1.bf16.msra.mxu0 %v8297_v2 }
 0x385   :  { %6087 = vmatpush1.bf16.msra.mxu1 %v8300_v28  ;;  %6002 = vmatprep.subr.bf16.mxu0 %v8305_v29 }
 0x386   :  { %6088 = vmatprep.subr.bf16.mxu1 %v8308_v54 }
 0x388   :  { %6003 = vmatpush1.bf16.msra.mxu0 %v8303_v31  ;;  %v8345_v31 = vld [vmem:[#allocation11 + $0x200] ss:$16 sps:$4 sm:$0xff]  }
 0x389   :  { %6089 = vmatpush1.bf16.msra.mxu1 %v8306_v32  ;;  %6004 = vmatprep.subr.bf16.mxu0 %v8311_v33  ;;  %v8348_v32 = vld [vmem:[#allocation11 + $0x208] ss:$16 sps:$4 sm:$0xff]  }
 0x38a   :  { %6090 = vmatprep.subr.bf16.mxu1 %v8314_v1  ;;  %v8353_v1 = vld [vmem:[#allocation11 + $0x224] ss:$16 sps:$4 sm:$0xff]  }
 0x38c   :  { %6005 = vmatpush1.bf16.msra.mxu0 %v8309_v34  ;;  %v8356_v34 = vld [vmem:[#allocation11 + $0x22c] ss:$16 sps:$4 sm:$0xff]  }
 0x38d   :  { %6091 = vmatpush1.bf16.msra.mxu1 %v8312_v35  ;;  %6006 = vmatprep.subr.bf16.mxu0 %v8317_v36  ;;  %v8351_v35 = vld [vmem:[#allocation11 + $0x220] ss:$16 sps:$4 sm:$0xff]   ;;  %v8354_v36 = vld [vmem:[#allocation11 + $0x228] ss:$16 sps:$4 sm:$0xff]  }
 0x38e   :  { %6092 = vmatprep.subr.bf16.mxu1 %v8320_v61  ;;  %v8359_v61 = vld [vmem:[#allocation11 + $0x244] ss:$16 sps:$4 sm:$0xff]  }
 0x390   :  { %6007 = vmatpush1.bf16.msra.mxu0 %v8315_v48  ;;  %v8362_v48 = vld [vmem:[#allocation11 + $0x24c] ss:$16 sps:$4 sm:$0xff]  }
 0x391   :  { %6093 = vmatpush1.bf16.msra.mxu1 %v8318_v38  ;;  %6008 = vmatprep.subr.bf16.mxu0 %v8323_v40  ;;  %v8357_v38 = vld [vmem:[#allocation11 + $0x240] ss:$16 sps:$4 sm:$0xff]   ;;  %v8360_v40 = vld [vmem:[#allocation11 + $0x248] ss:$16 sps:$4 sm:$0xff]  }
 0x392   :  { %6094 = vmatprep.subr.bf16.mxu1 %v8326_v41  ;;  %v8365_v41 = vld [vmem:[#allocation11 + $0x264] ss:$16 sps:$4 sm:$0xff]  }
 0x394   :  { %6009 = vmatpush1.bf16.msra.mxu0 %v8321_v42  ;;  %v8368_v42 = vld [vmem:[#allocation11 + $0x26c] ss:$16 sps:$4 sm:$0xff]  }
 0x395   :  { %6095 = vmatpush1.bf16.msra.mxu1 %v8324_v43  ;;  %6010 = vmatprep.subr.bf16.mxu0 %v8329_v58  ;;  %v8363_v43 = vld [vmem:[#allocation11 + $0x260] ss:$16 sps:$4 sm:$0xff]   ;;  %v8366_v58 = vld [vmem:[#allocation11 + $0x268] ss:$16 sps:$4 sm:$0xff]  }
 0x396   :  { %6096 = vmatprep.subr.bf16.mxu1 %v8332_v45  ;;  %v8371_v45 = vld [vmem:[#allocation11 + $0x284] ss:$16 sps:$4 sm:$0xff]  }
 0x398   :  { %6011 = vmatpush1.bf16.msra.mxu0 %v8327_v46  ;;  %v8374_v46 = vld [vmem:[#allocation11 + $0x28c] ss:$16 sps:$4 sm:$0xff]  }
 0x399   :  { %6097 = vmatpush1.bf16.msra.mxu1 %v8330_v47  ;;  %6012 = vmatprep.subr.bf16.mxu0 %v8335_v0  ;;  %v8369_v47 = vld [vmem:[#allocation11 + $0x280] ss:$16 sps:$4 sm:$0xff]   ;;  %v8372_v0 = vld [vmem:[#allocation11 + $0x288] ss:$16 sps:$4 sm:$0xff]  }
 0x39a   :  { %6098 = vmatprep.subr.bf16.mxu1 %v8338_v30  ;;  %v8377_v30 = vld [vmem:[#allocation11 + $0x2a4] ss:$16 sps:$4 sm:$0xff]  }
 0x39c   :  { %6013 = vmatpush1.bf16.msra.mxu0 %v8333_v49  ;;  %v8380_v49 = vld [vmem:[#allocation11 + $0x2ac] ss:$16 sps:$4 sm:$0xff]  }
 0x39d   :  { %6099 = vmatpush1.bf16.msra.mxu1 %v8336_v50  ;;  %6014 = vmatprep.subr.bf16.mxu0 %v8341_v13  ;;  %v8375_v50 = vld [vmem:[#allocation11 + $0x2a0] ss:$16 sps:$4 sm:$0xff]   ;;  %v8378_v13 = vld [vmem:[#allocation11 + $0x2a8] ss:$16 sps:$4 sm:$0xff]  }
 0x39e   :  { %6100 = vmatprep.subr.bf16.mxu1 %v8344_v27  ;;  %v8383_v27 = vld [vmem:[#allocation11 + $0x2c4] ss:$16 sps:$4 sm:$0xff]  }
 0x3a0   :  { %6015 = vmatpush1.bf16.msra.mxu0 %v8339_v51  ;;  %v8386_v51 = vld [vmem:[#allocation11 + $0x2cc] ss:$16 sps:$4 sm:$0xff]  }
 0x3a1   :  { %6101 = vmatpush1.bf16.msra.mxu1 %v8342_v52  ;;  %6027 = vmatprep.subr.bf16.mxu0 %v8347_v53  ;;  %v8381_v52 = vld [vmem:[#allocation11 + $0x2c0] ss:$16 sps:$4 sm:$0xff]   ;;  %v8384_v53 = vld [vmem:[#allocation11 + $0x2c8] ss:$16 sps:$4 sm:$0xff]  }
 0x3a2   :  { %6113 = vmatprep.subr.bf16.mxu1 %v8350_v55  ;;  %v8389_v55 = vld [vmem:[#allocation11 + $0x2e4] ss:$16 sps:$4 sm:$0xff]  }
 0x436   :  { %v4829_v59 = vpop.f32.mrb[16].mxu0 }
 0x437   :  { %v7382_v7 = vadd.f32 %v4829_v59, %v1917_v56  ;;  %v5173_v39 = vpop.f32.mrb[16].mxu1  ;;  %v4831_v60 = vpop.f32.mrb[17].mxu0  ;;  %v8393_v59 = vld [vmem:[#allocation11 + $0x300] ss:$16 sps:$4 sm:$0xff]  }
 0x438   :  { %v7386_v37 = vadd.f32 %v5173_v39, %v1925_v17  ;;  %v7383_v62 = vadd.f32 %v4831_v60, %v1921_v6  ;;  %v5175_v63 = vpop.f32.mrb[17].mxu1  ;;  %v4833_v3 = vpop.f32.mrb[18].mxu0  ;;  %v8401_v39 = vld [vmem:[#allocation11 + $0x324] ss:$16 sps:$4 sm:$0xff]   ;;  %v8404_v60 = vld [vmem:[#allocation11 + $0x32c] ss:$16 sps:$4 sm:$0xff]  }
 0x439   :  { %v7387_v4 = vadd.f32 %v5175_v63, %v1929_v57  ;;  %v7384_v8 = vadd.f32 %v4833_v3, %v1917_v56  ;;  %v5177_v9 = vpop.f32.mrb[18].mxu1  ;;  %v4835_v10 = vpop.f32.mrb[19].mxu0  ;;  %v5182_v19 = vmax.f32 %v7382_v7, 0.0  ;;  %v8387_v56 = vld [vmem:[#allocation11 + $0x2e0] ss:$16 sps:$4 sm:$0xff]  }
 0x43a   :  { %v7388_v11 = vadd.f32 %v5177_v9, %v1925_v17  ;;  %v7385_v16 = vadd.f32 %v4835_v10, %v1921_v6  ;;  %v5179_v21 = vpop.f32.mrb[19].mxu1  ;;  %v5184_v44 = vmax.f32 %v7386_v37, 0.0  ;;  %v5183_v23 = vmax.f32 %v7383_v62, 0.0  ;;  %v8390_v17 = vld [vmem:[#allocation11 + $0x2e8] ss:$16 sps:$4 sm:$0xff]  }
 0x43b   :  { %v5186_v12 = vmax.f32 %v7384_v8, 0.0  ;;  %v7389_v22 = vadd.f32 %v5179_v21, %v1929_v57  ;;  %v5185_v26 = vmax.f32 %v7387_v4, 0.0  ;;  %v8395_v6 = vld [vmem:[#allocation11 + $0x304] ss:$16 sps:$4 sm:$0xff]   ;;  %v8398_v57 = vld [vmem:[#allocation11 + $0x30c] ss:$16 sps:$4 sm:$0xff]  }
 0x43c   :  { %v5188_v25 = vmax.f32 %v7388_v11, 0.0  ;;  %v5187_v24 = vmax.f32 %v7385_v16, 0.0  ;;  %v8396_v7 = vld [vmem:[#allocation11 + $0x308] ss:$16 sps:$4 sm:$0xff]   ;;  %v8399_v37 = vld [vmem:[#allocation11 + $0x320] ss:$16 sps:$4 sm:$0xff]  }
 0x43d   :  { %v5190_v2 = vpack.c.bf16 %v5186_v12, %v5182_v19  ;;  %v5189_v28 = vmax.f32 %v7389_v22, 0.0  ;;  %v8402_v62 = vld [vmem:[#allocation11 + $0x328] ss:$16 sps:$4 sm:$0xff]   ;;  %v8407_v63 = vld [vmem:[#allocation11 + $0x344] ss:$16 sps:$4 sm:$0xff]  }
 0x43e   :  { %v9022_v29 = vpack.c.bf16 %v5188_v25, %v5184_v44  ;;  %v5191_v54 = vpack.c.bf16 %v5187_v24, %v5183_v23  ;;  %v8410_v3 = vld [vmem:[#allocation11 + $0x34c] ss:$16 sps:$4 sm:$0xff]   ;;  %v8405_v4 = vld [vmem:[#allocation11 + $0x340] ss:$16 sps:$4 sm:$0xff]   ;;  %v8408_v8 = vld [vmem:[#allocation11 + $0x348] ss:$16 sps:$4 sm:$0xff]  }
 0x43f   :  { %v5193_v33 = vpack.c.bf16 %v5189_v28, %v5185_v26  ;;  %v8413_v9 = vld [vmem:[#allocation11 + $0x364] ss:$16 sps:$4 sm:$0xff]   ;;  %v8416_v10 = vld [vmem:[#allocation11 + $0x36c] ss:$16 sps:$4 sm:$0xff]   ;;  %v8411_v11 = vld [vmem:[#allocation11 + $0x360] ss:$16 sps:$4 sm:$0xff]  }
 0x440   :  { %6016 = vmatprep.mubr.bf16.mxu0 %v5191_v54  ;;  %6102 = vmatprep.mubr.bf16.mxu1 %v5191_v54  ;;  %v8414_v16 = vld [vmem:[#allocation11 + $0x368] ss:$16 sps:$4 sm:$0xff]   ;;  %v8419_v21 = vld [vmem:[#allocation11 + $0x384] ss:$16 sps:$4 sm:$0xff]   ;;  %v8422_v19 = vld [vmem:[#allocation11 + $0x38c] ss:$16 sps:$4 sm:$0xff]  }
 0x441   :  { %6017 = vmatmul.mubr.bf16.vlgmr.msra.gmra.mrb[20].mxu0 %v5190_v2  ;;  %6103 = vmatmul.mubr.bf16.vlgmr.msra.gmra.mrb[20].mxu1 %v5190_v2  ;;  %v8417_v12 = vld [vmem:[#allocation11 + $0x380] ss:$16 sps:$4 sm:$0xff]   ;;  %v8420_v22 = vld [vmem:[#allocation11 + $0x388] ss:$16 sps:$4 sm:$0xff]   ;;  %v8425_v44 = vld [vmem:[#allocation11 + $0x3a4] ss:$16 sps:$4 sm:$0xff]  }
 0x442   :  { %6028 = vmatpush1.bf16.msra.mxu0 %v8345_v31  ;;  %6114 = vmatpush1.bf16.msra.mxu1 %v8348_v32  ;;  %v8428_v23 = vld [vmem:[#allocation11 + $0x3ac] ss:$16 sps:$4 sm:$0xff]   ;;  %v8423_v25 = vld [vmem:[#allocation11 + $0x3a0] ss:$16 sps:$4 sm:$0xff]   ;;  %v8426_v24 = vld [vmem:[#allocation11 + $0x3a8] ss:$16 sps:$4 sm:$0xff]  }
 0x443   :  { %6059 = vmatprep.mubr.bf16.mxu0 %v5193_v33  ;;  %6145 = vmatprep.mubr.bf16.mxu1 %v5193_v33  ;;  %v8431_v26 = vld [vmem:[#allocation11 + $0x3c4] ss:$16 sps:$4 sm:$0xff]   ;;  %v8434_v2 = vld [vmem:[#allocation11 + $0x3cc] ss:$16 sps:$4 sm:$0xff]   ;;  %v8429_v28 = vld [vmem:[#allocation11 + $0x3c0] ss:$16 sps:$4 sm:$0xff]  }
 0x444   :  { %6029 = vmatprep.subr.bf16.mxu0 %v8353_v1  ;;  %6115 = vmatprep.subr.bf16.mxu1 %v8356_v34  ;;  %v8432_v54 = vld [vmem:[#allocation11 + $0x3c8] ss:$16 sps:$4 sm:$0xff]   ;;  %v8437_v31 = vld [vmem:[#allocation11 + $0x3e4] ss:$16 sps:$4 sm:$0xff]   ;;  %v8440_v32 = vld [vmem:[#allocation11 + $0x3ec] ss:$16 sps:$4 sm:$0xff]  }
 0x445   :  { %v8435_v33 = vld [vmem:[#allocation11 + $0x3e0] ss:$16 sps:$4 sm:$0xff]   ;;  %v8438_v1 = vld [vmem:[#allocation11 + $0x3e8] ss:$16 sps:$4 sm:$0xff]  }
 0x446   :  { %6030 = vmatpush1.bf16.msra.mxu0 %v8351_v35  ;;  %6116 = vmatpush1.bf16.msra.mxu1 %v8354_v36  ;;  %v8441_v34 = vld [vmem:[#allocation14 + $0x40] sm:$0xff]  }
 0x447   :  { %6031 = vmatprep.subr.bf16.mxu0 %v8359_v61  ;;  %6117 = vmatprep.subr.bf16.mxu1 %v8362_v48  ;;  %v8442_v35 = vld [vmem:[#allocation14 + $0xc0] sm:$0xff]   ;;  %v8445_v48 = vld [vmem:[#allocation14 + $0x48] sm:$0xff]  }
 0x448   :  { %v8443_v36 = vld [vmem:[#allocation14] sm:$0xff]  }
 0x449   :  { %v8444_v61 = vld [vmem:[#allocation14 + $0x80] sm:$0xff]  }
 0x44a   :  { %6032 = vmatpush1.bf16.msra.mxu0 %v8357_v38  ;;  %6118 = vmatpush1.bf16.msra.mxu1 %v8360_v40  ;;  %v8446_v38 = vld [vmem:[#allocation14 + $0xc8] sm:$0xff]  }
 0x44b   :  { %6033 = vmatprep.subr.bf16.mxu0 %v8365_v41  ;;  %6119 = vmatprep.subr.bf16.mxu1 %v8368_v42  ;;  %v8447_v40 = vld [vmem:[#allocation14 + $0x8] sm:$0xff]   ;;  %v8449_v42 = vld [vmem:[#allocation14 + $0x50] sm:$0xff]  }
 0x44c   :  { %v8448_v41 = vld [vmem:[#allocation14 + $0x88] sm:$0xff]  }
 0x44e   :  { %6034 = vmatpush1.bf16.msra.mxu0 %v8363_v43  ;;  %6120 = vmatpush1.bf16.msra.mxu1 %v8366_v58  ;;  %v8450_v43 = vld [vmem:[#allocation14 + $0xd0] sm:$0xff]  }
 0x44f   :  { %6035 = vmatprep.subr.bf16.mxu0 %v8371_v45  ;;  %6121 = vmatprep.subr.bf16.mxu1 %v8374_v46  ;;  %v8451_v58 = vld [vmem:[#allocation14 + $0x10] sm:$0xff]   ;;  %v8453_v46 = vld [vmem:[#allocation14 + $0x58] sm:$0xff]  }
 0x450   :  { %v8452_v45 = vld [vmem:[#allocation14 + $0x90] sm:$0xff]  }
 0x452   :  { %6036 = vmatpush1.bf16.msra.mxu0 %v8369_v47  ;;  %6122 = vmatpush1.bf16.msra.mxu1 %v8372_v0  ;;  %v8454_v47 = vld [vmem:[#allocation14 + $0xd8] sm:$0xff]  }
 0x453   :  { %6037 = vmatprep.subr.bf16.mxu0 %v8377_v30  ;;  %6123 = vmatprep.subr.bf16.mxu1 %v8380_v49  ;;  %v8455_v0 = vld [vmem:[#allocation14 + $0x18] sm:$0xff]   ;;  %v8457_v30 = vld [vmem:[#allocation14 + $0x60] sm:$0xff]  }
 0x454   :  { %v8458_v49 = vld [vmem:[#allocation14 + $0xe0] sm:$0xff]  }
 0x456   :  { %6038 = vmatpush1.bf16.msra.mxu0 %v8375_v50  ;;  %6124 = vmatpush1.bf16.msra.mxu1 %v8378_v13  ;;  %v8459_v50 = vld [vmem:[#allocation14 + $0x20] sm:$0xff]  }
 0x457   :  { %6039 = vmatprep.subr.bf16.mxu0 %v8383_v27  ;;  %6125 = vmatprep.subr.bf16.mxu1 %v8386_v51  ;;  %v8460_v13 = vld [vmem:[#allocation14 + $0xa0] sm:$0xff]   ;;  %v8461_v27 = vld [vmem:[#allocation14 + $0x68] sm:$0xff]  }
 0x458   :  { %v8462_v51 = vld [vmem:[#allocation14 + $0xe8] sm:$0xff]  }
 0x45a   :  { %6040 = vmatpush1.bf16.msra.mxu0 %v8381_v52  ;;  %6126 = vmatpush1.bf16.msra.mxu1 %v8384_v53  ;;  %v8463_v52 = vld [vmem:[#allocation14 + $0x28] sm:$0xff]  }
 0x45b   :  { %6041 = vmatprep.subr.bf16.mxu0 %v8389_v55  ;;  %6127 = vmatprep.subr.bf16.mxu1 %v8392_v5  ;;  %v8464_v53 = vld [vmem:[#allocation14 + $0xa8] sm:$0xff]   ;;  %v8465_v55 = vld [vmem:[#allocation14 + $0x70] sm:$0xff]  }
 0x45c   :  { %v8466_v5 = vld [vmem:[#allocation14 + $0xf0] sm:$0xff]  }
 0x45e   :  { %6042 = vmatpush1.bf16.msra.mxu0 %v8387_v56  ;;  %6128 = vmatpush1.bf16.msra.mxu1 %v8390_v17  ;;  %v8467_v56 = vld [vmem:[#allocation14 + $0x30] sm:$0xff]  }
 0x45f   :  { %6043 = vmatprep.subr.bf16.mxu0 %v8395_v6  ;;  %6129 = vmatprep.subr.bf16.mxu1 %v8398_v57  ;;  %v8468_v17 = vld [vmem:[#allocation14 + $0xb0] sm:$0xff]   ;;  %v8469_v6 = vld [vmem:[#allocation14 + $0x78] sm:$0xff]  }
 0x460   :  { %v8470_v57 = vld [vmem:[#allocation14 + $0xf8] sm:$0xff]  }
 0x462   :  { %6044 = vmatpush1.bf16.msra.mxu0 %v8393_v59  ;;  %6130 = vmatpush1.bf16.msra.mxu1 %v8396_v7  ;;  %v8471_v59 = vld [vmem:[#allocation14 + $0x38] sm:$0xff]  }
 0x463   :  { %6045 = vmatprep.subr.bf16.mxu0 %v8401_v39  ;;  %6131 = vmatprep.subr.bf16.mxu1 %v8404_v60  ;;  %v8472_v7 = vld [vmem:[#allocation14 + $0xb8] sm:$0xff]  }
 0x464   :  { %v5322_v39 = vld [vmem:[#allocation13] sm:$0xf] }
 0x465   :  { %v5327_v60 = vrot.slane %v5322_v39, %v8909_v14 }
 0x466   :  { %6046 = vmatpush1.bf16.msra.mxu0 %v8399_v37  ;;  %6132 = vmatpush1.bf16.msra.mxu1 %v8402_v62  ;;  %v5335_v37 = vrot.slane %v5322_v39, %v8919_v18  ;;  %v5331_v62 = vrot.slane %v5322_v39, %v8912_v15 }
 0x467   :  { %6047 = vmatprep.subr.bf16.mxu0 %v8407_v63  ;;  %6133 = vmatprep.subr.bf16.mxu1 %v8410_v3  ;;  %v5339_v63 = vrot.slane %v5322_v39, %v8922_v20 }
 0x46a   :  { %6048 = vmatpush1.bf16.msra.mxu0 %v8405_v4  ;;  %6134 = vmatpush1.bf16.msra.mxu1 %v8408_v8 }
 0x46b   :  { %6049 = vmatprep.subr.bf16.mxu0 %v8413_v9  ;;  %6135 = vmatprep.subr.bf16.mxu1 %v8416_v10 }
 0x46e   :  { %6050 = vmatpush1.bf16.msra.mxu0 %v8411_v11  ;;  %6136 = vmatpush1.bf16.msra.mxu1 %v8414_v16 }
 0x46f   :  { %6051 = vmatprep.subr.bf16.mxu0 %v8419_v21  ;;  %6137 = vmatprep.subr.bf16.mxu1 %v8422_v19 }
 0x472   :  { %6052 = vmatpush1.bf16.msra.mxu0 %v8417_v12  ;;  %6138 = vmatpush1.bf16.msra.mxu1 %v8420_v22 }
 0x473   :  { %6053 = vmatprep.subr.bf16.mxu0 %v8425_v44  ;;  %6139 = vmatprep.subr.bf16.mxu1 %v8428_v23 }
 0x476   :  { %6054 = vmatpush1.bf16.msra.mxu0 %v8423_v25  ;;  %6140 = vmatpush1.bf16.msra.mxu1 %v8426_v24 }
 0x477   :  { %6055 = vmatprep.subr.bf16.mxu0 %v8431_v26  ;;  %6141 = vmatprep.subr.bf16.mxu1 %v8434_v2 }
 0x47a   :  { %6056 = vmatpush1.bf16.msra.mxu0 %v8429_v28  ;;  %6142 = vmatpush1.bf16.msra.mxu1 %v8432_v54 }
 0x47b   :  { %6057 = vmatprep.subr.bf16.mxu0 %v8437_v31  ;;  %6143 = vmatprep.subr.bf16.mxu1 %v8440_v32 }
 0x47e   :  { %6058 = vmatpush1.bf16.msra.mxu0 %v8435_v33  ;;  %6144 = vmatpush1.bf16.msra.mxu1 %v8438_v1 }
 0x47f   :  { %7338 = vmatprep.subr.bf16.mxu0 %v8441_v34  ;;  %7360 = vmatprep.subr.bf16.mxu1 %v8442_v35 }
 0x481   :  { %6060 = vmatmul.mubr.bf16.vlgmr.msra.gmra.mrb[20].mxu0 %v9022_v29  ;;  %6146 = vmatmul.mubr.bf16.vlgmr.msra.gmra.mrb[20].mxu1 %v9022_v29  ;;  %v8456_v29 = vld [vmem:[#allocation14 + $0x98] sm:$0xff]  }
 0x482   :  { %7339 = vmatpush3.bf16.msra.mxu0 %v8443_v36  ;;  %7361 = vmatpush3.bf16.msra.mxu1 %v8444_v61  ;;  %v7305_v61 = vld [vmem:[#allocation16] ss:$0 sm:$0xff] }
 0x483   :  { %7340 = vmatprep.subr.bf16.mxu0 %v8445_v48  ;;  %7362 = vmatprep.subr.bf16.mxu1 %v8446_v38 }
 0x486   :  { %7341 = vmatpush3.bf16.msra.mxu0 %v8447_v40  ;;  %7363 = vmatpush3.bf16.msra.mxu1 %v8448_v41 }
 0x487   :  { %7342 = vmatprep.subr.bf16.mxu0 %v8449_v42  ;;  %7364 = vmatprep.subr.bf16.mxu1 %v8450_v43 }
 0x48a   :  { %7343 = vmatpush3.bf16.msra.mxu0 %v8451_v58  ;;  %7365 = vmatpush3.bf16.msra.mxu1 %v8452_v45 }
 0x48b   :  { %7344 = vmatprep.subr.bf16.mxu0 %v8453_v46  ;;  %7366 = vmatprep.subr.bf16.mxu1 %v8454_v47 }
 0x48e   :  { %7345 = vmatpush3.bf16.msra.mxu0 %v8455_v0  ;;  %7367 = vmatpush3.bf16.msra.mxu1 %v8456_v29 }
 0x48f   :  { %7346 = vmatprep.subr.bf16.mxu0 %v8457_v30  ;;  %7368 = vmatprep.subr.bf16.mxu1 %v8458_v49 }
 0x492   :  { %7347 = vmatpush3.bf16.msra.mxu0 %v8459_v50  ;;  %7369 = vmatpush3.bf16.msra.mxu1 %v8460_v13 }
 0x493   :  { %7348 = vmatprep.subr.bf16.mxu0 %v8461_v27  ;;  %7370 = vmatprep.subr.bf16.mxu1 %v8462_v51 }
 0x496   :  { %7349 = vmatpush3.bf16.msra.mxu0 %v8463_v52  ;;  %7371 = vmatpush3.bf16.msra.mxu1 %v8464_v53 }
 0x497   :  { %7350 = vmatprep.subr.bf16.mxu0 %v8465_v55  ;;  %7372 = vmatprep.subr.bf16.mxu1 %v8466_v5 }
 0x49a   :  { %7351 = vmatpush3.bf16.msra.mxu0 %v8467_v56  ;;  %7373 = vmatpush3.bf16.msra.mxu1 %v8468_v17 }
 0x49b   :  { %7352 = vmatprep.subr.bf16.mxu0 %v8469_v6  ;;  %7374 = vmatprep.subr.bf16.mxu1 %v8470_v57 }
 0x49e   :  { %7353 = vmatpush3.bf16.msra.mxu0 %v8471_v59  ;;  %7375 = vmatpush3.bf16.msra.mxu1 %v8472_v7 }
 0x554   :  { %v6061_v3 = vpop.f32.mrb[20].mxu0  ;;  %v6147_v4 = vpop.f32.mrb[20].mxu1 }
 0x555   :  { %v7390_v8 = vadd.f32 %v6061_v3, %v5327_v60  ;;  %v7394_v9 = vadd.f32 %v6147_v4, %v5335_v37  ;;  %v6063_v10 = vpop.f32.mrb[21].mxu0  ;;  %v6149_v11 = vpop.f32.mrb[21].mxu1 }
 0x556   :  { %v7391_v16 = vadd.f32 %v6063_v10, %v5331_v62  ;;  %v7395_v21 = vadd.f32 %v6149_v11, %v5339_v63  ;;  %v6065_v19 = vpop.f32.mrb[22].mxu0  ;;  %v6151_v12 = vpop.f32.mrb[22].mxu1 }
 0x557   :  { %v7392_v22 = vadd.f32 %v6065_v19, %v5327_v60  ;;  %v7396_v44 = vadd.f32 %v6151_v12, %v5335_v37  ;;  %v6067_v23 = vpop.f32.mrb[23].mxu0  ;;  %v6153_v14 = vpop.f32.mrb[23].mxu1  ;;  %v6156_v24 = vmax.f32 %v7390_v8, 0.0  ;;  %v6158_v15 = vmax.f32 %v7394_v9, 0.0 }
 0x558   :  { %v7393_v25 = vadd.f32 %v6067_v23, %v5331_v62  ;;  %v7397_v18 = vadd.f32 %v6153_v14, %v5339_v63  ;;  %v6157_v2 = vmax.f32 %v7391_v16, 0.0  ;;  %v6159_v28 = vmax.f32 %v7395_v21, 0.0 }
 0x559   :  { %v6160_v26 = vmax.f32 %v7392_v22, 0.0  ;;  %v6162_v20 = vmax.f32 %v7396_v44, 0.0 }
 0x55a   :  { %v6161_v54 = vmax.f32 %v7393_v25, 0.0  ;;  %v6163_v31 = vmax.f32 %v7397_v18, 0.0 }
 0x55b   :  { %v6164_v32 = vpack.c.bf16 %v6160_v26, %v6156_v24  ;;  %v6166_v33 = vpack.c.bf16 %v6162_v20, %v6158_v15 }
 0x55c   :  { %v6165_v1 = vpack.c.bf16 %v6161_v54, %v6157_v2  ;;  %v6167_v34 = vpack.c.bf16 %v6163_v31, %v6159_v28 }
 0x55e   :  { %6463 = vmatprep.mubr.bf16.mxu0 %v6165_v1  ;;  %6504 = vmatprep.mubr.bf16.mxu1 %v6167_v34 }
 0x55f   :  { %6464 = vmatmul.mubr.bf16.vlgmr.msra.gmra.mrb[24].mxu0 %v6164_v32  ;;  %6505 = vmatmul.mubr.bf16.vlgmr.msra.gmra.mrb[24].mxu1 %v6166_v33 }
 0x632   :  { %v7354_v35 = vpop.f32.mrb[24].mxu0  ;;  %v7376_v36 = vpop.f32.mrb[24].mxu1 }
 0x633   :  { %v7355_v48 = vpop.f32.mrb[25].mxu0  ;;  %v7377_v38 = vpop.f32.mrb[25].mxu1 }
 0x634   :  { %v7356_v40 = vadd.f32 %v7355_v48, %v7354_v35  ;;  %v7378_v41 = vadd.f32 %v7377_v38, %v7376_v36  ;;  %v7357_v42 = vpop.f32.mrb[26].mxu0  ;;  %v7379_v43 = vpop.f32.mrb[26].mxu1 }
 0x635   :  { %v7358_v58 = vpop.f32.mrb[27].mxu0  ;;  %v7380_v45 = vpop.f32.mrb[27].mxu1 }
 0x636   :  { %v6466_v46 = vadd.f32 %v7356_v40, %v7305_v61  ;;  %v7359_v47 = vadd.f32 %v7358_v58, %v7357_v42  ;;  %v7381_v0 = vadd.f32 %v7380_v45, %v7379_v43 }
 0x638   :  { %v6507_v29 = vadd.f32 %v7378_v41, %v6466_v46  ;;  %v6469_v30 = vadd.f32 %v7359_v47, %v7305_v61 }
 0x63a   :  { %6513 = vst [vmem:[#allocation17] sm:$0xff] %v6507_v29  ;;  %v6510_v49 = vadd.f32 %v7381_v0, %v6469_v30 }
 0x63c   :  { %6514 = vst [vmem:[#allocation17 + $0x8] sm:$0xff] %v6510_v49 }
 0x63d   :  { %8683 = shalt.err (!%p8680_p6)
}
 0x63e   :  { %s8684_s22 = scalar_lea.hbm %s9051_s9, 256 }
 0x63f   :  { %p8685_p7 = scmp.ne.s32.totalorder %s9051_s9, %s8684_s22  ;;  %p8688_p8 = scmp.lt.u32.totalorder %s8684_s22, %s9051_s9 }
 0x641   :  { %p8690_p9 = pnand %p8688_p8, %p8685_p7 }
 0x643   :  { %8693 = shalt.err (!%p8690_p9)
}
 0x644   :  { %s8722_s30 = smov 128   ;;  %s8723_s11 = smov 8  }
 0x645   :  { %6526 = dma.vmem_to_hbm [thread:$0]  %s6521_s27, 256, %s9051_s9, [#allocation4], %s8722_s30, %s8722_s30, %s8723_s11  }
 0x646   :  { %8704 = dma.done.wait [#allocation4], 256  }
 0x647   :  { %8705 = vsyncadd [#allocation4], 4294967040 }
 0x648   :  { %6530 = vsyncpa [#allocation3], 1 }
 0x649   :  { %6531 = vsyncpa [#allocation6], 1 }
 0x64a   :  { %6532 = vsyncpa [#allocation9], 1 }
 0x64b   :  { %6533 = vsyncpa [#allocation12], 1 }
 0x64c   :  { %6534 = vsyncpa [#allocation15], 1 }
 0x64d   :  { %6535 = vsyncpa [#allocation4], 1 }

</bundles_post_ra>
